<compile_context>
chip_gen: v7x
topology: tpu7x:2x2x1
jax: 0.10.0
libtpu: 0.0.40
codegen_flags: <defaults>
</compile_context>

<pallas_src>
import functools

import jax
import jax.numpy as jnp
from jax import lax
from jax.experimental import pallas as pl
from jax.experimental.pallas import tpu as pltpu


# --------------------------- fused Pallas kernel ---------------------------

def _mnist_kernel(pe_ref, po_ref, w1_ref, b1_ref, w2_ref, b2_ref,
                  w3_ref, b3_ref, w4_ref, b4_ref, out_ref,
                  c1h_scr, p1_scr, c2_scr, *, bt):
    f32 = jnp.float32
    bf16 = jnp.bfloat16

    # ---- conv1 as two bf16 MXU dots over the w-parity-split patch streams ----
    # max over parity == 2x2 max-pool along W (shared bias, monotone ReLU).
    c1e = jnp.dot(pe_ref[...], w1_ref[...], preferred_element_type=f32)
    c1o = jnp.dot(po_ref[...], w1_ref[...], preferred_element_type=f32)
    c1 = jnp.maximum(jnp.maximum(c1e, c1o) + b1_ref[...], 0.0)   # (bt*288,128)
    # rows are (b, h, w2); each 24-row slab holds the H pair (h=2t, h=2t+1)
    c1h_scr[...] = c1.reshape(bt * 12, 24, 128)

    # ---- pool1 H direction: max of the two 12-row halves of each slab ----
    p1 = jnp.maximum(c1h_scr[:, 0:12, :], c1h_scr[:, 12:24, :])  # (bt*12,12,128)
    p1_scr[...] = p1.reshape(bt, 12, 12, 128)                    # [b, h2, w2, c]

    # ---- conv2: single MXU contraction, K = 25 taps * 128 channels = 3200 ----
    cols = []
    for kh in range(5):
        for kw in range(5):
            w = p1_scr[:, kh:kh + 8, kw:kw + 8, :]               # (bt,8,8,128) f32
            cols.append(w.reshape(bt * 64, 128).astype(bf16))
    lhs2 = jnp.concatenate(cols, axis=-1)                        # (bt*64, 3200) bf16
    c2 = jnp.dot(lhs2, w2_ref[...], preferred_element_type=f32)  # (bt*64, 128)
    c2 = jnp.maximum(c2 + b2_ref[...], 0.0)
    c2_scr[...] = c2.reshape(bt, 8, 8, 128)                      # [b, ho, wo, c]

    # ---- pool2 + fc1: one MXU contraction with K = 16*128 = 2048 ----
    pieces = []
    for h2 in range(4):
        for w2 in range(4):
            m00 = c2_scr[:, 2 * h2,     2 * w2,     :]
            m01 = c2_scr[:, 2 * h2,     2 * w2 + 1, :]
            m10 = c2_scr[:, 2 * h2 + 1, 2 * w2,     :]
            m11 = c2_scr[:, 2 * h2 + 1, 2 * w2 + 1, :]
            pieces.append(jnp.maximum(jnp.maximum(m00, m01),
                                      jnp.maximum(m10, m11)))    # (bt,128)
    lhs3 = jnp.concatenate(pieces, axis=-1).astype(bf16)         # (bt, 2048)
    hidden = jnp.dot(lhs3, w3_ref[...], preferred_element_type=f32) + b3_ref[...]
    hidden = jnp.maximum(hidden, 0.0)                            # (bt, 512) f32

    # ---- fc2 + log_softmax (padded logits carry a -1e30 bias -> masked) ----
    logits = jnp.dot(hidden.astype(bf16), w4_ref[...],
                     preferred_element_type=f32) + b4_ref[...]
    m = jnp.max(logits, axis=-1, keepdims=True)
    lse = m + jnp.log(jnp.sum(jnp.exp(logits - m), axis=-1, keepdims=True))
    out_ref[...] = (logits - lse).astype(out_ref.dtype)


# ------------------------------ JAX wrapper --------------------------------

def _conv1_patches(x):
    """x: (N,28,28) f32 -> two bf16 im2col streams split by output-col parity.

    Row order (image, out-row h, half-col w2); column = kh*5+kw, padded 25->32.
    """
    cols = [x[:, kh:kh + 24, kw:kw + 24] for kh in range(5) for kw in range(5)]
    p = jnp.stack(cols, axis=-1)                          # (N, 24, 24, 25)
    p = jnp.pad(p, ((0, 0), (0, 0), (0, 0), (0, 7)))      # K 25 -> 32 (128B rows)
    pe = p[:, :, 0::2, :].reshape(-1, 32).astype(jnp.bfloat16)   # w even
    po = p[:, :, 1::2, :].reshape(-1, 32).astype(jnp.bfloat16)   # w odd
    return pe, po


def _pack_params(params):
    f32, bf16 = jnp.float32, jnp.bfloat16
    # conv1 (20,1,5,5) -> (32,128): row = kh*5+kw (padded), col = cout (padded)
    w1 = jnp.transpose(params["conv1_w"][:, 0], (1, 2, 0)).reshape(25, 20)
    w1 = jnp.pad(w1, ((0, 7), (0, 108))).astype(bf16)
    b1 = jnp.pad(params["conv1_b"], (0, 108)).reshape(1, 128).astype(f32)
    # conv2 (50,20,5,5) -> (25,128,128) [tap,cin,cout] -> (3200,128)
    w2 = jnp.transpose(params["conv2_w"], (2, 3, 1, 0)).reshape(25, 20, 50)
    w2 = jnp.pad(w2, ((0, 0), (0, 108), (0, 78))).reshape(3200, 128).astype(bf16)
    b2 = jnp.pad(params["conv2_b"], (0, 78)).reshape(1, 128).astype(f32)
    # fc1 (800,500); input index = c*16+h*4+w  ->  (16,128,512) [(h*4+w),c,out]
    w3 = params["fc1_w"].reshape(50, 4, 4, 500).transpose(1, 2, 0, 3)
    w3 = w3.reshape(16, 50, 500)
    w3 = jnp.pad(w3, ((0, 0), (0, 78), (0, 12))).reshape(2048, 512).astype(bf16)
    b3 = jnp.pad(params["fc1_b"], (0, 12)).reshape(1, 512).astype(f32)
    # fc2 (500,10) -> (512,128); padded logits masked via -1e30 bias
    w4 = jnp.pad(params["fc2_w"], ((0, 12), (0, 118))).astype(bf16)
    b4 = jnp.concatenate([params["fc2_b"].astype(f32),
                          jnp.full((118,), -1e30, f32)]).reshape(1, 128)
    return w1, b1, w2, b2, w3, b3, w4, b4


def _const_spec(shape):
    """Full-block, constant-index spec; single-buffered when supported."""
    index_map = lambda i: (0,) * len(shape)
    try:
        return pl.BlockSpec(shape, index_map, pipeline_mode=pl.Buffered(1))
    except Exception:
        return pl.BlockSpec(shape, index_map)


def _select_tiling(n):
    """Pick batch tile / VMEM limit per chip generation (v7x has 64 MiB/TC)."""
    try:
        info = pltpu.get_tpu_info()
        vmem_cap = int(getattr(info, "vmem_capacity_bytes", 64 * 1024 * 1024))
    except Exception:
        vmem_cap = 64 * 1024 * 1024
    big_vmem = vmem_cap >= 100 * 1024 * 1024          # v5e/v6e (128 MiB)
    target_bt = 32 if big_vmem else 16                # cap bt on v7x
    bt = max(1, min(target_bt, n))
    vmem_limit = min(96 * 1024 * 1024, int(vmem_cap * 0.85))
    return bt, vmem_limit


def mnistnet_forward(x_nchw, params):
    n = x_nchw.shape[0]
    bt, vmem_limit = _select_tiling(n)
    npad = ((n + bt - 1) // bt) * bt

    x = x_nchw[:, 0, :, :].astype(jnp.float32)            # (N, 28, 28)
    if npad != n:
        x = jnp.pad(x, ((0, npad - n), (0, 0), (0, 0)))
    pe, po = _conv1_patches(x)                            # (npad*288, 32) each

    w1, b1, w2, b2, w3, b3, w4, b4 = _pack_params(params)

    grid = (npad // bt,)
    out = pl.pallas_call(
        functools.partial(_mnist_kernel, bt=bt),
        out_shape=jax.ShapeDtypeStruct((npad, 128), jnp.float32),
        grid=grid,
        in_specs=[
            pl.BlockSpec((bt * 288, 32), lambda i: (i, 0)),   # patches, w even
            pl.BlockSpec((bt * 288, 32), lambda i: (i, 0)),   # patches, w odd
            _const_spec((32, 128)),      # w1
            _const_spec((1, 128)),       # b1
            _const_spec((3200, 128)),    # w2
            _const_spec((1, 128)),       # b2
            _const_spec((2048, 512)),    # w3 (fc1)
            _const_spec((1, 512)),       # b3
            _const_spec((512, 128)),     # w4 (fc2)
            _const_spec((1, 128)),       # b4 (+ -1e30 pad mask)
        ],
        out_specs=pl.BlockSpec((bt, 128), lambda i: (i, 0)),
        scratch_shapes=[
            pltpu.VMEM((bt * 12, 24, 128), jnp.float32),   # conv1, W-pooled
            pltpu.VMEM((bt, 12, 12, 128), jnp.float32),    # pool1 out
            pltpu.VMEM((bt, 8, 8, 128), jnp.float32),      # conv2 out
        ],
        compiler_params=pltpu.CompilerParams(
            dimension_semantics=("parallel",),
            vmem_limit_bytes=vmem_limit,
        ),
    )(pe, po, w1, b1, w2, b2, w3, b3, w4, b4)

    return out[:n, :10]                                   # (N, 10) log-probs


# --------------------------- reference & params ----------------------------

def _reference_forward(x_nchw, params):
    """Pure-JAX (XLA) reference matching the PyTorch module semantics."""
    dn = ("NCHW", "OIHW", "NCHW")
    x = lax.conv_general_dilated(x_nchw, params["conv1_w"], (1, 1), "VALID",
                                 dimension_numbers=dn)
    x = jax.nn.relu(x + params["conv1_b"][None, :, None, None])
    x = lax.reduce_window(x, -jnp.inf, lax.max, (1, 1, 2, 2), (1, 1, 2, 2), "VALID")
    x = lax.conv_general_dilated(x, params["conv2_w"], (1, 1), "VALID",
                                 dimension_numbers=dn)
    x = jax.nn.relu(x + params["conv2_b"][None, :, None, None])
    x = lax.reduce_window(x, -jnp.inf, lax.max, (1, 1, 2, 2), (1, 1, 2, 2), "VALID")
    x = x.reshape(x.shape[0], -1)                          # NCHW flatten -> (N, 800)
    x = jax.nn.relu(x @ params["fc1_w"] + params["fc1_b"])
    x = x @ params["fc2_w"] + params["fc2_b"]
    return jax.nn.log_softmax(x, axis=-1)


def init_params(key):
    ks = jax.random.split(key, 8)
    s = 0.1
    return {
        # conv weights in PyTorch layout (O, I, kh, kw)
        "conv1_w": s * jax.random.normal(ks[0], (20, 1, 5, 5), jnp.float32),
        "conv1_b": s * jax.random.normal(ks[1], (20,), jnp.float32),
        "conv2_w": s * jax.random.normal(ks[2], (50, 20, 5, 5), jnp.float32),
        "conv2_b": s * jax.random.normal(ks[3], (50,), jnp.float32),
        # fc weights in matmul layout (in, out); fc1 "in" uses NCHW flatten order
        "fc1_w": s * jax.random.normal(ks[4], (4 * 4 * 50, 500), jnp.float32),
        "fc1_b": s * jax.random.normal(ks[5], (500,), jnp.float32),
        "fc2_w": s * jax.random.normal(ks[6], (500, 10), jnp.float32),
        "fc2_b": s * jax.random.normal(ks[7], (10,), jnp.float32),
    }


if __name__ == "__main__":
    key = jax.random.PRNGKey(0)
    k_x, k_p = jax.random.split(key)
    # MNIST-shaped input is required by the fc1 size (4*4*50); small batch = 2.
    x = jax.random.normal(k_x, (2, 1, 28, 28), jnp.float32)
    params = init_params(k_p)

    out = jax.jit(mnistnet_forward)(x, params)
    out = jax.block_until_ready(out)

    assert out.shape == (2, 10)
    # log_softmax rows must sum to ~1 in probability space
    assert jnp.allclose(jnp.sum(jnp.exp(out), axis=1), 1.0, atol=1e-4)

    # Reference with bf16-rounded params/input (kernel uses bf16 MXU operands);
    # any structural/layout bug would produce O(1) errors, far above 0.1.
    bf = lambda a: a.astype(jnp.bfloat16).astype(jnp.float32)
    params_q = jax.tree_util.tree_map(bf, params)
    ref = jax.jit(_reference_forward)(bf(x), params_q)
    assert jnp.allclose(out, ref, atol=1e-1, rtol=1e-1), \
        float(jnp.max(jnp.abs(out - ref)))
    print("KERNEL_OK")
</pallas_src>

<mosaic_0001>
module attributes {stable_mosaic.version = 11 : i64} {
  func.func @_mnist_kernel(%arg0: i32, %arg1: memref<576x32xbf16, #tpu.memory_space<vmem>>, %arg2: memref<576x32xbf16, #tpu.memory_space<vmem>>, %arg3: memref<32x128xbf16, #tpu.memory_space<vmem>>, %arg4: memref<1x128xf32, #tpu.memory_space<vmem>>, %arg5: memref<3200x128xbf16, #tpu.memory_space<vmem>>, %arg6: memref<1x128xf32, #tpu.memory_space<vmem>>, %arg7: memref<2048x512xbf16, #tpu.memory_space<vmem>>, %arg8: memref<1x512xf32, #tpu.memory_space<vmem>>, %arg9: memref<512x128xbf16, #tpu.memory_space<vmem>>, %arg10: memref<1x128xf32, #tpu.memory_space<vmem>>, %arg11: memref<2x128xf32, #tpu.memory_space<vmem>>, %arg12: memref<24x24x128xf32, #tpu.memory_space<vmem>>, %arg13: memref<2x12x12x128xf32, #tpu.memory_space<vmem>>, %arg14: memref<2x8x8x128xf32, #tpu.memory_space<vmem>>) attributes {dimension_semantics = [#tpu.dimension_semantics<parallel>], iteration_bounds = array<i64: 1>, scalar_prefetch = 0 : i64, scratch_operands = 3 : i64, tpu.core_type = #tpu.core_type<tc>, window_params = [{transform_indices = @transform_0, window_bounds = array<i64: 576, 32>}, {transform_indices = @transform_1, window_bounds = array<i64: 576, 32>}, {pipeline_mode = #tpu.pipeline_mode<synchronous>, transform_indices = @transform_2, window_bounds = array<i64: 32, 128>}, {pipeline_mode = #tpu.pipeline_mode<synchronous>, transform_indices = @transform_3, window_bounds = array<i64: 1, 128>}, {pipeline_mode = #tpu.pipeline_mode<synchronous>, transform_indices = @transform_4, window_bounds = array<i64: 3200, 128>}, {pipeline_mode = #tpu.pipeline_mode<synchronous>, transform_indices = @transform_5, window_bounds = array<i64: 1, 128>}, {pipeline_mode = #tpu.pipeline_mode<synchronous>, transform_indices = @transform_6, window_bounds = array<i64: 2048, 512>}, {pipeline_mode = #tpu.pipeline_mode<synchronous>, transform_indices = @transform_7, window_bounds = array<i64: 1, 512>}, {pipeline_mode = #tpu.pipeline_mode<synchronous>, transform_indices = @transform_8, window_bounds = array<i64: 512, 128>}, {pipeline_mode = #tpu.pipeline_mode<synchronous>, transform_indices = @transform_9, window_bounds = array<i64: 1, 128>}, {transform_indices = @transform_10, window_bounds = array<i64: 2, 128>}]} {
    %c0 = arith.constant 0 : index
    %c0_0 = arith.constant 0 : index
    %0 = vector.load %arg1[%c0, %c0_0] : memref<576x32xbf16, #tpu.memory_space<vmem>>, vector<576x32xbf16>
    %c0_1 = arith.constant 0 : index
    %c0_2 = arith.constant 0 : index
    %1 = vector.load %arg3[%c0_1, %c0_2] : memref<32x128xbf16, #tpu.memory_space<vmem>>, vector<32x128xbf16>
    %cst = arith.constant dense<0.000000e+00> : vector<576x128xf32>
    %2 = tpu.matmul %0, %1, %cst {dimension_numbers = #tpu.dot_dimension_numbers<[1], [0], [0], [1], [0, 0, 1, 1], [], []>} : vector<576x32xbf16>, vector<32x128xbf16>, vector<576x128xf32> -> vector<576x128xf32>
    %c0_3 = arith.constant 0 : index
    %c0_4 = arith.constant 0 : index
    %3 = vector.load %arg2[%c0_3, %c0_4] : memref<576x32xbf16, #tpu.memory_space<vmem>>, vector<576x32xbf16>
    %c0_5 = arith.constant 0 : index
    %c0_6 = arith.constant 0 : index
    %4 = vector.load %arg3[%c0_5, %c0_6] : memref<32x128xbf16, #tpu.memory_space<vmem>>, vector<32x128xbf16>
    %cst_7 = arith.constant dense<0.000000e+00> : vector<576x128xf32>
    %5 = tpu.matmul %3, %4, %cst_7 {dimension_numbers = #tpu.dot_dimension_numbers<[1], [0], [0], [1], [0, 0, 1, 1], [], []>} : vector<576x32xbf16>, vector<32x128xbf16>, vector<576x128xf32> -> vector<576x128xf32>
    %6 = arith.maximumf %2, %5 : vector<576x128xf32>
    %c0_8 = arith.constant 0 : index
    %c0_9 = arith.constant 0 : index
    %7 = vector.load %arg4[%c0_8, %c0_9] : memref<1x128xf32, #tpu.memory_space<vmem>>, vector<1x128xf32>
    %8 = vector.broadcast %7 : vector<1x128xf32> to vector<576x128xf32>
    %9 = arith.addf %6, %8 : vector<576x128xf32>
    %cst_10 = arith.constant 0.000000e+00 : f32
    %10 = vector.broadcast %cst_10 : f32 to vector<576x128xf32>
    %11 = arith.maximumf %9, %10 : vector<576x128xf32>
    %12 = vector.shape_cast %11 : vector<576x128xf32> to vector<24x24x128xf32>
    %c0_11 = arith.constant 0 : index
    %c0_12 = arith.constant 0 : index
    %c0_13 = arith.constant 0 : index
    %13 = vector.load %arg12[%c0_11, %c0_12, %c0_13] : memref<24x24x128xf32, #tpu.memory_space<vmem>>, vector<24x24x128xf32>
    tpu.vector_store %arg12[%c0_11, %c0_12, %c0_13], %12 {strides = array<i32>} : memref<24x24x128xf32, #tpu.memory_space<vmem>>, vector<24x24x128xf32>,
    %c0_14 = arith.constant 0 : index
    %c0_15 = arith.constant 0 : index
    %c0_16 = arith.constant 0 : index
    %14 = vector.load %arg12[%c0_14, %c0_15, %c0_16] : memref<24x24x128xf32, #tpu.memory_space<vmem>>, vector<24x12x128xf32>
    %c0_17 = arith.constant 0 : index
    %c12 = arith.constant 12 : index
    %c0_18 = arith.constant 0 : index
    %15 = vector.load %arg12[%c0_17, %c12, %c0_18] : memref<24x24x128xf32, #tpu.memory_space<vmem>>, vector<24x12x128xf32>
    %16 = arith.maximumf %14, %15 : vector<24x12x128xf32>
    %17 = vector.shape_cast %16 : vector<24x12x128xf32> to vector<2x12x12x128xf32>
    %c0_19 = arith.constant 0 : index
    %c0_20 = arith.constant 0 : index
    %c0_21 = arith.constant 0 : index
    %c0_22 = arith.constant 0 : index
    %18 = vector.load %arg13[%c0_19, %c0_20, %c0_21, %c0_22] : memref<2x12x12x128xf32, #tpu.memory_space<vmem>>, vector<2x12x12x128xf32>
    tpu.vector_store %arg13[%c0_19, %c0_20, %c0_21, %c0_22], %17 {strides = array<i32>} : memref<2x12x12x128xf32, #tpu.memory_space<vmem>>, vector<2x12x12x128xf32>,
    %c0_23 = arith.constant 0 : index
    %c0_24 = arith.constant 0 : index
    %c0_25 = arith.constant 0 : index
    %c0_26 = arith.constant 0 : index
    %19 = vector.load %arg13[%c0_23, %c0_24, %c0_25, %c0_26] : memref<2x12x12x128xf32, #tpu.memory_space<vmem>>, vector<2x8x8x128xf32>
    %20 = vector.shape_cast %19 : vector<2x8x8x128xf32> to vector<128x128xf32>
    %21 = arith.truncf %20 : vector<128x128xf32> to vector<128x128xbf16>
    %c0_27 = arith.constant 0 : index
    %c0_28 = arith.constant 0 : index
    %c1 = arith.constant 1 : index
    %c0_29 = arith.constant 0 : index
    %22 = vector.load %arg13[%c0_27, %c0_28, %c1, %c0_29] : memref<2x12x12x128xf32, #tpu.memory_space<vmem>>, vector<2x8x8x128xf32>
    %23 = vector.shape_cast %22 : vector<2x8x8x128xf32> to vector<128x128xf32>
    %24 = arith.truncf %23 : vector<128x128xf32> to vector<128x128xbf16>
    %c0_30 = arith.constant 0 : index
    %c0_31 = arith.constant 0 : index
    %c2 = arith.constant 2 : index
    %c0_32 = arith.constant 0 : index
    %25 = vector.load %arg13[%c0_30, %c0_31, %c2, %c0_32] : memref<2x12x12x128xf32, #tpu.memory_space<vmem>>, vector<2x8x8x128xf32>
    %26 = vector.shape_cast %25 : vector<2x8x8x128xf32> to vector<128x128xf32>
    %27 = arith.truncf %26 : vector<128x128xf32> to vector<128x128xbf16>
    %c0_33 = arith.constant 0 : index
    %c0_34 = arith.constant 0 : index
    %c3 = arith.constant 3 : index
    %c0_35 = arith.constant 0 : index
    %28 = vector.load %arg13[%c0_33, %c0_34, %c3, %c0_35] : memref<2x12x12x128xf32, #tpu.memory_space<vmem>>, vector<2x8x8x128xf32>
    %29 = vector.shape_cast %28 : vector<2x8x8x128xf32> to vector<128x128xf32>
    %30 = arith.truncf %29 : vector<128x128xf32> to vector<128x128xbf16>
    %c0_36 = arith.constant 0 : index
    %c0_37 = arith.constant 0 : index
    %c4 = arith.constant 4 : index
    %c0_38 = arith.constant 0 : index
    %31 = vector.load %arg13[%c0_36, %c0_37, %c4, %c0_38] : memref<2x12x12x128xf32, #tpu.memory_space<vmem>>, vector<2x8x8x128xf32>
    %32 = vector.shape_cast %31 : vector<2x8x8x128xf32> to vector<128x128xf32>
    %33 = arith.truncf %32 : vector<128x128xf32> to vector<128x128xbf16>
    %c0_39 = arith.constant 0 : index
    %c1_40 = arith.constant 1 : index
    %c0_41 = arith.constant 0 : index
    %c0_42 = arith.constant 0 : index
    %34 = vector.load %arg13[%c0_39, %c1_40, %c0_41, %c0_42] : memref<2x12x12x128xf32, #tpu.memory_space<vmem>>, vector<2x8x8x128xf32>
    %35 = vector.shape_cast %34 : vector<2x8x8x128xf32> to vector<128x128xf32>
    %36 = arith.truncf %35 : vector<128x128xf32> to vector<128x128xbf16>
    %c0_43 = arith.constant 0 : index
    %c1_44 = arith.constant 1 : index
    %c1_45 = arith.constant 1 : index
    %c0_46 = arith.constant 0 : index
    %37 = vector.load %arg13[%c0_43, %c1_44, %c1_45, %c0_46] : memref<2x12x12x128xf32, #tpu.memory_space<vmem>>, vector<2x8x8x128xf32>
    %38 = vector.shape_cast %37 : vector<2x8x8x128xf32> to vector<128x128xf32>
    %39 = arith.truncf %38 : vector<128x128xf32> to vector<128x128xbf16>
    %c0_47 = arith.constant 0 : index
    %c1_48 = arith.constant 1 : index
    %c2_49 = arith.constant 2 : index
    %c0_50 = arith.constant 0 : index
    %40 = vector.load %arg13[%c0_47, %c1_48, %c2_49, %c0_50] : memref<2x12x12x128xf32, #tpu.memory_space<vmem>>, vector<2x8x8x128xf32>
    %41 = vector.shape_cast %40 : vector<2x8x8x128xf32> to vector<128x128xf32>
    %42 = arith.truncf %41 : vector<128x128xf32> to vector<128x128xbf16>
    %c0_51 = arith.constant 0 : index
    %c1_52 = arith.constant 1 : index
    %c3_53 = arith.constant 3 : index
    %c0_54 = arith.constant 0 : index
    %43 = vector.load %arg13[%c0_51, %c1_52, %c3_53, %c0_54] : memref<2x12x12x128xf32, #tpu.memory_space<vmem>>, vector<2x8x8x128xf32>
    %44 = vector.shape_cast %43 : vector<2x8x8x128xf32> to vector<128x128xf32>
    %45 = arith.truncf %44 : vector<128x128xf32> to vector<128x128xbf16>
    %c0_55 = arith.constant 0 : index
    %c1_56 = arith.constant 1 : index
    %c4_57 = arith.constant 4 : index
    %c0_58 = arith.constant 0 : index
    %46 = vector.load %arg13[%c0_55, %c1_56, %c4_57, %c0_58] : memref<2x12x12x128xf32, #tpu.memory_space<vmem>>, vector<2x8x8x128xf32>
    %47 = vector.shape_cast %46 : vector<2x8x8x128xf32> to vector<128x128xf32>
    %48 = arith.truncf %47 : vector<128x128xf32> to vector<128x128xbf16>
    %c0_59 = arith.constant 0 : index
    %c2_60 = arith.constant 2 : index
    %c0_61 = arith.constant 0 : index
    %c0_62 = arith.constant 0 : index
    %49 = vector.load %arg13[%c0_59, %c2_60, %c0_61, %c0_62] : memref<2x12x12x128xf32, #tpu.memory_space<vmem>>, vector<2x8x8x128xf32>
    %50 = vector.shape_cast %49 : vector<2x8x8x128xf32> to vector<128x128xf32>
    %51 = arith.truncf %50 : vector<128x128xf32> to vector<128x128xbf16>
    %c0_63 = arith.constant 0 : index
    %c2_64 = arith.constant 2 : index
    %c1_65 = arith.constant 1 : index
    %c0_66 = arith.constant 0 : index
    %52 = vector.load %arg13[%c0_63, %c2_64, %c1_65, %c0_66] : memref<2x12x12x128xf32, #tpu.memory_space<vmem>>, vector<2x8x8x128xf32>
    %53 = vector.shape_cast %52 : vector<2x8x8x128xf32> to vector<128x128xf32>
    %54 = arith.truncf %53 : vector<128x128xf32> to vector<128x128xbf16>
    %c0_67 = arith.constant 0 : index
    %c2_68 = arith.constant 2 : index
    %c2_69 = arith.constant 2 : index
    %c0_70 = arith.constant 0 : index
    %55 = vector.load %arg13[%c0_67, %c2_68, %c2_69, %c0_70] : memref<2x12x12x128xf32, #tpu.memory_space<vmem>>, vector<2x8x8x128xf32>
    %56 = vector.shape_cast %55 : vector<2x8x8x128xf32> to vector<128x128xf32>
    %57 = arith.truncf %56 : vector<128x128xf32> to vector<128x128xbf16>
    %c0_71 = arith.constant 0 : index
    %c2_72 = arith.constant 2 : index
    %c3_73 = arith.constant 3 : index
    %c0_74 = arith.constant 0 : index
    %58 = vector.load %arg13[%c0_71, %c2_72, %c3_73, %c0_74] : memref<2x12x12x128xf32, #tpu.memory_space<vmem>>, vector<2x8x8x128xf32>
    %59 = vector.shape_cast %58 : vector<2x8x8x128xf32> to vector<128x128xf32>
    %60 = arith.truncf %59 : vector<128x128xf32> to vector<128x128xbf16>
    %c0_75 = arith.constant 0 : index
    %c2_76 = arith.constant 2 : index
    %c4_77 = arith.constant 4 : index
    %c0_78 = arith.constant 0 : index
    %61 = vector.load %arg13[%c0_75, %c2_76, %c4_77, %c0_78] : memref<2x12x12x128xf32, #tpu.memory_space<vmem>>, vector<2x8x8x128xf32>
    %62 = vector.shape_cast %61 : vector<2x8x8x128xf32> to vector<128x128xf32>
    %63 = arith.truncf %62 : vector<128x128xf32> to vector<128x128xbf16>
    %c0_79 = arith.constant 0 : index
    %c3_80 = arith.constant 3 : index
    %c0_81 = arith.constant 0 : index
    %c0_82 = arith.constant 0 : index
    %64 = vector.load %arg13[%c0_79, %c3_80, %c0_81, %c0_82] : memref<2x12x12x128xf32, #tpu.memory_space<vmem>>, vector<2x8x8x128xf32>
    %65 = vector.shape_cast %64 : vector<2x8x8x128xf32> to vector<128x128xf32>
    %66 = arith.truncf %65 : vector<128x128xf32> to vector<128x128xbf16>
    %c0_83 = arith.constant 0 : index
    %c3_84 = arith.constant 3 : index
    %c1_85 = arith.constant 1 : index
    %c0_86 = arith.constant 0 : index
    %67 = vector.load %arg13[%c0_83, %c3_84, %c1_85, %c0_86] : memref<2x12x12x128xf32, #tpu.memory_space<vmem>>, vector<2x8x8x128xf32>
    %68 = vector.shape_cast %67 : vector<2x8x8x128xf32> to vector<128x128xf32>
    %69 = arith.truncf %68 : vector<128x128xf32> to vector<128x128xbf16>
    %c0_87 = arith.constant 0 : index
    %c3_88 = arith.constant 3 : index
    %c2_89 = arith.constant 2 : index
    %c0_90 = arith.constant 0 : index
    %70 = vector.load %arg13[%c0_87, %c3_88, %c2_89, %c0_90] : memref<2x12x12x128xf32, #tpu.memory_space<vmem>>, vector<2x8x8x128xf32>
    %71 = vector.shape_cast %70 : vector<2x8x8x128xf32> to vector<128x128xf32>
    %72 = arith.truncf %71 : vector<128x128xf32> to vector<128x128xbf16>
    %c0_91 = arith.constant 0 : index
    %c3_92 = arith.constant 3 : index
    %c3_93 = arith.constant 3 : index
    %c0_94 = arith.constant 0 : index
    %73 = vector.load %arg13[%c0_91, %c3_92, %c3_93, %c0_94] : memref<2x12x12x128xf32, #tpu.memory_space<vmem>>, vector<2x8x8x128xf32>
    %74 = vector.shape_cast %73 : vector<2x8x8x128xf32> to vector<128x128xf32>
    %75 = arith.truncf %74 : vector<128x128xf32> to vector<128x128xbf16>
    %c0_95 = arith.constant 0 : index
    %c3_96 = arith.constant 3 : index
    %c4_97 = arith.constant 4 : index
    %c0_98 = arith.constant 0 : index
    %76 = vector.load %arg13[%c0_95, %c3_96, %c4_97, %c0_98] : memref<2x12x12x128xf32, #tpu.memory_space<vmem>>, vector<2x8x8x128xf32>
    %77 = vector.shape_cast %76 : vector<2x8x8x128xf32> to vector<128x128xf32>
    %78 = arith.truncf %77 : vector<128x128xf32> to vector<128x128xbf16>
    %c0_99 = arith.constant 0 : index
    %c4_100 = arith.constant 4 : index
    %c0_101 = arith.constant 0 : index
    %c0_102 = arith.constant 0 : index
    %79 = vector.load %arg13[%c0_99, %c4_100, %c0_101, %c0_102] : memref<2x12x12x128xf32, #tpu.memory_space<vmem>>, vector<2x8x8x128xf32>
    %80 = vector.shape_cast %79 : vector<2x8x8x128xf32> to vector<128x128xf32>
    %81 = arith.truncf %80 : vector<128x128xf32> to vector<128x128xbf16>
    %c0_103 = arith.constant 0 : index
    %c4_104 = arith.constant 4 : index
    %c1_105 = arith.constant 1 : index
    %c0_106 = arith.constant 0 : index
    %82 = vector.load %arg13[%c0_103, %c4_104, %c1_105, %c0_106] : memref<2x12x12x128xf32, #tpu.memory_space<vmem>>, vector<2x8x8x128xf32>
    %83 = vector.shape_cast %82 : vector<2x8x8x128xf32> to vector<128x128xf32>
    %84 = arith.truncf %83 : vector<128x128xf32> to vector<128x128xbf16>
    %c0_107 = arith.constant 0 : index
    %c4_108 = arith.constant 4 : index
    %c2_109 = arith.constant 2 : index
    %c0_110 = arith.constant 0 : index
    %85 = vector.load %arg13[%c0_107, %c4_108, %c2_109, %c0_110] : memref<2x12x12x128xf32, #tpu.memory_space<vmem>>, vector<2x8x8x128xf32>
    %86 = vector.shape_cast %85 : vector<2x8x8x128xf32> to vector<128x128xf32>
    %87 = arith.truncf %86 : vector<128x128xf32> to vector<128x128xbf16>
    %c0_111 = arith.constant 0 : index
    %c4_112 = arith.constant 4 : index
    %c3_113 = arith.constant 3 : index
    %c0_114 = arith.constant 0 : index
    %88 = vector.load %arg13[%c0_111, %c4_112, %c3_113, %c0_114] : memref<2x12x12x128xf32, #tpu.memory_space<vmem>>, vector<2x8x8x128xf32>
    %89 = vector.shape_cast %88 : vector<2x8x8x128xf32> to vector<128x128xf32>
    %90 = arith.truncf %89 : vector<128x128xf32> to vector<128x128xbf16>
    %c0_115 = arith.constant 0 : index
    %c4_116 = arith.constant 4 : index
    %c4_117 = arith.constant 4 : index
    %c0_118 = arith.constant 0 : index
    %91 = vector.load %arg13[%c0_115, %c4_116, %c4_117, %c0_118] : memref<2x12x12x128xf32, #tpu.memory_space<vmem>>, vector<2x8x8x128xf32>
    %92 = vector.shape_cast %91 : vector<2x8x8x128xf32> to vector<128x128xf32>
    %93 = arith.truncf %92 : vector<128x128xf32> to vector<128x128xbf16>
    %94 = tpu.concatenate %21, %24, %27, %30, %33, %36, %39, %42, %45, %48, %51, %54, %57, %60, %63, %66 in 1 : vector<128x128xbf16>, vector<128x128xbf16>, vector<128x128xbf16>, vector<128x128xbf16>, vector<128x128xbf16>, vector<128x128xbf16>, vector<128x128xbf16>, vector<128x128xbf16>, vector<128x128xbf16>, vector<128x128xbf16>, vector<128x128xbf16>, vector<128x128xbf16>, vector<128x128xbf16>, vector<128x128xbf16>, vector<128x128xbf16>, vector<128x128xbf16> -> vector<128x2048xbf16>
    %95 = tpu.concatenate %69, %72, %75, %78, %81, %84, %87, %90, %93 in 1 : vector<128x128xbf16>, vector<128x128xbf16>, vector<128x128xbf16>, vector<128x128xbf16>, vector<128x128xbf16>, vector<128x128xbf16>, vector<128x128xbf16>, vector<128x128xbf16>, vector<128x128xbf16> -> vector<128x1152xbf16>
    %96 = tpu.concatenate %94, %95 in 1 : vector<128x2048xbf16>, vector<128x1152xbf16> -> vector<128x3200xbf16>
    %c0_119 = arith.constant 0 : index
    %c0_120 = arith.constant 0 : index
    %97 = vector.load %arg5[%c0_119, %c0_120] : memref<3200x128xbf16, #tpu.memory_space<vmem>>, vector<3200x128xbf16>
    %cst_121 = arith.constant dense<0.000000e+00> : vector<128x128xf32>
    %98 = tpu.matmul %96, %97, %cst_121 {dimension_numbers = #tpu.dot_dimension_numbers<[1], [0], [0], [1], [0, 0, 1, 1], [], []>} : vector<128x3200xbf16>, vector<3200x128xbf16>, vector<128x128xf32> -> vector<128x128xf32>
    %c0_122 = arith.constant 0 : index
    %c0_123 = arith.constant 0 : index
    %99 = vector.load %arg6[%c0_122, %c0_123] : memref<1x128xf32, #tpu.memory_space<vmem>>, vector<1x128xf32>
    %100 = vector.broadcast %99 : vector<1x128xf32> to vector<128x128xf32>
    %101 = arith.addf %98, %100 : vector<128x128xf32>
    %cst_124 = arith.constant 0.000000e+00 : f32
    %102 = vector.broadcast %cst_124 : f32 to vector<128x128xf32>
    %103 = arith.maximumf %101, %102 : vector<128x128xf32>
    %104 = vector.shape_cast %103 : vector<128x128xf32> to vector<2x8x8x128xf32>
    %c0_125 = arith.constant 0 : index
    %c0_126 = arith.constant 0 : index
    %c0_127 = arith.constant 0 : index
    %c0_128 = arith.constant 0 : index
    %105 = vector.load %arg14[%c0_125, %c0_126, %c0_127, %c0_128] : memref<2x8x8x128xf32, #tpu.memory_space<vmem>>, vector<2x8x8x128xf32>
    tpu.vector_store %arg14[%c0_125, %c0_126, %c0_127, %c0_128], %104 {strides = array<i32>} : memref<2x8x8x128xf32, #tpu.memory_space<vmem>>, vector<2x8x8x128xf32>,
    %c0_129 = arith.constant 0 : index
    %c0_130 = arith.constant 0 : index
    %c0_131 = arith.constant 0 : index
    %c0_132 = arith.constant 0 : index
    %106 = vector.load %arg14[%c0_129, %c0_130, %c0_131, %c0_132] : memref<2x8x8x128xf32, #tpu.memory_space<vmem>>, vector<2x1x1x128xf32>
    %107 = vector.shape_cast %106 : vector<2x1x1x128xf32> to vector<2x128xf32>
    %c0_133 = arith.constant 0 : index
    %c0_134 = arith.constant 0 : index
    %c1_135 = arith.constant 1 : index
    %c0_136 = arith.constant 0 : index
    %108 = vector.load %arg14[%c0_133, %c0_134, %c1_135, %c0_136] : memref<2x8x8x128xf32, #tpu.memory_space<vmem>>, vector<2x1x1x128xf32>
    %109 = vector.shape_cast %108 : vector<2x1x1x128xf32> to vector<2x128xf32>
    %c0_137 = arith.constant 0 : index
    %c1_138 = arith.constant 1 : index
    %c0_139 = arith.constant 0 : index
    %c0_140 = arith.constant 0 : index
    %110 = vector.load %arg14[%c0_137, %c1_138, %c0_139, %c0_140] : memref<2x8x8x128xf32, #tpu.memory_space<vmem>>, vector<2x1x1x128xf32>
    %111 = vector.shape_cast %110 : vector<2x1x1x128xf32> to vector<2x128xf32>
    %c0_141 = arith.constant 0 : index
    %c1_142 = arith.constant 1 : index
    %c1_143 = arith.constant 1 : index
    %c0_144 = arith.constant 0 : index
    %112 = vector.load %arg14[%c0_141, %c1_142, %c1_143, %c0_144] : memref<2x8x8x128xf32, #tpu.memory_space<vmem>>, vector<2x1x1x128xf32>
    %113 = vector.shape_cast %112 : vector<2x1x1x128xf32> to vector<2x128xf32>
    %114 = arith.maximumf %107, %109 : vector<2x128xf32>
    %115 = arith.maximumf %111, %113 : vector<2x128xf32>
    %116 = arith.maximumf %114, %115 : vector<2x128xf32>
    %c0_145 = arith.constant 0 : index
    %c0_146 = arith.constant 0 : index
    %c2_147 = arith.constant 2 : index
    %c0_148 = arith.constant 0 : index
    %117 = vector.load %arg14[%c0_145, %c0_146, %c2_147, %c0_148] : memref<2x8x8x128xf32, #tpu.memory_space<vmem>>, vector<2x1x1x128xf32>
    %118 = vector.shape_cast %117 : vector<2x1x1x128xf32> to vector<2x128xf32>
    %c0_149 = arith.constant 0 : index
    %c0_150 = arith.constant 0 : index
    %c3_151 = arith.constant 3 : index
    %c0_152 = arith.constant 0 : index
    %119 = vector.load %arg14[%c0_149, %c0_150, %c3_151, %c0_152] : memref<2x8x8x128xf32, #tpu.memory_space<vmem>>, vector<2x1x1x128xf32>
    %120 = vector.shape_cast %119 : vector<2x1x1x128xf32> to vector<2x128xf32>
    %c0_153 = arith.constant 0 : index
    %c1_154 = arith.constant 1 : index
    %c2_155 = arith.constant 2 : index
    %c0_156 = arith.constant 0 : index
    %121 = vector.load %arg14[%c0_153, %c1_154, %c2_155, %c0_156] : memref<2x8x8x128xf32, #tpu.memory_space<vmem>>, vector<2x1x1x128xf32>
    %122 = vector.shape_cast %121 : vector<2x1x1x128xf32> to vector<2x128xf32>
    %c0_157 = arith.constant 0 : index
    %c1_158 = arith.constant 1 : index
    %c3_159 = arith.constant 3 : index
    %c0_160 = arith.constant 0 : index
    %123 = vector.load %arg14[%c0_157, %c1_158, %c3_159, %c0_160] : memref<2x8x8x128xf32, #tpu.memory_space<vmem>>, vector<2x1x1x128xf32>
    %124 = vector.shape_cast %123 : vector<2x1x1x128xf32> to vector<2x128xf32>
    %125 = arith.maximumf %118, %120 : vector<2x128xf32>
    %126 = arith.maximumf %122, %124 : vector<2x128xf32>
    %127 = arith.maximumf %125, %126 : vector<2x128xf32>
    %c0_161 = arith.constant 0 : index
    %c0_162 = arith.constant 0 : index
    %c4_163 = arith.constant 4 : index
    %c0_164 = arith.constant 0 : index
    %128 = vector.load %arg14[%c0_161, %c0_162, %c4_163, %c0_164] : memref<2x8x8x128xf32, #tpu.memory_space<vmem>>, vector<2x1x1x128xf32>
    %129 = vector.shape_cast %128 : vector<2x1x1x128xf32> to vector<2x128xf32>
    %c0_165 = arith.constant 0 : index
    %c0_166 = arith.constant 0 : index
    %c5 = arith.constant 5 : index
    %c0_167 = arith.constant 0 : index
    %130 = vector.load %arg14[%c0_165, %c0_166, %c5, %c0_167] : memref<2x8x8x128xf32, #tpu.memory_space<vmem>>, vector<2x1x1x128xf32>
    %131 = vector.shape_cast %130 : vector<2x1x1x128xf32> to vector<2x128xf32>
    %c0_168 = arith.constant 0 : index
    %c1_169 = arith.constant 1 : index
    %c4_170 = arith.constant 4 : index
    %c0_171 = arith.constant 0 : index
    %132 = vector.load %arg14[%c0_168, %c1_169, %c4_170, %c0_171] : memref<2x8x8x128xf32, #tpu.memory_space<vmem>>, vector<2x1x1x128xf32>
    %133 = vector.shape_cast %132 : vector<2x1x1x128xf32> to vector<2x128xf32>
    %c0_172 = arith.constant 0 : index
    %c1_173 = arith.constant 1 : index
    %c5_174 = arith.constant 5 : index
    %c0_175 = arith.constant 0 : index
    %134 = vector.load %arg14[%c0_172, %c1_173, %c5_174, %c0_175] : memref<2x8x8x128xf32, #tpu.memory_space<vmem>>, vector<2x1x1x128xf32>
    %135 = vector.shape_cast %134 : vector<2x1x1x128xf32> to vector<2x128xf32>
    %136 = arith.maximumf %129, %131 : vector<2x128xf32>
    %137 = arith.maximumf %133, %135 : vector<2x128xf32>
    %138 = arith.maximumf %136, %137 : vector<2x128xf32>
    %c0_176 = arith.constant 0 : index
    %c0_177 = arith.constant 0 : index
    %c6 = arith.constant 6 : index
    %c0_178 = arith.constant 0 : index
    %139 = vector.load %arg14[%c0_176, %c0_177, %c6, %c0_178] : memref<2x8x8x128xf32, #tpu.memory_space<vmem>>, vector<2x1x1x128xf32>
    %140 = vector.shape_cast %139 : vector<2x1x1x128xf32> to vector<2x128xf32>
    %c0_179 = arith.constant 0 : index
    %c0_180 = arith.constant 0 : index
    %c7 = arith.constant 7 : index
    %c0_181 = arith.constant 0 : index
    %141 = vector.load %arg14[%c0_179, %c0_180, %c7, %c0_181] : memref<2x8x8x128xf32, #tpu.memory_space<vmem>>, vector<2x1x1x128xf32>
    %142 = vector.shape_cast %141 : vector<2x1x1x128xf32> to vector<2x128xf32>
    %c0_182 = arith.constant 0 : index
    %c1_183 = arith.constant 1 : index
    %c6_184 = arith.constant 6 : index
    %c0_185 = arith.constant 0 : index
    %143 = vector.load %arg14[%c0_182, %c1_183, %c6_184, %c0_185] : memref<2x8x8x128xf32, #tpu.memory_space<vmem>>, vector<2x1x1x128xf32>
    %144 = vector.shape_cast %143 : vector<2x1x1x128xf32> to vector<2x128xf32>
    %c0_186 = arith.constant 0 : index
    %c1_187 = arith.constant 1 : index
    %c7_188 = arith.constant 7 : index
    %c0_189 = arith.constant 0 : index
    %145 = vector.load %arg14[%c0_186, %c1_187, %c7_188, %c0_189] : memref<2x8x8x128xf32, #tpu.memory_space<vmem>>, vector<2x1x1x128xf32>
    %146 = vector.shape_cast %145 : vector<2x1x1x128xf32> to vector<2x128xf32>
    %147 = arith.maximumf %140, %142 : vector<2x128xf32>
    %148 = arith.maximumf %144, %146 : vector<2x128xf32>
    %149 = arith.maximumf %147, %148 : vector<2x128xf32>
    %c0_190 = arith.constant 0 : index
    %c2_191 = arith.constant 2 : index
    %c0_192 = arith.constant 0 : index
    %c0_193 = arith.constant 0 : index
    %150 = vector.load %arg14[%c0_190, %c2_191, %c0_192, %c0_193] : memref<2x8x8x128xf32, #tpu.memory_space<vmem>>, vector<2x1x1x128xf32>
    %151 = vector.shape_cast %150 : vector<2x1x1x128xf32> to vector<2x128xf32>
    %c0_194 = arith.constant 0 : index
    %c2_195 = arith.constant 2 : index
    %c1_196 = arith.constant 1 : index
    %c0_197 = arith.constant 0 : index
    %152 = vector.load %arg14[%c0_194, %c2_195, %c1_196, %c0_197] : memref<2x8x8x128xf32, #tpu.memory_space<vmem>>, vector<2x1x1x128xf32>
    %153 = vector.shape_cast %152 : vector<2x1x1x128xf32> to vector<2x128xf32>
    %c0_198 = arith.constant 0 : index
    %c3_199 = arith.constant 3 : index
    %c0_200 = arith.constant 0 : index
    %c0_201 = arith.constant 0 : index
    %154 = vector.load %arg14[%c0_198, %c3_199, %c0_200, %c0_201] : memref<2x8x8x128xf32, #tpu.memory_space<vmem>>, vector<2x1x1x128xf32>
    %155 = vector.shape_cast %154 : vector<2x1x1x128xf32> to vector<2x128xf32>
    %c0_202 = arith.constant 0 : index
    %c3_203 = arith.constant 3 : index
    %c1_204 = arith.constant 1 : index
    %c0_205 = arith.constant 0 : index
    %156 = vector.load %arg14[%c0_202, %c3_203, %c1_204, %c0_205] : memref<2x8x8x128xf32, #tpu.memory_space<vmem>>, vector<2x1x1x128xf32>
    %157 = vector.shape_cast %156 : vector<2x1x1x128xf32> to vector<2x128xf32>
    %158 = arith.maximumf %151, %153 : vector<2x128xf32>
    %159 = arith.maximumf %155, %157 : vector<2x128xf32>
    %160 = arith.maximumf %158, %159 : vector<2x128xf32>
    %c0_206 = arith.constant 0 : index
    %c2_207 = arith.constant 2 : index
    %c2_208 = arith.constant 2 : index
    %c0_209 = arith.constant 0 : index
    %161 = vector.load %arg14[%c0_206, %c2_207, %c2_208, %c0_209] : memref<2x8x8x128xf32, #tpu.memory_space<vmem>>, vector<2x1x1x128xf32>
    %162 = vector.shape_cast %161 : vector<2x1x1x128xf32> to vector<2x128xf32>
    %c0_210 = arith.constant 0 : index
    %c2_211 = arith.constant 2 : index
    %c3_212 = arith.constant 3 : index
    %c0_213 = arith.constant 0 : index
    %163 = vector.load %arg14[%c0_210, %c2_211, %c3_212, %c0_213] : memref<2x8x8x128xf32, #tpu.memory_space<vmem>>, vector<2x1x1x128xf32>
    %164 = vector.shape_cast %163 : vector<2x1x1x128xf32> to vector<2x128xf32>
    %c0_214 = arith.constant 0 : index
    %c3_215 = arith.constant 3 : index
    %c2_216 = arith.constant 2 : index
    %c0_217 = arith.constant 0 : index
    %165 = vector.load %arg14[%c0_214, %c3_215, %c2_216, %c0_217] : memref<2x8x8x128xf32, #tpu.memory_space<vmem>>, vector<2x1x1x128xf32>
    %166 = vector.shape_cast %165 : vector<2x1x1x128xf32> to vector<2x128xf32>
    %c0_218 = arith.constant 0 : index
    %c3_219 = arith.constant 3 : index
    %c3_220 = arith.constant 3 : index
    %c0_221 = arith.constant 0 : index
    %167 = vector.load %arg14[%c0_218, %c3_219, %c3_220, %c0_221] : memref<2x8x8x128xf32, #tpu.memory_space<vmem>>, vector<2x1x1x128xf32>
    %168 = vector.shape_cast %167 : vector<2x1x1x128xf32> to vector<2x128xf32>
    %169 = arith.maximumf %162, %164 : vector<2x128xf32>
    %170 = arith.maximumf %166, %168 : vector<2x128xf32>
    %171 = arith.maximumf %169, %170 : vector<2x128xf32>
    %c0_222 = arith.constant 0 : index
    %c2_223 = arith.constant 2 : index
    %c4_224 = arith.constant 4 : index
    %c0_225 = arith.constant 0 : index
    %172 = vector.load %arg14[%c0_222, %c2_223, %c4_224, %c0_225] : memref<2x8x8x128xf32, #tpu.memory_space<vmem>>, vector<2x1x1x128xf32>
    %173 = vector.shape_cast %172 : vector<2x1x1x128xf32> to vector<2x128xf32>
    %c0_226 = arith.constant 0 : index
    %c2_227 = arith.constant 2 : index
    %c5_228 = arith.constant 5 : index
    %c0_229 = arith.constant 0 : index
    %174 = vector.load %arg14[%c0_226, %c2_227, %c5_228, %c0_229] : memref<2x8x8x128xf32, #tpu.memory_space<vmem>>, vector<2x1x1x128xf32>
    %175 = vector.shape_cast %174 : vector<2x1x1x128xf32> to vector<2x128xf32>
    %c0_230 = arith.constant 0 : index
    %c3_231 = arith.constant 3 : index
    %c4_232 = arith.constant 4 : index
    %c0_233 = arith.constant 0 : index
    %176 = vector.load %arg14[%c0_230, %c3_231, %c4_232, %c0_233] : memref<2x8x8x128xf32, #tpu.memory_space<vmem>>, vector<2x1x1x128xf32>
    %177 = vector.shape_cast %176 : vector<2x1x1x128xf32> to vector<2x128xf32>
    %c0_234 = arith.constant 0 : index
    %c3_235 = arith.constant 3 : index
    %c5_236 = arith.constant 5 : index
    %c0_237 = arith.constant 0 : index
    %178 = vector.load %arg14[%c0_234, %c3_235, %c5_236, %c0_237] : memref<2x8x8x128xf32, #tpu.memory_space<vmem>>, vector<2x1x1x128xf32>
    %179 = vector.shape_cast %178 : vector<2x1x1x128xf32> to vector<2x128xf32>
    %180 = arith.maximumf %173, %175 : vector<2x128xf32>
    %181 = arith.maximumf %177, %179 : vector<2x128xf32>
    %182 = arith.maximumf %180, %181 : vector<2x128xf32>
    %c0_238 = arith.constant 0 : index
    %c2_239 = arith.constant 2 : index
    %c6_240 = arith.constant 6 : index
    %c0_241 = arith.constant 0 : index
    %183 = vector.load %arg14[%c0_238, %c2_239, %c6_240, %c0_241] : memref<2x8x8x128xf32, #tpu.memory_space<vmem>>, vector<2x1x1x128xf32>
    %184 = vector.shape_cast %183 : vector<2x1x1x128xf32> to vector<2x128xf32>
    %c0_242 = arith.constant 0 : index
    %c2_243 = arith.constant 2 : index
    %c7_244 = arith.constant 7 : index
    %c0_245 = arith.constant 0 : index
    %185 = vector.load %arg14[%c0_242, %c2_243, %c7_244, %c0_245] : memref<2x8x8x128xf32, #tpu.memory_space<vmem>>, vector<2x1x1x128xf32>
    %186 = vector.shape_cast %185 : vector<2x1x1x128xf32> to vector<2x128xf32>
    %c0_246 = arith.constant 0 : index
    %c3_247 = arith.constant 3 : index
    %c6_248 = arith.constant 6 : index
    %c0_249 = arith.constant 0 : index
    %187 = vector.load %arg14[%c0_246, %c3_247, %c6_248, %c0_249] : memref<2x8x8x128xf32, #tpu.memory_space<vmem>>, vector<2x1x1x128xf32>
    %188 = vector.shape_cast %187 : vector<2x1x1x128xf32> to vector<2x128xf32>
    %c0_250 = arith.constant 0 : index
    %c3_251 = arith.constant 3 : index
    %c7_252 = arith.constant 7 : index
    %c0_253 = arith.constant 0 : index
    %189 = vector.load %arg14[%c0_250, %c3_251, %c7_252, %c0_253] : memref<2x8x8x128xf32, #tpu.memory_space<vmem>>, vector<2x1x1x128xf32>
    %190 = vector.shape_cast %189 : vector<2x1x1x128xf32> to vector<2x128xf32>
    %191 = arith.maximumf %184, %186 : vector<2x128xf32>
    %192 = arith.maximumf %188, %190 : vector<2x128xf32>
    %193 = arith.maximumf %191, %192 : vector<2x128xf32>
    %c0_254 = arith.constant 0 : index
    %c4_255 = arith.constant 4 : index
    %c0_256 = arith.constant 0 : index
    %c0_257 = arith.constant 0 : index
    %194 = vector.load %arg14[%c0_254, %c4_255, %c0_256, %c0_257] : memref<2x8x8x128xf32, #tpu.memory_space<vmem>>, vector<2x1x1x128xf32>
    %195 = vector.shape_cast %194 : vector<2x1x1x128xf32> to vector<2x128xf32>
    %c0_258 = arith.constant 0 : index
    %c4_259 = arith.constant 4 : index
    %c1_260 = arith.constant 1 : index
    %c0_261 = arith.constant 0 : index
    %196 = vector.load %arg14[%c0_258, %c4_259, %c1_260, %c0_261] : memref<2x8x8x128xf32, #tpu.memory_space<vmem>>, vector<2x1x1x128xf32>
    %197 = vector.shape_cast %196 : vector<2x1x1x128xf32> to vector<2x128xf32>
    %c0_262 = arith.constant 0 : index
    %c5_263 = arith.constant 5 : index
    %c0_264 = arith.constant 0 : index
    %c0_265 = arith.constant 0 : index
    %198 = vector.load %arg14[%c0_262, %c5_263, %c0_264, %c0_265] : memref<2x8x8x128xf32, #tpu.memory_space<vmem>>, vector<2x1x1x128xf32>
    %199 = vector.shape_cast %198 : vector<2x1x1x128xf32> to vector<2x128xf32>
    %c0_266 = arith.constant 0 : index
    %c5_267 = arith.constant 5 : index
    %c1_268 = arith.constant 1 : index
    %c0_269 = arith.constant 0 : index
    %200 = vector.load %arg14[%c0_266, %c5_267, %c1_268, %c0_269] : memref<2x8x8x128xf32, #tpu.memory_space<vmem>>, vector<2x1x1x128xf32>
    %201 = vector.shape_cast %200 : vector<2x1x1x128xf32> to vector<2x128xf32>
    %202 = arith.maximumf %195, %197 : vector<2x128xf32>
    %203 = arith.maximumf %199, %201 : vector<2x128xf32>
    %204 = arith.maximumf %202, %203 : vector<2x128xf32>
    %c0_270 = arith.constant 0 : index
    %c4_271 = arith.constant 4 : index
    %c2_272 = arith.constant 2 : index
    %c0_273 = arith.constant 0 : index
    %205 = vector.load %arg14[%c0_270, %c4_271, %c2_272, %c0_273] : memref<2x8x8x128xf32, #tpu.memory_space<vmem>>, vector<2x1x1x128xf32>
    %206 = vector.shape_cast %205 : vector<2x1x1x128xf32> to vector<2x128xf32>
    %c0_274 = arith.constant 0 : index
    %c4_275 = arith.constant 4 : index
    %c3_276 = arith.constant 3 : index
    %c0_277 = arith.constant 0 : index
    %207 = vector.load %arg14[%c0_274, %c4_275, %c3_276, %c0_277] : memref<2x8x8x128xf32, #tpu.memory_space<vmem>>, vector<2x1x1x128xf32>
    %208 = vector.shape_cast %207 : vector<2x1x1x128xf32> to vector<2x128xf32>
    %c0_278 = arith.constant 0 : index
    %c5_279 = arith.constant 5 : index
    %c2_280 = arith.constant 2 : index
    %c0_281 = arith.constant 0 : index
    %209 = vector.load %arg14[%c0_278, %c5_279, %c2_280, %c0_281] : memref<2x8x8x128xf32, #tpu.memory_space<vmem>>, vector<2x1x1x128xf32>
    %210 = vector.shape_cast %209 : vector<2x1x1x128xf32> to vector<2x128xf32>
    %c0_282 = arith.constant 0 : index
    %c5_283 = arith.constant 5 : index
    %c3_284 = arith.constant 3 : index
    %c0_285 = arith.constant 0 : index
    %211 = vector.load %arg14[%c0_282, %c5_283, %c3_284, %c0_285] : memref<2x8x8x128xf32, #tpu.memory_space<vmem>>, vector<2x1x1x128xf32>
    %212 = vector.shape_cast %211 : vector<2x1x1x128xf32> to vector<2x128xf32>
    %213 = arith.maximumf %206, %208 : vector<2x128xf32>
    %214 = arith.maximumf %210, %212 : vector<2x128xf32>
    %215 = arith.maximumf %213, %214 : vector<2x128xf32>
    %c0_286 = arith.constant 0 : index
    %c4_287 = arith.constant 4 : index
    %c4_288 = arith.constant 4 : index
    %c0_289 = arith.constant 0 : index
    %216 = vector.load %arg14[%c0_286, %c4_287, %c4_288, %c0_289] : memref<2x8x8x128xf32, #tpu.memory_space<vmem>>, vector<2x1x1x128xf32>
    %217 = vector.shape_cast %216 : vector<2x1x1x128xf32> to vector<2x128xf32>
    %c0_290 = arith.constant 0 : index
    %c4_291 = arith.constant 4 : index
    %c5_292 = arith.constant 5 : index
    %c0_293 = arith.constant 0 : index
    %218 = vector.load %arg14[%c0_290, %c4_291, %c5_292, %c0_293] : memref<2x8x8x128xf32, #tpu.memory_space<vmem>>, vector<2x1x1x128xf32>
    %219 = vector.shape_cast %218 : vector<2x1x1x128xf32> to vector<2x128xf32>
    %c0_294 = arith.constant 0 : index
    %c5_295 = arith.constant 5 : index
    %c4_296 = arith.constant 4 : index
    %c0_297 = arith.constant 0 : index
    %220 = vector.load %arg14[%c0_294, %c5_295, %c4_296, %c0_297] : memref<2x8x8x128xf32, #tpu.memory_space<vmem>>, vector<2x1x1x128xf32>
    %221 = vector.shape_cast %220 : vector<2x1x1x128xf32> to vector<2x128xf32>
    %c0_298 = arith.constant 0 : index
    %c5_299 = arith.constant 5 : index
    %c5_300 = arith.constant 5 : index
    %c0_301 = arith.constant 0 : index
    %222 = vector.load %arg14[%c0_298, %c5_299, %c5_300, %c0_301] : memref<2x8x8x128xf32, #tpu.memory_space<vmem>>, vector<2x1x1x128xf32>
    %223 = vector.shape_cast %222 : vector<2x1x1x128xf32> to vector<2x128xf32>
    %224 = arith.maximumf %217, %219 : vector<2x128xf32>
    %225 = arith.maximumf %221, %223 : vector<2x128xf32>
    %226 = arith.maximumf %224, %225 : vector<2x128xf32>
    %c0_302 = arith.constant 0 : index
    %c4_303 = arith.constant 4 : index
    %c6_304 = arith.constant 6 : index
    %c0_305 = arith.constant 0 : index
    %227 = vector.load %arg14[%c0_302, %c4_303, %c6_304, %c0_305] : memref<2x8x8x128xf32, #tpu.memory_space<vmem>>, vector<2x1x1x128xf32>
    %228 = vector.shape_cast %227 : vector<2x1x1x128xf32> to vector<2x128xf32>
    %c0_306 = arith.constant 0 : index
    %c4_307 = arith.constant 4 : index
    %c7_308 = arith.constant 7 : index
    %c0_309 = arith.constant 0 : index
    %229 = vector.load %arg14[%c0_306, %c4_307, %c7_308, %c0_309] : memref<2x8x8x128xf32, #tpu.memory_space<vmem>>, vector<2x1x1x128xf32>
    %230 = vector.shape_cast %229 : vector<2x1x1x128xf32> to vector<2x128xf32>
    %c0_310 = arith.constant 0 : index
    %c5_311 = arith.constant 5 : index
    %c6_312 = arith.constant 6 : index
    %c0_313 = arith.constant 0 : index
    %231 = vector.load %arg14[%c0_310, %c5_311, %c6_312, %c0_313] : memref<2x8x8x128xf32, #tpu.memory_space<vmem>>, vector<2x1x1x128xf32>
    %232 = vector.shape_cast %231 : vector<2x1x1x128xf32> to vector<2x128xf32>
    %c0_314 = arith.constant 0 : index
    %c5_315 = arith.constant 5 : index
    %c7_316 = arith.constant 7 : index
    %c0_317 = arith.constant 0 : index
    %233 = vector.load %arg14[%c0_314, %c5_315, %c7_316, %c0_317] : memref<2x8x8x128xf32, #tpu.memory_space<vmem>>, vector<2x1x1x128xf32>
    %234 = vector.shape_cast %233 : vector<2x1x1x128xf32> to vector<2x128xf32>
    %235 = arith.maximumf %228, %230 : vector<2x128xf32>
    %236 = arith.maximumf %232, %234 : vector<2x128xf32>
    %237 = arith.maximumf %235, %236 : vector<2x128xf32>
    %c0_318 = arith.constant 0 : index
    %c6_319 = arith.constant 6 : index
    %c0_320 = arith.constant 0 : index
    %c0_321 = arith.constant 0 : index
    %238 = vector.load %arg14[%c0_318, %c6_319, %c0_320, %c0_321] : memref<2x8x8x128xf32, #tpu.memory_space<vmem>>, vector<2x1x1x128xf32>
    %239 = vector.shape_cast %238 : vector<2x1x1x128xf32> to vector<2x128xf32>
    %c0_322 = arith.constant 0 : index
    %c6_323 = arith.constant 6 : index
    %c1_324 = arith.constant 1 : index
    %c0_325 = arith.constant 0 : index
    %240 = vector.load %arg14[%c0_322, %c6_323, %c1_324, %c0_325] : memref<2x8x8x128xf32, #tpu.memory_space<vmem>>, vector<2x1x1x128xf32>
    %241 = vector.shape_cast %240 : vector<2x1x1x128xf32> to vector<2x128xf32>
    %c0_326 = arith.constant 0 : index
    %c7_327 = arith.constant 7 : index
    %c0_328 = arith.constant 0 : index
    %c0_329 = arith.constant 0 : index
    %242 = vector.load %arg14[%c0_326, %c7_327, %c0_328, %c0_329] : memref<2x8x8x128xf32, #tpu.memory_space<vmem>>, vector<2x1x1x128xf32>
    %243 = vector.shape_cast %242 : vector<2x1x1x128xf32> to vector<2x128xf32>
    %c0_330 = arith.constant 0 : index
    %c7_331 = arith.constant 7 : index
    %c1_332 = arith.constant 1 : index
    %c0_333 = arith.constant 0 : index
    %244 = vector.load %arg14[%c0_330, %c7_331, %c1_332, %c0_333] : memref<2x8x8x128xf32, #tpu.memory_space<vmem>>, vector<2x1x1x128xf32>
    %245 = vector.shape_cast %244 : vector<2x1x1x128xf32> to vector<2x128xf32>
    %246 = arith.maximumf %239, %241 : vector<2x128xf32>
    %247 = arith.maximumf %243, %245 : vector<2x128xf32>
    %248 = arith.maximumf %246, %247 : vector<2x128xf32>
    %c0_334 = arith.constant 0 : index
    %c6_335 = arith.constant 6 : index
    %c2_336 = arith.constant 2 : index
    %c0_337 = arith.constant 0 : index
    %249 = vector.load %arg14[%c0_334, %c6_335, %c2_336, %c0_337] : memref<2x8x8x128xf32, #tpu.memory_space<vmem>>, vector<2x1x1x128xf32>
    %250 = vector.shape_cast %249 : vector<2x1x1x128xf32> to vector<2x128xf32>
    %c0_338 = arith.constant 0 : index
    %c6_339 = arith.constant 6 : index
    %c3_340 = arith.constant 3 : index
    %c0_341 = arith.constant 0 : index
    %251 = vector.load %arg14[%c0_338, %c6_339, %c3_340, %c0_341] : memref<2x8x8x128xf32, #tpu.memory_space<vmem>>, vector<2x1x1x128xf32>
    %252 = vector.shape_cast %251 : vector<2x1x1x128xf32> to vector<2x128xf32>
    %c0_342 = arith.constant 0 : index
    %c7_343 = arith.constant 7 : index
    %c2_344 = arith.constant 2 : index
    %c0_345 = arith.constant 0 : index
    %253 = vector.load %arg14[%c0_342, %c7_343, %c2_344, %c0_345] : memref<2x8x8x128xf32, #tpu.memory_space<vmem>>, vector<2x1x1x128xf32>
    %254 = vector.shape_cast %253 : vector<2x1x1x128xf32> to vector<2x128xf32>
    %c0_346 = arith.constant 0 : index
    %c7_347 = arith.constant 7 : index
    %c3_348 = arith.constant 3 : index
    %c0_349 = arith.constant 0 : index
    %255 = vector.load %arg14[%c0_346, %c7_347, %c3_348, %c0_349] : memref<2x8x8x128xf32, #tpu.memory_space<vmem>>, vector<2x1x1x128xf32>
    %256 = vector.shape_cast %255 : vector<2x1x1x128xf32> to vector<2x128xf32>
    %257 = arith.maximumf %250, %252 : vector<2x128xf32>
    %258 = arith.maximumf %254, %256 : vector<2x128xf32>
    %259 = arith.maximumf %257, %258 : vector<2x128xf32>
    %c0_350 = arith.constant 0 : index
    %c6_351 = arith.constant 6 : index
    %c4_352 = arith.constant 4 : index
    %c0_353 = arith.constant 0 : index
    %260 = vector.load %arg14[%c0_350, %c6_351, %c4_352, %c0_353] : memref<2x8x8x128xf32, #tpu.memory_space<vmem>>, vector<2x1x1x128xf32>
    %261 = vector.shape_cast %260 : vector<2x1x1x128xf32> to vector<2x128xf32>
    %c0_354 = arith.constant 0 : index
    %c6_355 = arith.constant 6 : index
    %c5_356 = arith.constant 5 : index
    %c0_357 = arith.constant 0 : index
    %262 = vector.load %arg14[%c0_354, %c6_355, %c5_356, %c0_357] : memref<2x8x8x128xf32, #tpu.memory_space<vmem>>, vector<2x1x1x128xf32>
    %263 = vector.shape_cast %262 : vector<2x1x1x128xf32> to vector<2x128xf32>
    %c0_358 = arith.constant 0 : index
    %c7_359 = arith.constant 7 : index
    %c4_360 = arith.constant 4 : index
    %c0_361 = arith.constant 0 : index
    %264 = vector.load %arg14[%c0_358, %c7_359, %c4_360, %c0_361] : memref<2x8x8x128xf32, #tpu.memory_space<vmem>>, vector<2x1x1x128xf32>
    %265 = vector.shape_cast %264 : vector<2x1x1x128xf32> to vector<2x128xf32>
    %c0_362 = arith.constant 0 : index
    %c7_363 = arith.constant 7 : index
    %c5_364 = arith.constant 5 : index
    %c0_365 = arith.constant 0 : index
    %266 = vector.load %arg14[%c0_362, %c7_363, %c5_364, %c0_365] : memref<2x8x8x128xf32, #tpu.memory_space<vmem>>, vector<2x1x1x128xf32>
    %267 = vector.shape_cast %266 : vector<2x1x1x128xf32> to vector<2x128xf32>
    %268 = arith.maximumf %261, %263 : vector<2x128xf32>
    %269 = arith.maximumf %265, %267 : vector<2x128xf32>
    %270 = arith.maximumf %268, %269 : vector<2x128xf32>
    %c0_366 = arith.constant 0 : index
    %c6_367 = arith.constant 6 : index
    %c6_368 = arith.constant 6 : index
    %c0_369 = arith.constant 0 : index
    %271 = vector.load %arg14[%c0_366, %c6_367, %c6_368, %c0_369] : memref<2x8x8x128xf32, #tpu.memory_space<vmem>>, vector<2x1x1x128xf32>
    %272 = vector.shape_cast %271 : vector<2x1x1x128xf32> to vector<2x128xf32>
    %c0_370 = arith.constant 0 : index
    %c6_371 = arith.constant 6 : index
    %c7_372 = arith.constant 7 : index
    %c0_373 = arith.constant 0 : index
    %273 = vector.load %arg14[%c0_370, %c6_371, %c7_372, %c0_373] : memref<2x8x8x128xf32, #tpu.memory_space<vmem>>, vector<2x1x1x128xf32>
    %274 = vector.shape_cast %273 : vector<2x1x1x128xf32> to vector<2x128xf32>
    %c0_374 = arith.constant 0 : index
    %c7_375 = arith.constant 7 : index
    %c6_376 = arith.constant 6 : index
    %c0_377 = arith.constant 0 : index
    %275 = vector.load %arg14[%c0_374, %c7_375, %c6_376, %c0_377] : memref<2x8x8x128xf32, #tpu.memory_space<vmem>>, vector<2x1x1x128xf32>
    %276 = vector.shape_cast %275 : vector<2x1x1x128xf32> to vector<2x128xf32>
    %c0_378 = arith.constant 0 : index
    %c7_379 = arith.constant 7 : index
    %c7_380 = arith.constant 7 : index
    %c0_381 = arith.constant 0 : index
    %277 = vector.load %arg14[%c0_378, %c7_379, %c7_380, %c0_381] : memref<2x8x8x128xf32, #tpu.memory_space<vmem>>, vector<2x1x1x128xf32>
    %278 = vector.shape_cast %277 : vector<2x1x1x128xf32> to vector<2x128xf32>
    %279 = arith.maximumf %272, %274 : vector<2x128xf32>
    %280 = arith.maximumf %276, %278 : vector<2x128xf32>
    %281 = arith.maximumf %279, %280 : vector<2x128xf32>
    %282 = tpu.concatenate %116, %127, %138, %149, %160, %171, %182, %193, %204, %215, %226, %237, %248, %259, %270, %281 in 1 : vector<2x128xf32>, vector<2x128xf32>, vector<2x128xf32>, vector<2x128xf32>, vector<2x128xf32>, vector<2x128xf32>, vector<2x128xf32>, vector<2x128xf32>, vector<2x128xf32>, vector<2x128xf32>, vector<2x128xf32>, vector<2x128xf32>, vector<2x128xf32>, vector<2x128xf32>, vector<2x128xf32>, vector<2x128xf32> -> vector<2x2048xf32>
    %283 = arith.truncf %282 : vector<2x2048xf32> to vector<2x2048xbf16>
    %c0_382 = arith.constant 0 : index
    %c0_383 = arith.constant 0 : index
    %284 = vector.load %arg7[%c0_382, %c0_383] : memref<2048x512xbf16, #tpu.memory_space<vmem>>, vector<2048x512xbf16>
    %cst_384 = arith.constant dense<0.000000e+00> : vector<2x512xf32>
    %285 = tpu.matmul %283, %284, %cst_384 {dimension_numbers = #tpu.dot_dimension_numbers<[1], [0], [0], [1], [0, 0, 1, 1], [], []>} : vector<2x2048xbf16>, vector<2048x512xbf16>, vector<2x512xf32> -> vector<2x512xf32>
    %c0_385 = arith.constant 0 : index
    %c0_386 = arith.constant 0 : index
    %286 = vector.load %arg8[%c0_385, %c0_386] : memref<1x512xf32, #tpu.memory_space<vmem>>, vector<1x512xf32>
    %287 = vector.broadcast %286 : vector<1x512xf32> to vector<2x512xf32>
    %288 = arith.addf %285, %287 : vector<2x512xf32>
    %cst_387 = arith.constant 0.000000e+00 : f32
    %289 = vector.broadcast %cst_387 : f32 to vector<2x512xf32>
    %290 = arith.maximumf %288, %289 : vector<2x512xf32>
    %291 = arith.truncf %290 : vector<2x512xf32> to vector<2x512xbf16>
    %c0_388 = arith.constant 0 : index
    %c0_389 = arith.constant 0 : index
    %292 = vector.load %arg9[%c0_388, %c0_389] : memref<512x128xbf16, #tpu.memory_space<vmem>>, vector<512x128xbf16>
    %cst_390 = arith.constant dense<0.000000e+00> : vector<2x128xf32>
    %293 = tpu.matmul %291, %292, %cst_390 {dimension_numbers = #tpu.dot_dimension_numbers<[1], [0], [0], [1], [0, 0, 1, 1], [], []>} : vector<2x512xbf16>, vector<512x128xbf16>, vector<2x128xf32> -> vector<2x128xf32>
    %c0_391 = arith.constant 0 : index
    %c0_392 = arith.constant 0 : index
    %294 = vector.load %arg10[%c0_391, %c0_392] : memref<1x128xf32, #tpu.memory_space<vmem>>, vector<1x128xf32>
    %295 = vector.broadcast %294 : vector<1x128xf32> to vector<2x128xf32>
    %296 = arith.addf %293, %295 : vector<2x128xf32>
    %cst_393 = arith.constant dense<0xFF800000> : vector<2xf32>
    %297 = vector.multi_reduction <maximumf>, %296, %cst_393 [1] : vector<2x128xf32> to vector<2xf32>
    %298 = vector.shape_cast %297 : vector<2xf32> to vector<2x1xf32>
    %299 = vector.broadcast %298 : vector<2x1xf32> to vector<2x128xf32>
    %300 = arith.subf %296, %299 : vector<2x128xf32>
    %301 = math.exp %300 : vector<2x128xf32>
    %cst_394 = arith.constant dense<0.000000e+00> : vector<2xf32>
    %302 = vector.multi_reduction <add>, %301, %cst_394 [1] : vector<2x128xf32> to vector<2xf32>
    %303 = vector.shape_cast %302 : vector<2xf32> to vector<2x1xf32>
    %304 = math.log %303 : vector<2x1xf32>
    %305 = arith.addf %298, %304 : vector<2x1xf32>
    %306 = vector.broadcast %305 : vector<2x1xf32> to vector<2x128xf32>
    %307 = arith.subf %296, %306 : vector<2x128xf32>
    %c0_395 = arith.constant 0 : index
    %c0_396 = arith.constant 0 : index
    %308 = vector.load %arg11[%c0_395, %c0_396] : memref<2x128xf32, #tpu.memory_space<vmem>>, vector<2x128xf32>
    tpu.vector_store %arg11[%c0_395, %c0_396], %307 {strides = array<i32>} : memref<2x128xf32, #tpu.memory_space<vmem>>, vector<2x128xf32>,
    return
  }
  func.func @transform_0(%arg0: i32) -> (i32, i32) {
    %c0_i32 = arith.constant 0 : i32
    %c0_i32_0 = arith.constant 0 : i32
    return %arg0, %c0_i32 : i32, i32
  }
  func.func @transform_1(%arg0: i32) -> (i32, i32) {
    %c0_i32 = arith.constant 0 : i32
    %c0_i32_0 = arith.constant 0 : i32
    return %arg0, %c0_i32 : i32, i32
  }
  func.func @transform_2(%arg0: i32) -> (i32, i32) {
    %c0_i32 = arith.constant 0 : i32
    %c0_i32_0 = arith.constant 0 : i32
    %c0_i32_1 = arith.constant 0 : i32
    return %c0_i32, %c0_i32_0 : i32, i32
  }
  func.func @transform_3(%arg0: i32) -> (i32, i32) {
    %c0_i32 = arith.constant 0 : i32
    %c0_i32_0 = arith.constant 0 : i32
    %c0_i32_1 = arith.constant 0 : i32
    return %c0_i32, %c0_i32_0 : i32, i32
  }
  func.func @transform_4(%arg0: i32) -> (i32, i32) {
    %c0_i32 = arith.constant 0 : i32
    %c0_i32_0 = arith.constant 0 : i32
    %c0_i32_1 = arith.constant 0 : i32
    return %c0_i32, %c0_i32_0 : i32, i32
  }
  func.func @transform_5(%arg0: i32) -> (i32, i32) {
    %c0_i32 = arith.constant 0 : i32
    %c0_i32_0 = arith.constant 0 : i32
    %c0_i32_1 = arith.constant 0 : i32
    return %c0_i32, %c0_i32_0 : i32, i32
  }
  func.func @transform_6(%arg0: i32) -> (i32, i32) {
    %c0_i32 = arith.constant 0 : i32
    %c0_i32_0 = arith.constant 0 : i32
    %c0_i32_1 = arith.constant 0 : i32
    return %c0_i32, %c0_i32_0 : i32, i32
  }
  func.func @transform_7(%arg0: i32) -> (i32, i32) {
    %c0_i32 = arith.constant 0 : i32
    %c0_i32_0 = arith.constant 0 : i32
    %c0_i32_1 = arith.constant 0 : i32
    return %c0_i32, %c0_i32_0 : i32, i32
  }
  func.func @transform_8(%arg0: i32) -> (i32, i32) {
    %c0_i32 = arith.constant 0 : i32
    %c0_i32_0 = arith.constant 0 : i32
    %c0_i32_1 = arith.constant 0 : i32
    return %c0_i32, %c0_i32_0 : i32, i32
  }
  func.func @transform_9(%arg0: i32) -> (i32, i32) {
    %c0_i32 = arith.constant 0 : i32
    %c0_i32_0 = arith.constant 0 : i32
    %c0_i32_1 = arith.constant 0 : i32
    return %c0_i32, %c0_i32_0 : i32, i32
  }
  func.func @transform_10(%arg0: i32) -> (i32, i32) {
    %c0_i32 = arith.constant 0 : i32
    %c0_i32_0 = arith.constant 0 : i32
    return %arg0, %c0_i32 : i32, i32
  }
}

</mosaic_0001>

<bundles_post_ra>
// kernel: mnistnet_forward.1
= control target key start
LH: loop header
LB: loop body
LE: loop exit
PB: predicated region body
PF: predicated region fallthrough
CT: control target
= control target key end

     0   :  { %vm305_vm0 = vcmask 261120   ;;  %s16710_s0 = inlined_call_operand.vmem [shape: bf16[576,32], index: 0, kind: input, shape index: {}]   ;;  %s16711_s1 = inlined_call_operand.vmem [shape: bf16[576,32], index: 1, kind: input, shape index: {}]   ;;  %s16712_s2 = inlined_call_operand.vmem [shape: bf16[32,128], index: 2, kind: input, shape index: {}]   ;;  %s16713_s3 = inlined_call_operand.vmem [shape: f32[1,128], index: 3, kind: input, shape index: {}]   ;;  %s16714_s4 = inlined_call_operand.vmem [shape: bf16[3200,128], index: 4, kind: input, shape index: {}]   ;;  %s16715_s5 = inlined_call_operand.vmem [shape: f32[1,128], index: 5, kind: input, shape index: {}]   ;;  %s16716_s6 = inlined_call_operand.vmem [shape: bf16[2048,512], index: 6, kind: input, shape index: {}]   ;;  %s16717_s7 = inlined_call_operand.vmem [shape: f32[1,512], index: 7, kind: input, shape index: {}]   ;;  %s16718_s8 = inlined_call_operand.vmem [shape: bf16[512,128], index: 8, kind: input, shape index: {}]   ;;  %s16719_s9 = inlined_call_operand.vmem [shape: f32[1,128], index: 9, kind: input, shape index: {}]   ;;  %s16720_s10 = inlined_call_operand.hbm [shape: f32[2,128], index: 10, kind: output, shape index: {}]  }
   0x1   :  { %v11907_v0 = vld [vmem:[%s16712_s2] sm:$0xff]   ;;  %v11908_v1 = vld [vmem:[%s16712_s2 + $0x8] sm:$0xff]   ;;  %v11913_v6 = vld [vmem:[%s16710_s0 + $0x10] sm:$0xff]  }
   0x2   :  { %11662 = vmatprep.subr.bf16.mxu0 %v11907_v0  ;;  %11738 = vmatprep.subr.bf16.mxu1 %v11907_v0  ;;  %v11909_v2 = vld [vmem:[%s16710_s0] sm:$0xff]   ;;  %v11911_v4 = vld [vmem:[%s16710_s0 + $0x8] sm:$0xff]   ;;  %v11914_v7 = vld [vmem:[%s16711_s1 + $0x10] sm:$0xff]  }
   0x3   :  { %11663 = vmatpush3.bf16.msra.mxu0 %v11907_v0  ;;  %11739 = vmatpush3.bf16.msra.mxu1 %v11907_v0  ;;  %v11910_v3 = vld [vmem:[%s16711_s1] sm:$0xff]   ;;  %v11912_v5 = vld [vmem:[%s16711_s1 + $0x8] sm:$0xff]   ;;  %v11915_v8 = vld [vmem:[%s16710_s0 + $0x18] sm:$0xff]  }
   0x4   :  { %11664 = vmatprep.subr.bf16.mxu0 %v11908_v1  ;;  %11740 = vmatprep.subr.bf16.mxu1 %v11908_v1  ;;  %v11916_v9 = vld [vmem:[%s16711_s1 + $0x18] sm:$0xff]   ;;  %v11917_v10 = vld [vmem:[%s16710_s0 + $0x20] sm:$0xff]   ;;  %v11919_v12 = vld [vmem:[%s16710_s0 + $0x28] sm:$0xff]  }
   0x5   :  { %11666 = vmatprep.mubr.msk.bf16.mxu0 %vm305_vm0, %v11909_v2  ;;  %11742 = vmatprep.mubr.msk.bf16.mxu1 %vm305_vm0, %v11910_v3  ;;  %v11918_v11 = vld [vmem:[%s16711_s1 + $0x20] sm:$0xff]   ;;  %v11920_v13 = vld [vmem:[%s16711_s1 + $0x28] sm:$0xff]   ;;  %v11921_v14 = vld [vmem:[%s16710_s0 + $0x30] sm:$0xff]  }
   0x6   :  { %v11922_v15 = vld [vmem:[%s16711_s1 + $0x30] sm:$0xff]   ;;  %v11923_v16 = vld [vmem:[%s16710_s0 + $0x38] sm:$0xff]   ;;  %v11925_v18 = vld [vmem:[%s16710_s0 + $0x40] sm:$0xff]  }
   0x7   :  { %11665 = vmatpush3.bf16.msra.mxu0 %v11908_v1  ;;  %11741 = vmatpush3.bf16.msra.mxu1 %v11908_v1  ;;  %v11924_v17 = vld [vmem:[%s16711_s1 + $0x38] sm:$0xff]   ;;  %v11926_v19 = vld [vmem:[%s16711_s1 + $0x40] sm:$0xff]   ;;  %v11927_v20 = vld [vmem:[%s16710_s0 + $0x48] sm:$0xff]  }
   0x8   :  { %v11928_v21 = vld [vmem:[%s16711_s1 + $0x48] sm:$0xff]   ;;  %v11929_v22 = vld [vmem:[%s16710_s0 + $0x50] sm:$0xff]   ;;  %v11931_v24 = vld [vmem:[%s16710_s0 + $0x58] sm:$0xff]  }
   0x9   :  { %v11930_v23 = vld [vmem:[%s16711_s1 + $0x50] sm:$0xff]   ;;  %v11932_v25 = vld [vmem:[%s16711_s1 + $0x58] sm:$0xff]   ;;  %v11933_v26 = vld [vmem:[%s16710_s0 + $0x60] sm:$0xff]  }
   0xa   :  { %11667 = vmatmul.mubr.msk.bf16.vlgmr.msra.gmra.mrb[0].mxu0 %vm305_vm0, %v11911_v4  ;;  %11743 = vmatmul.mubr.msk.bf16.vlgmr.msra.gmra.mrb[0].mxu1 %vm305_vm0, %v11912_v5  ;;  %v11934_v27 = vld [vmem:[%s16711_s1 + $0x60] sm:$0xff]   ;;  %v11935_v28 = vld [vmem:[%s16710_s0 + $0x68] sm:$0xff]   ;;  %v11937_v30 = vld [vmem:[%s16710_s0 + $0x70] sm:$0xff]  }
   0xb   :  { %11670 = vmatprep.mubr.msk.bf16.mxu0 %vm305_vm0, %v11913_v6  ;;  %11746 = vmatprep.mubr.msk.bf16.mxu1 %vm305_vm0, %v11914_v7  ;;  %v11936_v29 = vld [vmem:[%s16711_s1 + $0x68] sm:$0xff]   ;;  %v11938_v31 = vld [vmem:[%s16711_s1 + $0x70] sm:$0xff]   ;;  %v11939_v32 = vld [vmem:[%s16710_s0 + $0x78] sm:$0xff]  }
   0xc   :  { %v11940_v33 = vld [vmem:[%s16711_s1 + $0x78] sm:$0xff]   ;;  %v11941_v34 = vld [vmem:[%s16710_s0 + $0x80] sm:$0xff]   ;;  %v11943_v38 = vld [vmem:[%s16710_s0 + $0x88] sm:$0xff]  }
   0xd   :  { %v11942_v35 = vld [vmem:[%s16711_s1 + $0x80] sm:$0xff]   ;;  %v11944_v39 = vld [vmem:[%s16711_s1 + $0x88] sm:$0xff]   ;;  %v11945_v40 = vld [vmem:[%s16710_s0 + $0x90] sm:$0xff]  }
   0xe   :  { %v11973_v36 = vld [vmem:[%s16714_s4 + $0x40] sm:$0xff]   ;;  %v11946_v41 = vld [vmem:[%s16711_s1 + $0x90] sm:$0xff]   ;;  %v11979_v42 = vld [vmem:[%s16714_s4 + $0x48] sm:$0xff]  }
   0xf   :  { %v11974_v37 = vld [vmem:[%s16714_s4] sm:$0xff]   ;;  %10834 = vmatprep.subr.bf16.mxu0 %v11973_v36  ;;  %v11980_v43 = vld [vmem:[%s16714_s4 + $0x8] sm:$0xff]   ;;  %v11947_v44 = vld [vmem:[%s16710_s0 + $0x98] sm:$0xff]  }
  0x10   :  { %10835 = vmatpush3.bf16.msra.mxu0 %v11974_v37  ;;  %v11948_v45 = vld [vmem:[%s16711_s1 + $0x98] sm:$0xff]   ;;  %v11949_v46 = vld [vmem:[%s16710_s0 + $0xa0] sm:$0xff]   ;;  %v11985_v48 = vld [vmem:[%s16714_s4 + $0x50] sm:$0xff]  }
  0x11   :  { %10836 = vmatprep.subr.bf16.mxu0 %v11979_v42  ;;  %v11950_v47 = vld [vmem:[%s16711_s1 + $0xa0] sm:$0xff]   ;;  %v11986_v49 = vld [vmem:[%s16714_s4 + $0x10] sm:$0xff]   ;;  %v11989_v52 = vld [vmem:[%s16714_s4 + $0x58] sm:$0xff]  }
  0x12   :  { %11671 = vmatmul.mubr.msk.bf16.gmra.mrb[4].mxu0 %vm305_vm0, %v11915_v8  ;;  %11747 = vmatmul.mubr.msk.bf16.gmra.mrb[4].mxu1 %vm305_vm0, %v11916_v9  ;;  %v11987_v50 = vld [vmem:[%s16714_s4 + $0xc0] sm:$0xff]   ;;  %v11990_v53 = vld [vmem:[%s16714_s4 + $0x18] sm:$0xff]   ;;  %v11951_v54 = vld [vmem:[%s16710_s0 + $0xa8] sm:$0xff]  }
  0x13   :  { %11674 = vmatprep.mubr.msk.bf16.mxu0 %vm305_vm0, %v11917_v10  ;;  %11750 = vmatprep.mubr.msk.bf16.mxu1 %vm305_vm0, %v11918_v11  ;;  %v11988_v51 = vld [vmem:[%s16714_s4 + $0x80] sm:$0xff]   ;;  %v11952_v55 = vld [vmem:[%s16711_s1 + $0xa8] sm:$0xff]   ;;  %v11953_v56 = vld [vmem:[%s16710_s0 + $0xb0] sm:$0xff]  }
  0x14   :  { %10837 = vmatpush3.bf16.msra.mxu0 %v11980_v43  ;;  %10898 = vmatprep.subr.bf16.mxu1 %v11987_v50  ;;  %v11954_v57 = vld [vmem:[%s16711_s1 + $0xb0] sm:$0xff]   ;;  %v11955_v58 = vld [vmem:[%s16710_s0 + $0xb8] sm:$0xff]   ;;  %v11957_v60 = vld [vmem:[%s16710_s0 + $0xc0] sm:$0xff]  }
  0x15   :  { %10838 = vmatprep.subr.bf16.mxu0 %v11985_v48  ;;  %10899 = vmatpush3.bf16.msra.mxu1 %v11988_v51  ;;  %v11956_v59 = vld [vmem:[%s16711_s1 + $0xb8] sm:$0xff]   ;;  %v11958_v61 = vld [vmem:[%s16711_s1 + $0xc0] sm:$0xff]   ;;  %v11959_v62 = vld [vmem:[%s16710_s0 + $0xc8] sm:$0xff]  }
  0x16   :  { %v11960_v63 = vld [vmem:[%s16711_s1 + $0xc8] sm:$0xff]   ;;  %v11961_v0 = vld [vmem:[%s16710_s0 + $0xd0] sm:$0xff]   ;;  %v11963_v6 = vld [vmem:[%s16710_s0 + $0xd8] sm:$0xff]  }
  0x17   :  { %v11962_v1 = vld [vmem:[%s16711_s1 + $0xd0] sm:$0xff]   ;;  %v11991_v2 = vld [vmem:[%s16714_s4 + $0xc8] sm:$0xff]   ;;  %v11964_v7 = vld [vmem:[%s16711_s1 + $0xd8] sm:$0xff]  }
  0x18   :  { %10839 = vmatpush3.bf16.msra.mxu0 %v11986_v49  ;;  %v11992_v3 = vld [vmem:[%s16714_s4 + $0x88] sm:$0xff]   ;;  %10900 = vmatprep.subr.bf16.mxu1 %v11991_v2  ;;  %v11995_v4 = vld [vmem:[%s16714_s4 + $0xd0] sm:$0xff]   ;;  %v11965_v8 = vld [vmem:[%s16710_s0 + $0xe0] sm:$0xff]  }
  0x19   :  { %10840 = vmatprep.subr.bf16.mxu0 %v11989_v52  ;;  %10901 = vmatpush3.bf16.msra.mxu1 %v11992_v3  ;;  %v11996_v5 = vld [vmem:[%s16714_s4 + $0x90] sm:$0xff]   ;;  %v11966_v9 = vld [vmem:[%s16711_s1 + $0xe0] sm:$0xff]   ;;  %v11997_v10 = vld [vmem:[%s16714_s4 + $0xd8] sm:$0xff]  }
  0x1a   :  { %11675 = vmatmul.mubr.msk.bf16.gmra.mrb[8].mxu0 %vm305_vm0, %v11919_v12  ;;  %11751 = vmatmul.mubr.msk.bf16.gmra.mrb[8].mxu1 %vm305_vm0, %v11920_v13  ;;  %v11993_v11 = vld [vmem:[%s16714_s4 + $0x60] sm:$0xff]   ;;  %v11998_v13 = vld [vmem:[%s16714_s4 + $0x98] sm:$0xff]   ;;  %v11977_v36 = vld [vmem:[%s16710_s0 + $0x108] sm:$0xff]  }
  0x1b   :  { %11678 = vmatprep.mubr.msk.bf16.mxu0 %vm305_vm0, %v11921_v14  ;;  %11754 = vmatprep.mubr.msk.bf16.mxu1 %vm305_vm0, %v11922_v15  ;;  %v11994_v12 = vld [vmem:[%s16714_s4 + $0x20] sm:$0xff]   ;;  %v11978_v37 = vld [vmem:[%s16711_s1 + $0x108] sm:$0xff]  }
  0x1c   :  { %10841 = vmatpush3.bf16.msra.mxu0 %v11990_v53  ;;  %10902 = vmatprep.subr.bf16.mxu1 %v11995_v4  ;;  %v11999_v14 = vld [vmem:[%s16714_s4 + $0xe0] sm:$0xff]  }
  0x1d   :  { %10903 = vmatpush3.bf16.msra.mxu1 %v11996_v5  ;;  %10842 = vmatprep.subr.bf16.mxu0 %v11993_v11  ;;  %v12000_v15 = vld [vmem:[%s16714_s4 + $0xa0] sm:$0xff]  }
  0x1e   :  { %10904 = vmatprep.subr.bf16.mxu1 %v11997_v10  ;;  %v12013_v42 = vld [vmem:[%s16714_s4 + $0x140] sm:$0xff]  }
  0x1f   :  { %v12023_v43 = vld [vmem:[%s16714_s4 + $0x1c0] sm:$0xff]  }
  0x20   :  { %10843 = vmatpush3.bf16.msra.mxu0 %v11994_v12 }
  0x21   :  { %10905 = vmatpush3.bf16.msra.mxu1 %v11998_v13 }
  0x22   :  { %11679 = vmatmul.mubr.msk.bf16.gmra.mrb[12].mxu0 %vm305_vm0, %v11923_v16  ;;  %11755 = vmatmul.mubr.msk.bf16.gmra.mrb[12].mxu1 %vm305_vm0, %v11924_v17  ;;  %v11967_v16 = vld [vmem:[%s16710_s0 + $0xe8] sm:$0xff]  }
  0x23   :  { %11682 = vmatprep.mubr.msk.bf16.mxu0 %vm305_vm0, %v11925_v18  ;;  %11758 = vmatprep.mubr.msk.bf16.mxu1 %vm305_vm0, %v11926_v19  ;;  %v11968_v17 = vld [vmem:[%s16711_s1 + $0xe8] sm:$0xff]   ;;  %v11969_v18 = vld [vmem:[%s16710_s0 + $0xf0] sm:$0xff]  }
  0x24   :  { %10906 = vmatprep.subr.bf16.mxu1 %v11999_v14  ;;  %v11970_v19 = vld [vmem:[%s16711_s1 + $0xf0] sm:$0xff]  }
  0x25   :  { %10907 = vmatpush3.bf16.msra.mxu1 %v12000_v15 }
  0x2a   :  { %11683 = vmatmul.mubr.msk.bf16.gmra.mrb[16].mxu0 %vm305_vm0, %v11927_v20  ;;  %11759 = vmatmul.mubr.msk.bf16.gmra.mrb[16].mxu1 %vm305_vm0, %v11928_v21  ;;  %v12001_v20 = vld [vmem:[%s16714_s4 + $0x68] sm:$0xff]  }
  0x2b   :  { %11686 = vmatprep.mubr.msk.bf16.mxu0 %vm305_vm0, %v11929_v22  ;;  %11762 = vmatprep.mubr.msk.bf16.mxu1 %vm305_vm0, %v11930_v23  ;;  %v12002_v21 = vld [vmem:[%s16714_s4 + $0xe8] sm:$0xff]  }
  0x2c   :  { %v12003_v22 = vld [vmem:[%s16714_s4 + $0x28] sm:$0xff]   ;;  %10844 = vmatprep.subr.bf16.mxu0 %v12001_v20  ;;  %10908 = vmatprep.subr.bf16.mxu1 %v12002_v21 }
  0x2d   :  { %v12004_v23 = vld [vmem:[%s16714_s4 + $0xa8] sm:$0xff]   ;;  %10845 = vmatpush3.bf16.msra.mxu0 %v12003_v22 }
  0x2e   :  { %10909 = vmatpush3.bf16.msra.mxu1 %v12004_v23 }
  0x32   :  { %11687 = vmatmul.mubr.msk.bf16.gmra.mrb[20].mxu0 %vm305_vm0, %v11931_v24  ;;  %11763 = vmatmul.mubr.msk.bf16.gmra.mrb[20].mxu1 %vm305_vm0, %v11932_v25  ;;  %v12005_v24 = vld [vmem:[%s16714_s4 + $0x70] sm:$0xff]  }
  0x33   :  { %11690 = vmatprep.mubr.msk.bf16.mxu0 %vm305_vm0, %v11933_v26  ;;  %11766 = vmatprep.mubr.msk.bf16.mxu1 %vm305_vm0, %v11934_v27  ;;  %v12006_v25 = vld [vmem:[%s16714_s4 + $0xf0] sm:$0xff]  }
  0x34   :  { %v12007_v26 = vld [vmem:[%s16714_s4 + $0x30] sm:$0xff]   ;;  %10846 = vmatprep.subr.bf16.mxu0 %v12005_v24  ;;  %10910 = vmatprep.subr.bf16.mxu1 %v12006_v25 }
  0x35   :  { %v12008_v27 = vld [vmem:[%s16714_s4 + $0xb0] sm:$0xff]   ;;  %10847 = vmatpush3.bf16.msra.mxu0 %v12007_v26 }
  0x36   :  { %10911 = vmatpush3.bf16.msra.mxu1 %v12008_v27 }
  0x3a   :  { %11691 = vmatmul.mubr.msk.bf16.gmra.mrb[24].mxu0 %vm305_vm0, %v11935_v28  ;;  %11767 = vmatmul.mubr.msk.bf16.gmra.mrb[24].mxu1 %vm305_vm0, %v11936_v29  ;;  %v11971_v28 = vld [vmem:[%s16710_s0 + $0xf8] sm:$0xff]  }
  0x3b   :  { %11694 = vmatprep.mubr.msk.bf16.mxu0 %vm305_vm0, %v11937_v30  ;;  %11770 = vmatprep.mubr.msk.bf16.mxu1 %vm305_vm0, %v11938_v31  ;;  %v11972_v29 = vld [vmem:[%s16711_s1 + $0xf8] sm:$0xff]   ;;  %v11975_v30 = vld [vmem:[%s16710_s0 + $0x100] sm:$0xff]  }
  0x3c   :  { %v11976_v31 = vld [vmem:[%s16711_s1 + $0x100] sm:$0xff]  }
  0x42   :  { %11695 = vmatmul.mubr.msk.bf16.gmra.mrb[28].mxu0 %vm305_vm0, %v11939_v32  ;;  %11771 = vmatmul.mubr.msk.bf16.gmra.mrb[28].mxu1 %vm305_vm0, %v11940_v33  ;;  %v12009_v32 = vld [vmem:[%s16714_s4 + $0x78] sm:$0xff]  }
  0x43   :  { %11698 = vmatprep.mubr.msk.bf16.mxu0 %vm305_vm0, %v11941_v34  ;;  %11774 = vmatprep.mubr.msk.bf16.mxu1 %vm305_vm0, %v11942_v35  ;;  %v12010_v33 = vld [vmem:[%s16714_s4 + $0xf8] sm:$0xff]  }
  0x44   :  { %v12011_v34 = vld [vmem:[%s16714_s4 + $0x38] sm:$0xff]   ;;  %10848 = vmatprep.subr.bf16.mxu0 %v12009_v32  ;;  %10912 = vmatprep.subr.bf16.mxu1 %v12010_v33 }
  0x45   :  { %v12012_v35 = vld [vmem:[%s16714_s4 + $0xb8] sm:$0xff]   ;;  %10849 = vmatpush3.bf16.msra.mxu0 %v12011_v34 }
  0x46   :  { %10913 = vmatpush3.bf16.msra.mxu1 %v12012_v35  ;;  %10962 = vmatprep.subr.bf16.mxu0 %v12013_v42 }
  0x47   :  { %11026 = vmatprep.subr.bf16.mxu1 %v12023_v43 }
  0x4a   :  { %11699 = vmatmul.mubr.msk.bf16.gmra.mrb[32].mxu0 %vm305_vm0, %v11943_v38  ;;  %11775 = vmatmul.mubr.msk.bf16.gmra.mrb[32].mxu1 %vm305_vm0, %v11944_v39  ;;  %v11981_v38 = vld [vmem:[%s16710_s0 + $0x110] sm:$0xff]  }
  0x4b   :  { %11702 = vmatprep.mubr.msk.bf16.mxu0 %vm305_vm0, %v11945_v40  ;;  %11778 = vmatprep.mubr.msk.bf16.mxu1 %vm305_vm0, %v11946_v41  ;;  %v11982_v39 = vld [vmem:[%s16711_s1 + $0x110] sm:$0xff]   ;;  %v11983_v40 = vld [vmem:[%s16710_s0 + $0x118] sm:$0xff]  }
  0x4c   :  { %v11984_v41 = vld [vmem:[%s16711_s1 + $0x118] sm:$0xff]  }
  0x52   :  { %11703 = vmatmul.mubr.msk.bf16.gmra.mrb[36].mxu0 %vm305_vm0, %v11947_v44  ;;  %11779 = vmatmul.mubr.msk.bf16.gmra.mrb[36].mxu1 %vm305_vm0, %v11948_v45  ;;  %v13467_v44 = vld [vmem:[%s16713_s3] ss:$0 sm:$0xff] }
  0x53   :  { %11706 = vmatprep.mubr.msk.bf16.mxu0 %vm305_vm0, %v11949_v46  ;;  %11782 = vmatprep.mubr.msk.bf16.mxu1 %vm305_vm0, %v11950_v47 }
  0x5a   :  { %11707 = vmatmul.mubr.msk.bf16.gmra.mrb[40].mxu0 %vm305_vm0, %v11951_v54  ;;  %11783 = vmatmul.mubr.msk.bf16.gmra.mrb[40].mxu1 %vm305_vm0, %v11952_v55 }
  0x5b   :  { %11710 = vmatprep.mubr.msk.bf16.mxu0 %vm305_vm0, %v11953_v56  ;;  %11786 = vmatprep.mubr.msk.bf16.mxu1 %vm305_vm0, %v11954_v57 }
  0x62   :  { %11711 = vmatmul.mubr.msk.bf16.gmra.mrb[44].mxu0 %vm305_vm0, %v11955_v58  ;;  %11787 = vmatmul.mubr.msk.bf16.gmra.mrb[44].mxu1 %vm305_vm0, %v11956_v59 }
  0x63   :  { %11714 = vmatprep.mubr.msk.bf16.mxu0 %vm305_vm0, %v11957_v60  ;;  %11790 = vmatprep.mubr.msk.bf16.mxu1 %vm305_vm0, %v11958_v61 }
  0x6a   :  { %11715 = vmatmul.mubr.msk.bf16.gmra.mrb[48].mxu0 %vm305_vm0, %v11959_v62  ;;  %11791 = vmatmul.mubr.msk.bf16.gmra.mrb[48].mxu1 %vm305_vm0, %v11960_v63 }
  0x6b   :  { %11718 = vmatprep.mubr.msk.bf16.mxu0 %vm305_vm0, %v11961_v0  ;;  %11794 = vmatprep.mubr.msk.bf16.mxu1 %vm305_vm0, %v11962_v1 }
  0x72   :  { %11719 = vmatmul.mubr.msk.bf16.gmra.mrb[52].mxu0 %vm305_vm0, %v11963_v6  ;;  %11795 = vmatmul.mubr.msk.bf16.gmra.mrb[52].mxu1 %vm305_vm0, %v11964_v7 }
  0x73   :  { %11722 = vmatprep.mubr.msk.bf16.mxu0 %vm305_vm0, %v11965_v8  ;;  %11798 = vmatprep.mubr.msk.bf16.mxu1 %vm305_vm0, %v11966_v9 }
  0x7a   :  { %11723 = vmatmul.mubr.msk.bf16.gmra.mrb[56].mxu0 %vm305_vm0, %v11967_v16  ;;  %11799 = vmatmul.mubr.msk.bf16.gmra.mrb[56].mxu1 %vm305_vm0, %v11968_v17 }
  0x7b   :  { %11726 = vmatprep.mubr.msk.bf16.mxu0 %vm305_vm0, %v11969_v18  ;;  %11802 = vmatprep.mubr.msk.bf16.mxu1 %vm305_vm0, %v11970_v19 }
  0x82   :  { %11727 = vmatmul.mubr.msk.bf16.gmra.mrb[60].mxu0 %vm305_vm0, %v11971_v28  ;;  %11803 = vmatmul.mubr.msk.bf16.gmra.mrb[60].mxu1 %vm305_vm0, %v11972_v29 }
  0x83   :  { %11730 = vmatprep.mubr.msk.bf16.mxu0 %vm305_vm0, %v11975_v30  ;;  %11806 = vmatprep.mubr.msk.bf16.mxu1 %vm305_vm0, %v11976_v31 }
  0x8a   :  { %11731 = vmatmul.mubr.msk.bf16.gmra.mrb[64].mxu0 %vm305_vm0, %v11977_v36  ;;  %11807 = vmatmul.mubr.msk.bf16.gmra.mrb[64].mxu1 %vm305_vm0, %v11978_v37 }
  0x8b   :  { %11734 = vmatprep.mubr.msk.bf16.mxu0 %vm305_vm0, %v11981_v38  ;;  %11810 = vmatprep.mubr.msk.bf16.mxu1 %vm305_vm0, %v11982_v39 }
  0x92   :  { %11735 = vmatmul.mubr.msk.bf16.gmra.mrb[68].mxu0 %vm305_vm0, %v11983_v40  ;;  %11811 = vmatmul.mubr.msk.bf16.gmra.mrb[68].mxu1 %vm305_vm0, %v11984_v41 }
  0xdd   :  { %v11668_v45 = vpop.f32.mrb[0].mxu0  ;;  %v11744_v46 = vpop.f32.mrb[0].mxu1 }
  0xde   :  { %v1418_v47 = vmax.f32 %v11668_v45, %v11744_v46  ;;  %v448_v48 = vpop.f32.mrb[1].mxu0  ;;  %v1129_v49 = vpop.f32.mrb[1].mxu1 }
  0xdf   :  { %v1416_v50 = vmax.f32 %v448_v48, %v1129_v49  ;;  %v11669_v51 = vpop.f32.mrb[2].mxu0  ;;  %v11745_v52 = vpop.f32.mrb[2].mxu1 }
  0xe0   :  { %v1497_v53 = vadd.f32 %v13467_v44, %v1418_v47  ;;  %v1419_v54 = vmax.f32 %v11669_v51, %v11745_v52  ;;  %v451_v55 = vpop.f32.mrb[3].mxu0  ;;  %v1132_v56 = vpop.f32.mrb[3].mxu1 }
  0xe1   :  { %v1495_v57 = vadd.f32 %v13467_v44, %v1416_v50  ;;  %v1417_v58 = vmax.f32 %v451_v55, %v1132_v56 }
  0xe2   :  { %v1569_v59 = vmax.f32 %v1497_v53, 0.0  ;;  %v13472_v60 = vadd.f32 %v13467_v44, %v1419_v54 }
  0xe3   :  { %v1567_v61 = vmax.f32 %v1495_v57, 0.0  ;;  %v1496_v62 = vadd.f32 %v13467_v44, %v1417_v58 }
  0xe4   :  { %1641 = vst [vmem:[#allocation2 + $0x10] sm:$0xff] %v1569_v59  ;;  %v1570_v63 = vmax.f32 %v13472_v60, 0.0 }
  0xe5   :  { %v1568_v0 = vmax.f32 %v1496_v62, 0.0  ;;  %v11672_v1 = vpop.f32.mrb[4].mxu0  ;;  %v11748_v2 = vpop.f32.mrb[4].mxu1 }
  0xe6   :  { %v1422_v3 = vmax.f32 %v11672_v1, %v11748_v2  ;;  %v464_v4 = vpop.f32.mrb[5].mxu0  ;;  %v1145_v5 = vpop.f32.mrb[5].mxu1 }
  0xe7   :  { %1640 = vst [vmem:[#allocation2 + $0x8] sm:$0xff] %v1568_v0  ;;  %v1420_v6 = vmax.f32 %v464_v4, %v1145_v5  ;;  %v11673_v7 = vpop.f32.mrb[6].mxu0  ;;  %v11749_v8 = vpop.f32.mrb[6].mxu1 }
  0xe8   :  { %v13477_v9 = vadd.f32 %v13467_v44, %v1422_v3  ;;  %v1423_v10 = vmax.f32 %v11673_v7, %v11749_v8  ;;  %v467_v11 = vpop.f32.mrb[7].mxu0  ;;  %v1148_v12 = vpop.f32.mrb[7].mxu1 }
  0xe9   :  { %v1499_v13 = vadd.f32 %v13467_v44, %v1420_v6  ;;  %v1421_v14 = vmax.f32 %v467_v11, %v1148_v12 }
  0xea   :  { %v1573_v15 = vmax.f32 %v13477_v9, 0.0  ;;  %v1502_v16 = vadd.f32 %v13467_v44, %v1423_v10 }
  0xeb   :  { %v1571_v17 = vmax.f32 %v1499_v13, 0.0  ;;  %v1500_v18 = vadd.f32 %v13467_v44, %v1421_v14  ;;  %v1760_v23 = vld [vmem:[#allocation2 + $0x14] sm:$0xf] }
  0xec   :  { %v1574_v19 = vmax.f32 %v1502_v16, 0.0 }
  0xed   :  { %1643 = vst [vmem:[#allocation2 + $0x20] sm:$0xff] %v1571_v17  ;;  %v1572_v20 = vmax.f32 %v1500_v18, 0.0  ;;  %v11676_v21 = vpop.f32.mrb[8].mxu0  ;;  %v11752_v22 = vpop.f32.mrb[8].mxu1 }
  0xee   :  { %1646 = vst [vmem:[#allocation2 + $0x38] sm:$0xff] %v1574_v19  ;;  %v1426_v24 = vmax.f32 %v11676_v21, %v11752_v22  ;;  %v480_v25 = vpop.f32.mrb[9].mxu0  ;;  %v1161_v26 = vpop.f32.mrb[9].mxu1  ;;  %v1712_v27 = vld [vmem:[#allocation2 + $0x8] sm:$0xf]  ;;  %v1759_v28 = vld [vmem:[#allocation2 + $0xc] sm:$0xff] }
  0xef   :  { %1644 = vst [vmem:[#allocation2 + $0x28] sm:$0xff] %v1572_v20  ;;  %v1424_v29 = vmax.f32 %v480_v25, %v1161_v26  ;;  %v11677_v30 = vpop.f32.mrb[10].mxu0  ;;  %v11753_v31 = vpop.f32.mrb[10].mxu1  ;;  %v13483_v32 = vmax.f32 %v1567_v61, %v1759_v28  ;;  %v1808_v33 = vmax.f32 %v1712_v27, %v1760_v23 }
  0xf0   :  { %v1505_v34 = vadd.f32 %v13467_v44, %v1426_v24  ;;  %v1427_v35 = vmax.f32 %v11677_v30, %v11753_v31  ;;  %v483_v36 = vpop.f32.mrb[11].mxu0  ;;  %v1164_v37 = vpop.f32.mrb[11].mxu1 }
  0xf1   :  { %v1503_v38 = vadd.f32 %v13467_v44, %v1424_v29  ;;  %v1425_v39 = vmax.f32 %v483_v36, %v1164_v37  ;;  %1855 = vst [vmem:[#allocation3] sm:$0xff] %v13483_v32  ;;  %1856 = vst [vmem:[#allocation3 + $0x8] sm:$0xf] %v1808_v33 }
  0xf2   :  { %v1577_v40 = vmax.f32 %v1505_v34, 0.0  ;;  %v1506_v41 = vadd.f32 %v13467_v44, %v1427_v35 }
  0xf3   :  { %v1575_v42 = vmax.f32 %v1503_v38, 0.0  ;;  %v1504_v43 = vadd.f32 %v13467_v44, %v1425_v39 }
  0xf4   :  { %1649 = vst [vmem:[#allocation2 + $0x50] sm:$0xff] %v1577_v40  ;;  %v1578_v45 = vmax.f32 %v1506_v41, 0.0  ;;  %v1714_v49 = vld [vmem:[#allocation2 + $0x20] sm:$0xf] }
  0xf5   :  { %1647 = vst [vmem:[#allocation2 + $0x40] sm:$0xff] %v1575_v42  ;;  %v1576_v46 = vmax.f32 %v1504_v43, 0.0  ;;  %v11680_v47 = vpop.f32.mrb[12].mxu0  ;;  %v11756_v48 = vpop.f32.mrb[12].mxu1  ;;  %v1716_v7 = vld [vmem:[#allocation2 + $0x38] sm:$0xf] }
  0xf6   :  { %1650 = vst [vmem:[#allocation2 + $0x58] sm:$0xff] %v1578_v45  ;;  %v1430_v50 = vmax.f32 %v11680_v47, %v11756_v48  ;;  %v496_v51 = vpop.f32.mrb[13].mxu0  ;;  %v1177_v52 = vpop.f32.mrb[13].mxu1  ;;  %v1761_v53 = vld [vmem:[#allocation2 + $0x24] sm:$0xff]  ;;  %v1762_v54 = vld [vmem:[#allocation2 + $0x2c] sm:$0xf] }
  0xf7   :  { %v1428_v55 = vmax.f32 %v496_v51, %v1177_v52  ;;  %v11681_v56 = vpop.f32.mrb[14].mxu0  ;;  %v11757_v57 = vpop.f32.mrb[14].mxu1  ;;  %v13492_v58 = vmax.f32 %v1570_v63, %v1761_v53  ;;  %v1810_v59 = vmax.f32 %v1714_v49, %v1762_v54  ;;  %v12014_v42 = vld [vmem:[%s16714_s4 + $0x100] sm:$0xff]   ;;  %v12015_v48 = vld [vmem:[%s16714_s4 + $0x148] sm:$0xff]  }
  0xf8   :  { %v1509_v61 = vadd.f32 %v13467_v44, %v1430_v50  ;;  %v1431_v62 = vmax.f32 %v11681_v56, %v11757_v57  ;;  %v499_v0 = vpop.f32.mrb[15].mxu0  ;;  %v1180_v1 = vpop.f32.mrb[15].mxu1  ;;  %v1927_v24 = vld [vmem:[#allocation3 + $0x1] sm:$0xff]  ;;  %v12017_v57 = vld [vmem:[%s16714_s4 + $0x150] sm:$0xff]  }
  0xf9   :  { %v13496_v2 = vadd.f32 %v13467_v44, %v1428_v55  ;;  %v1429_v3 = vmax.f32 %v499_v0, %v1180_v1  ;;  %1857 = vst [vmem:[#allocation3 + $0x10] sm:$0xff] %v13492_v58  ;;  %1858 = vst [vmem:[#allocation3 + $0x18] sm:$0xf] %v1810_v59  ;;  %v1919_v4 = vpack.c.bf16 %v13492_v58, %v13483_v32  ;;  %v1975_v25 = vld [vmem:[#allocation3 + $0x3] sm:$0xff] }
  0xfa   :  { %v1581_v5 = vmax.f32 %v1509_v61, 0.0  ;;  %v13502_v60 = vadd.f32 %v13467_v44, %v1431_v62  ;;  %v1951_v41 = vld [vmem:[#allocation3 + $0x2] sm:$0xff] }
  0xfb   :  { %v1579_v63 = vmax.f32 %v13496_v2, 0.0  ;;  %v1508_v6 = vadd.f32 %v13467_v44, %v1429_v3  ;;  %v1718_v10 = vld [vmem:[#allocation2 + $0x50] sm:$0xf]  ;;  %v12024_v43 = vld [vmem:[%s16714_s4 + $0x180] sm:$0xff]   ;;  %v12025_v49 = vld [vmem:[%s16714_s4 + $0x1c8] sm:$0xff]  }
  0xfc   :  { %1653 = vst [vmem:[#allocation2 + $0x70] sm:$0xff] %v1581_v5  ;;  %v1582_v8 = vmax.f32 %v13502_v60, 0.0  ;;  %v1763_v11 = vld [vmem:[#allocation2 + $0x3c] sm:$0xff]  ;;  %v1764_v12 = vld [vmem:[#allocation2 + $0x44] sm:$0xf]  ;;  %v12016_v53 = vld [vmem:[%s16714_s4 + $0x108] sm:$0xff]  }
  0xfd   :  { %v1580_v13 = vmax.f32 %v1508_v6, 0.0  ;;  %v11684_v14 = vpop.f32.mrb[16].mxu0  ;;  %v11760_v16 = vpop.f32.mrb[16].mxu1  ;;  %v1765_v17 = vld [vmem:[#allocation2 + $0x54] sm:$0xff]  ;;  %v1766_v18 = vld [vmem:[#allocation2 + $0x5c] sm:$0xf]  ;;  %v13509_v19 = vmax.f32 %v1573_v15, %v1763_v11  ;;  %v1812_v20 = vmax.f32 %v1716_v7, %v1764_v12 }
  0xfe   :  { %v1434_v21 = vmax.f32 %v11684_v14, %v11760_v16  ;;  %v512_v22 = vpop.f32.mrb[17].mxu0  ;;  %v1193_v23 = vpop.f32.mrb[17].mxu1  ;;  %v13511_v26 = vmax.f32 %v1576_v46, %v1765_v17  ;;  %v1814_v27 = vmax.f32 %v1718_v10, %v1766_v18  ;;  %v12026_v58 = vld [vmem:[%s16714_s4 + $0x188] sm:$0xff]   ;;  %v12019_v2 = vld [vmem:[%s16714_s4 + $0x158] sm:$0xff]   ;;  %v12035_v60 = vld [vmem:[%s16714_s4 + $0x1e0] sm:$0xff]  }
  0xff   :  { %1652 = vst [vmem:[#allocation2 + $0x68] sm:$0xff] %v1580_v13  ;;  %v1432_v28 = vmax.f32 %v512_v22, %v1193_v23  ;;  %v11685_v29 = vpop.f32.mrb[18].mxu0  ;;  %v11761_v30 = vpop.f32.mrb[18].mxu1  ;;  %1859 = vst [vmem:[#allocation3 + $0x20] sm:$0xff] %v13509_v19 }
 0x100   :  { %1860 = vst [vmem:[#allocation3 + $0x28] sm:$0xf] %v1812_v20  ;;  %v13515_v9 = vadd.f32 %v13467_v44, %v1434_v21  ;;  %v1435_v15 = vmax.f32 %v11685_v29, %v11761_v30  ;;  %v515_v31 = vpop.f32.mrb[19].mxu0  ;;  %v1196_v32 = vpop.f32.mrb[19].mxu1  ;;  %v1928_v33 = vld [vmem:[#allocation3 + $0x11] sm:$0xff]  ;;  %1861 = vst [vmem:[#allocation3 + $0x30] sm:$0xff] %v13511_v26  ;;  %v1920_v36 = vpack.c.bf16 %v13511_v26, %v13509_v19 }
 0x101   :  { %v1976_v34 = vld [vmem:[#allocation3 + $0x13] sm:$0xff]  ;;  %1862 = vst [vmem:[#allocation3 + $0x38] sm:$0xf] %v1814_v27  ;;  %v1511_v37 = vadd.f32 %v13467_v44, %v1432_v28  ;;  %v1433_v38 = vmax.f32 %v515_v31, %v1196_v32  ;;  %v1943_v39 = vpack.c.bf16 %v1928_v33, %v1927_v24 }
 0x102   :  { %v1952_v35 = vld [vmem:[#allocation3 + $0x12] sm:$0xff]  ;;  %v1991_v40 = vpack.c.bf16 %v1976_v34, %v1975_v25  ;;  %v1585_v45 = vmax.f32 %v13515_v9, 0.0  ;;  %v1514_v46 = vadd.f32 %v13467_v44, %v1435_v15 }
 0x103   :  { %v1967_v47 = vpack.c.bf16 %v1952_v35, %v1951_v41  ;;  %v1583_v50 = vmax.f32 %v1511_v37, 0.0  ;;  %v1512_v51 = vadd.f32 %v13467_v44, %v1433_v38  ;;  %4146 = vmatprep.mubr.bf16.mxu0 %v1943_v39  ;;  %v1768_v24 = vld [vmem:[#allocation2 + $0x74] sm:$0xf]  ;;  %v12031_v35 = vld [vmem:[%s16714_s4 + $0x1d8] sm:$0xff]  }
 0x104   :  { %4243 = vmatprep.mubr.bf16.mxu1 %v1991_v40  ;;  %v1586_v52 = vmax.f32 %v1514_v46, 0.0  ;;  %4147 = vmatmul.mubr.bf16.vlgmr.msra.gmra.mrb[72].mxu0 %v1919_v4  ;;  %v12018_v27 = vld [vmem:[%s16714_s4 + $0x110] sm:$0xff]   ;;  %v12020_v41 = vld [vmem:[%s16714_s4 + $0x118] sm:$0xff]   ;;  %v12021_v46 = vld [vmem:[%s16714_s4 + $0x160] sm:$0xff]  }
 0x105   :  { %4244 = vmatmul.mubr.bf16.vlgmr.msra.gmra.mrb[72].mxu1 %v1967_v47  ;;  %1655 = vst [vmem:[#allocation2 + $0x80] sm:$0xff] %v1583_v50  ;;  %v1584_v54 = vmax.f32 %v1512_v51, 0.0  ;;  %v11688_v55 = vpop.f32.mrb[20].mxu0  ;;  %v11764_v56 = vpop.f32.mrb[20].mxu1  ;;  %10963 = vmatpush3.bf16.msra.mxu0 %v12014_v42  ;;  %v12029_v28 = vld [vmem:[%s16714_s4 + $0x1d0] sm:$0xff]  }
 0x106   :  { %11027 = vmatpush3.bf16.msra.mxu1 %v12024_v43  ;;  %1658 = vst [vmem:[#allocation2 + $0x98] sm:$0xff] %v1586_v52  ;;  %v1438_v59 = vmax.f32 %v11688_v55, %v11764_v56  ;;  %v528_v61 = vpop.f32.mrb[21].mxu0  ;;  %v1209_v62 = vpop.f32.mrb[21].mxu1  ;;  %10964 = vmatprep.subr.bf16.mxu0 %v12015_v48  ;;  %v1720_v20 = vld [vmem:[#allocation2 + $0x68] sm:$0xf]  ;;  %v1767_v21 = vld [vmem:[#allocation2 + $0x6c] sm:$0xff] }
 0x107   :  { %v1929_v0 = vld [vmem:[#allocation3 + $0x21] sm:$0xff]  ;;  %11028 = vmatprep.subr.bf16.mxu1 %v12025_v49  ;;  %1656 = vst [vmem:[#allocation2 + $0x88] sm:$0xff] %v1584_v54  ;;  %v1436_v4 = vmax.f32 %v528_v61, %v1209_v62  ;;  %v11689_v5 = vpop.f32.mrb[22].mxu0  ;;  %v11765_v6 = vpop.f32.mrb[22].mxu1  ;;  %v13549_v25 = vmax.f32 %v1579_v63, %v1767_v21  ;;  %v1816_v31 = vmax.f32 %v1720_v20, %v1768_v24  ;;  %v12030_v33 = vld [vmem:[%s16714_s4 + $0x190] sm:$0xff]   ;;  %v12032_v52 = vld [vmem:[%s16714_s4 + $0x198] sm:$0xff]  }
 0x108   :  { %v1977_v1 = vld [vmem:[#allocation3 + $0x23] sm:$0xff]  ;;  %v1930_v7 = vld [vmem:[#allocation3 + $0x31] sm:$0xff]  ;;  %v1517_v12 = vadd.f32 %v13467_v44, %v1438_v59  ;;  %v1439_v13 = vmax.f32 %v11689_v5, %v11765_v6  ;;  %v531_v14 = vpop.f32.mrb[23].mxu0  ;;  %v1212_v16 = vpop.f32.mrb[23].mxu1 }
 0x109   :  { %v1953_v3 = vld [vmem:[#allocation3 + $0x22] sm:$0xff]  ;;  %v1978_v10 = vld [vmem:[#allocation3 + $0x33] sm:$0xff]  ;;  %v1944_v17 = vpack.c.bf16 %v1930_v7, %v1929_v0  ;;  %v1515_v22 = vadd.f32 %v13467_v44, %v1436_v4  ;;  %v1437_v23 = vmax.f32 %v531_v14, %v1212_v16  ;;  %10965 = vmatpush3.bf16.msra.mxu0 %v12016_v53  ;;  %1863 = vst [vmem:[#allocation3 + $0x40] sm:$0xff] %v13549_v25  ;;  %1864 = vst [vmem:[#allocation3 + $0x48] sm:$0xf] %v1816_v31 }
 0x10a   :  { %v1954_v11 = vld [vmem:[#allocation3 + $0x32] sm:$0xff]  ;;  %v1992_v18 = vpack.c.bf16 %v1978_v10, %v1977_v1  ;;  %v1589_v29 = vmax.f32 %v1517_v12, 0.0  ;;  %v1518_v30 = vadd.f32 %v13467_v44, %v1439_v13  ;;  %10966 = vmatprep.subr.bf16.mxu0 %v12017_v57  ;;  %11029 = vmatpush3.bf16.msra.mxu1 %v12026_v58  ;;  %v12022_v57 = vld [vmem:[%s16714_s4 + $0x120] sm:$0xff]   ;;  %v12027_v0 = vld [vmem:[%s16714_s4 + $0x168] sm:$0xff]  }
 0x10b   :  { %4154 = vmatprep.mubr.bf16.mxu0 %v1944_v17  ;;  %v1968_v15 = vpack.c.bf16 %v1954_v11, %v1953_v3  ;;  %v1587_v63 = vmax.f32 %v1515_v22, 0.0  ;;  %v13562_v32 = vadd.f32 %v13467_v44, %v1437_v23  ;;  %11030 = vmatprep.subr.bf16.mxu1 %v12029_v28  ;;  %v12036_v1 = vld [vmem:[%s16714_s4 + $0x1a0] sm:$0xff]   ;;  %v12028_v6 = vld [vmem:[%s16714_s4 + $0x128] sm:$0xff]   ;;  %v12033_v9 = vld [vmem:[%s16714_s4 + $0x170] sm:$0xff]  }
 0x10c   :  { %4251 = vmatprep.mubr.bf16.mxu1 %v1992_v18  ;;  %1661 = vst [vmem:[#allocation2 + $0xb0] sm:$0xff] %v1589_v29  ;;  %v1590_v34 = vmax.f32 %v1518_v30, 0.0  ;;  %4155 = vmatmul.mubr.bf16.gmra.mrb[76].mxu0 %v1920_v36  ;;  %v1722_v40 = vld [vmem:[#allocation2 + $0x80] sm:$0xf]  ;;  %v12037_v7 = vld [vmem:[%s16714_s4 + $0x1e8] sm:$0xff]  }
 0x10d   :  { %4252 = vmatmul.mubr.bf16.gmra.mrb[76].mxu1 %v1968_v15  ;;  %1659 = vst [vmem:[#allocation2 + $0xa0] sm:$0xff] %v1587_v63  ;;  %v1588_v37 = vmax.f32 %v13562_v32, 0.0  ;;  %v11692_v38 = vpop.f32.mrb[24].mxu0  ;;  %v11768_v39 = vpop.f32.mrb[24].mxu1  ;;  %10967 = vmatpush3.bf16.msra.mxu0 %v12018_v27  ;;  %v1724_v3 = vld [vmem:[#allocation2 + $0x98] sm:$0xf] }
 0x10e   :  { %1662 = vst [vmem:[#allocation2 + $0xb8] sm:$0xff] %v1590_v34  ;;  %v1442_v19 = vmax.f32 %v11692_v38, %v11768_v39  ;;  %v544_v26 = vpop.f32.mrb[25].mxu0  ;;  %v1225_v36 = vpop.f32.mrb[25].mxu1  ;;  %v1769_v42 = vld [vmem:[#allocation2 + $0x84] sm:$0xff]  ;;  %v1770_v43 = vld [vmem:[#allocation2 + $0x8c] sm:$0xf]  ;;  %10968 = vmatprep.subr.bf16.mxu0 %v12019_v2  ;;  %11031 = vmatpush3.bf16.msra.mxu1 %v12030_v33 }
 0x10f   :  { %v1440_v47 = vmax.f32 %v544_v26, %v1225_v36  ;;  %v11693_v48 = vpop.f32.mrb[26].mxu0  ;;  %v11769_v49 = vpop.f32.mrb[26].mxu1  ;;  %v13583_v50 = vmax.f32 %v1582_v8, %v1769_v42  ;;  %v1818_v51 = vmax.f32 %v1722_v40, %v1770_v43  ;;  %11032 = vmatprep.subr.bf16.mxu1 %v12031_v35  ;;  %v12034_v42 = vld [vmem:[%s16714_s4 + $0x130] sm:$0xff]   ;;  %v12038_v43 = vld [vmem:[%s16714_s4 + $0x1a8] sm:$0xff]  }
 0x110   :  { %v1521_v53 = vadd.f32 %v13467_v44, %v1442_v19  ;;  %v1443_v54 = vmax.f32 %v11693_v48, %v11769_v49  ;;  %v547_v55 = vpop.f32.mrb[27].mxu0  ;;  %v1228_v56 = vpop.f32.mrb[27].mxu1  ;;  %v1931_v31 = vld [vmem:[#allocation3 + $0x41] sm:$0xff]  ;;  %v12039_v49 = vld [vmem:[%s16714_s4 + $0x178] sm:$0xff]  }
 0x111   :  { %v13596_v8 = vadd.f32 %v13467_v44, %v1440_v47  ;;  %v1441_v58 = vmax.f32 %v547_v55, %v1228_v56  ;;  %1865 = vst [vmem:[#allocation3 + $0x50] sm:$0xff] %v13583_v50  ;;  %1866 = vst [vmem:[#allocation3 + $0x58] sm:$0xf] %v1818_v51  ;;  %v1921_v59 = vpack.c.bf16 %v13583_v50, %v13549_v25  ;;  %10969 = vmatpush3.bf16.msra.mxu0 %v12020_v41  ;;  %v1979_v2 = vld [vmem:[#allocation3 + $0x43] sm:$0xff]  ;;  %v12041_v51 = vld [vmem:[%s16714_s4 + $0x1f0] sm:$0xff]  }
 0x112   :  { %v1593_v61 = vmax.f32 %v1521_v53, 0.0  ;;  %v13602_v62 = vadd.f32 %v13467_v44, %v1443_v54  ;;  %10970 = vmatprep.subr.bf16.mxu0 %v12021_v46  ;;  %11033 = vmatpush3.bf16.msra.mxu1 %v12032_v52  ;;  %v1955_v36 = vld [vmem:[#allocation3 + $0x42] sm:$0xff]  ;;  %v12040_v55 = vld [vmem:[%s16714_s4 + $0x138] sm:$0xff]   ;;  %v12042_v56 = vld [vmem:[%s16714_s4 + $0x1b0] sm:$0xff]  }
 0x113   :  { %v1591_v4 = vmax.f32 %v13596_v8, 0.0  ;;  %v1520_v5 = vadd.f32 %v13467_v44, %v1441_v58  ;;  %v1726_v10 = vld [vmem:[#allocation2 + $0xb0] sm:$0xf]  ;;  %11034 = vmatprep.subr.bf16.mxu1 %v12035_v60  ;;  %v12043_v25 = vld [vmem:[%s16714_s4 + $0x1f8] sm:$0xff]   ;;  %v12045_v50 = vld [vmem:[%s16714_s4 + $0x240] sm:$0xff]  }
 0x114   :  { %v1771_v11 = vld [vmem:[#allocation2 + $0x9c] sm:$0xff]  ;;  %v1772_v12 = vld [vmem:[#allocation2 + $0xa4] sm:$0xf]  ;;  %1665 = vst [vmem:[#allocation2 + $0xd0] sm:$0xff] %v1593_v61  ;;  %v1594_v13 = vmax.f32 %v13602_v62, 0.0 }
 0x115   :  { %v13621_v14 = vmax.f32 %v1585_v45, %v1771_v11  ;;  %v1820_v16 = vmax.f32 %v1724_v3, %v1772_v12  ;;  %v1773_v17 = vld [vmem:[#allocation2 + $0xb4] sm:$0xff]  ;;  %v1774_v18 = vld [vmem:[#allocation2 + $0xbc] sm:$0xf]  ;;  %v1592_v20 = vmax.f32 %v1520_v5, 0.0  ;;  %v11696_v21 = vpop.f32.mrb[28].mxu0  ;;  %v11772_v22 = vpop.f32.mrb[28].mxu1  ;;  %10971 = vmatpush3.bf16.msra.mxu0 %v12022_v57 }
 0x116   :  { %v1822_v23 = vmax.f32 %v1726_v10, %v1774_v18  ;;  %v13623_v24 = vmax.f32 %v1588_v37, %v1773_v17  ;;  %v1446_v27 = vmax.f32 %v11696_v21, %v11772_v22  ;;  %v560_v28 = vpop.f32.mrb[29].mxu0  ;;  %v1241_v29 = vpop.f32.mrb[29].mxu1  ;;  %10972 = vmatprep.subr.bf16.mxu0 %v12027_v0  ;;  %11035 = vmatpush3.bf16.msra.mxu1 %v12036_v1 }
 0x117   :  { %1867 = vst [vmem:[#allocation3 + $0x60] sm:$0xff] %v13621_v14  ;;  %1868 = vst [vmem:[#allocation3 + $0x68] sm:$0xf] %v1820_v16  ;;  %v1444_v45 = vmax.f32 %v560_v28, %v1241_v29  ;;  %v11697_v30 = vpop.f32.mrb[30].mxu0  ;;  %v11773_v15 = vpop.f32.mrb[30].mxu1  ;;  %11036 = vmatprep.subr.bf16.mxu1 %v12037_v7 }
 0x118   :  { %1664 = vst [vmem:[#allocation2 + $0xc8] sm:$0xff] %v1592_v20  ;;  %1870 = vst [vmem:[#allocation3 + $0x78] sm:$0xf] %v1822_v23  ;;  %v13631_v63 = vadd.f32 %v13467_v44, %v1446_v27  ;;  %v1447_v32 = vmax.f32 %v11697_v30, %v11773_v15  ;;  %v563_v33 = vpop.f32.mrb[31].mxu0  ;;  %v1244_v34 = vpop.f32.mrb[31].mxu1  ;;  %v1932_v35 = vld [vmem:[#allocation3 + $0x51] sm:$0xff]  ;;  %v1922_v39 = vpack.c.bf16 %v13623_v24, %v13621_v14 }
 0x119   :  { %1869 = vst [vmem:[#allocation3 + $0x70] sm:$0xff] %v13623_v24  ;;  %v1980_v37 = vld [vmem:[#allocation3 + $0x53] sm:$0xff]  ;;  %v1523_v40 = vadd.f32 %v13467_v44, %v1444_v45  ;;  %v1445_v41 = vmax.f32 %v563_v33, %v1244_v34  ;;  %v1945_v19 = vpack.c.bf16 %v1932_v35, %v1931_v31  ;;  %10973 = vmatpush3.bf16.msra.mxu0 %v12028_v6 }
 0x11a   :  { %v1956_v38 = vld [vmem:[#allocation3 + $0x52] sm:$0xff]  ;;  %v1993_v26 = vpack.c.bf16 %v1980_v37, %v1979_v2  ;;  %v1597_v46 = vmax.f32 %v13631_v63, 0.0  ;;  %v1526_v47 = vadd.f32 %v13467_v44, %v1447_v32  ;;  %10974 = vmatprep.subr.bf16.mxu0 %v12033_v9  ;;  %11037 = vmatpush3.bf16.msra.mxu1 %v12038_v43  ;;  %v12055_v32 = vld [vmem:[%s16714_s4 + $0x2c0] sm:$0xff]  }
 0x11b   :  { %v1969_v48 = vpack.c.bf16 %v1956_v38, %v1955_v36  ;;  %v1595_v52 = vmax.f32 %v1523_v40, 0.0  ;;  %v1524_v53 = vadd.f32 %v13467_v44, %v1445_v41  ;;  %4162 = vmatprep.mubr.bf16.mxu0 %v1945_v19  ;;  %v1776_v57 = vld [vmem:[#allocation2 + $0xd4] sm:$0xf]  ;;  %11038 = vmatprep.subr.bf16.mxu1 %v12041_v51  ;;  %v12044_v30 = vld [vmem:[%s16714_s4 + $0x1b8] sm:$0xff]   ;;  %v13701_v63 = vld [vmem:[%s16713_s3] ss:$0 sm:$0xff] }
 0x11c   :  { %4259 = vmatprep.mubr.bf16.mxu1 %v1993_v26  ;;  %v1598_v54 = vmax.f32 %v1526_v47, 0.0  ;;  %4163 = vmatmul.mubr.bf16.gmra.mrb[80].mxu0 %v1921_v59 }
 0x11d   :  { %4260 = vmatmul.mubr.bf16.gmra.mrb[80].mxu1 %v1969_v48  ;;  %1667 = vst [vmem:[#allocation2 + $0xe0] sm:$0xff] %v1595_v52  ;;  %v1596_v60 = vmax.f32 %v1524_v53, 0.0  ;;  %v11700_v58 = vpop.f32.mrb[32].mxu0  ;;  %v11776_v61 = vpop.f32.mrb[32].mxu1  ;;  %10975 = vmatpush3.bf16.msra.mxu0 %v12034_v42 }
 0x11e   :  { %1670 = vst [vmem:[#allocation2 + $0xf8] sm:$0xff] %v1598_v54  ;;  %v1450_v1 = vmax.f32 %v11700_v58, %v11776_v61  ;;  %v576_v3 = vpop.f32.mrb[33].mxu0  ;;  %v1257_v5 = vpop.f32.mrb[33].mxu1  ;;  %v1933_v6 = vld [vmem:[#allocation3 + $0x61] sm:$0xff]  ;;  %10976 = vmatprep.subr.bf16.mxu0 %v12039_v49  ;;  %11039 = vmatpush3.bf16.msra.mxu1 %v12042_v56 }
 0x11f   :  { %v1728_v59 = vld [vmem:[#allocation2 + $0xc8] sm:$0xf]  ;;  %v1775_v0 = vld [vmem:[#allocation2 + $0xcc] sm:$0xff]  ;;  %1668 = vst [vmem:[#allocation2 + $0xe8] sm:$0xff] %v1596_v60  ;;  %v1448_v11 = vmax.f32 %v576_v3, %v1257_v5  ;;  %v11701_v12 = vpop.f32.mrb[34].mxu0  ;;  %v11777_v16 = vpop.f32.mrb[34].mxu1  ;;  %11040 = vmatprep.subr.bf16.mxu1 %v12043_v25 }
 0x120   :  { %v1823_v7 = vmax.f32 %v1591_v4, %v1775_v0  ;;  %v1824_v10 = vmax.f32 %v1728_v59, %v1776_v57  ;;  %v1934_v17 = vld [vmem:[#allocation3 + $0x71] sm:$0xff]  ;;  %v1981_v18 = vld [vmem:[#allocation3 + $0x63] sm:$0xff]  ;;  %v1529_v21 = vadd.f32 %v13467_v44, %v1450_v1  ;;  %v1451_v22 = vmax.f32 %v11701_v12, %v11777_v16  ;;  %v579_v23 = vpop.f32.mrb[35].mxu0  ;;  %v1260_v27 = vpop.f32.mrb[35].mxu1 }
 0x121   :  { %v1982_v20 = vld [vmem:[#allocation3 + $0x73] sm:$0xff]  ;;  %v1946_v28 = vpack.c.bf16 %v1934_v17, %v1933_v6  ;;  %v13669_v9 = vld [vmem:[#allocation3 + $0x62] sm:$0xff]  ;;  %v1527_v8 = vadd.f32 %v13467_v44, %v1448_v11  ;;  %v1449_v4 = vmax.f32 %v579_v23, %v1260_v27  ;;  %10977 = vmatpush3.bf16.msra.mxu0 %v12040_v55 }
 0x122   :  { %v1994_v29 = vpack.c.bf16 %v1982_v20, %v1981_v18  ;;  %v13671_v45 = vld [vmem:[#allocation3 + $0x72] sm:$0xff]  ;;  %1871 = vst [vmem:[#allocation3 + $0x80] sm:$0xff] %v1823_v7  ;;  %1872 = vst [vmem:[#allocation3 + $0x88] sm:$0xf] %v1824_v10  ;;  %v1601_v15 = vmax.f32 %v1529_v21, 0.0  ;;  %v1530_v31 = vadd.f32 %v13467_v44, %v1451_v22  ;;  %11090 = vmatprep.subr.bf16.mxu0 %v12045_v50  ;;  %11041 = vmatpush3.bf16.msra.mxu1 %v12044_v30 }
 0x123   :  { %4170 = vmatprep.mubr.bf16.mxu0 %v1946_v28  ;;  %v1970_v2 = vpack.c.bf16 %v13671_v45, %v13669_v9  ;;  %v1599_v33 = vmax.f32 %v1527_v8, 0.0  ;;  %v1528_v34 = vadd.f32 %v13467_v44, %v1449_v4  ;;  %11154 = vmatprep.subr.bf16.mxu1 %v12055_v32 }
 0x124   :  { %4267 = vmatprep.mubr.bf16.mxu1 %v1994_v29  ;;  %1673 = vst [vmem:[#allocation2 + $0x110] sm:$0xff] %v1601_v15  ;;  %v1602_v35 = vmax.f32 %v1530_v31, 0.0  ;;  %4171 = vmatmul.mubr.bf16.gmra.mrb[84].mxu0 %v1922_v39  ;;  %v1730_v37 = vld [vmem:[#allocation2 + $0xe0] sm:$0xf] }
 0x125   :  { %4268 = vmatmul.mubr.bf16.gmra.mrb[84].mxu1 %v1970_v2  ;;  %1671 = vst [vmem:[#allocation2 + $0x100] sm:$0xff] %v1599_v33  ;;  %v1600_v38 = vmax.f32 %v1528_v34, 0.0  ;;  %v11704_v40 = vpop.f32.mrb[36].mxu0  ;;  %v11780_v41 = vpop.f32.mrb[36].mxu1  ;;  %v1732_v62 = vld [vmem:[#allocation2 + $0xf8] sm:$0xf] }
 0x126   :  { %v1777_v19 = vld [vmem:[#allocation2 + $0xe4] sm:$0xff]  ;;  %v1778_v26 = vld [vmem:[#allocation2 + $0xec] sm:$0xf]  ;;  %1674 = vst [vmem:[#allocation2 + $0x118] sm:$0xff] %v1602_v35  ;;  %v1454_v36 = vmax.f32 %v11704_v40, %v11780_v41  ;;  %v592_v42 = vpop.f32.mrb[37].mxu0  ;;  %v1273_v43 = vpop.f32.mrb[37].mxu1 }
 0x127   :  { %v1825_v47 = vmax.f32 %v1594_v13, %v1777_v19  ;;  %v1826_v48 = vmax.f32 %v1730_v37, %v1778_v26  ;;  %v1452_v14 = vmax.f32 %v592_v42, %v1273_v43  ;;  %v11705_v24 = vpop.f32.mrb[38].mxu0  ;;  %v11781_v39 = vpop.f32.mrb[38].mxu1 }
 0x128   :  { %v1533_v49 = vadd.f32 %v13467_v44, %v1454_v36  ;;  %v1455_v51 = vmax.f32 %v11705_v24, %v11781_v39  ;;  %v595_v52 = vpop.f32.mrb[39].mxu0  ;;  %v1276_v53 = vpop.f32.mrb[39].mxu1 }
 0x129   :  { %1873 = vst [vmem:[#allocation3 + $0x90] sm:$0xff] %v1825_v47  ;;  %1874 = vst [vmem:[#allocation3 + $0x98] sm:$0xf] %v1826_v48  ;;  %v1531_v54 = vadd.f32 %v13467_v44, %v1452_v14  ;;  %v1453_v55 = vmax.f32 %v595_v52, %v1276_v53 }
 0x12a   :  { %v1605_v56 = vmax.f32 %v1533_v49, 0.0  ;;  %v13692_v57 = vadd.f32 %v13467_v44, %v1455_v51 }
 0x12b   :  { %v1603_v13 = vmax.f32 %v1531_v54, 0.0  ;;  %v1532_v60 = vadd.f32 %v13467_v44, %v1453_v55  ;;  %v1734_v58 = vld [vmem:[#allocation2 + $0x110] sm:$0xf] }
 0x12c   :  { %v1779_v61 = vld [vmem:[#allocation2 + $0xfc] sm:$0xff]  ;;  %v1780_v25 = vld [vmem:[#allocation2 + $0x104] sm:$0xf]  ;;  %1677 = vst [vmem:[#allocation2 + $0x130] sm:$0xff] %v1605_v56  ;;  %v1606_v50 = vmax.f32 %v13692_v57, 0.0 }
 0x12d   :  { %v1827_v59 = vmax.f32 %v1597_v46, %v1779_v61  ;;  %v1828_v0 = vmax.f32 %v1732_v62, %v1780_v25  ;;  %v1781_v1 = vld [vmem:[#allocation2 + $0x114] sm:$0xff]  ;;  %v1782_v3 = vld [vmem:[#allocation2 + $0x11c] sm:$0xf]  ;;  %v1604_v5 = vmax.f32 %v1532_v60, 0.0  ;;  %v11708_v6 = vpop.f32.mrb[40].mxu0  ;;  %v11784_v7 = vpop.f32.mrb[40].mxu1 }
 0x12e   :  { %v1830_v10 = vmax.f32 %v1734_v58, %v1782_v3  ;;  %v1829_v11 = vmax.f32 %v1600_v38, %v1781_v1  ;;  %v1458_v12 = vmax.f32 %v11708_v6, %v11784_v7  ;;  %v608_v16 = vpop.f32.mrb[41].mxu0  ;;  %v1289_v44 = vpop.f32.mrb[41].mxu1 }
 0x12f   :  { %1875 = vst [vmem:[#allocation3 + $0xa0] sm:$0xff] %v1827_v59  ;;  %1876 = vst [vmem:[#allocation3 + $0xa8] sm:$0xf] %v1828_v0  ;;  %v1456_v17 = vmax.f32 %v608_v16, %v1289_v44  ;;  %v11709_v18 = vpop.f32.mrb[42].mxu0  ;;  %v11785_v20 = vpop.f32.mrb[42].mxu1 }
 0x130   :  { %1676 = vst [vmem:[#allocation2 + $0x128] sm:$0xff] %v1604_v5  ;;  %1878 = vst [vmem:[#allocation3 + $0xb8] sm:$0xf] %v1830_v10  ;;  %v13704_v46 = vadd.f32 %v13701_v63, %v1458_v12  ;;  %v1459_v21 = vmax.f32 %v11709_v18, %v11785_v20  ;;  %v611_v22 = vpop.f32.mrb[43].mxu0  ;;  %v1292_v23 = vpop.f32.mrb[43].mxu1 }
 0x131   :  { %1877 = vst [vmem:[#allocation3 + $0xb0] sm:$0xff] %v1829_v11  ;;  %v1535_v27 = vadd.f32 %v13701_v63, %v1456_v17  ;;  %v1457_v28 = vmax.f32 %v611_v22, %v1292_v23 }
 0x132   :  { %v1609_v29 = vmax.f32 %v13704_v46, 0.0  ;;  %v1538_v8 = vadd.f32 %v13701_v63, %v1459_v21 }
 0x133   :  { %v1607_v4 = vmax.f32 %v1535_v27, 0.0  ;;  %v1536_v30 = vadd.f32 %v13701_v63, %v1457_v28  ;;  %v1784_v31 = vld [vmem:[#allocation2 + $0x134] sm:$0xf] }
 0x134   :  { %v1610_v15 = vmax.f32 %v1538_v8, 0.0 }
 0x135   :  { %1679 = vst [vmem:[#allocation2 + $0x140] sm:$0xff] %v1607_v4  ;;  %v1608_v2 = vmax.f32 %v1536_v30, 0.0  ;;  %v11712_v32 = vpop.f32.mrb[44].mxu0  ;;  %v11788_v33 = vpop.f32.mrb[44].mxu1 }
 0x136   :  { %1682 = vst [vmem:[#allocation2 + $0x158] sm:$0xff] %v1610_v15  ;;  %v1462_v37 = vmax.f32 %v11712_v32, %v11788_v33  ;;  %v624_v38 = vpop.f32.mrb[45].mxu0  ;;  %v1305_v40 = vpop.f32.mrb[45].mxu1 }
 0x137   :  { %v1736_v34 = vld [vmem:[#allocation2 + $0x128] sm:$0xf]  ;;  %v1783_v35 = vld [vmem:[#allocation2 + $0x12c] sm:$0xff]  ;;  %1680 = vst [vmem:[#allocation2 + $0x148] sm:$0xff] %v1608_v2  ;;  %v1460_v26 = vmax.f32 %v624_v38, %v1305_v40  ;;  %v11713_v36 = vpop.f32.mrb[46].mxu0  ;;  %v11789_v42 = vpop.f32.mrb[46].mxu1 }
 0x138   :  { %v13710_v41 = vmax.f32 %v1603_v13, %v1783_v35  ;;  %v1832_v19 = vmax.f32 %v1736_v34, %v1784_v31  ;;  %v1541_v43 = vadd.f32 %v13701_v63, %v1462_v37  ;;  %v1463_v47 = vmax.f32 %v11713_v36, %v11789_v42  ;;  %v627_v48 = vpop.f32.mrb[47].mxu0  ;;  %v1308_v14 = vpop.f32.mrb[47].mxu1 }
 0x139   :  { %v1539_v24 = vadd.f32 %v13701_v63, %v1460_v26  ;;  %v1461_v39 = vmax.f32 %v627_v48, %v1308_v14 }
 0x13a   :  { %1879 = vst [vmem:[#allocation3 + $0xc0] sm:$0xff] %v13710_v41  ;;  %1880 = vst [vmem:[#allocation3 + $0xc8] sm:$0xf] %v1832_v19  ;;  %v1613_v49 = vmax.f32 %v1541_v43, 0.0  ;;  %v1542_v51 = vadd.f32 %v13701_v63, %v1463_v47 }
 0x13b   :  { %v1611_v52 = vmax.f32 %v1539_v24, 0.0  ;;  %v1540_v53 = vadd.f32 %v13701_v63, %v1461_v39 }
 0x13c   :  { %1685 = vst [vmem:[#allocation2 + $0x170] sm:$0xff] %v1613_v49  ;;  %v1614_v54 = vmax.f32 %v1542_v51, 0.0  ;;  %v1738_v55 = vld [vmem:[#allocation2 + $0x140] sm:$0xf] }
 0x13d   :  { %1683 = vst [vmem:[#allocation2 + $0x160] sm:$0xff] %v1611_v52  ;;  %v1612_v56 = vmax.f32 %v1540_v53, 0.0  ;;  %v11716_v62 = vpop.f32.mrb[48].mxu0  ;;  %v11792_v13 = vpop.f32.mrb[48].mxu1  ;;  %v1740_v18 = vld [vmem:[#allocation2 + $0x158] sm:$0xf] }
 0x13e   :  { %v1785_v60 = vld [vmem:[#allocation2 + $0x144] sm:$0xff]  ;;  %v1786_v58 = vld [vmem:[#allocation2 + $0x14c] sm:$0xf]  ;;  %1686 = vst [vmem:[#allocation2 + $0x178] sm:$0xff] %v1614_v54  ;;  %v1466_v61 = vmax.f32 %v11716_v62, %v11792_v13  ;;  %v640_v25 = vpop.f32.mrb[49].mxu0  ;;  %v1321_v59 = vpop.f32.mrb[49].mxu1 }
 0x13f   :  { %v13719_v0 = vmax.f32 %v1606_v50, %v1785_v60  ;;  %v1834_v1 = vmax.f32 %v1738_v55, %v1786_v58  ;;  %v1464_v3 = vmax.f32 %v640_v25, %v1321_v59  ;;  %v11717_v5 = vpop.f32.mrb[50].mxu0  ;;  %v11793_v6 = vpop.f32.mrb[50].mxu1 }
 0x140   :  { %v1545_v7 = vadd.f32 %v13701_v63, %v1466_v61  ;;  %v1467_v10 = vmax.f32 %v11717_v5, %v11793_v6  ;;  %v643_v11 = vpop.f32.mrb[51].mxu0  ;;  %v1324_v12 = vpop.f32.mrb[51].mxu1 }
 0x141   :  { %1881 = vst [vmem:[#allocation3 + $0xd0] sm:$0xff] %v13719_v0  ;;  %1882 = vst [vmem:[#allocation3 + $0xd8] sm:$0xf] %v1834_v1  ;;  %v13724_v16 = vadd.f32 %v13701_v63, %v1464_v3  ;;  %v1465_v44 = vmax.f32 %v643_v11, %v1324_v12  ;;  %v1923_v57 = vpack.c.bf16 %v13719_v0, %v13710_v41  ;;  %v1935_v41 = vld [vmem:[#allocation3 + $0xc1] sm:$0xff] }
 0x142   :  { %v1617_v50 = vmax.f32 %v1545_v7, 0.0  ;;  %v13729_v17 = vadd.f32 %v13701_v63, %v1467_v10  ;;  %v1983_v19 = vld [vmem:[#allocation3 + $0xc3] sm:$0xff] }
 0x143   :  { %v1615_v20 = vmax.f32 %v13724_v16, 0.0  ;;  %v1544_v21 = vadd.f32 %v13701_v63, %v1465_v44  ;;  %v1742_v22 = vld [vmem:[#allocation2 + $0x170] sm:$0xf]  ;;  %v1959_v53 = vld [vmem:[#allocation3 + $0xc2] sm:$0xff] }
 0x144   :  { %v1787_v23 = vld [vmem:[#allocation2 + $0x15c] sm:$0xff]  ;;  %v1788_v27 = vld [vmem:[#allocation2 + $0x164] sm:$0xf]  ;;  %1689 = vst [vmem:[#allocation2 + $0x190] sm:$0xff] %v1617_v50  ;;  %v1618_v28 = vmax.f32 %v13729_v17, 0.0 }
 0x145   :  { %v13736_v8 = vmax.f32 %v1609_v29, %v1787_v23  ;;  %v1836_v4 = vmax.f32 %v1740_v18, %v1788_v27  ;;  %v1789_v30 = vld [vmem:[#allocation2 + $0x174] sm:$0xff]  ;;  %v1790_v15 = vld [vmem:[#allocation2 + $0x17c] sm:$0xf]  ;;  %v1616_v31 = vmax.f32 %v1544_v21, 0.0  ;;  %v11720_v2 = vpop.f32.mrb[52].mxu0  ;;  %v11796_v32 = vpop.f32.mrb[52].mxu1 }
 0x146   :  { %v1838_v33 = vmax.f32 %v1742_v22, %v1790_v15  ;;  %v13738_v34 = vmax.f32 %v1612_v56, %v1789_v30  ;;  %v1470_v35 = vmax.f32 %v11720_v2, %v11796_v32  ;;  %v656_v37 = vpop.f32.mrb[53].mxu0  ;;  %v1337_v38 = vpop.f32.mrb[53].mxu1 }
 0x147   :  { %1883 = vst [vmem:[#allocation3 + $0xe0] sm:$0xff] %v13736_v8  ;;  %1884 = vst [vmem:[#allocation3 + $0xe8] sm:$0xf] %v1836_v4  ;;  %v1468_v40 = vmax.f32 %v656_v37, %v1337_v38  ;;  %v11721_v46 = vpop.f32.mrb[54].mxu0  ;;  %v11797_v29 = vpop.f32.mrb[54].mxu1 }
 0x148   :  { %1688 = vst [vmem:[#allocation2 + $0x188] sm:$0xff] %v1616_v31  ;;  %1886 = vst [vmem:[#allocation3 + $0xf8] sm:$0xf] %v1838_v33  ;;  %v13743_v26 = vadd.f32 %v13701_v63, %v1470_v35  ;;  %v1471_v36 = vmax.f32 %v11721_v46, %v11797_v29  ;;  %v659_v42 = vpop.f32.mrb[55].mxu0  ;;  %v1340_v43 = vpop.f32.mrb[55].mxu1  ;;  %v13745_v47 = vld [vmem:[#allocation3 + $0xd1] sm:$0xff]  ;;  %v1924_v24 = vpack.c.bf16 %v13738_v34, %v13736_v8 }
 0x149   :  { %1885 = vst [vmem:[#allocation3 + $0xf0] sm:$0xff] %v13738_v34  ;;  %v1984_v48 = vld [vmem:[#allocation3 + $0xd3] sm:$0xff]  ;;  %v1547_v39 = vadd.f32 %v13701_v63, %v1468_v40  ;;  %v1469_v49 = vmax.f32 %v659_v42, %v1340_v43  ;;  %v1947_v51 = vpack.c.bf16 %v13745_v47, %v1935_v41 }
 0x14a   :  { %v13747_v14 = vld [vmem:[#allocation3 + $0xd2] sm:$0xff]  ;;  %v1995_v52 = vpack.c.bf16 %v1984_v48, %v1983_v19  ;;  %v1621_v54 = vmax.f32 %v13743_v26, 0.0  ;;  %v1550_v55 = vadd.f32 %v13701_v63, %v1471_v36 }
 0x14b   :  { %v1971_v56 = vpack.c.bf16 %v13747_v14, %v1959_v53  ;;  %v1619_v62 = vmax.f32 %v1547_v39, 0.0  ;;  %v1548_v13 = vadd.f32 %v13701_v63, %v1469_v49  ;;  %4178 = vmatprep.mubr.bf16.mxu0 %v1947_v51  ;;  %v1792_v60 = vld [vmem:[#allocation2 + $0x194] sm:$0xf] }
 0x14c   :  { %4275 = vmatprep.mubr.bf16.mxu1 %v1995_v52  ;;  %v1622_v58 = vmax.f32 %v1550_v55, 0.0  ;;  %4179 = vmatmul.mubr.bf16.gmra.mrb[88].mxu0 %v1923_v57 }
 0x14d   :  { %4276 = vmatmul.mubr.bf16.gmra.mrb[88].mxu1 %v1971_v56  ;;  %1691 = vst [vmem:[#allocation2 + $0x1a0] sm:$0xff] %v1619_v62  ;;  %v1620_v61 = vmax.f32 %v1548_v13, 0.0  ;;  %v11724_v25 = vpop.f32.mrb[56].mxu0  ;;  %v11800_v59 = vpop.f32.mrb[56].mxu1 }
 0x14e   :  { %1694 = vst [vmem:[#allocation2 + $0x1b8] sm:$0xff] %v1622_v58  ;;  %v1474_v3 = vmax.f32 %v11724_v25, %v11800_v59  ;;  %v672_v5 = vpop.f32.mrb[57].mxu0  ;;  %v1353_v6 = vpop.f32.mrb[57].mxu1  ;;  %v13757_v7 = vld [vmem:[#allocation3 + $0xe1] sm:$0xff] }
 0x14f   :  { %v1744_v0 = vld [vmem:[#allocation2 + $0x188] sm:$0xf]  ;;  %v1791_v1 = vld [vmem:[#allocation2 + $0x18c] sm:$0xff]  ;;  %1692 = vst [vmem:[#allocation2 + $0x1a8] sm:$0xff] %v1620_v61  ;;  %v1472_v12 = vmax.f32 %v672_v5, %v1353_v6  ;;  %v11725_v44 = vpop.f32.mrb[58].mxu0  ;;  %v11801_v57 = vpop.f32.mrb[58].mxu1  ;;  %v2068_v22 = vpack.c.bf16 %v13757_v7, %v13745_v47 }
 0x150   :  { %v13761_v10 = vmax.f32 %v1615_v20, %v1791_v1  ;;  %v1840_v11 = vmax.f32 %v1744_v0, %v1792_v60  ;;  %v13763_v50 = vld [vmem:[#allocation3 + $0xf1] sm:$0xff]  ;;  %v1985_v18 = vld [vmem:[#allocation3 + $0xe3] sm:$0xff]  ;;  %v1553_v23 = vadd.f32 %v13701_v63, %v1474_v3  ;;  %v1475_v27 = vmax.f32 %v11725_v44, %v11801_v57  ;;  %v675_v4 = vpop.f32.mrb[59].mxu0  ;;  %v1356_v30 = vpop.f32.mrb[59].mxu1 }
 0x151   :  { %v1986_v21 = vld [vmem:[#allocation3 + $0xf3] sm:$0xff]  ;;  %v1948_v16 = vpack.c.bf16 %v13763_v50, %v13757_v7  ;;  %v13770_v15 = vld [vmem:[#allocation3 + $0xe2] sm:$0xff]  ;;  %v1551_v2 = vadd.f32 %v13701_v63, %v1472_v12  ;;  %v1473_v32 = vmax.f32 %v675_v4, %v1356_v30 }
 0x152   :  { %v1996_v20 = vpack.c.bf16 %v1986_v21, %v1985_v18  ;;  %v13772_v31 = vld [vmem:[#allocation3 + $0xf2] sm:$0xff]  ;;  %1887 = vst [vmem:[#allocation3 + $0x100] sm:$0xff] %v13761_v10  ;;  %1888 = vst [vmem:[#allocation3 + $0x108] sm:$0xf] %v1840_v11  ;;  %v1625_v33 = vmax.f32 %v1553_v23, 0.0  ;;  %v1554_v35 = vadd.f32 %v13701_v63, %v1475_v27  ;;  %v2045_v38 = vpack.c.bf16 %v13761_v10, %v13738_v34 }
 0x153   :  { %4186 = vmatprep.mubr.bf16.mxu0 %v1948_v16  ;;  %v1972_v37 = vpack.c.bf16 %v13772_v31, %v13770_v15  ;;  %v1623_v40 = vmax.f32 %v1551_v2, 0.0  ;;  %v1552_v46 = vadd.f32 %v13701_v63, %v1473_v32 }
 0x154   :  { %4283 = vmatprep.mubr.bf16.mxu1 %v1996_v20  ;;  %1697 = vst [vmem:[#allocation2 + $0x1d0] sm:$0xff] %v1625_v33  ;;  %v1626_v29 = vmax.f32 %v1554_v35, 0.0  ;;  %4187 = vmatmul.mubr.bf16.gmra.mrb[92].mxu0 %v1924_v24  ;;  %v1746_v41 = vld [vmem:[#allocation2 + $0x1a0] sm:$0xf] }
 0x155   :  { %4284 = vmatmul.mubr.bf16.gmra.mrb[92].mxu1 %v1972_v37  ;;  %1695 = vst [vmem:[#allocation2 + $0x1c0] sm:$0xff] %v1623_v40  ;;  %v1624_v19 = vmax.f32 %v1552_v46, 0.0  ;;  %v11728_v36 = vpop.f32.mrb[60].mxu0  ;;  %v11804_v42 = vpop.f32.mrb[60].mxu1  ;;  %v1748_v5 = vld [vmem:[#allocation2 + $0x1b8] sm:$0xf] }
 0x156   :  { %v1793_v43 = vld [vmem:[#allocation2 + $0x1a4] sm:$0xff]  ;;  %v1794_v48 = vld [vmem:[#allocation2 + $0x1ac] sm:$0xf]  ;;  %1698 = vst [vmem:[#allocation2 + $0x1d8] sm:$0xff] %v1626_v29  ;;  %v1478_v39 = vmax.f32 %v11728_v36, %v11804_v42  ;;  %v688_v49 = vpop.f32.mrb[61].mxu0  ;;  %v1369_v51 = vpop.f32.mrb[61].mxu1 }
 0x157   :  { %v13784_v52 = vmax.f32 %v1618_v28, %v1793_v43  ;;  %v1842_v53 = vmax.f32 %v1746_v41, %v1794_v48  ;;  %v1476_v55 = vmax.f32 %v688_v49, %v1369_v51  ;;  %v11729_v56 = vpop.f32.mrb[62].mxu0  ;;  %v11805_v24 = vpop.f32.mrb[62].mxu1 }
 0x158   :  { %v1557_v62 = vadd.f32 %v13701_v63, %v1478_v39  ;;  %v1479_v13 = vmax.f32 %v11729_v56, %v11805_v24  ;;  %v691_v60 = vpop.f32.mrb[63].mxu0  ;;  %v1372_v58 = vpop.f32.mrb[63].mxu1 }
 0x159   :  { %1889 = vst [vmem:[#allocation3 + $0x110] sm:$0xff] %v13784_v52  ;;  %1890 = vst [vmem:[#allocation3 + $0x118] sm:$0xf] %v1842_v53  ;;  %v13789_v61 = vadd.f32 %v13701_v63, %v1476_v55  ;;  %v1477_v25 = vmax.f32 %v691_v60, %v1372_v58  ;;  %v1925_v17 = vpack.c.bf16 %v13784_v52, %v13761_v10  ;;  %v13806_v33 = vld [vmem:[#allocation3 + $0x101] sm:$0xff] }
 0x15a   :  { %v1629_v28 = vmax.f32 %v1557_v62, 0.0  ;;  %v13794_v59 = vadd.f32 %v13701_v63, %v1479_v13  ;;  %v1987_v26 = vld [vmem:[#allocation3 + $0x103] sm:$0xff] }
 0x15b   :  { %v1750_v0 = vld [vmem:[#allocation2 + $0x1d0] sm:$0xf]  ;;  %v1627_v1 = vmax.f32 %v13789_v61, 0.0  ;;  %v1556_v3 = vadd.f32 %v13701_v63, %v1477_v25  ;;  %v14050_v10 = vld [vmem:[#allocation3 + $0x104] sm:$0xff] }
 0x15c   :  { %v1795_v6 = vld [vmem:[#allocation2 + $0x1bc] sm:$0xff]  ;;  %v1796_v11 = vld [vmem:[#allocation2 + $0x1c4] sm:$0xf]  ;;  %1701 = vst [vmem:[#allocation2 + $0x1f0] sm:$0xff] %v1629_v28  ;;  %v1630_v12 = vmax.f32 %v13794_v59, 0.0 }
 0x15d   :  { %v13801_v44 = vmax.f32 %v1621_v54, %v1795_v6  ;;  %v1844_v57 = vmax.f32 %v1748_v5, %v1796_v11  ;;  %v1797_v18 = vld [vmem:[#allocation2 + $0x1d4] sm:$0xff]  ;;  %v1798_v21 = vld [vmem:[#allocation2 + $0x1dc] sm:$0xf]  ;;  %v1628_v23 = vmax.f32 %v1556_v3, 0.0  ;;  %v11732_v27 = vpop.f32.mrb[64].mxu0  ;;  %v11808_v4 = vpop.f32.mrb[64].mxu1 }
 0x15e   :  { %v1846_v30 = vmax.f32 %v1750_v0, %v1798_v21  ;;  %v13803_v16 = vmax.f32 %v1624_v19, %v1797_v18  ;;  %v1482_v20 = vmax.f32 %v11732_v27, %v11808_v4  ;;  %v704_v2 = vpop.f32.mrb[65].mxu0  ;;  %v1385_v32 = vpop.f32.mrb[65].mxu1  ;;  %v13808_v54 = vld [vmem:[#allocation3 + $0x102] sm:$0xff] }
 0x15f   :  { %1891 = vst [vmem:[#allocation3 + $0x120] sm:$0xff] %v13801_v44  ;;  %1892 = vst [vmem:[#allocation3 + $0x128] sm:$0xf] %v1844_v57  ;;  %v1480_v35 = vmax.f32 %v704_v2, %v1385_v32  ;;  %v11733_v37 = vpop.f32.mrb[66].mxu0  ;;  %v11809_v40 = vpop.f32.mrb[66].mxu1  ;;  %v2046_v46 = vpack.c.bf16 %v13801_v44, %v13784_v52  ;;  %v13832_v11 = vld [vmem:[#allocation3 + $0x20] sm:$0xff] }
 0x160   :  { %1700 = vst [vmem:[#allocation2 + $0x1e8] sm:$0xff] %v1628_v23  ;;  %1894 = vst [vmem:[#allocation3 + $0x138] sm:$0xf] %v1846_v30  ;;  %v13813_v29 = vld [vmem:[#allocation3 + $0x111] sm:$0xff]  ;;  %v1926_v36 = vpack.c.bf16 %v13803_v16, %v13801_v44  ;;  %v13820_v42 = vadd.f32 %v13701_v63, %v1482_v20  ;;  %v1483_v43 = vmax.f32 %v11733_v37, %v11809_v40  ;;  %v707_v48 = vpop.f32.mrb[67].mxu0  ;;  %v1388_v39 = vpop.f32.mrb[67].mxu1 }
 0x161   :  { %1893 = vst [vmem:[#allocation3 + $0x130] sm:$0xff] %v13803_v16  ;;  %v1988_v41 = vld [vmem:[#allocation3 + $0x113] sm:$0xff]  ;;  %v1949_v49 = vpack.c.bf16 %v13813_v29, %v13806_v33  ;;  %v1559_v55 = vadd.f32 %v13701_v63, %v1480_v35  ;;  %v1481_v62 = vmax.f32 %v707_v48, %v1388_v39  ;;  %v2073_v40 = vld [vmem:[#allocation3 + $0x22] sm:$0xff] }
 0x162   :  { %v13815_v19 = vld [vmem:[#allocation3 + $0x112] sm:$0xff]  ;;  %v1997_v51 = vpack.c.bf16 %v1988_v41, %v1987_v26  ;;  %v1633_v56 = vmax.f32 %v13820_v42, 0.0  ;;  %v1562_v24 = vadd.f32 %v13701_v63, %v1483_v43 }
 0x163   :  { %v1973_v53 = vpack.c.bf16 %v13815_v19, %v13808_v54  ;;  %4194 = vmatprep.mubr.bf16.mxu0 %v1949_v49  ;;  %v1631_v13 = vmax.f32 %v1559_v55, 0.0  ;;  %v1800_v60 = vld [vmem:[#allocation2 + $0x1f4] sm:$0xf]  ;;  %v1560_v25 = vadd.f32 %v13701_v63, %v1481_v62 }
 0x164   :  { %4291 = vmatprep.mubr.bf16.mxu1 %v1997_v51  ;;  %4195 = vmatmul.mubr.bf16.gmra.mrb[96].mxu0 %v1925_v17  ;;  %v1634_v58 = vmax.f32 %v1562_v24, 0.0  ;;  %v2072_v55 = vld [vmem:[#allocation3 + $0x12] sm:$0xff] }
 0x165   :  { %4292 = vmatmul.mubr.bf16.gmra.mrb[96].mxu1 %v1973_v53  ;;  %1703 = vst [vmem:[#allocation2 + $0x200] sm:$0xff] %v1631_v13  ;;  %v11736_v28 = vpop.f32.mrb[68].mxu0  ;;  %v11812_v0 = vpop.f32.mrb[68].mxu1  ;;  %v1632_v57 = vmax.f32 %v1560_v25, 0.0  ;;  %v2024_v53 = vld [vmem:[#allocation3 + $0x10] sm:$0xff] }
 0x166   :  { %v13830_v6 = vld [vmem:[#allocation3 + $0x121] sm:$0xff]  ;;  %1706 = vst [vmem:[#allocation2 + $0x218] sm:$0xff] %v1634_v58  ;;  %v1486_v18 = vmax.f32 %v11736_v28, %v11812_v0  ;;  %v720_v21 = vpop.f32.mrb[69].mxu0  ;;  %v1401_v20 = vpop.f32.mrb[69].mxu1  ;;  %v2088_v58 = vpack.c.bf16 %v2073_v40, %v2072_v55  ;;  %v13904_v42 = vld [vmem:[#allocation3 + $0x31] sm:$0xff] }
 0x167   :  { %v1752_v3 = vld [vmem:[#allocation2 + $0x1e8] sm:$0xf]  ;;  %v1799_v5 = vld [vmem:[#allocation2 + $0x1ec] sm:$0xff]  ;;  %v11737_v2 = vpop.f32.mrb[70].mxu0  ;;  %1704 = vst [vmem:[#allocation2 + $0x208] sm:$0xff] %v1632_v57  ;;  %v11813_v41 = vpop.f32.mrb[70].mxu1 }
 0x168   :  { %v13836_v17 = vmax.f32 %v1627_v1, %v1799_v5  ;;  %v1848_v23 = vmax.f32 %v1752_v3, %v1800_v60  ;;  %v13838_v27 = vld [vmem:[#allocation3 + $0x131] sm:$0xff]  ;;  %v1989_v4 = vld [vmem:[#allocation3 + $0x123] sm:$0xff]  ;;  %v1565_v61 = vadd.f32 %v13701_v63, %v1486_v18  ;;  %v1484_v1 = vmax.f32 %v720_v21, %v1401_v20  ;;  %v723_v43 = vpop.f32.mrb[71].mxu0  ;;  %v1404_v49 = vpop.f32.mrb[71].mxu1 }
 0x169   :  { %v1990_v30 = vld [vmem:[#allocation3 + $0x133] sm:$0xff]  ;;  %v1950_v32 = vpack.c.bf16 %v13838_v27, %v13830_v6  ;;  %v13842_v35 = vld [vmem:[#allocation3 + $0x122] sm:$0xff]  ;;  %v1487_v39 = vmax.f32 %v11737_v2, %v11813_v41  ;;  %v1485_v13 = vmax.f32 %v723_v43, %v1404_v49  ;;  %v2040_v60 = vpack.c.bf16 %v13832_v11, %v2024_v53 }
 0x16a   :  { %v1998_v26 = vpack.c.bf16 %v1990_v30, %v1989_v4  ;;  %v13844_v37 = vld [vmem:[#allocation3 + $0x132] sm:$0xff]  ;;  %1895 = vst [vmem:[#allocation3 + $0x140] sm:$0xff] %v13836_v17  ;;  %1896 = vst [vmem:[#allocation3 + $0x148] sm:$0xf] %v1848_v23  ;;  %v2047_v48 = vpack.c.bf16 %v13836_v17, %v13803_v16  ;;  %v1637_v24 = vmax.f32 %v1565_v61, 0.0  ;;  %v1563_v62 = vadd.f32 %v13701_v63, %v1484_v1  ;;  %v13861_v21 = vld [vmem:[#allocation3 + $0x21] sm:$0xff] }
 0x16b   :  { %4202 = vmatprep.mubr.bf16.mxu0 %v1950_v32  ;;  %v1974_v51 = vpack.c.bf16 %v13844_v37, %v13842_v35  ;;  %v1566_v25 = vadd.f32 %v13701_v63, %v1487_v39  ;;  %v1564_v0 = vadd.f32 %v13701_v63, %v1485_v13  ;;  %v13859_v57 = vld [vmem:[#allocation3 + $0x14] sm:$0xff]  ;;  %v13866_v30 = vld [vmem:[#allocation3 + $0x40] sm:$0xff]  ;;  %v12047_v41 = vld [vmem:[%s16714_s4 + $0x248] sm:$0xff]   ;;  %v2094_v47 = vpack.c.bf16 %v13842_v35, %v13815_v19 }
 0x16c   :  { %4299 = vmatprep.mubr.bf16.mxu1 %v1998_v26  ;;  %4203 = vmatmul.mubr.bf16.gmra.mrb[100].mxu0 %v1926_v36  ;;  %1709 = vst [vmem:[#allocation2 + $0x230] sm:$0xff] %v1637_v24  ;;  %v1635_v28 = vmax.f32 %v1563_v62, 0.0  ;;  %v1754_v3 = vld [vmem:[#allocation2 + $0x200] sm:$0xf]  ;;  %v1999_v2 = vld [vmem:[#allocation3 + $0x4] sm:$0xff]  ;;  %v2048_v32 = vld [vmem:[#allocation3 + $0x11] sm:$0xff]  ;;  %v2185_v16 = vpack.c.bf16 %v13904_v42, %v13861_v21 }
 0x16d   :  { %4300 = vmatmul.mubr.bf16.gmra.mrb[100].mxu1 %v1974_v51  ;;  %4340 = vmatprep.mubr.bf16.mxu0 %v2040_v60  ;;  %v1638_v5 = vmax.f32 %v1566_v25, 0.0  ;;  %v1636_v18 = vmax.f32 %v1564_v0, 0.0  ;;  %v12046_v36 = vld [vmem:[%s16714_s4 + $0x200] sm:$0xff]   ;;  %v2015_v40 = vpack.c.bf16 %v13859_v57, %v1999_v2  ;;  %v2064_v61 = vpack.c.bf16 %v13861_v21, %v2048_v32  ;;  %v13872_v1 = vld [vmem:[#allocation3 + $0x30] sm:$0xff]  ;;  %v1756_v43 = vld [vmem:[#allocation2 + $0x218] sm:$0xf] }
 0x16e   :  { %4437 = vmatprep.mubr.bf16.mxu1 %v2088_v58  ;;  %1707 = vst [vmem:[#allocation2 + $0x220] sm:$0xff] %v1635_v28  ;;  %v1801_v23 = vld [vmem:[#allocation2 + $0x204] sm:$0xff]  ;;  %v1802_v4 = vld [vmem:[#allocation2 + $0x20c] sm:$0xf]  ;;  %v2041_v59 = vpack.c.bf16 %v13866_v30, %v13872_v1  ;;  %v12049_v24 = vld [vmem:[%s16714_s4 + $0x250] sm:$0xff]  }
 0x16f   :  { %1710 = vst [vmem:[#allocation2 + $0x238] sm:$0xff] %v1638_v5  ;;  %v1849_v63 = vmax.f32 %v1630_v12, %v1801_v23  ;;  %v1850_v20 = vmax.f32 %v1754_v3, %v1802_v4  ;;  %v2075_v26 = vld [vmem:[#allocation3 + $0x42] sm:$0xff]  ;;  %v2074_v12 = vld [vmem:[#allocation3 + $0x32] sm:$0xff] }
 0x170   :  { %v12056_v39 = vld [vmem:[%s16714_s4 + $0x280] sm:$0xff]   ;;  %v2089_v49 = vpack.c.bf16 %v2075_v26, %v2074_v12  ;;  %v12048_v51 = vld [vmem:[%s16714_s4 + $0x208] sm:$0xff]   ;;  %v13895_v3 = vld [vmem:[#allocation3 + $0x34] sm:$0xff] }
 0x171   :  { %1897 = vst [vmem:[#allocation3 + $0x150] sm:$0xff] %v1849_v63  ;;  %1898 = vst [vmem:[#allocation3 + $0x158] sm:$0xf] %v1850_v20  ;;  %v12057_v55 = vld [vmem:[%s16714_s4 + $0x2c8] sm:$0xff]   ;;  %v13902_v63 = vld [vmem:[#allocation3 + $0x60] sm:$0xff] }
 0x172   :  { %v13891_v60 = vld [vmem:[#allocation3 + $0x24] sm:$0xff]  ;;  %v13913_v2 = vld [vmem:[#allocation3 + $0x50] sm:$0xff]  ;;  %v12063_v12 = vld [vmem:[%s16714_s4 + $0x2d8] sm:$0xff]  }
 0x173   :  { %v1758_v53 = vld [vmem:[#allocation2 + $0x230] sm:$0xf]  ;;  %v13897_v5 = vld [vmem:[#allocation3 + $0x41] sm:$0xff]  ;;  %v2016_v20 = vpack.c.bf16 %v13895_v3, %v13891_v60  ;;  %v14048_v34 = vld [vmem:[#allocation3 + $0x114] sm:$0xff]  ;;  %v2136_v19 = vpack.c.bf16 %v13891_v60, %v13859_v57 }
 0x174   :  { %4341 = vmatmul.mubr.bf16.vlgmr.msra.gmra.mrb[104].mxu0 %v2015_v40  ;;  %v12058_v23 = vld [vmem:[%s16714_s4 + $0x288] sm:$0xff]   ;;  %v2076_v32 = vld [vmem:[#allocation3 + $0x52] sm:$0xff]  ;;  %v2042_v40 = vpack.c.bf16 %v13902_v63, %v13913_v2  ;;  %v12078_v35 = vld [vmem:[%s16714_s4 + $0x300] sm:$0xff]  }
 0x175   :  { %4438 = vmatmul.mubr.bf16.vlgmr.msra.gmra.mrb[104].mxu1 %v2064_v61  ;;  %11091 = vmatpush3.bf16.msra.mxu0 %v12046_v36  ;;  %v1803_v62 = vld [vmem:[#allocation2 + $0x21c] sm:$0xff]  ;;  %v1804_v13 = vld [vmem:[#allocation2 + $0x224] sm:$0xf]  ;;  %v12061_v26 = vld [vmem:[%s16714_s4 + $0x2d0] sm:$0xff]   ;;  %v2090_v61 = vpack.c.bf16 %v13669_v9, %v2076_v32 }
 0x176   :  { %4348 = vmatprep.mubr.bf16.mxu0 %v2041_v59  ;;  %4445 = vmatprep.mubr.bf16.mxu1 %v2089_v49  ;;  %v1851_v58 = vmax.f32 %v1633_v56, %v1803_v62  ;;  %v1852_v25 = vmax.f32 %v1756_v43, %v1804_v13  ;;  %v1805_v28 = vld [vmem:[#allocation2 + $0x234] sm:$0xff]  ;;  %v1806_v0 = vld [vmem:[#allocation2 + $0x23c] sm:$0xf]  ;;  %v12053_v43 = vld [vmem:[%s16714_s4 + $0x260] sm:$0xff]  }
 0x177   :  { %11092 = vmatprep.subr.bf16.mxu0 %v12047_v41  ;;  %11155 = vmatpush3.bf16.msra.mxu1 %v12056_v39  ;;  %v1854_v4 = vmax.f32 %v1758_v53, %v1806_v0  ;;  %v1853_v36 = vmax.f32 %v1636_v18, %v1805_v28  ;;  %v12050_v56 = vld [vmem:[%s16714_s4 + $0x210] sm:$0xff]   ;;  %v2065_v18 = vpack.c.bf16 %v13897_v5, %v13904_v42  ;;  %v12051_v41 = vld [vmem:[%s16714_s4 + $0x258] sm:$0xff]   ;;  %v13936_v39 = vld [vmem:[#allocation3 + $0x44] sm:$0xff] }
 0x178   :  { %1899 = vst [vmem:[#allocation3 + $0x160] sm:$0xff] %v1851_v58  ;;  %1900 = vst [vmem:[#allocation3 + $0x168] sm:$0xf] %v1852_v25  ;;  %11156 = vmatprep.subr.bf16.mxu1 %v12057_v55  ;;  %v12062_v59 = vld [vmem:[%s16714_s4 + $0x290] sm:$0xff]   ;;  %v12052_v9 = vld [vmem:[%s16714_s4 + $0x218] sm:$0xff]   ;;  %v2137_v21 = vpack.c.bf16 %v13936_v39, %v13895_v3 }
 0x179   :  { %11093 = vmatpush3.bf16.msra.mxu0 %v12048_v51  ;;  %1902 = vst [vmem:[#allocation3 + $0x178] sm:$0xf] %v1854_v4  ;;  %1901 = vst [vmem:[#allocation3 + $0x170] sm:$0xff] %v1853_v36  ;;  %v13938_v49 = vld [vmem:[#allocation3 + $0x54] sm:$0xff]  ;;  %v13940_v51 = vld [vmem:[#allocation3 + $0x61] sm:$0xff] }
 0x17a   :  { %11094 = vmatprep.subr.bf16.mxu0 %v12049_v24  ;;  %v12064_v53 = vld [vmem:[%s16714_s4 + $0x298] sm:$0xff]   ;;  %v13947_v24 = vld [vmem:[#allocation3 + $0x80] sm:$0xff]  ;;  %v13952_v58 = vld [vmem:[#allocation3 + $0x70] sm:$0xff] }
 0x17b   :  { %11157 = vmatpush3.bf16.msra.mxu1 %v12058_v23  ;;  %v13945_v55 = vld [vmem:[#allocation3 + $0x51] sm:$0xff]  ;;  %v2079_v62 = vld [vmem:[#allocation3 + $0x82] sm:$0xff]  ;;  %v2017_v23 = vpack.c.bf16 %v13938_v49, %v13936_v39  ;;  %v2043_v36 = vpack.c.bf16 %v13947_v24, %v13952_v58 }
 0x17c   :  { %4349 = vmatmul.mubr.bf16.gmra.mrb[108].mxu0 %v2016_v20  ;;  %11158 = vmatprep.subr.bf16.mxu1 %v12061_v26  ;;  %v12054_v13 = vld [vmem:[%s16714_s4 + $0x220] sm:$0xff]   ;;  %v12059_v25 = vld [vmem:[%s16714_s4 + $0x268] sm:$0xff]   ;;  %v2066_v4 = vpack.c.bf16 %v13940_v51, %v13945_v55  ;;  %v13978_v26 = vld [vmem:[#allocation3 + $0x74] sm:$0xff] }
 0x17d   :  { %4446 = vmatmul.mubr.bf16.gmra.mrb[108].mxu1 %v2065_v18  ;;  %4356 = vmatprep.mubr.bf16.mxu0 %v2042_v40  ;;  %v12067_v28 = vld [vmem:[%s16714_s4 + $0x2e0] sm:$0xff]   ;;  %v12060_v20 = vld [vmem:[%s16714_s4 + $0x228] sm:$0xff]   ;;  %v14062_v44 = vld [vmem:[#allocation3 + $0x134] sm:$0xff] }
 0x17e   :  { %4453 = vmatprep.mubr.bf16.mxu1 %v2090_v61  ;;  %11095 = vmatpush3.bf16.msra.mxu0 %v12050_v56  ;;  %v12068_v0 = vld [vmem:[%s16714_s4 + $0x2a0] sm:$0xff]   ;;  %v2091_v56 = vpack.c.bf16 %v2079_v62, %v13671_v45  ;;  %v12069_v18 = vld [vmem:[%s16714_s4 + $0x2e8] sm:$0xff]   ;;  %v12065_v45 = vld [vmem:[%s16714_s4 + $0x270] sm:$0xff]  }
 0x17f   :  { %11096 = vmatprep.subr.bf16.mxu0 %v12051_v41  ;;  %11159 = vmatpush3.bf16.msra.mxu1 %v12062_v59  ;;  %v13976_v32 = vld [vmem:[#allocation3 + $0x64] sm:$0xff]  ;;  %v2032_v41 = vld [vmem:[#allocation3 + $0xd0] sm:$0xff] }
 0x180   :  { %11160 = vmatprep.subr.bf16.mxu1 %v12063_v12  ;;  %v13980_v40 = vld [vmem:[#allocation3 + $0x81] sm:$0xff]  ;;  %v13988_v59 = vld [vmem:[#allocation3 + $0x71] sm:$0xff]  ;;  %v2018_v62 = vpack.c.bf16 %v13978_v26, %v13976_v32 }
 0x181   :  { %v12070_v61 = vld [vmem:[%s16714_s4 + $0x2a8] sm:$0xff]   ;;  %v12066_v12 = vld [vmem:[%s16714_s4 + $0x230] sm:$0xff]   ;;  %v12088_v57 = vld [vmem:[%s16714_s4 + $0x380] sm:$0xff]  }
 0x182   :  { %11097 = vmatpush3.bf16.msra.mxu0 %v12052_v9  ;;  %v12073_v9 = vld [vmem:[%s16714_s4 + $0x2f0] sm:$0xff]   ;;  %v2087_v7 = vld [vmem:[#allocation3 + $0x142] sm:$0xff] }
 0x183   :  { %11098 = vmatprep.subr.bf16.mxu0 %v12053_v43  ;;  %11161 = vmatpush3.bf16.msra.mxu1 %v12064_v53  ;;  %v12071_v43 = vld [vmem:[%s16714_s4 + $0x278] sm:$0xff]   ;;  %v12074_v53 = vld [vmem:[%s16714_s4 + $0x2b0] sm:$0xff]   ;;  %v14060_v52 = vld [vmem:[#allocation3 + $0x124] sm:$0xff] }
 0x184   :  { %4357 = vmatmul.mubr.bf16.gmra.mrb[112].mxu0 %v2017_v23  ;;  %11162 = vmatprep.subr.bf16.mxu1 %v12067_v28  ;;  %v2092_v28 = vpack.c.bf16 %v13770_v15, %v13747_v14  ;;  %v12075_v23 = vld [vmem:[%s16714_s4 + $0x2f8] sm:$0xff]   ;;  %v12077_v14 = vld [vmem:[%s16714_s4 + $0x340] sm:$0xff]   ;;  %v12080_v60 = vld [vmem:[%s16714_s4 + $0x308] sm:$0xff]  }
 0x185   :  { %4454 = vmatmul.mubr.bf16.gmra.mrb[112].mxu1 %v2066_v4  ;;  %4364 = vmatprep.mubr.bf16.mxu0 %v2043_v36  ;;  %v14015_v4 = vld [vmem:[#allocation3 + $0xd4] sm:$0xff]  ;;  %v2007_v15 = vld [vmem:[#allocation3 + $0xc4] sm:$0xff] }
 0x186   :  { %4461 = vmatprep.mubr.bf16.mxu1 %v2091_v56  ;;  %11099 = vmatpush3.bf16.msra.mxu0 %v12054_v13  ;;  %v2067_v13 = vpack.c.bf16 %v13980_v40, %v13988_v59  ;;  %v12087_v36 = vld [vmem:[%s16714_s4 + $0x3c0] sm:$0xff]   ;;  %v2019_v56 = vpack.c.bf16 %v14015_v4, %v2007_v15  ;;  %v2096_v17 = vld [vmem:[#allocation3 + $0x13] sm:$0xff]  ;;  %v12089_v42 = vld [vmem:[%s16714_s4 + $0x3c8] sm:$0xff]   ;;  %v2163_v15 = vpack.c.bf16 %v13952_v58, %v13902_v63 }
 0x187   :  { %11100 = vmatprep.subr.bf16.mxu0 %v12059_v25  ;;  %11163 = vmatpush3.bf16.msra.mxu1 %v12068_v0  ;;  %v2044_v25 = vpack.c.bf16 %v13736_v8, %v2032_v41  ;;  %v12072_v0 = vld [vmem:[%s16714_s4 + $0x238] sm:$0xff]   ;;  %v14101_v3 = vld [vmem:[#allocation3 + $0x43] sm:$0xff]  ;;  %v14173_v58 = vld [vmem:[#allocation3 + $0x90] sm:$0xff] }
 0x188   :  { %11164 = vmatprep.subr.bf16.mxu1 %v12069_v18  ;;  %v12076_v8 = vld [vmem:[%s16714_s4 + $0x2b8] sm:$0xff]   ;;  %v14035_v18 = vld [vmem:[#allocation3 + $0xe4] sm:$0xff] }
 0x189   :  { %v12090_v39 = vld [vmem:[%s16714_s4 + $0x388] sm:$0xff]   ;;  %v12083_v41 = vld [vmem:[%s16714_s4 + $0x358] sm:$0xff]  }
 0x18a   :  { %11101 = vmatpush3.bf16.msra.mxu0 %v12060_v20  ;;  %v2093_v20 = vpack.c.bf16 %v13808_v54, %v13772_v31  ;;  %v2069_v54 = vpack.c.bf16 %v13806_v33, %v13763_v50  ;;  %v2070_v50 = vpack.c.bf16 %v13830_v6, %v13813_v29  ;;  %v14064_v33 = vld [vmem:[#allocation3 + $0x141] sm:$0xff] }
 0x18b   :  { %11102 = vmatprep.subr.bf16.mxu0 %v12065_v45  ;;  %11165 = vmatpush3.bf16.msra.mxu1 %v12070_v61  ;;  %v14037_v45 = vld [vmem:[#allocation3 + $0xf4] sm:$0xff]  ;;  %v2071_v29 = vpack.c.bf16 %v14064_v33, %v13838_v27  ;;  %v14074_v6 = vld [vmem:[#allocation3 + $0x23] sm:$0xff]  ;;  %v2161_v27 = vpack.c.bf16 %v13872_v1, %v13832_v11  ;;  %v2186_v11 = vpack.c.bf16 %v13945_v55, %v13897_v5 }
 0x18c   :  { %4365 = vmatmul.mubr.bf16.gmra.mrb[116].mxu0 %v2018_v62  ;;  %11166 = vmatprep.subr.bf16.mxu1 %v12073_v9  ;;  %v2020_v31 = vpack.c.bf16 %v14037_v45, %v14035_v18  ;;  %v12081_v1 = vld [vmem:[%s16714_s4 + $0x350] sm:$0xff]   ;;  %v2138_v62 = vpack.c.bf16 %v13976_v32, %v13938_v49  ;;  %v12096_v32 = vld [vmem:[%s16714_s4 + $0x398] sm:$0xff]   ;;  %v14171_v63 = vld [vmem:[#allocation3 + $0x83] sm:$0xff] }
 0x18d   :  { %4462 = vmatmul.mubr.bf16.gmra.mrb[116].mxu1 %v2067_v13  ;;  %4372 = vmatprep.mubr.bf16.mxu0 %v2044_v25  ;;  %v14106_v61 = vld [vmem:[#allocation3 + $0x33] sm:$0xff]  ;;  %v2187_v13 = vpack.c.bf16 %v13988_v59, %v13940_v51  ;;  %v14131_v25 = vld [vmem:[#allocation3 + $0x63] sm:$0xff] }
 0x18e   :  { %4469 = vmatprep.mubr.bf16.mxu1 %v2092_v28  ;;  %11103 = vmatpush3.bf16.msra.mxu0 %v12066_v12  ;;  %v12082_v5 = vld [vmem:[%s16714_s4 + $0x310] sm:$0xff]   ;;  %v2113_v9 = vpack.c.bf16 %v14101_v3, %v14106_v61  ;;  %v12085_v51 = vld [vmem:[%s16714_s4 + $0x360] sm:$0xff]  }
 0x18f   :  { %11104 = vmatprep.subr.bf16.mxu0 %v12071_v43  ;;  %11167 = vmatpush3.bf16.msra.mxu1 %v12074_v53  ;;  %v12093_v55 = vld [vmem:[%s16714_s4 + $0x3d0] sm:$0xff]   ;;  %v2162_v43 = vpack.c.bf16 %v13913_v2, %v13866_v30  ;;  %v12095_v53 = vld [vmem:[%s16714_s4 + $0x3d8] sm:$0xff]   ;;  %v14136_v2 = vld [vmem:[#allocation3 + $0x84] sm:$0xff] }
 0x190   :  { %11168 = vmatprep.subr.bf16.mxu1 %v12075_v23  ;;  %v12094_v12 = vld [vmem:[%s16714_s4 + $0x390] sm:$0xff]   ;;  %v12084_v30 = vld [vmem:[%s16714_s4 + $0x318] sm:$0xff]   ;;  %v12086_v59 = vld [vmem:[%s16714_s4 + $0x320] sm:$0xff]  }
 0x191   :  { %v2176_v28 = vld [vmem:[#allocation3 + $0x91] sm:$0xff]  ;;  %v12091_v23 = vld [vmem:[%s16714_s4 + $0x368] sm:$0xff]  }
 0x192   :  { %11105 = vmatpush3.bf16.msra.mxu0 %v12072_v0  ;;  %v14138_v49 = vld [vmem:[#allocation3 + $0x53] sm:$0xff]  ;;  %v12099_v0 = vld [vmem:[%s16714_s4 + $0x3e0] sm:$0xff]  }
 0x193   :  { %11169 = vmatpush3.bf16.msra.mxu1 %v12076_v8  ;;  %11218 = vmatprep.subr.bf16.mxu0 %v12077_v14  ;;  %v12100_v8 = vld [vmem:[%s16714_s4 + $0x3a0] sm:$0xff]   ;;  %v2114_v14 = vpack.c.bf16 %v14131_v25, %v14138_v49 }
 0x194   :  { %4373 = vmatmul.mubr.bf16.gmra.mrb[120].mxu0 %v2019_v56  ;;  %11282 = vmatprep.subr.bf16.mxu1 %v12087_v36  ;;  %v12101_v36 = vld [vmem:[%s16714_s4 + $0x3e8] sm:$0xff]   ;;  %v2139_v56 = vpack.c.bf16 %v14136_v2, %v13978_v26  ;;  %v14175_v26 = vld [vmem:[#allocation3 + $0x73] sm:$0xff] }
 0x195   :  { %4470 = vmatmul.mubr.bf16.gmra.mrb[120].mxu1 %v2068_v22  ;;  %4380 = vmatprep.mubr.bf16.mxu0 %v2045_v38  ;;  %v2021_v22 = vpack.c.bf16 %v14048_v34, %v14050_v10  ;;  %v2095_v38 = vpack.c.bf16 %v2087_v7, %v13844_v37  ;;  %v2112_v37 = vpack.c.bf16 %v14074_v6, %v2096_v17  ;;  %v12102_v7 = vld [vmem:[%s16714_s4 + $0x3a8] sm:$0xff]  }
 0x196   :  { %4477 = vmatprep.mubr.bf16.mxu1 %v2093_v20  ;;  %v2188_v20 = vpack.c.bf16 %v2176_v28, %v13980_v40  ;;  %v12097_v40 = vld [vmem:[%s16714_s4 + $0x370] sm:$0xff]   ;;  %v2140_v17 = vpack.c.bf16 %v14035_v18, %v14015_v4  ;;  %v12108_v18 = vld [vmem:[%s16714_s4 + $0x3b8] sm:$0xff]  }
 0x197   :  { %v2104_v4 = vld [vmem:[#allocation3 + $0xd3] sm:$0xff] }
 0x19c   :  { %4381 = vmatmul.mubr.bf16.gmra.mrb[124].mxu0 %v2020_v31  ;;  %v12092_v31 = vld [vmem:[%s16714_s4 + $0x328] sm:$0xff]  }
 0x19d   :  { %4478 = vmatmul.mubr.bf16.gmra.mrb[124].mxu1 %v2069_v54  ;;  %4388 = vmatprep.mubr.bf16.mxu0 %v2046_v46  ;;  %v2022_v46 = vpack.c.bf16 %v14062_v44, %v14060_v52  ;;  %v2177_v54 = vld [vmem:[#allocation3 + $0xe1] sm:$0xff] }
 0x19e   :  { %4485 = vmatprep.mubr.bf16.mxu1 %v2094_v47  ;;  %v2178_v47 = vld [vmem:[#allocation3 + $0xf1] sm:$0xff] }
 0x1a4   :  { %4389 = vmatmul.mubr.bf16.gmra.mrb[128].mxu0 %v2021_v22  ;;  %v12098_v22 = vld [vmem:[%s16714_s4 + $0x330] sm:$0xff]  }
 0x1a5   :  { %4486 = vmatmul.mubr.bf16.gmra.mrb[128].mxu1 %v2070_v50  ;;  %4396 = vmatprep.mubr.bf16.mxu0 %v2047_v48  ;;  %v12079_v48 = vld [vmem:[%s16714_s4 + $0x348] sm:$0xff]   ;;  %v12105_v50 = vld [vmem:[%s16714_s4 + $0x3f0] sm:$0xff]  }
 0x1a6   :  { %4493 = vmatprep.mubr.bf16.mxu1 %v2095_v38  ;;  %v12103_v38 = vld [vmem:[%s16714_s4 + $0x378] sm:$0xff]  }
 0x1ac   :  { %4397 = vmatmul.mubr.bf16.gmra.mrb[132].mxu0 %v2022_v46  ;;  %v12106_v46 = vld [vmem:[%s16714_s4 + $0x3b0] sm:$0xff]  }
 0x1ad   :  { %4494 = vmatmul.mubr.bf16.gmra.mrb[132].mxu1 %v2071_v29  ;;  %4534 = vmatprep.mubr.bf16.mxu0 %v2136_v19  ;;  %v2115_v29 = vpack.c.bf16 %v14171_v63, %v14175_v26  ;;  %v2164_v19 = vpack.c.bf16 %v14173_v58, %v13947_v24  ;;  %v14207_v24 = vld [vmem:[#allocation3 + $0xe3] sm:$0xff] }
 0x1ae   :  { %4631 = vmatprep.mubr.bf16.mxu1 %v2185_v16  ;;  %v12107_v16 = vld [vmem:[%s16714_s4 + $0x3f8] sm:$0xff]  }
 0x1b4   :  { %4535 = vmatmul.mubr.bf16.vlgmr.msra.gmra.mrb[136].mxu0 %v2112_v37  ;;  %v12104_v37 = vld [vmem:[%s16714_s4 + $0x338] sm:$0xff]  }
 0x1b5   :  { %4632 = vmatmul.mubr.bf16.vlgmr.msra.gmra.mrb[136].mxu1 %v2161_v27  ;;  %11219 = vmatpush3.bf16.msra.mxu0 %v12078_v35  ;;  %v2189_v35 = vpack.c.bf16 %v2178_v47, %v2177_v54  ;;  %v2153_v27 = vld [vmem:[#allocation3 + $0xe0] sm:$0xff] }
 0x1b6   :  { %4542 = vmatprep.mubr.bf16.mxu0 %v2137_v21  ;;  %4639 = vmatprep.mubr.bf16.mxu1 %v2186_v11  ;;  %v12109_v21 = vld [vmem:[%s16714_s4 + $0x440] sm:$0xff]  }
 0x1b7   :  { %11220 = vmatprep.subr.bf16.mxu0 %v12079_v48  ;;  %11283 = vmatpush3.bf16.msra.mxu1 %v12088_v57  ;;  %v14209_v48 = vld [vmem:[#allocation3 + $0xf0] sm:$0xff]  ;;  %v12119_v11 = vld [vmem:[%s16714_s4 + $0x4c0] sm:$0xff]  }
 0x1b8   :  { %11284 = vmatprep.subr.bf16.mxu1 %v12089_v42  ;;  %v2180_v57 = vld [vmem:[#allocation3 + $0x111] sm:$0xff]  ;;  %v2165_v42 = vpack.c.bf16 %v14209_v48, %v2153_v27 }
 0x1b9   :  { %11221 = vmatpush3.bf16.msra.mxu0 %v12080_v60  ;;  %v2179_v60 = vld [vmem:[#allocation3 + $0x101] sm:$0xff] }
 0x1ba   :  { %11222 = vmatprep.subr.bf16.mxu0 %v12081_v1  ;;  %v2116_v1 = vpack.c.bf16 %v14207_v24, %v2104_v4 }
 0x1bb   :  { %11285 = vmatpush3.bf16.msra.mxu1 %v12090_v39  ;;  %v2141_v39 = vpack.c.bf16 %v14050_v10, %v14037_v45  ;;  %v14233_v45 = vld [vmem:[#allocation3 + $0x100] sm:$0xff]  ;;  %v14235_v10 = vld [vmem:[#allocation3 + $0x110] sm:$0xff] }
 0x1bc   :  { %4543 = vmatmul.mubr.bf16.gmra.mrb[140].mxu0 %v2113_v9  ;;  %11286 = vmatprep.subr.bf16.mxu1 %v12093_v55  ;;  %v14224_v55 = vld [vmem:[#allocation3 + $0x103] sm:$0xff] }
 0x1bd   :  { %4640 = vmatmul.mubr.bf16.gmra.mrb[140].mxu1 %v2162_v43  ;;  %4550 = vmatprep.mubr.bf16.mxu0 %v2138_v62  ;;  %v14231_v43 = vld [vmem:[#allocation3 + $0xf3] sm:$0xff] }
 0x1be   :  { %4647 = vmatprep.mubr.bf16.mxu1 %v2187_v13  ;;  %11223 = vmatpush3.bf16.msra.mxu0 %v12082_v5  ;;  %v2190_v5 = vpack.c.bf16 %v2180_v57, %v2179_v60 }
 0x1bf   :  { %11224 = vmatprep.subr.bf16.mxu0 %v12083_v41  ;;  %11287 = vmatpush3.bf16.msra.mxu1 %v12094_v12  ;;  %v14229_v41 = vld [vmem:[%s16715_s5] ss:$0 sm:$0xff] }
 0x1c0   :  { %11288 = vmatprep.subr.bf16.mxu1 %v12095_v53  ;;  %v2181_v53 = vld [vmem:[#allocation3 + $0x121] sm:$0xff] }
 0x1c2   :  { %11225 = vmatpush3.bf16.msra.mxu0 %v12084_v30  ;;  %v2182_v30 = vld [vmem:[#allocation3 + $0x131] sm:$0xff] }
 0x1c3   :  { %11226 = vmatprep.subr.bf16.mxu0 %v12085_v51  ;;  %11289 = vmatpush3.bf16.msra.mxu1 %v12096_v32 }
 0x1c4   :  { %4551 = vmatmul.mubr.bf16.gmra.mrb[144].mxu0 %v2114_v14  ;;  %11290 = vmatprep.subr.bf16.mxu1 %v12099_v0  ;;  %v2166_v14 = vpack.c.bf16 %v14235_v10, %v14233_v45 }
 0x1c5   :  { %4648 = vmatmul.mubr.bf16.gmra.mrb[144].mxu1 %v2163_v15  ;;  %4558 = vmatprep.mubr.bf16.mxu0 %v2139_v56  ;;  %v2142_v15 = vpack.c.bf16 %v14060_v52, %v14048_v34  ;;  %v14251_v34 = vld [vmem:[#allocation3 + $0x113] sm:$0xff]  ;;  %v14253_v52 = vld [vmem:[#allocation3 + $0x120] sm:$0xff] }
 0x1c6   :  { %4655 = vmatprep.mubr.bf16.mxu1 %v2188_v20  ;;  %11227 = vmatpush3.bf16.msra.mxu0 %v12086_v59 }
 0x1c7   :  { %11228 = vmatprep.subr.bf16.mxu0 %v12091_v23  ;;  %11291 = vmatpush3.bf16.msra.mxu1 %v12100_v8  ;;  %v2117_v8 = vpack.c.bf16 %v14224_v55, %v14231_v43 }
 0x1c8   :  { %11292 = vmatprep.subr.bf16.mxu1 %v12101_v36 }
 0x1ca   :  { %11229 = vmatpush3.bf16.msra.mxu0 %v12092_v31  ;;  %v2191_v31 = vpack.c.bf16 %v2182_v30, %v2181_v53  ;;  %v14272_v53 = vld [vmem:[#allocation3 + $0x133] sm:$0xff] }
 0x1cb   :  { %11230 = vmatprep.subr.bf16.mxu0 %v12097_v40  ;;  %11293 = vmatpush3.bf16.msra.mxu1 %v12102_v7  ;;  %v14247_v40 = vld [vmem:[#allocation3 + $0x123] sm:$0xff]  ;;  %v2266_v30 = vld [vmem:[#allocation3 + $0x30] sm:$0xff] }
 0x1cc   :  { %4559 = vmatmul.mubr.bf16.gmra.mrb[148].mxu0 %v2115_v29  ;;  %11294 = vmatprep.subr.bf16.mxu1 %v12105_v50 }
 0x1cd   :  { %4656 = vmatmul.mubr.bf16.gmra.mrb[148].mxu1 %v2164_v19  ;;  %4566 = vmatprep.mubr.bf16.mxu0 %v2140_v17 }
 0x1ce   :  { %4663 = vmatprep.mubr.bf16.mxu1 %v2189_v35  ;;  %11231 = vmatpush3.bf16.msra.mxu0 %v12098_v22 }
 0x1cf   :  { %11232 = vmatprep.subr.bf16.mxu0 %v12103_v38  ;;  %11295 = vmatpush3.bf16.msra.mxu1 %v12106_v46  ;;  %v14255_v38 = vld [vmem:[#allocation3 + $0x130] sm:$0xff]  ;;  %v14257_v46 = vld [vmem:[#allocation3 + $0x144] sm:$0xff] }
 0x1d0   :  { %11296 = vmatprep.subr.bf16.mxu1 %v12107_v16  ;;  %v2184_v16 = vld [vmem:[#allocation3 + $0x151] sm:$0xff]  ;;  %v2143_v60 = vpack.c.bf16 %v14257_v46, %v14062_v44  ;;  %v2267_v44 = vld [vmem:[#allocation3 + $0x40] sm:$0xff] }
 0x1d2   :  { %11233 = vmatpush3.bf16.msra.mxu0 %v12104_v37 }
 0x1d3   :  { %11297 = vmatpush3.bf16.msra.mxu1 %v12108_v18  ;;  %11346 = vmatprep.subr.bf16.mxu0 %v12109_v21  ;;  %v2118_v18 = vpack.c.bf16 %v14247_v40, %v14251_v34  ;;  %v2167_v21 = vpack.c.bf16 %v14255_v38, %v14253_v52 }
 0x1d4   :  { %4567 = vmatmul.mubr.bf16.gmra.mrb[152].mxu0 %v2116_v1  ;;  %11410 = vmatprep.subr.bf16.mxu1 %v12119_v11 }
 0x1d5   :  { %4664 = vmatmul.mubr.bf16.gmra.mrb[152].mxu1 %v2165_v42  ;;  %4574 = vmatprep.mubr.bf16.mxu0 %v2141_v39  ;;  %v2192_v39 = vpack.c.bf16 %v2184_v16, %v14064_v33  ;;  %v12120_v16 = vld [vmem:[%s16714_s4 + $0x480] sm:$0xff]  }
 0x1d6   :  { %4671 = vmatprep.mubr.bf16.mxu1 %v2190_v5 }
 0x1d7   :  { %v10850_v12 = vpop.f32.mrb[72].mxu0 }
 0x1d8   :  { %v10914_v9 = vpop.f32.mrb[72].mxu1  ;;  %v10851_v62 = vpop.f32.mrb[73].mxu0 }
 0x1d9   :  { %v10915_v13 = vpop.f32.mrb[73].mxu1  ;;  %v10852_v28 = vadd.f32 %v10851_v62, %v10850_v12  ;;  %v10853_v32 = vpop.f32.mrb[74].mxu0  ;;  %v14274_v62 = vld [vmem:[#allocation3 + $0x143] sm:$0xff] }
 0x1da   :  { %v10916_v51 = vadd.f32 %v10915_v13, %v10914_v9  ;;  %v10917_v59 = vpop.f32.mrb[74].mxu1  ;;  %v10854_v0 = vpop.f32.mrb[75].mxu0  ;;  %v14276_v13 = vld [vmem:[#allocation3 + $0x140] sm:$0xff]  ;;  %v2119_v33 = vpack.c.bf16 %v14274_v62, %v14272_v53 }
 0x1db   :  { %v10918_v23 = vpop.f32.mrb[75].mxu1  ;;  %v4149_v36 = vadd.f32 %v10852_v28, %v14229_v41  ;;  %v10855_v56 = vadd.f32 %v10854_v0, %v10853_v32  ;;  %v12986_v28 = vld [vmem:[#allocation3 + $0x150] sm:$0xff]  ;;  %v2233_v32 = vpack.c.bf16 %v14106_v61, %v14074_v6  ;;  %v2193_v0 = vld [vmem:[#allocation3 + $0x22] sm:$0xff] }
 0x1dc   :  { %v10919_v20 = vadd.f32 %v10918_v23, %v10917_v59  ;;  %4575 = vmatmul.mubr.bf16.gmra.mrb[156].mxu0 %v2117_v8  ;;  %v2282_v59 = vpack.c.bf16 %v2267_v44, %v2266_v30  ;;  %v14283_v23 = vld [vmem:[#allocation3 + $0x32] sm:$0xff]  ;;  %v2241_v8 = vld [vmem:[#allocation3 + $0x24] sm:$0xff] }
 0x1dd   :  { %4672 = vmatmul.mubr.bf16.gmra.mrb[156].mxu1 %v2166_v14  ;;  %v14244_v54 = vadd.f32 %v10916_v51, %v4149_v36  ;;  %v4152_v47 = vadd.f32 %v10855_v56, %v14229_v41  ;;  %4582 = vmatprep.mubr.bf16.mxu0 %v2142_v15  ;;  %v2168_v51 = vpack.c.bf16 %v12986_v28, %v14276_v13  ;;  %v14285_v36 = vld [vmem:[#allocation3 + $0x34] sm:$0xff]  ;;  %v12110_v56 = vld [vmem:[%s16714_s4 + $0x400] sm:$0xff]   ;;  %v12111_v61 = vld [vmem:[%s16714_s4 + $0x448] sm:$0xff]  }
 0x1de   :  { %4679 = vmatprep.mubr.bf16.mxu1 %v2191_v31  ;;  %v12112_v44 = vld [vmem:[%s16714_s4 + $0x408] sm:$0xff]  }
 0x1df   :  { %v14249_v7 = vadd.f32 %v10919_v20, %v4152_v47  ;;  %v10856_v22 = vpop.f32.mrb[76].mxu0  ;;  %v2269_v20 = vld [vmem:[#allocation3 + $0x60] sm:$0xff] }
 0x1e0   :  { %v10920_v50 = vpop.f32.mrb[76].mxu1  ;;  %v10857_v29 = vpop.f32.mrb[77].mxu0 }
 0x1e1   :  { %v10921_v19 = vpop.f32.mrb[77].mxu1  ;;  %v10858_v17 = vadd.f32 %v10857_v29, %v10856_v22  ;;  %v10859_v37 = vpop.f32.mrb[78].mxu0 }
 0x1e2   :  { %v10922_v35 = vadd.f32 %v10921_v19, %v10920_v50  ;;  %v10923_v27 = vpop.f32.mrb[78].mxu1  ;;  %v10860_v57 = vpop.f32.mrb[79].mxu0  ;;  %v2268_v19 = vld [vmem:[#allocation3 + $0x50] sm:$0xff] }
 0x1e3   :  { %v10924_v4 = vpop.f32.mrb[79].mxu1  ;;  %v4157_v11 = vadd.f32 %v10858_v17, %v14229_v41  ;;  %v10861_v1 = vadd.f32 %v10860_v57, %v10859_v37  ;;  %v2209_v37 = vpack.c.bf16 %v14283_v23, %v2193_v0  ;;  %v12121_v57 = vld [vmem:[%s16714_s4 + $0x4c8] sm:$0xff]  }
 0x1e4   :  { %v10925_v42 = vadd.f32 %v10924_v4, %v10923_v27  ;;  %4583 = vmatmul.mubr.bf16.gmra.mrb[160].mxu0 %v2118_v18  ;;  %v2257_v27 = vpack.c.bf16 %v14285_v36, %v2241_v8 }
 0x1e5   :  { %4680 = vmatmul.mubr.bf16.gmra.mrb[160].mxu1 %v2167_v21  ;;  %v14267_v5 = vadd.f32 %v10922_v35, %v4157_v11  ;;  %v4160_v12 = vadd.f32 %v10861_v1, %v14229_v41  ;;  %4590 = vmatprep.mubr.bf16.mxu0 %v2143_v60  ;;  %v2234_v60 = vpack.c.bf16 %v14138_v49, %v14101_v3  ;;  %v12113_v3 = vld [vmem:[%s16714_s4 + $0x450] sm:$0xff]   ;;  %v2271_v49 = vld [vmem:[#allocation3 + $0x80] sm:$0xff] }
 0x1e6   :  { %4687 = vmatprep.mubr.bf16.mxu1 %v2192_v39  ;;  %v2283_v11 = vpack.c.bf16 %v2269_v20, %v2268_v19  ;;  %v14307_v39 = vld [vmem:[#allocation3 + $0x52] sm:$0xff] }
 0x1e7   :  { %v14270_v9 = vadd.f32 %v10925_v42, %v4160_v12  ;;  %v14309_v12 = vld [vmem:[#allocation3 + $0x54] sm:$0xff] }
 0x1ec   :  { %4591 = vmatmul.mubr.bf16.gmra.mrb[164].mxu0 %v2119_v33 }
 0x1ed   :  { %4688 = vmatmul.mubr.bf16.gmra.mrb[164].mxu1 %v2168_v51  ;;  %4728 = vmatprep.mubr.bf16.mxu0 %v2233_v32  ;;  %v14319_v51 = vld [vmem:[#allocation3 + $0x42] sm:$0xff] }
 0x1ee   :  { %4825 = vmatprep.mubr.bf16.mxu1 %v2282_v59  ;;  %v14321_v32 = vld [vmem:[#allocation3 + $0x44] sm:$0xff]  ;;  %v2210_v19 = vpack.c.bf16 %v14307_v39, %v14319_v51 }
 0x1ef   :  { %v10862_v14 = vpop.f32.mrb[80].mxu0  ;;  %v12122_v59 = vld [vmem:[%s16714_s4 + $0x488] sm:$0xff]  }
 0x1f0   :  { %v10926_v15 = vpop.f32.mrb[80].mxu1  ;;  %v10863_v31 = vpop.f32.mrb[81].mxu0 }
 0x1f1   :  { %v10927_v6 = vpop.f32.mrb[81].mxu1  ;;  %v10864_v47 = vadd.f32 %v10863_v31, %v10862_v14  ;;  %v10865_v50 = vpop.f32.mrb[82].mxu0  ;;  %v2270_v14 = vld [vmem:[#allocation3 + $0x70] sm:$0xff] }
 0x1f2   :  { %v10928_v22 = vadd.f32 %v10927_v6, %v10926_v15  ;;  %v10929_v29 = vpop.f32.mrb[82].mxu1  ;;  %v10866_v17 = vpop.f32.mrb[83].mxu0  ;;  %v12114_v15 = vld [vmem:[%s16714_s4 + $0x410] sm:$0xff]  }
 0x1f3   :  { %v10930_v35 = vpop.f32.mrb[83].mxu1  ;;  %v4165_v4 = vadd.f32 %v10864_v47, %v14229_v41  ;;  %v10867_v18 = vadd.f32 %v10866_v17, %v10865_v50  ;;  %v12115_v47 = vld [vmem:[%s16714_s4 + $0x458] sm:$0xff]   ;;  %v2235_v17 = vpack.c.bf16 %v14175_v26, %v14131_v25  ;;  %v14354_v26 = vld [vmem:[#allocation3 + $0x62] sm:$0xff] }
 0x1f4   :  { %v10931_v21 = vadd.f32 %v10930_v35, %v10929_v29  ;;  %4729 = vmatmul.mubr.bf16.vlgmr.msra.gmra.mrb[168].mxu0 %v2209_v37  ;;  %v12127_v35 = vld [vmem:[%s16714_s4 + $0x4d8] sm:$0xff]  }
 0x1f5   :  { %4826 = vmatmul.mubr.bf16.vlgmr.msra.gmra.mrb[168].mxu1 %v2257_v27  ;;  %v14304_v1 = vadd.f32 %v10928_v22, %v4165_v4  ;;  %v4168_v42 = vadd.f32 %v10867_v18, %v14229_v41  ;;  %11347 = vmatpush3.bf16.msra.mxu0 %v12110_v56  ;;  %v12125_v56 = vld [vmem:[%s16714_s4 + $0x4d0] sm:$0xff]   ;;  %v2284_v4 = vpack.c.bf16 %v2271_v49, %v2270_v14  ;;  %v12116_v18 = vld [vmem:[%s16714_s4 + $0x418] sm:$0xff]   ;;  %v2273_v49 = vld [vmem:[#allocation3 + $0xa0] sm:$0xff] }
 0x1f6   :  { %4736 = vmatprep.mubr.bf16.mxu0 %v2234_v60  ;;  %4833 = vmatprep.mubr.bf16.mxu1 %v2283_v11  ;;  %v12126_v22 = vld [vmem:[%s16714_s4 + $0x490] sm:$0xff]   ;;  %v14358_v11 = vld [vmem:[#allocation3 + $0x64] sm:$0xff] }
 0x1f7   :  { %11348 = vmatprep.subr.bf16.mxu0 %v12111_v61  ;;  %v14317_v30 = vadd.f32 %v10931_v21, %v4168_v42  ;;  %v10868_v33 = vpop.f32.mrb[84].mxu0  ;;  %11411 = vmatpush3.bf16.msra.mxu1 %v12120_v16  ;;  %v2258_v16 = vpack.c.bf16 %v14309_v12, %v14321_v32  ;;  %v14356_v60 = vld [vmem:[#allocation3 + $0x72] sm:$0xff]  ;;  %v12132_v14 = vld [vmem:[%s16714_s4 + $0x4a0] sm:$0xff]  }
 0x1f8   :  { %v10932_v28 = vpop.f32.mrb[84].mxu1  ;;  %v10869_v0 = vpop.f32.mrb[85].mxu0  ;;  %11412 = vmatprep.subr.bf16.mxu1 %v12121_v57  ;;  %v14360_v42 = vld [vmem:[#allocation3 + $0x74] sm:$0xff] }
 0x1f9   :  { %v10933_v8 = vpop.f32.mrb[85].mxu1  ;;  %v10870_v20 = vadd.f32 %v10869_v0, %v10868_v33  ;;  %v10871_v6 = vpop.f32.mrb[86].mxu0  ;;  %11349 = vmatpush3.bf16.msra.mxu0 %v12112_v44  ;;  %v12117_v44 = vld [vmem:[%s16714_s4 + $0x460] sm:$0xff]  }
 0x1fa   :  { %v10934_v31 = vadd.f32 %v10933_v8, %v10932_v28  ;;  %v10935_v61 = vpop.f32.mrb[86].mxu1  ;;  %v10872_v50 = vpop.f32.mrb[87].mxu0  ;;  %11350 = vmatprep.subr.bf16.mxu0 %v12113_v3  ;;  %v14365_v3 = vld [vmem:[#allocation3 + $0x93] sm:$0xff]  ;;  %v12131_v0 = vld [vmem:[%s16714_s4 + $0x4e0] sm:$0xff]   ;;  %v12123_v8 = vld [vmem:[%s16714_s4 + $0x468] sm:$0xff]  }
 0x1fb   :  { %v10936_v29 = vpop.f32.mrb[87].mxu1  ;;  %v4173_v37 = vadd.f32 %v10870_v20, %v14229_v41  ;;  %v10873_v27 = vadd.f32 %v10872_v50, %v10871_v6  ;;  %11413 = vmatpush3.bf16.msra.mxu1 %v12122_v59  ;;  %v12128_v28 = vld [vmem:[%s16714_s4 + $0x498] sm:$0xff]   ;;  %v12118_v59 = vld [vmem:[%s16714_s4 + $0x420] sm:$0xff]   ;;  %v12133_v20 = vld [vmem:[%s16714_s4 + $0x4e8] sm:$0xff]   ;;  %v2285_v6 = vpack.c.bf16 %v2273_v49, %v14173_v58 }
 0x1fc   :  { %v10937_v57 = vadd.f32 %v10936_v29, %v10935_v61  ;;  %4737 = vmatmul.mubr.bf16.gmra.mrb[172].mxu0 %v2210_v19  ;;  %11414 = vmatprep.subr.bf16.mxu1 %v12125_v56  ;;  %v2259_v56 = vpack.c.bf16 %v14360_v42, %v14358_v11  ;;  %v12124_v61 = vld [vmem:[%s16714_s4 + $0x428] sm:$0xff]   ;;  %v12130_v29 = vld [vmem:[%s16714_s4 + $0x430] sm:$0xff]  }
 0x1fd   :  { %4834 = vmatmul.mubr.bf16.gmra.mrb[172].mxu1 %v2258_v16  ;;  %v14351_v21 = vadd.f32 %v10934_v31, %v4173_v37  ;;  %v4176_v25 = vadd.f32 %v10873_v27, %v14229_v41  ;;  %4744 = vmatprep.mubr.bf16.mxu0 %v2235_v17  ;;  %v2236_v31 = vpack.c.bf16 %v14365_v3, %v14171_v63  ;;  %v12129_v63 = vld [vmem:[%s16714_s4 + $0x470] sm:$0xff]   ;;  %v14404_v58 = vld [vmem:[#allocation3 + $0x82] sm:$0xff]  ;;  %v12135_v16 = vld [vmem:[%s16714_s4 + $0x478] sm:$0xff]  }
 0x1fe   :  { %4841 = vmatprep.mubr.bf16.mxu1 %v2284_v4  ;;  %11351 = vmatpush3.bf16.msra.mxu0 %v12114_v15  ;;  %v2211_v15 = vpack.c.bf16 %v14356_v60, %v14354_v26  ;;  %v12134_v50 = vld [vmem:[%s16714_s4 + $0x4a8] sm:$0xff]   ;;  %v12137_v19 = vld [vmem:[%s16714_s4 + $0x4f0] sm:$0xff]   ;;  %v12139_v27 = vld [vmem:[%s16714_s4 + $0x4f8] sm:$0xff]   ;;  %v2286_v4 = vpack.c.bf16 %v14233_v45, %v14209_v48 }
 0x1ff   :  { %v14367_v33 = vadd.f32 %v10937_v57, %v4176_v25  ;;  %11352 = vmatprep.subr.bf16.mxu0 %v12115_v47  ;;  %11415 = vmatpush3.bf16.msra.mxu1 %v12126_v22  ;;  %v14397_v47 = vld [vmem:[#allocation3 + $0x92] sm:$0xff]  ;;  %v2237_v57 = vpack.c.bf16 %v14231_v43, %v14207_v24  ;;  %v12141_v48 = vld [vmem:[%s16714_s4 + $0x540] sm:$0xff]  }
 0x200   :  { %11416 = vmatprep.subr.bf16.mxu1 %v12127_v35  ;;  %v14399_v22 = vld [vmem:[#allocation3 + $0x94] sm:$0xff]  ;;  %v2212_v35 = vpack.c.bf16 %v14397_v47, %v14404_v58  ;;  %v12151_v43 = vld [vmem:[%s16714_s4 + $0x5c0] sm:$0xff]  }
 0x201   :  { %v12138_v17 = vld [vmem:[%s16714_s4 + $0x4b0] sm:$0xff]   ;;  %v2260_v37 = vpack.c.bf16 %v14399_v22, %v14136_v2  ;;  %v2201_v2 = vld [vmem:[#allocation3 + $0xe2] sm:$0xff]  ;;  %v12140_v24 = vld [vmem:[%s16714_s4 + $0x4b8] sm:$0xff]  }
 0x202   :  { %11353 = vmatpush3.bf16.msra.mxu0 %v12116_v18  ;;  %v12136_v18 = vld [vmem:[%s16714_s4 + $0x438] sm:$0xff]  }
 0x203   :  { %11354 = vmatprep.subr.bf16.mxu0 %v12117_v44  ;;  %11417 = vmatpush3.bf16.msra.mxu1 %v12128_v28  ;;  %v14435_v25 = vld [vmem:[#allocation3 + $0xf2] sm:$0xff]  ;;  %v2249_v44 = vld [vmem:[#allocation3 + $0xe4] sm:$0xff] }
 0x204   :  { %4745 = vmatmul.mubr.bf16.gmra.mrb[176].mxu0 %v2211_v15  ;;  %11418 = vmatprep.subr.bf16.mxu1 %v12131_v0  ;;  %v14437_v49 = vld [vmem:[#allocation3 + $0xf4] sm:$0xff]  ;;  %v2213_v45 = vpack.c.bf16 %v14435_v25, %v2201_v2  ;;  %v2287_v0 = vpack.c.bf16 %v14253_v52, %v14235_v10  ;;  %v14458_v15 = vld [vmem:[#allocation3 + $0x104] sm:$0xff]  ;;  %v2288_v52 = vpack.c.bf16 %v14276_v13, %v14255_v38 }
 0x205   :  { %4842 = vmatmul.mubr.bf16.gmra.mrb[176].mxu1 %v2259_v56  ;;  %4752 = vmatprep.mubr.bf16.mxu0 %v2236_v31  ;;  %v2261_v28 = vpack.c.bf16 %v14437_v49, %v2249_v44  ;;  %v14460_v56 = vld [vmem:[#allocation3 + $0x114] sm:$0xff] }
 0x206   :  { %4849 = vmatprep.mubr.bf16.mxu1 %v2285_v6  ;;  %11355 = vmatpush3.bf16.msra.mxu0 %v12118_v59  ;;  %v2238_v59 = vpack.c.bf16 %v14251_v34, %v14224_v55  ;;  %v2262_v10 = vpack.c.bf16 %v14460_v56, %v14458_v15  ;;  %v2239_v34 = vpack.c.bf16 %v14272_v53, %v14247_v40  ;;  %v14472_v31 = vld [vmem:[#allocation3 + $0x132] sm:$0xff]  ;;  %v14474_v6 = vld [vmem:[#allocation3 + $0x124] sm:$0xff] }
 0x207   :  { %11356 = vmatprep.subr.bf16.mxu0 %v12123_v8  ;;  %11419 = vmatpush3.bf16.msra.mxu1 %v12132_v14  ;;  %v14454_v8 = vld [vmem:[#allocation3 + $0x112] sm:$0xff]  ;;  %v14456_v14 = vld [vmem:[#allocation3 + $0x102] sm:$0xff] }
 0x208   :  { %11420 = vmatprep.subr.bf16.mxu1 %v12133_v20  ;;  %v2214_v55 = vpack.c.bf16 %v14454_v8, %v14456_v14  ;;  %v14470_v20 = vld [vmem:[#allocation3 + $0x122] sm:$0xff] }
 0x209   :  { %v2281_v53 = vld [vmem:[#allocation3 + $0x160] sm:$0xff] }
 0x20a   :  { %11357 = vmatpush3.bf16.msra.mxu0 %v12124_v61  ;;  %v14476_v61 = vld [vmem:[#allocation3 + $0x134] sm:$0xff] }
 0x20b   :  { %11358 = vmatprep.subr.bf16.mxu0 %v12129_v63  ;;  %11421 = vmatpush3.bf16.msra.mxu1 %v12134_v50  ;;  %v14478_v63 = vld [vmem:[#allocation3 + $0x153] sm:$0xff] }
 0x20c   :  { %4753 = vmatmul.mubr.bf16.gmra.mrb[180].mxu0 %v2212_v35  ;;  %11422 = vmatprep.subr.bf16.mxu1 %v12137_v19  ;;  %v2280_v50 = vld [vmem:[#allocation3 + $0x150] sm:$0xff] }
 0x20d   :  { %4850 = vmatmul.mubr.bf16.gmra.mrb[180].mxu1 %v2260_v37  ;;  %4760 = vmatprep.mubr.bf16.mxu0 %v2237_v57  ;;  %v2215_v57 = vpack.c.bf16 %v14472_v31, %v14470_v20 }
 0x20e   :  { %4857 = vmatprep.mubr.bf16.mxu1 %v2286_v4  ;;  %11359 = vmatpush3.bf16.msra.mxu0 %v12130_v29  ;;  %v2263_v4 = vpack.c.bf16 %v14476_v61, %v14474_v6 }
 0x20f   :  { %11360 = vmatprep.subr.bf16.mxu0 %v12135_v16  ;;  %11423 = vmatpush3.bf16.msra.mxu1 %v12138_v17 }
 0x210   :  { %11424 = vmatprep.subr.bf16.mxu1 %v12139_v27 }
 0x212   :  { %11361 = vmatpush3.bf16.msra.mxu0 %v12136_v18  ;;  %v2240_v18 = vpack.c.bf16 %v14478_v63, %v14274_v62  ;;  %v14494_v62 = vld [vmem:[#allocation3 + $0x142] sm:$0xff] }
 0x213   :  { %11425 = vmatpush3.bf16.msra.mxu1 %v12140_v24  ;;  %11474 = vmatprep.subr.bf16.mxu0 %v12141_v48  ;;  %v2289_v48 = vpack.c.bf16 %v2281_v53, %v2280_v50 }
 0x214   :  { %4761 = vmatmul.mubr.bf16.gmra.mrb[184].mxu0 %v2213_v45  ;;  %11538 = vmatprep.subr.bf16.mxu1 %v12151_v43 }
 0x215   :  { %4858 = vmatmul.mubr.bf16.gmra.mrb[184].mxu1 %v2261_v28  ;;  %4768 = vmatprep.mubr.bf16.mxu0 %v2238_v59  ;;  %v14490_v28 = vld [vmem:[#allocation3 + $0x152] sm:$0xff] }
 0x216   :  { %4865 = vmatprep.mubr.bf16.mxu1 %v2287_v0 }
 0x21c   :  { %4769 = vmatmul.mubr.bf16.gmra.mrb[188].mxu0 %v2214_v55 }
 0x21d   :  { %4866 = vmatmul.mubr.bf16.gmra.mrb[188].mxu1 %v2262_v10  ;;  %4776 = vmatprep.mubr.bf16.mxu0 %v2239_v34  ;;  %v14496_v10 = vld [vmem:[#allocation3 + $0x154] sm:$0xff] }
 0x21e   :  { %4873 = vmatprep.mubr.bf16.mxu1 %v2288_v52 }
 0x21f   :  { %v10874_v29 = vpop.f32.mrb[88].mxu0 }
 0x220   :  { %v10938_v40 = vpop.f32.mrb[88].mxu1  ;;  %v10875_v19 = vpop.f32.mrb[89].mxu0 }
 0x221   :  { %v10939_v38 = vpop.f32.mrb[89].mxu1  ;;  %v10876_v13 = vadd.f32 %v10875_v19, %v10874_v29  ;;  %v10877_v17 = vpop.f32.mrb[90].mxu0 }
 0x222   :  { %v10940_v16 = vadd.f32 %v10939_v38, %v10938_v40  ;;  %v10941_v35 = vpop.f32.mrb[90].mxu1  ;;  %v10878_v37 = vpop.f32.mrb[91].mxu0  ;;  %v2216_v38 = vpack.c.bf16 %v14490_v28, %v14494_v62 }
 0x223   :  { %v10942_v27 = vpop.f32.mrb[91].mxu1  ;;  %v4181_v2 = vadd.f32 %v10876_v13, %v14229_v41  ;;  %v10879_v44 = vadd.f32 %v10878_v37, %v10877_v17  ;;  %v2264_v13 = vpack.c.bf16 %v14496_v10, %v14257_v46  ;;  %v14507_v17 = vld [vmem:[%s16715_s5] ss:$0 sm:$0xff] }
 0x224   :  { %v10943_v24 = vadd.f32 %v10942_v27, %v10941_v35  ;;  %4777 = vmatmul.mubr.bf16.gmra.mrb[192].mxu0 %v2215_v57  ;;  %v2378_v57 = vpack.c.bf16 %v14321_v32, %v14285_v36  ;;  %v12142_v36 = vld [vmem:[%s16714_s4 + $0x500] sm:$0xff]   ;;  %v12143_v32 = vld [vmem:[%s16714_s4 + $0x548] sm:$0xff]  }
 0x225   :  { %4874 = vmatmul.mubr.bf16.gmra.mrb[192].mxu1 %v2263_v4  ;;  %v14487_v43 = vadd.f32 %v10940_v16, %v4181_v2  ;;  %v4184_v45 = vadd.f32 %v10879_v44, %v14229_v41  ;;  %4784 = vmatprep.mubr.bf16.mxu0 %v2240_v18  ;;  %v2330_v16 = vpack.c.bf16 %v14319_v51, %v14283_v23  ;;  %v14515_v23 = vld [vmem:[#allocation3 + $0x41] sm:$0xff]  ;;  %v2290_v2 = vld [vmem:[#allocation3 + $0x31] sm:$0xff] }
 0x226   :  { %4881 = vmatprep.mubr.bf16.mxu1 %v2289_v48  ;;  %v14517_v51 = vld [vmem:[#allocation3 + $0x43] sm:$0xff]  ;;  %v2338_v44 = vld [vmem:[#allocation3 + $0x33] sm:$0xff]  ;;  %v2306_v48 = vpack.c.bf16 %v14515_v23, %v2290_v2 }
 0x227   :  { %v14492_v59 = vadd.f32 %v10943_v24, %v4184_v45  ;;  %v10880_v0 = vpop.f32.mrb[92].mxu0  ;;  %v12152_v24 = vld [vmem:[%s16714_s4 + $0x580] sm:$0xff]   ;;  %v2354_v45 = vpack.c.bf16 %v14517_v51, %v2338_v44  ;;  %v12158_v2 = vld [vmem:[%s16714_s4 + $0x590] sm:$0xff]  }
 0x228   :  { %v10944_v55 = vpop.f32.mrb[92].mxu1  ;;  %v10881_v34 = vpop.f32.mrb[93].mxu0 }
 0x229   :  { %v10945_v52 = vpop.f32.mrb[93].mxu1  ;;  %v10882_v50 = vadd.f32 %v10881_v34, %v10880_v0  ;;  %v10883_v40 = vpop.f32.mrb[94].mxu0  ;;  %v12153_v0 = vld [vmem:[%s16714_s4 + $0x5c8] sm:$0xff]  }
 0x22a   :  { %v10946_v29 = vadd.f32 %v10945_v52, %v10944_v55  ;;  %v10947_v53 = vpop.f32.mrb[94].mxu1  ;;  %v10884_v19 = vpop.f32.mrb[95].mxu0  ;;  %v2331_v55 = vpack.c.bf16 %v14354_v26, %v14307_v39  ;;  %v12144_v34 = vld [vmem:[%s16714_s4 + $0x508] sm:$0xff]   ;;  %v2379_v52 = vpack.c.bf16 %v14358_v11, %v14309_v12  ;;  %v14552_v12 = vld [vmem:[#allocation3 + $0x51] sm:$0xff] }
 0x22b   :  { %v10948_v41 = vpop.f32.mrb[95].mxu1  ;;  %v4189_v35 = vadd.f32 %v14507_v17, %v10882_v50  ;;  %v10885_v37 = vadd.f32 %v10884_v19, %v10883_v40  ;;  %v12145_v50 = vld [vmem:[%s16714_s4 + $0x550] sm:$0xff]   ;;  %v14547_v40 = vld [vmem:[#allocation3 + $0x63] sm:$0xff] }
 0x22c   :  { %v10949_v27 = vadd.f32 %v10948_v41, %v10947_v53  ;;  %4785 = vmatmul.mubr.bf16.gmra.mrb[196].mxu0 %v2216_v38  ;;  %v12154_v39 = vld [vmem:[%s16714_s4 + $0x588] sm:$0xff]   ;;  %v14554_v11 = vld [vmem:[#allocation3 + $0x53] sm:$0xff] }
 0x22d   :  { %4882 = vmatmul.mubr.bf16.gmra.mrb[196].mxu1 %v2264_v13  ;;  %v14512_v4 = vadd.f32 %v10946_v29, %v4189_v35  ;;  %v4192_v46 = vadd.f32 %v14507_v17, %v10885_v37  ;;  %4922 = vmatprep.mubr.bf16.mxu0 %v2330_v16  ;;  %v14545_v29 = vld [vmem:[#allocation3 + $0x61] sm:$0xff]  ;;  %v12146_v13 = vld [vmem:[%s16714_s4 + $0x510] sm:$0xff]  }
 0x22e   :  { %5019 = vmatprep.mubr.bf16.mxu1 %v2378_v57  ;;  %v2367_v26 = vld [vmem:[#allocation3 + $0x84] sm:$0xff]  ;;  %v12157_v16 = vld [vmem:[%s16714_s4 + $0x5d0] sm:$0xff]  }
 0x22f   :  { %v14519_v18 = vadd.f32 %v10949_v27, %v4192_v46  ;;  %v12147_v46 = vld [vmem:[%s16714_s4 + $0x558] sm:$0xff]  }
 0x234   :  { %4923 = vmatmul.mubr.bf16.vlgmr.msra.gmra.mrb[200].mxu0 %v2306_v48  ;;  %v2332_v48 = vpack.c.bf16 %v14404_v58, %v14356_v60  ;;  %v14585_v58 = vld [vmem:[#allocation3 + $0x81] sm:$0xff] }
 0x235   :  { %5020 = vmatmul.mubr.bf16.vlgmr.msra.gmra.mrb[200].mxu1 %v2354_v45  ;;  %11475 = vmatpush3.bf16.msra.mxu0 %v12142_v36  ;;  %v12159_v45 = vld [vmem:[%s16714_s4 + $0x5d8] sm:$0xff]  }
 0x236   :  { %4930 = vmatprep.mubr.bf16.mxu0 %v2331_v55  ;;  %5027 = vmatprep.mubr.bf16.mxu1 %v2379_v52  ;;  %v2380_v52 = vpack.c.bf16 %v2367_v26, %v14360_v42  ;;  %v2369_v42 = vld [vmem:[#allocation3 + $0xa4] sm:$0xff]  ;;  %v12160_v26 = vld [vmem:[%s16714_s4 + $0x598] sm:$0xff]  }
 0x237   :  { %11476 = vmatprep.subr.bf16.mxu0 %v12143_v32  ;;  %v10886_v53 = vpop.f32.mrb[96].mxu0  ;;  %11539 = vmatpush3.bf16.msra.mxu1 %v12152_v24  ;;  %v2307_v32 = vpack.c.bf16 %v14545_v29, %v14552_v12  ;;  %v2355_v24 = vpack.c.bf16 %v14547_v40, %v14554_v11 }
 0x238   :  { %v10950_v19 = vpop.f32.mrb[96].mxu1  ;;  %v10887_v41 = vpop.f32.mrb[97].mxu0  ;;  %11540 = vmatprep.subr.bf16.mxu1 %v12153_v0 }
 0x239   :  { %v10951_v38 = vpop.f32.mrb[97].mxu1  ;;  %v10888_v35 = vadd.f32 %v10887_v41, %v10886_v53  ;;  %v10889_v27 = vpop.f32.mrb[98].mxu0  ;;  %11477 = vmatpush3.bf16.msra.mxu0 %v12144_v34  ;;  %v12148_v53 = vld [vmem:[%s16714_s4 + $0x518] sm:$0xff]   ;;  %v14589_v41 = vld [vmem:[#allocation3 + $0xa2] sm:$0xff] }
 0x23a   :  { %v10952_v37 = vadd.f32 %v10951_v38, %v10950_v19  ;;  %v10953_v57 = vpop.f32.mrb[98].mxu1  ;;  %v10890_v44 = vpop.f32.mrb[99].mxu0  ;;  %11478 = vmatprep.subr.bf16.mxu0 %v12145_v50  ;;  %v14587_v50 = vld [vmem:[#allocation3 + $0x83] sm:$0xff] }
 0x23b   :  { %v10954_v36 = vpop.f32.mrb[99].mxu1  ;;  %v4197_v0 = vadd.f32 %v14507_v17, %v10888_v35  ;;  %v10891_v55 = vadd.f32 %v10890_v44, %v10889_v27  ;;  %11541 = vmatpush3.bf16.msra.mxu1 %v12154_v39  ;;  %16722 = vst [vmem:[#allocation8_spill] sm:$0xff] %v14587_v50  ;;  %v12149_v39 = vld [vmem:[%s16714_s4 + $0x560] sm:$0xff]   ;;  %v14599_v27 = vld [vmem:[#allocation3 + $0x71] sm:$0xff] }
 0x23c   :  { %v10955_v34 = vadd.f32 %v10954_v36, %v10953_v57  ;;  %4931 = vmatmul.mubr.bf16.gmra.mrb[204].mxu0 %v2307_v32  ;;  %11542 = vmatprep.subr.bf16.mxu1 %v12157_v16  ;;  %v14601_v57 = vld [vmem:[#allocation3 + $0x73] sm:$0xff]  ;;  %v12150_v32 = vld [vmem:[%s16714_s4 + $0x520] sm:$0xff]  }
 0x23d   :  { %5028 = vmatmul.mubr.bf16.gmra.mrb[204].mxu1 %v2355_v24  ;;  %v14582_v19 = vadd.f32 %v10952_v37, %v4197_v0  ;;  %v4200_v60 = vadd.f32 %v14507_v17, %v10891_v55  ;;  %4938 = vmatprep.mubr.bf16.mxu0 %v2332_v48 }
 0x23e   :  { %5035 = vmatprep.mubr.bf16.mxu1 %v2380_v52  ;;  %11479 = vmatpush3.bf16.msra.mxu0 %v12146_v13  ;;  %v12163_v13 = vld [vmem:[%s16714_s4 + $0x5e0] sm:$0xff]   ;;  %v2356_v52 = vpack.c.bf16 %v14587_v50, %v14601_v57 }
 0x23f   :  { %v14597_v38 = vadd.f32 %v10955_v34, %v4200_v60  ;;  %v10892_v35 = vpop.f32.mrb[100].mxu0  ;;  %11480 = vmatprep.subr.bf16.mxu0 %v12147_v46  ;;  %11543 = vmatpush3.bf16.msra.mxu1 %v12158_v2  ;;  %v12155_v46 = vld [vmem:[%s16714_s4 + $0x568] sm:$0xff]   ;;  %v12164_v2 = vld [vmem:[%s16714_s4 + $0x5a0] sm:$0xff]   ;;  %v2333_v60 = vpack.c.bf16 %v14589_v41, %v14397_v47 }
 0x240   :  { %v10956_v37 = vpop.f32.mrb[100].mxu1  ;;  %v10893_v44 = vpop.f32.mrb[101].mxu0  ;;  %11544 = vmatprep.subr.bf16.mxu1 %v12159_v45  ;;  %v2308_v45 = vpack.c.bf16 %v14585_v58, %v14599_v27 }
 0x241   :  { %16723 = vst [vmem:[#allocation9_spill] sm:$0xff] %v14597_v38  ;;  %v10957_v36 = vpop.f32.mrb[101].mxu1  ;;  %v10894_v16 = vadd.f32 %v10893_v44, %v10892_v35  ;;  %v10895_v48 = vpop.f32.mrb[102].mxu0  ;;  %v2381_v35 = vpack.c.bf16 %v2369_v42, %v14399_v22  ;;  %v12165_v38 = vld [vmem:[%s16714_s4 + $0x5e8] sm:$0xff]  }
 0x242   :  { %v10958_v24 = vadd.f32 %v10957_v36, %v10956_v37  ;;  %v10959_v0 = vpop.f32.mrb[102].mxu1  ;;  %v10896_v55 = vpop.f32.mrb[103].mxu0  ;;  %11481 = vmatpush3.bf16.msra.mxu0 %v12148_v53 }
 0x243   :  { %v10960_v34 = vpop.f32.mrb[103].mxu1  ;;  %v4205_v37 = vadd.f32 %v14507_v17, %v10894_v16  ;;  %v10897_v44 = vadd.f32 %v10896_v55, %v10895_v48  ;;  %11482 = vmatprep.subr.bf16.mxu0 %v12149_v39  ;;  %11545 = vmatpush3.bf16.msra.mxu1 %v12160_v26 }
 0x244   :  { %v10961_v36 = vadd.f32 %v10960_v34, %v10959_v0  ;;  %4939 = vmatmul.mubr.bf16.gmra.mrb[208].mxu0 %v2308_v45 }
 0x245   :  { %5036 = vmatmul.mubr.bf16.gmra.mrb[208].mxu1 %v2356_v52 }
 0x246   :  { %15 = vsyncpa [#allocation6], 0  ;;  %v14626_v50 = vadd.f32 %v10958_v24, %v4205_v37  ;;  %v4208_v47 = vadd.f32 %v14507_v17, %v10897_v44  ;;  %4946 = vmatprep.mubr.bf16.mxu0 %v2333_v60  ;;  %5043 = vmatprep.mubr.bf16.mxu1 %v2381_v35  ;;  %v14629_v22 = vld [vmem:[#allocation3 + $0xa1] sm:$0xff]  ;;  %v12161_v17 = vld [vmem:[%s16714_s4 + $0x570] sm:$0xff]   ;;  %v2334_v35 = vpack.c.bf16 %v14456_v14, %v14435_v25  ;;  %vm5641_vm1 = vcmask 1041409  }
 0x247   :  { %11483 = vmatpush3.bf16.msra.mxu0 %v12150_v32  ;;  %v12156_v53 = vld [vmem:[%s16714_s4 + $0x528] sm:$0xff]   ;;  %11546 = vmatprep.subr.bf16.mxu1 %v12163_v13  ;;  %v10978_v39 = vpop.f32.mrb[104].mxu0  ;;  %v14644_v45 = vld [vmem:[#allocation3 + $0x91] sm:$0xff]  ;;  %vm9836_vm2 = vcmask 1041408  }
 0x248   :  { %v14634_v42 = vadd.f32 %v10961_v36, %v4208_v47  ;;  %v11042_v26 = vpop.f32.mrb[104].mxu1  ;;  %v14636_v16 = vld [vmem:[#allocation3 + $0xa3] sm:$0xff]  ;;  %11484 = vmatprep.subr.bf16.mxu0 %v12155_v46  ;;  %11547 = vmatpush3.bf16.msra.mxu1 %v12164_v2  ;;  %v10979_v24 = vpop.f32.mrb[105].mxu0  ;;  %v2309_v60 = vpack.c.bf16 %v14629_v22, %v14644_v45  ;;  %v12162_v37 = vld [vmem:[%s16714_s4 + $0x530] sm:$0xff]  }
 0x249   :  { %v12166_v32 = vld [vmem:[%s16714_s4 + $0x5a8] sm:$0xff]   ;;  %v11043_v48 = vpop.f32.mrb[105].mxu1  ;;  %11548 = vmatprep.subr.bf16.mxu1 %v12165_v38  ;;  %v10980_v13 = vadd.f32 %v10979_v24, %v10978_v39  ;;  %v10981_v55 = vpop.f32.mrb[106].mxu0  ;;  %v2357_v2 = vpack.c.bf16 %v14636_v16, %v14365_v3  ;;  %v2382_v38 = vpack.c.bf16 %v14458_v15, %v14437_v49  ;;  %v12169_v44 = vld [vmem:[%s16714_s4 + $0x5f0] sm:$0xff]   ;;  %v12167_v3 = vld [vmem:[%s16714_s4 + $0x578] sm:$0xff]  }
 0x24a   :  { %v11044_v0 = vadd.f32 %v11043_v48, %v11042_v26  ;;  %v11045_v34 = vpop.f32.mrb[106].mxu1  ;;  %v10982_v52 = vpop.f32.mrb[107].mxu0  ;;  %v12170_v25 = vld [vmem:[%s16714_s4 + $0x5b0] sm:$0xff]   ;;  %v12171_v49 = vld [vmem:[%s16714_s4 + $0x5f8] sm:$0xff]   ;;  %v14673_v15 = vld [vmem:[#allocation3 + $0x101] sm:$0xff] }
 0x24b   :  { %v11046_v46 = vpop.f32.mrb[107].mxu1  ;;  %11485 = vmatpush3.bf16.msra.mxu0 %v12156_v53  ;;  %v4343_v36 = vadd.f32 %v10980_v13, %v14244_v54  ;;  %v10983_v47 = vadd.f32 %v10982_v52, %v10981_v55  ;;  %v12168_v53 = vld [vmem:[%s16714_s4 + $0x538] sm:$0xff]   ;;  %v14680_v24 = vld [vmem:[#allocation3 + $0x103] sm:$0xff] }
 0x24c   :  { %v11047_v39 = vadd.f32 %v11046_v46, %v11045_v34  ;;  %11486 = vmatprep.subr.bf16.mxu0 %v12161_v17  ;;  %11549 = vmatpush3.bf16.msra.mxu1 %v12166_v32  ;;  %v14688_v48 = vld [vmem:[%s16714_s4 + $0x600] sm:$0xff]  }
 0x24d   :  { %4947 = vmatmul.mubr.bf16.gmra.mrb[212].mxu0 %v2309_v60  ;;  %5044 = vmatmul.mubr.bf16.gmra.mrb[212].mxu1 %v2357_v2  ;;  %v14670_v14 = vadd.f32 %v11044_v0, %v4343_v36  ;;  %v4346_v54 = vadd.f32 %v10983_v47, %v14249_v7  ;;  %v12172_v7 = vld [vmem:[%s16714_s4 + $0x5b8] sm:$0xff]   ;;  %v2335_v36 = vpack.c.bf16 %v14470_v20, %v14454_v8 }
 0x24e   :  { %4954 = vmatprep.mubr.bf16.mxu0 %v2334_v35  ;;  %5051 = vmatprep.mubr.bf16.mxu1 %v2382_v38  ;;  %v2298_v60 = vld [vmem:[#allocation3 + $0xf1] sm:$0xff]  ;;  %v2383_v47 = vpack.c.bf16 %v14474_v6, %v14460_v56  ;;  %v14703_v6 = vld [vmem:[#allocation3 + $0x121] sm:$0xff] }
 0x24f   :  { %11487 = vmatpush3.bf16.msra.mxu0 %v12162_v37  ;;  %11550 = vmatprep.subr.bf16.mxu1 %v12169_v44  ;;  %v14678_v26 = vadd.f32 %v11047_v39, %v4346_v54  ;;  %v10984_v17 = vpop.f32.mrb[108].mxu0  ;;  %v2346_v2 = vld [vmem:[#allocation3 + $0xf3] sm:$0xff]  ;;  %v2310_v37 = vpack.c.bf16 %v14673_v15, %v2298_v60 }
 0x250   :  { %v11048_v32 = vpop.f32.mrb[108].mxu1  ;;  %11488 = vmatprep.subr.bf16.mxu0 %v12167_v3  ;;  %11551 = vmatpush3.bf16.msra.mxu1 %v12170_v25  ;;  %v10985_v13 = vpop.f32.mrb[109].mxu0  ;;  %v2358_v44 = vpack.c.bf16 %v14680_v24, %v2346_v2 }
 0x251   :  { %v11049_v0 = vpop.f32.mrb[109].mxu1  ;;  %11552 = vmatprep.subr.bf16.mxu1 %v12171_v49  ;;  %v10986_v55 = vadd.f32 %v10985_v13, %v10984_v17  ;;  %v10987_v52 = vpop.f32.mrb[110].mxu0 }
 0x252   :  { %v11050_v34 = vadd.f32 %v11049_v0, %v11048_v32  ;;  %v11051_v46 = vpop.f32.mrb[110].mxu1  ;;  %v10988_v35 = vpop.f32.mrb[111].mxu0  ;;  %v14707_v32 = vld [vmem:[#allocation3 + $0x144] sm:$0xff] }
 0x253   :  { %v11052_v38 = vpop.f32.mrb[111].mxu1  ;;  %11489 = vmatpush3.bf16.msra.mxu0 %v12168_v53  ;;  %v4351_v39 = vadd.f32 %v10986_v55, %v14267_v5  ;;  %v10989_v3 = vadd.f32 %v10988_v35, %v10987_v52  ;;  %v14705_v5 = vld [vmem:[#allocation3 + $0x123] sm:$0xff]  ;;  %v2336_v35 = vpack.c.bf16 %v14494_v62, %v14472_v31 }
 0x254   :  { %v11053_v25 = vadd.f32 %v11052_v38, %v11051_v46  ;;  %11553 = vmatpush3.bf16.msra.mxu1 %v12172_v7  ;;  %11814 = vmatprep.subr.bf16.mxu0 %v14688_v48  ;;  %v14727_v31 = vld [vmem:[#allocation3 + $0x141] sm:$0xff] }
 0x255   :  { %4955 = vmatmul.mubr.bf16.gmra.mrb[216].mxu0 %v2310_v37  ;;  %5052 = vmatmul.mubr.bf16.gmra.mrb[216].mxu1 %v2358_v44  ;;  %v14698_v49 = vadd.f32 %v11050_v34, %v4351_v39  ;;  %v4354_v54 = vadd.f32 %v10989_v3, %v14270_v9  ;;  %v14709_v34 = vld [vmem:[#allocation3 + $0x111] sm:$0xff]  ;;  %v14731_v62 = vld [vmem:[#allocation3 + $0x162] sm:$0xff] }
 0x256   :  { %4962 = vmatprep.mubr.bf16.mxu0 %v2335_v36  ;;  %5059 = vmatprep.mubr.bf16.mxu1 %v2383_v47  ;;  %v14711_v9 = vld [vmem:[#allocation3 + $0x113] sm:$0xff]  ;;  %v2311_v60 = vpack.c.bf16 %v14703_v6, %v14709_v34  ;;  %v2384_v36 = vpack.c.bf16 %v14707_v32, %v14476_v61 }
 0x257   :  { %v14701_v8 = vadd.f32 %v11053_v25, %v4354_v54  ;;  %v10990_v20 = vpop.f32.mrb[112].mxu0  ;;  %v2359_v2 = vpack.c.bf16 %v14705_v5, %v14711_v9 }
 0x258   :  { %v11054_v56 = vpop.f32.mrb[112].mxu1  ;;  %v10991_v53 = vpop.f32.mrb[113].mxu0 }
 0x259   :  { %v11055_v17 = vpop.f32.mrb[113].mxu1  ;;  %v10992_v7 = vadd.f32 %v10991_v53, %v10990_v20  ;;  %v10993_v0 = vpop.f32.mrb[114].mxu0 }
 0x25a   :  { %v11056_v13 = vadd.f32 %v11055_v17, %v11054_v56  ;;  %v11057_v55 = vpop.f32.mrb[114].mxu1  ;;  %v10994_v52 = vpop.f32.mrb[115].mxu0  ;;  %v14733_v56 = vld [vmem:[#allocation3 + $0x164] sm:$0xff] }
 0x25b   :  { %v11058_v46 = vpop.f32.mrb[115].mxu1  ;;  %v4359_v38 = vadd.f32 %v10992_v7, %v14304_v1  ;;  %v10995_v37 = vadd.f32 %v10994_v52, %v10993_v0  ;;  %v14729_v1 = vld [vmem:[#allocation3 + $0x143] sm:$0xff]  ;;  %v14737_v0 = vld [vmem:[#allocation3 + $0x133] sm:$0xff] }
 0x25c   :  { %v11059_v44 = vadd.f32 %v11058_v46, %v11057_v55 }
 0x25d   :  { %4963 = vmatmul.mubr.bf16.gmra.mrb[220].mxu0 %v2311_v60  ;;  %5060 = vmatmul.mubr.bf16.gmra.mrb[220].mxu1 %v2359_v2  ;;  %v14722_v47 = vadd.f32 %v11056_v13, %v4359_v38  ;;  %v4362_v39 = vadd.f32 %v10995_v37, %v14317_v30  ;;  %v14735_v13 = vld [vmem:[#allocation3 + $0x131] sm:$0xff]  ;;  %v2360_v60 = vpack.c.bf16 %v14729_v1, %v14737_v0 }
 0x25e   :  { %4970 = vmatprep.mubr.bf16.mxu0 %v2336_v35  ;;  %5067 = vmatprep.mubr.bf16.mxu1 %v2384_v36  ;;  %v2312_v46 = vpack.c.bf16 %v14727_v31, %v14735_v13  ;;  %v2337_v2 = vpack.c.bf16 %v14731_v62, %v14490_v28  ;;  %v14753_v28 = vld [vmem:[#allocation3 + $0x151] sm:$0xff] }
 0x25f   :  { %v14725_v3 = vadd.f32 %v11059_v44, %v4362_v39  ;;  %v10996_v25 = vpop.f32.mrb[116].mxu0  ;;  %v2385_v44 = vpack.c.bf16 %v14733_v56, %v14496_v10 }
 0x260   :  { %v11060_v54 = vpop.f32.mrb[116].mxu1  ;;  %v10997_v20 = vpop.f32.mrb[117].mxu0 }
 0x261   :  { %v11061_v61 = vpop.f32.mrb[117].mxu1  ;;  %v10998_v53 = vadd.f32 %v10997_v20, %v10996_v25  ;;  %v10999_v7 = vpop.f32.mrb[118].mxu0 }
 0x262   :  { %v11062_v17 = vadd.f32 %v11061_v61, %v11060_v54  ;;  %v11063_v30 = vpop.f32.mrb[118].mxu1  ;;  %v11000_v55 = vpop.f32.mrb[119].mxu0  ;;  %v14757_v61 = vld [vmem:[#allocation3 + $0x163] sm:$0xff] }
 0x263   :  { %v11064_v52 = vpop.f32.mrb[119].mxu1  ;;  %v4367_v35 = vadd.f32 %v10998_v53, %v14351_v21  ;;  %v11001_v38 = vadd.f32 %v11000_v55, %v10999_v7  ;;  %v14755_v21 = vld [vmem:[#allocation3 + $0x161] sm:$0xff] }
 0x264   :  { %v11065_v37 = vadd.f32 %v11064_v52, %v11063_v30 }
 0x265   :  { %4971 = vmatmul.mubr.bf16.gmra.mrb[224].mxu0 %v2312_v46  ;;  %5068 = vmatmul.mubr.bf16.gmra.mrb[224].mxu1 %v2360_v60  ;;  %v14748_v36 = vadd.f32 %v11062_v17, %v4367_v35  ;;  %v4370_v39 = vadd.f32 %v11001_v38, %v14367_v33  ;;  %v2313_v46 = vpack.c.bf16 %v14755_v21, %v14753_v28 }
 0x266   :  { %4978 = vmatprep.mubr.bf16.mxu0 %v2337_v2  ;;  %5075 = vmatprep.mubr.bf16.mxu1 %v2385_v44  ;;  %v2361_v60 = vpack.c.bf16 %v14757_v61, %v14478_v63  ;;  %v2427_v2 = vpack.c.bf16 %v14552_v12, %v14515_v23  ;;  %v2475_v44 = vpack.c.bf16 %v14554_v11, %v14517_v51  ;;  %v2388_v23 = vld [vmem:[#allocation3 + $0x50] sm:$0xff]  ;;  %v2387_v11 = vld [vmem:[#allocation3 + $0x40] sm:$0xff] }
 0x267   :  { %v14751_v25 = vadd.f32 %v11065_v37, %v4370_v39  ;;  %v11002_v54 = vpop.f32.mrb[120].mxu0  ;;  %v2436_v12 = vld [vmem:[#allocation3 + $0x52] sm:$0xff] }
 0x268   :  { %v11066_v20 = vpop.f32.mrb[120].mxu1  ;;  %v11003_v53 = vpop.f32.mrb[121].mxu0 }
 0x269   :  { %v11067_v10 = vpop.f32.mrb[121].mxu1  ;;  %v11004_v7 = vadd.f32 %v11003_v53, %v11002_v54  ;;  %v11005_v17 = vpop.f32.mrb[122].mxu0 }
 0x26a   :  { %v11068_v30 = vadd.f32 %v11067_v10, %v11066_v20  ;;  %v11069_v55 = vpop.f32.mrb[122].mxu1  ;;  %v11006_v52 = vpop.f32.mrb[123].mxu0 }
 0x26b   :  { %v11070_v33 = vpop.f32.mrb[123].mxu1  ;;  %v4375_v35 = vadd.f32 %v11004_v7, %v14487_v43  ;;  %v11007_v38 = vadd.f32 %v11006_v52, %v11005_v17  ;;  %v2435_v52 = vld [vmem:[#allocation3 + $0x42] sm:$0xff] }
 0x26c   :  { %v11071_v37 = vadd.f32 %v11070_v33, %v11069_v55 }
 0x26d   :  { %4979 = vmatmul.mubr.bf16.gmra.mrb[228].mxu0 %v2313_v46  ;;  %5076 = vmatmul.mubr.bf16.gmra.mrb[228].mxu1 %v2361_v60  ;;  %v14768_v39 = vadd.f32 %v11068_v30, %v4375_v35  ;;  %v4378_v54 = vadd.f32 %v11007_v38, %v14492_v59  ;;  %v2403_v46 = vpack.c.bf16 %v2388_v23, %v2387_v11  ;;  %v12174_v60 = vld [vmem:[%s16714_s4 + $0x608] sm:$0xff]  }
 0x26e   :  { %5116 = vmatprep.mubr.bf16.mxu0 %v2427_v2  ;;  %5213 = vmatprep.mubr.bf16.mxu1 %v2475_v44  ;;  %v2451_v59 = vpack.c.bf16 %v2436_v12, %v2435_v52  ;;  %v2476_v44 = vpack.c.bf16 %v14601_v57, %v14547_v40  ;;  %v2390_v12 = vld [vmem:[#allocation3 + $0x70] sm:$0xff]  ;;  %v2437_v40 = vld [vmem:[#allocation3 + $0x62] sm:$0xff] }
 0x26f   :  { %v14771_v20 = vadd.f32 %v11071_v37, %v4378_v54  ;;  %v11008_v63 = vpop.f32.mrb[124].mxu0  ;;  %v2428_v37 = vpack.c.bf16 %v14599_v27, %v14545_v29  ;;  %v2438_v57 = vld [vmem:[#allocation3 + $0x72] sm:$0xff] }
 0x270   :  { %v11072_v53 = vpop.f32.mrb[124].mxu1  ;;  %v11009_v43 = vpop.f32.mrb[125].mxu0 }
 0x271   :  { %v11073_v10 = vpop.f32.mrb[125].mxu1  ;;  %v11010_v7 = vadd.f32 %v11009_v43, %v11008_v63  ;;  %v11011_v55 = vpop.f32.mrb[126].mxu0 }
 0x272   :  { %v11074_v17 = vadd.f32 %v11073_v10, %v11072_v53  ;;  %v11075_v51 = vpop.f32.mrb[126].mxu1  ;;  %v11012_v30 = vpop.f32.mrb[127].mxu0  ;;  %v12175_v53 = vld [vmem:[%s16714_s4 + $0x610] sm:$0xff]  }
 0x273   :  { %v11076_v33 = vpop.f32.mrb[127].mxu1  ;;  %v4383_v2 = vadd.f32 %v11010_v7, %v14512_v4  ;;  %v11013_v35 = vadd.f32 %v11012_v30, %v11011_v55  ;;  %v2389_v4 = vld [vmem:[#allocation3 + $0x60] sm:$0xff]  ;;  %v2452_v30 = vpack.c.bf16 %v2438_v57, %v2437_v40 }
 0x274   :  { %v11077_v38 = vadd.f32 %v11076_v33, %v11075_v51  ;;  %v2404_v52 = vpack.c.bf16 %v2390_v12, %v2389_v4  ;;  %v2429_v33 = vpack.c.bf16 %v14644_v45, %v14585_v58  ;;  %v2392_v58 = vld [vmem:[#allocation3 + $0x90] sm:$0xff]  ;;  %v12177_v12 = vld [vmem:[%s16714_s4 + $0x620] sm:$0xff]  }
 0x275   :  { %5117 = vmatmul.mubr.bf16.vlgmr.msra.gmra.mrb[232].mxu0 %v2403_v46  ;;  %5214 = vmatmul.mubr.bf16.vlgmr.msra.gmra.mrb[232].mxu1 %v2451_v59  ;;  %v14781_v54 = vadd.f32 %v11074_v17, %v4383_v2  ;;  %v4386_v63 = vadd.f32 %v11013_v35, %v14519_v18  ;;  %v2464_v18 = vld [vmem:[#allocation3 + $0x93] sm:$0xff]  ;;  %v16724_v35 = vld [vmem:[#allocation8_spill] sm:$0xff] }
 0x276   :  { %11815 = vmatpush3.bf16.msra.mxu0 %v14688_v48  ;;  %5124 = vmatprep.mubr.bf16.mxu0 %v2428_v37  ;;  %v12176_v37 = vld [vmem:[%s16714_s4 + $0x618] sm:$0xff]  }
 0x277   :  { %5221 = vmatprep.mubr.bf16.mxu1 %v2476_v44  ;;  %11816 = vmatprep.subr.bf16.mxu0 %v12174_v60  ;;  %v14788_v29 = vadd.f32 %v11077_v38, %v4386_v63  ;;  %v11014_v27 = vpop.f32.mrb[128].mxu0  ;;  %v2477_v38 = vpack.c.bf16 %v2464_v18, %v16724_v35  ;;  %v16725_v44 = vld [vmem:[#allocation9_spill] sm:$0xff] }
 0x278   :  { %v11078_v23 = vpop.f32.mrb[128].mxu1  ;;  %v11015_v43 = vpop.f32.mrb[129].mxu0  ;;  %v12178_v35 = vld [vmem:[%s16714_s4 + $0x628] sm:$0xff]  }
 0x279   :  { %v11079_v10 = vpop.f32.mrb[129].mxu1  ;;  %v11016_v7 = vadd.f32 %v11015_v43, %v11014_v27  ;;  %v11017_v17 = vpop.f32.mrb[130].mxu0  ;;  %v2440_v27 = vld [vmem:[#allocation3 + $0x92] sm:$0xff] }
 0x27a   :  { %v11080_v48 = vadd.f32 %v11079_v10, %v11078_v23  ;;  %v11081_v55 = vpop.f32.mrb[130].mxu1  ;;  %11817 = vmatpush3.bf16.msra.mxu0 %v12174_v60  ;;  %v11018_v51 = vpop.f32.mrb[131].mxu0  ;;  %v2418_v23 = vld [vmem:[#allocation3 + $0xb1] sm:$0xff] }
 0x27b   :  { %v11082_v11 = vpop.f32.mrb[131].mxu1  ;;  %11818 = vmatprep.subr.bf16.mxu0 %v12175_v53  ;;  %v4391_v46 = vadd.f32 %v11016_v7, %v14582_v19  ;;  %v11019_v59 = vadd.f32 %v11018_v51, %v11017_v17  ;;  %v2466_v43 = vld [vmem:[#allocation3 + $0xb3] sm:$0xff]  ;;  %v2391_v17 = vld [vmem:[#allocation3 + $0x80] sm:$0xff] }
 0x27c   :  { %v11083_v2 = vadd.f32 %v11082_v11, %v11081_v55  ;;  %v2405_v11 = vpack.c.bf16 %v2392_v58, %v2391_v17  ;;  %v2442_v58 = vld [vmem:[#allocation3 + $0xb2] sm:$0xff] }
 0x27d   :  { %5125 = vmatmul.mubr.bf16.gmra.mrb[236].mxu0 %v2404_v52  ;;  %5222 = vmatmul.mubr.bf16.gmra.mrb[236].mxu1 %v2452_v30  ;;  %v14797_v60 = vadd.f32 %v11080_v48, %v4391_v46  ;;  %v4394_v63 = vadd.f32 %v11019_v59, %v16725_v44  ;;  %v2430_v30 = vpack.c.bf16 %v2418_v23, %v14629_v22  ;;  %v2393_v22 = vld [vmem:[#allocation3 + $0xa0] sm:$0xff] }
 0x27e   :  { %5132 = vmatprep.mubr.bf16.mxu0 %v2429_v33  ;;  %5229 = vmatprep.mubr.bf16.mxu1 %v2477_v38 }
 0x27f   :  { %11819 = vmatpush3.bf16.msra.mxu0 %v12175_v53  ;;  %v14800_v45 = vadd.f32 %v11083_v2, %v4394_v63  ;;  %v11020_v19 = vpop.f32.mrb[132].mxu0  ;;  %v2439_v53 = vld [vmem:[#allocation3 + $0x82] sm:$0xff]  ;;  %v2478_v2 = vpack.c.bf16 %v2466_v43, %v14636_v16  ;;  %v2394_v16 = vld [vmem:[#allocation3 + $0xb0] sm:$0xff] }
 0x280   :  { %v11084_v4 = vpop.f32.mrb[132].mxu1  ;;  %11820 = vmatprep.subr.bf16.mxu0 %v12176_v37  ;;  %v11021_v40 = vpop.f32.mrb[133].mxu0  ;;  %v2453_v52 = vpack.c.bf16 %v2440_v27, %v2439_v53 }
 0x281   :  { %v11085_v57 = vpop.f32.mrb[133].mxu1  ;;  %v11022_v10 = vadd.f32 %v11021_v40, %v11020_v19  ;;  %v11023_v7 = vpop.f32.mrb[134].mxu0  ;;  %v12179_v19 = vld [vmem:[%s16714_s4 + $0x630] sm:$0xff]  }
 0x282   :  { %v11086_v18 = vadd.f32 %v11085_v57, %v11084_v4  ;;  %v11087_v48 = vpop.f32.mrb[134].mxu1  ;;  %v11024_v55 = vpop.f32.mrb[135].mxu0 }
 0x283   :  { %v11088_v51 = vpop.f32.mrb[135].mxu1  ;;  %11821 = vmatpush3.bf16.msra.mxu0 %v12176_v37  ;;  %v4399_v33 = vadd.f32 %v11022_v10, %v14626_v50  ;;  %v11025_v46 = vadd.f32 %v11024_v55, %v11023_v7  ;;  %v2431_v7 = vpack.c.bf16 %v14709_v34, %v14673_v15  ;;  %v2479_v55 = vpack.c.bf16 %v14711_v9, %v14680_v24  ;;  %v2444_v24 = vld [vmem:[#allocation3 + $0x112] sm:$0xff] }
 0x284   :  { %v11089_v59 = vadd.f32 %v11088_v51, %v11087_v48  ;;  %11822 = vmatprep.subr.bf16.mxu0 %v12177_v12  ;;  %v12180_v51 = vld [vmem:[%s16714_s4 + $0x638] sm:$0xff]  }
 0x285   :  { %5133 = vmatmul.mubr.bf16.gmra.mrb[240].mxu0 %v2405_v11  ;;  %5230 = vmatmul.mubr.bf16.gmra.mrb[240].mxu1 %v2453_v52  ;;  %v14811_v38 = vadd.f32 %v11086_v18, %v4399_v33  ;;  %v4402_v44 = vadd.f32 %v11025_v46, %v14634_v42  ;;  %v2454_v18 = vpack.c.bf16 %v2442_v58, %v14589_v41  ;;  %v2396_v52 = vld [vmem:[#allocation3 + $0x110] sm:$0xff] }
 0x286   :  { %5140 = vmatprep.mubr.bf16.mxu0 %v2430_v30  ;;  %5237 = vmatprep.mubr.bf16.mxu1 %v2478_v2 }
 0x287   :  { %11823 = vmatpush3.bf16.msra.mxu0 %v12177_v12  ;;  %v14814_v50 = vadd.f32 %v11089_v59, %v4402_v44  ;;  %v11106_v37 = vpop.f32.mrb[136].mxu0  ;;  %v2406_v12 = vpack.c.bf16 %v2394_v16, %v2393_v22  ;;  %v2443_v44 = vld [vmem:[#allocation3 + $0x102] sm:$0xff]  ;;  %v2432_v16 = vpack.c.bf16 %v14735_v13, %v14703_v6 }
 0x288   :  { %v11170_v63 = vpop.f32.mrb[136].mxu1  ;;  %11824 = vmatprep.subr.bf16.mxu0 %v12178_v35  ;;  %v11107_v4 = vpop.f32.mrb[137].mxu0 }
 0x289   :  { %v11171_v27 = vpop.f32.mrb[137].mxu1  ;;  %v11108_v23 = vadd.f32 %v11107_v4, %v11106_v37  ;;  %v11109_v42 = vpop.f32.mrb[138].mxu0 }
 0x28a   :  { %v11172_v40 = vadd.f32 %v11171_v27, %v11170_v63  ;;  %v11173_v57 = vpop.f32.mrb[138].mxu1  ;;  %v11110_v43 = vpop.f32.mrb[139].mxu0  ;;  %v2455_v63 = vpack.c.bf16 %v2444_v24, %v2443_v44  ;;  %v2480_v27 = vpack.c.bf16 %v14737_v0, %v14705_v5 }
 0x28b   :  { %v11174_v10 = vpop.f32.mrb[139].mxu1  ;;  %11825 = vmatpush3.bf16.msra.mxu0 %v12178_v35  ;;  %v4537_v48 = vadd.f32 %v11108_v23, %v14670_v14  ;;  %v11111_v17 = vadd.f32 %v11110_v43, %v11109_v42  ;;  %v2395_v35 = vld [vmem:[#allocation3 + $0x100] sm:$0xff]  ;;  %v2398_v43 = vld [vmem:[#allocation3 + $0x130] sm:$0xff] }
 0x28c   :  { %v11175_v53 = vadd.f32 %v11174_v10, %v11173_v57  ;;  %11826 = vmatprep.subr.bf16.mxu0 %v12179_v19  ;;  %v2407_v37 = vpack.c.bf16 %v2396_v52, %v2395_v35  ;;  %v2397_v42 = vld [vmem:[#allocation3 + $0x120] sm:$0xff]  ;;  %v2446_v10 = vld [vmem:[#allocation3 + $0x132] sm:$0xff] }
 0x28d   :  { %5141 = vmatmul.mubr.bf16.gmra.mrb[244].mxu0 %v2406_v12  ;;  %5238 = vmatmul.mubr.bf16.gmra.mrb[244].mxu1 %v2454_v18  ;;  %v14828_v11 = vadd.f32 %v11172_v40, %v4537_v48  ;;  %v4540_v41 = vadd.f32 %v11111_v17, %v14678_v26  ;;  %v2426_v35 = vld [vmem:[#allocation3 + $0x171] sm:$0xff] }
 0x28e   :  { %5148 = vmatprep.mubr.bf16.mxu0 %v2431_v7  ;;  %5245 = vmatprep.mubr.bf16.mxu1 %v2479_v55  ;;  %v2472_v7 = vld [vmem:[#allocation3 + $0x153] sm:$0xff] }
 0x28f   :  { %11827 = vmatpush3.bf16.msra.mxu0 %v12179_v19  ;;  %v14831_v14 = vadd.f32 %v11175_v53, %v4540_v41  ;;  %v11112_v15 = vpop.f32.mrb[140].mxu0  ;;  %v2433_v41 = vpack.c.bf16 %v14753_v28, %v14727_v31  ;;  %v2481_v24 = vpack.c.bf16 %v2472_v7, %v14729_v1  ;;  %v2447_v28 = vld [vmem:[#allocation3 + $0x142] sm:$0xff]  ;;  %v2474_v1 = vld [vmem:[#allocation3 + $0x173] sm:$0xff] }
 0x290   :  { %v11176_v34 = vpop.f32.mrb[140].mxu1  ;;  %11828 = vmatprep.subr.bf16.mxu0 %v12180_v51  ;;  %v11113_v9 = vpop.f32.mrb[141].mxu0  ;;  %v2401_v7 = vld [vmem:[#allocation3 + $0x160] sm:$0xff] }
 0x291   :  { %v11177_v30 = vpop.f32.mrb[141].mxu1  ;;  %v11114_v33 = vadd.f32 %v11113_v9, %v11112_v15  ;;  %v11115_v59 = vpop.f32.mrb[142].mxu0 }
 0x292   :  { %v11178_v46 = vadd.f32 %v11177_v30, %v11176_v34  ;;  %v11179_v2 = vpop.f32.mrb[142].mxu1  ;;  %v11116_v22 = vpop.f32.mrb[143].mxu0 }
 0x293   :  { %v11180_v26 = vpop.f32.mrb[143].mxu1  ;;  %11829 = vmatpush3.bf16.msra.mxu0 %v12180_v51  ;;  %v4545_v58 = vadd.f32 %v11114_v33, %v14698_v49  ;;  %v11117_v19 = vadd.f32 %v11116_v22, %v11115_v59  ;;  %v2445_v49 = vld [vmem:[#allocation3 + $0x122] sm:$0xff] }
 0x294   :  { %v11181_v4 = vadd.f32 %v11180_v26, %v11179_v2  ;;  %v2456_v51 = vpack.c.bf16 %v2446_v10, %v2445_v49  ;;  %v2399_v33 = vld [vmem:[#allocation3 + $0x140] sm:$0xff] }
 0x295   :  { %5149 = vmatmul.mubr.bf16.gmra.mrb[248].mxu0 %v2407_v37  ;;  %5246 = vmatmul.mubr.bf16.gmra.mrb[248].mxu1 %v2455_v63  ;;  %v14838_v23 = vadd.f32 %v11178_v46, %v4545_v58  ;;  %v4548_v40 = vadd.f32 %v11117_v19, %v14701_v8  ;;  %v2408_v8 = vpack.c.bf16 %v2398_v43, %v2397_v42  ;;  %v2400_v46 = vld [vmem:[#allocation3 + $0x150] sm:$0xff] }
 0x296   :  { %5156 = vmatprep.mubr.bf16.mxu0 %v2432_v16  ;;  %5253 = vmatprep.mubr.bf16.mxu1 %v2480_v27  ;;  %v2409_v19 = vpack.c.bf16 %v2400_v46, %v2399_v33  ;;  %v2434_v27 = vpack.c.bf16 %v2426_v35, %v14755_v21  ;;  %v2402_v21 = vld [vmem:[#allocation3 + $0x170] sm:$0xff] }
 0x297   :  { %v14841_v57 = vadd.f32 %v11181_v4, %v4548_v40  ;;  %v11118_v6 = vpop.f32.mrb[144].mxu0  ;;  %v2486_v35 = vld [vmem:[#allocation3 + $0x74] sm:$0xff] }
 0x298   :  { %v11182_v13 = vpop.f32.mrb[144].mxu1  ;;  %v11119_v12 = vpop.f32.mrb[145].mxu0 }
 0x299   :  { %v11183_v18 = vpop.f32.mrb[145].mxu1  ;;  %v11120_v5 = vadd.f32 %v11119_v12, %v11118_v6  ;;  %v11121_v48 = vpop.f32.mrb[146].mxu0 }
 0x29a   :  { %v11184_v0 = vadd.f32 %v11183_v18, %v11182_v13  ;;  %v11185_v17 = vpop.f32.mrb[146].mxu1  ;;  %v11122_v53 = vpop.f32.mrb[147].mxu0  ;;  %v2482_v13 = vpack.c.bf16 %v2474_v1, %v14757_v61 }
 0x29b   :  { %v11186_v55 = vpop.f32.mrb[147].mxu1  ;;  %v4553_v15 = vadd.f32 %v11120_v5, %v14722_v47  ;;  %v11123_v34 = vadd.f32 %v11122_v53, %v11121_v48  ;;  %v2448_v47 = vld [vmem:[#allocation3 + $0x152] sm:$0xff] }
 0x29c   :  { %v11187_v52 = vadd.f32 %v11186_v55, %v11185_v17  ;;  %v2457_v4 = vpack.c.bf16 %v2448_v47, %v2447_v28  ;;  %v2450_v5 = vld [vmem:[#allocation3 + $0x172] sm:$0xff]  ;;  %v2485_v47 = vld [vmem:[#allocation3 + $0x64] sm:$0xff] }
 0x29d   :  { %5157 = vmatmul.mubr.bf16.gmra.mrb[252].mxu0 %v2408_v8  ;;  %5254 = vmatmul.mubr.bf16.gmra.mrb[252].mxu1 %v2456_v51  ;;  %v14847_v9 = vadd.f32 %v11184_v0, %v4553_v15  ;;  %v4556_v30 = vadd.f32 %v11123_v34, %v14725_v3  ;;  %v2484_v48 = vld [vmem:[#allocation3 + $0x54] sm:$0xff]  ;;  %v2483_v15 = vld [vmem:[#allocation3 + $0x44] sm:$0xff] }
 0x29e   :  { %5164 = vmatprep.mubr.bf16.mxu0 %v2433_v41  ;;  %5261 = vmatprep.mubr.bf16.mxu1 %v2481_v24  ;;  %v2410_v41 = vpack.c.bf16 %v2402_v21, %v2401_v7 }
 0x29f   :  { %v14850_v59 = vadd.f32 %v11187_v52, %v4556_v30  ;;  %v11124_v2 = vpop.f32.mrb[148].mxu0  ;;  %v2499_v30 = vpack.c.bf16 %v2484_v48, %v2483_v15 }
 0x2a0   :  { %v11188_v31 = vpop.f32.mrb[148].mxu1  ;;  %v11125_v44 = vpop.f32.mrb[149].mxu0 }
 0x2a1   :  { %v11189_v22 = vpop.f32.mrb[149].mxu1  ;;  %v11126_v26 = vadd.f32 %v11125_v44, %v11124_v2  ;;  %v11127_v63 = vpop.f32.mrb[150].mxu0 }
 0x2a2   :  { %v11190_v37 = vadd.f32 %v11189_v22, %v11188_v31  ;;  %v11191_v16 = vpop.f32.mrb[150].mxu1  ;;  %v11128_v58 = vpop.f32.mrb[151].mxu0  ;;  %v2488_v22 = vld [vmem:[#allocation3 + $0x94] sm:$0xff] }
 0x2a3   :  { %v11192_v3 = vpop.f32.mrb[151].mxu1  ;;  %v4561_v40 = vadd.f32 %v11126_v26, %v14748_v36  ;;  %v11129_v42 = vadd.f32 %v11128_v58, %v11127_v63  ;;  %v2500_v58 = vpack.c.bf16 %v2486_v35, %v2485_v47  ;;  %v2496_v47 = vld [vmem:[#allocation3 + $0x154] sm:$0xff] }
 0x2a4   :  { %v11193_v6 = vadd.f32 %v11192_v3, %v11191_v16  ;;  %v2487_v3 = vld [vmem:[#allocation3 + $0x84] sm:$0xff] }
 0x2a5   :  { %5165 = vmatmul.mubr.bf16.gmra.mrb[0].mxu0 %v2409_v19  ;;  %5262 = vmatmul.mubr.bf16.gmra.mrb[0].mxu1 %v2457_v4  ;;  %v14855_v43 = vadd.f32 %v11190_v37, %v4561_v40  ;;  %v4564_v49 = vadd.f32 %v11129_v42, %v14751_v25  ;;  %v2458_v25 = vpack.c.bf16 %v2450_v5, %v14731_v62  ;;  %v2492_v5 = vld [vmem:[#allocation3 + $0x114] sm:$0xff] }
 0x2a6   :  { %5172 = vmatprep.mubr.bf16.mxu0 %v2434_v27  ;;  %5269 = vmatprep.mubr.bf16.mxu1 %v2482_v13  ;;  %v2501_v27 = vpack.c.bf16 %v2488_v22, %v2487_v3 }
 0x2a7   :  { %v14858_v10 = vadd.f32 %v11193_v6, %v4564_v49  ;;  %v11130_v12 = vpop.f32.mrb[152].mxu0 }
 0x2a8   :  { %v11194_v18 = vpop.f32.mrb[152].mxu1  ;;  %v11131_v36 = vpop.f32.mrb[153].mxu0 }
 0x2a9   :  { %v11195_v0 = vpop.f32.mrb[153].mxu1  ;;  %v11132_v17 = vadd.f32 %v11131_v36, %v11130_v12  ;;  %v11133_v53 = vpop.f32.mrb[154].mxu0  ;;  %v2489_v12 = vld [vmem:[#allocation3 + $0xa4] sm:$0xff] }
 0x2aa   :  { %v11196_v61 = vadd.f32 %v11195_v0, %v11194_v18  ;;  %v11197_v55 = vpop.f32.mrb[154].mxu1  ;;  %v11134_v8 = vpop.f32.mrb[155].mxu0  ;;  %v2490_v18 = vld [vmem:[#allocation3 + $0xb4] sm:$0xff] }
 0x2ab   :  { %v11198_v51 = vpop.f32.mrb[155].mxu1  ;;  %v4569_v34 = vadd.f32 %v11132_v17, %v14768_v39  ;;  %v11135_v52 = vadd.f32 %v11134_v8, %v11133_v53  ;;  %v2502_v53 = vpack.c.bf16 %v2490_v18, %v2489_v12 }
 0x2ac   :  { %v11199_v24 = vadd.f32 %v11198_v51, %v11197_v55  ;;  %v2491_v55 = vld [vmem:[#allocation3 + $0x104] sm:$0xff] }
 0x2ad   :  { %5173 = vmatmul.mubr.bf16.gmra.mrb[4].mxu0 %v2410_v41  ;;  %5270 = vmatmul.mubr.bf16.gmra.mrb[4].mxu1 %v2458_v25  ;;  %v14862_v33 = vadd.f32 %v11196_v61, %v4569_v34  ;;  %v4572_v46 = vadd.f32 %v11135_v52, %v14771_v20  ;;  %v2503_v41 = vpack.c.bf16 %v2492_v5, %v2491_v55 }
 0x2ae   :  { %11830 = vmatprep.mubr.bf16.mxu0 %v2499_v30  ;;  %v2493_v30 = vld [vmem:[#allocation3 + $0x124] sm:$0xff] }
 0x2af   :  { %v14865_v2 = vadd.f32 %v11199_v24, %v4572_v46  ;;  %v11136_v31 = vpop.f32.mrb[156].mxu0  ;;  %v2494_v46 = vld [vmem:[#allocation3 + $0x134] sm:$0xff] }
 0x2b0   :  { %v11200_v28 = vpop.f32.mrb[156].mxu1  ;;  %v11137_v62 = vpop.f32.mrb[157].mxu0 }
 0x2b1   :  { %v11201_v44 = vpop.f32.mrb[157].mxu1  ;;  %v11138_v39 = vadd.f32 %v11137_v62, %v11136_v31  ;;  %v11139_v26 = vpop.f32.mrb[158].mxu0 }
 0x2b2   :  { %v11202_v1 = vadd.f32 %v11201_v44, %v11200_v28  ;;  %v11203_v37 = vpop.f32.mrb[158].mxu1  ;;  %v11140_v63 = vpop.f32.mrb[159].mxu0 }
 0x2b3   :  { %v11204_v16 = vpop.f32.mrb[159].mxu1  ;;  %v4577_v20 = vadd.f32 %v11138_v39, %v14781_v54  ;;  %v11141_v19 = vadd.f32 %v11140_v63, %v11139_v26  ;;  %v2505_v63 = vpack.c.bf16 %v2496_v47, %v14707_v32 }
 0x2b4   :  { %v11205_v4 = vadd.f32 %v11204_v16, %v11203_v37 }
 0x2b5   :  { %11831 = vmatmul.mubr.bf16.vlgmr.msra.gmra.mrb[8].mxu0 %v2500_v58  ;;  %v14868_v40 = vadd.f32 %v11202_v1, %v4577_v20  ;;  %v4580_v42 = vadd.f32 %v11141_v19, %v14788_v29  ;;  %v2504_v1 = vpack.c.bf16 %v2494_v46, %v2493_v30 }
 0x2b6   :  { %11834 = vmatprep.mubr.bf16.mxu0 %v2501_v27 }
 0x2b7   :  { %v14871_v6 = vadd.f32 %v11205_v4, %v4580_v42  ;;  %v11142_v13 = vpop.f32.mrb[160].mxu0  ;;  %v2498_v4 = vld [vmem:[#allocation3 + $0x174] sm:$0xff] }
 0x2b8   :  { %v11206_v49 = vpop.f32.mrb[160].mxu1  ;;  %v11143_v7 = vpop.f32.mrb[161].mxu0  ;;  %v2506_v32 = vpack.c.bf16 %v2498_v4, %v14733_v56 }
 0x2b9   :  { %v11207_v21 = vpop.f32.mrb[161].mxu1  ;;  %v11144_v36 = vadd.f32 %v11143_v7, %v11142_v13  ;;  %v11145_v0 = vpop.f32.mrb[162].mxu0 }
 0x2ba   :  { %v11208_v54 = vadd.f32 %v11207_v21, %v11206_v49  ;;  %v11209_v48 = vpop.f32.mrb[162].mxu1  ;;  %v11146_v17 = vpop.f32.mrb[163].mxu0 }
 0x2bb   :  { %v11210_v61 = vpop.f32.mrb[163].mxu1  ;;  %v4585_v29 = vadd.f32 %v11144_v36, %v14797_v60  ;;  %v11147_v8 = vadd.f32 %v11146_v17, %v11145_v0 }
 0x2bc   :  { %v11211_v51 = vadd.f32 %v11210_v61, %v11209_v48 }
 0x2bd   :  { %11835 = vmatmul.mubr.bf16.gmra.mrb[12].mxu0 %v2502_v53  ;;  %v14874_v25 = vadd.f32 %v11208_v54, %v4585_v29  ;;  %v4588_v15 = vadd.f32 %v11147_v8, %v14800_v45 }
 0x2be   :  { %11838 = vmatprep.mubr.bf16.mxu0 %v2503_v41 }
 0x2bf   :  { %v14877_v34 = vadd.f32 %v11211_v51, %v4588_v15  ;;  %v11148_v52 = vpop.f32.mrb[164].mxu0 }
 0x2c0   :  { %v11212_v24 = vpop.f32.mrb[164].mxu1  ;;  %v11149_v31 = vpop.f32.mrb[165].mxu0 }
 0x2c1   :  { %v11213_v28 = vpop.f32.mrb[165].mxu1  ;;  %v11150_v35 = vadd.f32 %v11149_v31, %v11148_v52  ;;  %v11151_v62 = vpop.f32.mrb[166].mxu0 }
 0x2c2   :  { %v11214_v60 = vadd.f32 %v11213_v28, %v11212_v24  ;;  %v11215_v44 = vpop.f32.mrb[166].mxu1  ;;  %v11152_v22 = vpop.f32.mrb[167].mxu0 }
 0x2c3   :  { %v11216_v39 = vpop.f32.mrb[167].mxu1  ;;  %v4593_v26 = vadd.f32 %v11150_v35, %v14811_v38  ;;  %v11153_v45 = vadd.f32 %v11152_v22, %v11151_v62 }
 0x2c4   :  { %v11217_v37 = vadd.f32 %v11216_v39, %v11215_v44 }
 0x2c5   :  { %11839 = vmatmul.mubr.bf16.gmra.mrb[16].mxu0 %v2504_v1  ;;  %v14881_v16 = vadd.f32 %v11214_v60, %v4593_v26  ;;  %v4596_v58 = vadd.f32 %v11153_v45, %v14814_v50 }
 0x2c6   :  { %11842 = vmatprep.mubr.bf16.mxu0 %v2505_v63 }
 0x2c7   :  { %v14884_v3 = vadd.f32 %v11217_v37, %v4596_v58  ;;  %v11234_v20 = vpop.f32.mrb[168].mxu0 }
 0x2c8   :  { %v11298_v19 = vpop.f32.mrb[168].mxu1  ;;  %v11235_v27 = vpop.f32.mrb[169].mxu0 }
 0x2c9   :  { %v11299_v42 = vpop.f32.mrb[169].mxu1  ;;  %v11236_v13 = vadd.f32 %v11235_v27, %v11234_v20  ;;  %v11237_v38 = vpop.f32.mrb[170].mxu0 }
 0x2ca   :  { %v11300_v49 = vadd.f32 %v11299_v42, %v11298_v19  ;;  %v11301_v12 = vpop.f32.mrb[170].mxu1  ;;  %v11238_v18 = vpop.f32.mrb[171].mxu0 }
 0x2cb   :  { %v11302_v7 = vpop.f32.mrb[171].mxu1  ;;  %v4731_v21 = vadd.f32 %v11236_v13, %v14828_v11  ;;  %v11239_v5 = vadd.f32 %v11238_v18, %v11237_v38 }
 0x2cc   :  { %v11303_v50 = vadd.f32 %v11302_v7, %v11301_v12 }
 0x2cd   :  { %11843 = vmatmul.mubr.bf16.gmra.mrb[20].mxu0 %v2506_v32  ;;  %v14888_v36 = vadd.f32 %v11300_v49, %v4731_v21  ;;  %v4734_v54 = vadd.f32 %v11239_v5, %v14831_v14 }
 0x2cf   :  { %v14891_v0 = vadd.f32 %v11303_v50, %v4734_v54  ;;  %v11240_v48 = vpop.f32.mrb[172].mxu0 }
 0x2d0   :  { %v11304_v17 = vpop.f32.mrb[172].mxu1  ;;  %v11241_v61 = vpop.f32.mrb[173].mxu0 }
 0x2d1   :  { %v11305_v53 = vpop.f32.mrb[173].mxu1  ;;  %v11242_v55 = vadd.f32 %v11241_v61, %v11240_v48  ;;  %v11243_v8 = vpop.f32.mrb[174].mxu0 }
 0x2d2   :  { %v11306_v29 = vadd.f32 %v11305_v53, %v11304_v17  ;;  %v11307_v51 = vpop.f32.mrb[174].mxu1  ;;  %v11244_v56 = vpop.f32.mrb[175].mxu0 }
 0x2d3   :  { %v11308_v41 = vpop.f32.mrb[175].mxu1  ;;  %v4739_v11 = vadd.f32 %v11242_v55, %v14838_v23  ;;  %v11245_v15 = vadd.f32 %v11244_v56, %v11243_v8 }
 0x2d4   :  { %v11309_v52 = vadd.f32 %v11308_v41, %v11307_v51 }
 0x2d5   :  { %v14894_v24 = vadd.f32 %v11306_v29, %v4739_v11  ;;  %v4742_v14 = vadd.f32 %v11245_v15, %v14841_v57 }
 0x2d7   :  { %v14897_v30 = vadd.f32 %v11309_v52, %v4742_v14  ;;  %v11246_v46 = vpop.f32.mrb[176].mxu0 }
 0x2d8   :  { %v11310_v31 = vpop.f32.mrb[176].mxu1  ;;  %v11247_v28 = vpop.f32.mrb[177].mxu0 }
 0x2d9   :  { %v11311_v47 = vpop.f32.mrb[177].mxu1  ;;  %v11248_v35 = vadd.f32 %v11247_v28, %v11246_v46  ;;  %v11249_v62 = vpop.f32.mrb[178].mxu0 }
 0x2da   :  { %v11312_v60 = vadd.f32 %v11311_v47, %v11310_v31  ;;  %v11313_v44 = vpop.f32.mrb[178].mxu1  ;;  %v11250_v22 = vpop.f32.mrb[179].mxu0 }
 0x2db   :  { %v11314_v39 = vpop.f32.mrb[179].mxu1  ;;  %v4747_v23 = vadd.f32 %v11248_v35, %v14847_v9  ;;  %v11251_v1 = vadd.f32 %v11250_v22, %v11249_v62  ;;  %v12183_v22 = vld [vmem:[%s16716_s6 + $0x4] ss:$16 sps:$4 sm:$0xff]  }
 0x2dc   :  { %v11315_v26 = vadd.f32 %v11314_v39, %v11313_v44  ;;  %v12184_v39 = vld [vmem:[%s16716_s6 + $0x8] ss:$16 sps:$4 sm:$0xff]   ;;  %8829 = vmatprep.subr.bf16.mxu1 %v12183_v22  ;;  %v12213_v22 = vld [vmem:[%s16716_s6 + $0xa4] ss:$16 sps:$4 sm:$0xff]  }
 0x2dd   :  { %v14900_v45 = vadd.f32 %v11312_v60, %v4747_v23  ;;  %v4750_v57 = vadd.f32 %v11251_v1, %v14850_v59  ;;  %v12186_v23 = vld [vmem:[%s16716_s6 + $0xc] ss:$16 sps:$4 sm:$0xff]  }
 0x2de   :  { %9157 = vmatprep.subr.bf16.mxu0 %v12186_v23  ;;  %v12216_v23 = vld [vmem:[%s16716_s6 + $0xac] ss:$16 sps:$4 sm:$0xff]  }
 0x2df   :  { %v14903_v37 = vadd.f32 %v11315_v26, %v4750_v57  ;;  %v11252_v63 = vpop.f32.mrb[180].mxu0  ;;  %v12189_v26 = vld [vmem:[%s16716_s6 + $0x24] ss:$16 sps:$4 sm:$0xff]   ;;  %v12187_v57 = vld [vmem:[%s16716_s6 + $0x20] ss:$16 sps:$4 sm:$0xff]   ;;  %9158 = vmatpush1.bf16.msra.mxu0 %v12184_v39 }
 0x2e0   :  { %v11316_v58 = vpop.f32.mrb[180].mxu1  ;;  %v11253_v20 = vpop.f32.mrb[181].mxu0  ;;  %v12211_v39 = vld [vmem:[%s16716_s6 + $0xa0] ss:$16 sps:$4 sm:$0xff]  }
 0x2e1   :  { %v11317_v19 = vpop.f32.mrb[181].mxu1  ;;  %v11254_v4 = vadd.f32 %v11253_v20, %v11252_v63  ;;  %v11255_v42 = vpop.f32.mrb[182].mxu0  ;;  %v12192_v63 = vld [vmem:[%s16716_s6 + $0x2c] ss:$16 sps:$4 sm:$0xff]  }
 0x2e2   :  { %v11318_v27 = vadd.f32 %v11317_v19, %v11316_v58  ;;  %v11319_v13 = vpop.f32.mrb[182].mxu1  ;;  %v11256_v49 = vpop.f32.mrb[183].mxu0  ;;  %9159 = vmatprep.subr.bf16.mxu0 %v12192_v63 }
 0x2e3   :  { %v11320_v38 = vpop.f32.mrb[183].mxu1  ;;  %v4755_v9 = vadd.f32 %v11254_v4, %v14855_v43  ;;  %v11257_v12 = vadd.f32 %v11256_v49, %v11255_v42 }
 0x2e4   :  { %v11321_v18 = vadd.f32 %v11320_v38, %v11319_v13 }
 0x2e5   :  { %v14906_v7 = vadd.f32 %v11318_v27, %v4755_v9  ;;  %v4758_v59 = vadd.f32 %v11257_v12, %v14858_v10 }
 0x2e7   :  { %v14909_v32 = vadd.f32 %v11321_v18, %v4758_v59  ;;  %v11258_v21 = vpop.f32.mrb[184].mxu0 }
 0x2e8   :  { %v11322_v5 = vpop.f32.mrb[184].mxu1  ;;  %v11259_v50 = vpop.f32.mrb[185].mxu0 }
 0x2e9   :  { %v11323_v54 = vpop.f32.mrb[185].mxu1  ;;  %v11260_v48 = vadd.f32 %v11259_v50, %v11258_v21  ;;  %v11261_v61 = vpop.f32.mrb[186].mxu0  ;;  %v12195_v50 = vld [vmem:[%s16716_s6 + $0x44] ss:$16 sps:$4 sm:$0xff]  }
 0x2ea   :  { %v11324_v17 = vadd.f32 %v11323_v54, %v11322_v5  ;;  %v11325_v53 = vpop.f32.mrb[186].mxu1  ;;  %v11262_v55 = vpop.f32.mrb[187].mxu0  ;;  %v12193_v5 = vld [vmem:[%s16716_s6 + $0x40] ss:$16 sps:$4 sm:$0xff]   ;;  %v12196_v54 = vld [vmem:[%s16716_s6 + $0x48] ss:$16 sps:$4 sm:$0xff]  }
 0x2eb   :  { %v11326_v29 = vpop.f32.mrb[187].mxu1  ;;  %v4763_v43 = vadd.f32 %v11260_v48, %v14862_v33  ;;  %v11263_v8 = vadd.f32 %v11262_v55, %v11261_v61  ;;  %v12198_v48 = vld [vmem:[%s16716_s6 + $0x4c] ss:$16 sps:$4 sm:$0xff]   ;;  %v12201_v61 = vld [vmem:[%s16716_s6 + $0x64] ss:$16 sps:$4 sm:$0xff]  }
 0x2ec   :  { %v11327_v51 = vadd.f32 %v11326_v29, %v11325_v53  ;;  %v12199_v53 = vld [vmem:[%s16716_s6 + $0x60] ss:$16 sps:$4 sm:$0xff]   ;;  %v12204_v55 = vld [vmem:[%s16716_s6 + $0x6c] ss:$16 sps:$4 sm:$0xff]  }
 0x2ed   :  { %v14912_v56 = vadd.f32 %v11324_v17, %v4763_v43  ;;  %v4766_v10 = vadd.f32 %v11263_v8, %v14865_v2  ;;  %v12181_v2 = vld [vmem:[%s16716_s6] ss:$16 sps:$4 sm:$0xff]  }
 0x2ee   :  { %8830 = vmatpush1.bf16.msra.mxu1 %v12181_v2 }
 0x2ef   :  { %v14915_v41 = vadd.f32 %v11327_v51, %v4766_v10  ;;  %v11264_v11 = vpop.f32.mrb[188].mxu0  ;;  %8831 = vmatprep.subr.bf16.mxu1 %v12189_v26 }
 0x2f0   :  { %v11328_v15 = vpop.f32.mrb[188].mxu1  ;;  %v11265_v52 = vpop.f32.mrb[189].mxu0 }
 0x2f1   :  { %v11329_v14 = vpop.f32.mrb[189].mxu1  ;;  %v11266_v46 = vadd.f32 %v11265_v52, %v11264_v11  ;;  %v11267_v28 = vpop.f32.mrb[190].mxu0 }
 0x2f2   :  { %v11330_v31 = vadd.f32 %v11329_v14, %v11328_v15  ;;  %v11331_v47 = vpop.f32.mrb[190].mxu1  ;;  %v11268_v35 = vpop.f32.mrb[191].mxu0  ;;  %8832 = vmatpush1.bf16.msra.mxu1 %v12187_v57 }
 0x2f3   :  { %v11332_v60 = vpop.f32.mrb[191].mxu1  ;;  %v4771_v33 = vadd.f32 %v11266_v46, %v14868_v40  ;;  %v11269_v62 = vadd.f32 %v11268_v35, %v11267_v28  ;;  %8833 = vmatprep.subr.bf16.mxu1 %v12195_v50 }
 0x2f4   :  { %v11333_v44 = vadd.f32 %v11332_v60, %v11331_v47  ;;  %v12205_v60 = vld [vmem:[%s16716_s6 + $0x80] ss:$16 sps:$4 sm:$0xff]  }
 0x2f5   :  { %v14930_v1 = vadd.f32 %v11330_v31, %v4771_v33  ;;  %v4774_v40 = vadd.f32 %v11269_v62, %v14871_v6  ;;  %v12190_v6 = vld [vmem:[%s16716_s6 + $0x28] ss:$16 sps:$4 sm:$0xff]   ;;  %v12207_v33 = vld [vmem:[%s16716_s6 + $0x84] ss:$16 sps:$4 sm:$0xff]  }
 0x2f6   :  { %9160 = vmatpush1.bf16.msra.mxu0 %v12190_v6  ;;  %8834 = vmatpush1.bf16.msra.mxu1 %v12193_v5  ;;  %v12208_v62 = vld [vmem:[%s16716_s6 + $0x88] ss:$16 sps:$4 sm:$0xff]  }
 0x2f7   :  { %v14942_v58 = vadd.f32 %v11333_v44, %v4774_v40  ;;  %v11270_v20 = vpop.f32.mrb[192].mxu0  ;;  %9161 = vmatprep.subr.bf16.mxu0 %v12198_v48  ;;  %8835 = vmatprep.subr.bf16.mxu1 %v12201_v61  ;;  %v12210_v44 = vld [vmem:[%s16716_s6 + $0x8c] ss:$16 sps:$4 sm:$0xff]  }
 0x2f8   :  { %v11334_v19 = vpop.f32.mrb[192].mxu1  ;;  %v11271_v4 = vpop.f32.mrb[193].mxu0 }
 0x2f9   :  { %v11335_v27 = vpop.f32.mrb[193].mxu1  ;;  %v11272_v42 = vadd.f32 %v11271_v4, %v11270_v20  ;;  %v11273_v49 = vpop.f32.mrb[194].mxu0 }
 0x2fa   :  { %v11336_v13 = vadd.f32 %v11335_v27, %v11334_v19  ;;  %v11337_v38 = vpop.f32.mrb[194].mxu1  ;;  %v11274_v9 = vpop.f32.mrb[195].mxu0  ;;  %9162 = vmatpush1.bf16.msra.mxu0 %v12196_v54  ;;  %8836 = vmatpush1.bf16.msra.mxu1 %v12199_v53 }
 0x2fb   :  { %v11338_v12 = vpop.f32.mrb[195].mxu1  ;;  %v4779_v18 = vadd.f32 %v11272_v42, %v14874_v25  ;;  %v11275_v59 = vadd.f32 %v11274_v9, %v11273_v49  ;;  %9163 = vmatprep.subr.bf16.mxu0 %v12204_v55  ;;  %8837 = vmatprep.subr.bf16.mxu1 %v12207_v33 }
 0x2fc   :  { %v11339_v21 = vadd.f32 %v11338_v12, %v11337_v38 }
 0x2fd   :  { %v14960_v25 = vadd.f32 %v11336_v13, %v4779_v18  ;;  %v4782_v17 = vadd.f32 %v11275_v59, %v14877_v34  ;;  %v12202_v34 = vld [vmem:[%s16716_s6 + $0x68] ss:$16 sps:$4 sm:$0xff]  }
 0x2fe   :  { %9164 = vmatpush1.bf16.msra.mxu0 %v12202_v34  ;;  %8838 = vmatpush1.bf16.msra.mxu1 %v12205_v60 }
 0x2ff   :  { %v14972_v29 = vadd.f32 %v11339_v21, %v4782_v17  ;;  %v11276_v43 = vpop.f32.mrb[196].mxu0  ;;  %9165 = vmatprep.subr.bf16.mxu0 %v12210_v44  ;;  %8839 = vmatprep.subr.bf16.mxu1 %v12213_v22  ;;  %v12223_v44 = vld [vmem:[%s16716_s6 + $0xe0] ss:$16 sps:$4 sm:$0xff]  }
 0x300   :  { %v11340_v8 = vpop.f32.mrb[196].mxu1  ;;  %v11277_v51 = vpop.f32.mrb[197].mxu0 }
 0x301   :  { %v11341_v10 = vpop.f32.mrb[197].mxu1  ;;  %v11278_v11 = vadd.f32 %v11277_v51, %v11276_v43  ;;  %v11279_v52 = vpop.f32.mrb[198].mxu0 }
 0x302   :  { %v11342_v15 = vadd.f32 %v11341_v10, %v11340_v8  ;;  %v11343_v14 = vpop.f32.mrb[198].mxu1  ;;  %v11280_v46 = vpop.f32.mrb[199].mxu0  ;;  %9166 = vmatpush1.bf16.msra.mxu0 %v12208_v62  ;;  %8840 = vmatpush1.bf16.msra.mxu1 %v12211_v39  ;;  %v12217_v10 = vld [vmem:[%s16716_s6 + $0xc0] ss:$16 sps:$4 sm:$0xff]  }
 0x303   :  { %v11344_v31 = vpop.f32.mrb[199].mxu1  ;;  %v4787_v28 = vadd.f32 %v11278_v11, %v14881_v16  ;;  %v11281_v47 = vadd.f32 %v11280_v46, %v11279_v52  ;;  %9167 = vmatprep.subr.bf16.mxu0 %v12216_v23  ;;  %v12219_v11 = vld [vmem:[%s16716_s6 + $0xc4] ss:$16 sps:$4 sm:$0xff]  }
 0x304   :  { %v11345_v35 = vadd.f32 %v11344_v31, %v11343_v14  ;;  %8841 = vmatprep.subr.bf16.mxu1 %v12219_v11 }
 0x305   :  { %v14990_v16 = vadd.f32 %v11342_v15, %v4787_v28  ;;  %v4790_v2 = vadd.f32 %v11281_v47, %v14884_v3  ;;  %v12214_v3 = vld [vmem:[%s16716_s6 + $0xa8] ss:$16 sps:$4 sm:$0xff]  }
 0x306   :  { %9168 = vmatpush1.bf16.msra.mxu0 %v12214_v3  ;;  %v12220_v15 = vld [vmem:[%s16716_s6 + $0xc8] ss:$16 sps:$4 sm:$0xff]   ;;  %8842 = vmatpush1.bf16.msra.mxu1 %v12217_v10  ;;  %v12243_v10 = vld [vmem:[%s16716_s6 + $0x144] ss:$16 sps:$4 sm:$0xff]  }
 0x307   :  { %v15002_v40 = vadd.f32 %v11345_v35, %v4790_v2  ;;  %v11362_v26 = vpop.f32.mrb[200].mxu0  ;;  %v12225_v2 = vld [vmem:[%s16716_s6 + $0xe4] ss:$16 sps:$4 sm:$0xff]  }
 0x308   :  { %v11426_v57 = vpop.f32.mrb[200].mxu1  ;;  %v11363_v63 = vpop.f32.mrb[201].mxu0  ;;  %8843 = vmatprep.subr.bf16.mxu1 %v12225_v2  ;;  %v12247_v2 = vld [vmem:[%s16716_s6 + $0x160] ss:$16 sps:$4 sm:$0xff]  }
 0x309   :  { %v11427_v20 = vpop.f32.mrb[201].mxu1  ;;  %v11364_v19 = vadd.f32 %v11363_v63, %v11362_v26  ;;  %v11365_v4 = vpop.f32.mrb[202].mxu0  ;;  %v12226_v26 = vld [vmem:[%s16716_s6 + $0xe8] ss:$16 sps:$4 sm:$0xff]  }
 0x30a   :  { %v11428_v6 = vadd.f32 %v11427_v20, %v11426_v57  ;;  %v11429_v27 = vpop.f32.mrb[202].mxu1  ;;  %v11366_v42 = vpop.f32.mrb[203].mxu0  ;;  %v12228_v57 = vld [vmem:[%s16716_s6 + $0xec] ss:$16 sps:$4 sm:$0xff]   ;;  %8844 = vmatpush1.bf16.msra.mxu1 %v12223_v44 }
 0x30b   :  { %v11430_v13 = vpop.f32.mrb[203].mxu1  ;;  %v4925_v49 = vadd.f32 %v11364_v19, %v14888_v36  ;;  %v11367_v38 = vadd.f32 %v11366_v42, %v11365_v4 }
 0x30c   :  { %v11431_v9 = vadd.f32 %v11430_v13, %v11429_v27 }
 0x30d   :  { %v15008_v12 = vadd.f32 %v11428_v6, %v4925_v49  ;;  %v4928_v18 = vadd.f32 %v11367_v38, %v14891_v0 }
 0x30f   :  { %v15011_v59 = vadd.f32 %v11431_v9, %v4928_v18  ;;  %v11368_v21 = vpop.f32.mrb[204].mxu0 }
 0x310   :  { %v11432_v5 = vpop.f32.mrb[204].mxu1  ;;  %v11369_v50 = vpop.f32.mrb[205].mxu0 }
 0x311   :  { %v11433_v54 = vpop.f32.mrb[205].mxu1  ;;  %v11370_v48 = vadd.f32 %v11369_v50, %v11368_v21  ;;  %v11371_v61 = vpop.f32.mrb[206].mxu0  ;;  %v12231_v50 = vld [vmem:[%s16716_s6 + $0x104] ss:$16 sps:$4 sm:$0xff]  }
 0x312   :  { %v11434_v17 = vadd.f32 %v11433_v54, %v11432_v5  ;;  %v11435_v53 = vpop.f32.mrb[206].mxu1  ;;  %v11372_v55 = vpop.f32.mrb[207].mxu0  ;;  %v12232_v54 = vld [vmem:[%s16716_s6 + $0x108] ss:$16 sps:$4 sm:$0xff]   ;;  %8845 = vmatprep.subr.bf16.mxu1 %v12231_v50 }
 0x313   :  { %v11436_v43 = vpop.f32.mrb[207].mxu1  ;;  %v4933_v36 = vadd.f32 %v11370_v48, %v14894_v24  ;;  %v11373_v8 = vadd.f32 %v11372_v55, %v11371_v61  ;;  %v12234_v48 = vld [vmem:[%s16716_s6 + $0x10c] ss:$16 sps:$4 sm:$0xff]   ;;  %v12237_v61 = vld [vmem:[%s16716_s6 + $0x124] ss:$16 sps:$4 sm:$0xff]  }
 0x314   :  { %v11437_v34 = vadd.f32 %v11436_v43, %v11435_v53  ;;  %v12235_v53 = vld [vmem:[%s16716_s6 + $0x120] ss:$16 sps:$4 sm:$0xff]   ;;  %v12240_v55 = vld [vmem:[%s16716_s6 + $0x12c] ss:$16 sps:$4 sm:$0xff]  }
 0x315   :  { %v15014_v51 = vadd.f32 %v11434_v17, %v4933_v36  ;;  %v4936_v0 = vadd.f32 %v11373_v8, %v14897_v30  ;;  %v12222_v30 = vld [vmem:[%s16716_s6 + $0xcc] ss:$16 sps:$4 sm:$0xff]  }
 0x316   :  { %9169 = vmatprep.subr.bf16.mxu0 %v12222_v30  ;;  %v12246_v30 = vld [vmem:[%s16716_s6 + $0x14c] ss:$16 sps:$4 sm:$0xff]  }
 0x317   :  { %v15026_v52 = vadd.f32 %v11437_v34, %v4936_v0  ;;  %v11374_v24 = vpop.f32.mrb[208].mxu0  ;;  %9170 = vmatpush1.bf16.msra.mxu0 %v12220_v15 }
 0x318   :  { %v11438_v14 = vpop.f32.mrb[208].mxu1  ;;  %v11375_v46 = vpop.f32.mrb[209].mxu0  ;;  %9171 = vmatprep.subr.bf16.mxu0 %v12228_v57 }
 0x319   :  { %v11439_v31 = vpop.f32.mrb[209].mxu1  ;;  %v11376_v28 = vadd.f32 %v11375_v46, %v11374_v24  ;;  %v11377_v35 = vpop.f32.mrb[210].mxu0 }
 0x31a   :  { %v11440_v47 = vadd.f32 %v11439_v31, %v11438_v14  ;;  %v11441_v60 = vpop.f32.mrb[210].mxu1  ;;  %v11378_v33 = vpop.f32.mrb[211].mxu0 }
 0x31b   :  { %v11442_v62 = vpop.f32.mrb[211].mxu1  ;;  %v4941_v22 = vadd.f32 %v11376_v28, %v14900_v45  ;;  %v11379_v39 = vadd.f32 %v11378_v33, %v11377_v35  ;;  %9172 = vmatpush1.bf16.msra.mxu0 %v12226_v26  ;;  %v12241_v28 = vld [vmem:[%s16716_s6 + $0x140] ss:$16 sps:$4 sm:$0xff]   ;;  %v12244_v33 = vld [vmem:[%s16716_s6 + $0x148] ss:$16 sps:$4 sm:$0xff]  }
 0x31c   :  { %v11443_v23 = vadd.f32 %v11442_v62, %v11441_v60  ;;  %9173 = vmatprep.subr.bf16.mxu0 %v12234_v48  ;;  %v12250_v26 = vld [vmem:[%s16716_s6 + $0x168] ss:$16 sps:$4 sm:$0xff]  }
 0x31d   :  { %v15044_v3 = vadd.f32 %v11440_v47, %v4941_v22  ;;  %v4944_v63 = vadd.f32 %v11379_v39, %v14903_v37  ;;  %v12229_v37 = vld [vmem:[%s16716_s6 + $0x100] ss:$16 sps:$4 sm:$0xff]  }
 0x31e   :  { %8846 = vmatpush1.bf16.msra.mxu1 %v12229_v37  ;;  %v12256_v37 = vld [vmem:[%s16716_s6 + $0x188] ss:$16 sps:$4 sm:$0xff]  }
 0x31f   :  { %v15047_v20 = vadd.f32 %v11443_v23, %v4944_v63  ;;  %9174 = vmatpush1.bf16.msra.mxu0 %v12232_v54  ;;  %8847 = vmatprep.subr.bf16.mxu1 %v12237_v61 }
 0x320   :  { %v11380_v45 = vpop.f32.mrb[212].mxu0  ;;  %v11444_v19 = vpop.f32.mrb[212].mxu1  ;;  %9175 = vmatprep.subr.bf16.mxu0 %v12240_v55 }
 0x321   :  { %v11381_v6 = vpop.f32.mrb[213].mxu0  ;;  %v11445_v4 = vpop.f32.mrb[213].mxu1 }
 0x322   :  { %v11382_v27 = vadd.f32 %v11381_v6, %v11380_v45  ;;  %v11446_v42 = vadd.f32 %v11445_v4, %v11444_v19  ;;  %v11383_v13 = vpop.f32.mrb[214].mxu0  ;;  %v11447_v49 = vpop.f32.mrb[214].mxu1  ;;  %8848 = vmatpush1.bf16.msra.mxu1 %v12235_v53 }
 0x323   :  { %v11384_v38 = vpop.f32.mrb[215].mxu0  ;;  %v11448_v9 = vpop.f32.mrb[215].mxu1  ;;  %8849 = vmatprep.subr.bf16.mxu1 %v12243_v10 }
 0x324   :  { %v4949_v18 = vadd.f32 %v11382_v27, %v14906_v7  ;;  %v11385_v21 = vadd.f32 %v11384_v38, %v11383_v13  ;;  %v11449_v5 = vadd.f32 %v11448_v9, %v11447_v49 }
 0x326   :  { %v15062_v17 = vadd.f32 %v11446_v42, %v4949_v18  ;;  %v4952_v7 = vadd.f32 %v11385_v21, %v14909_v32  ;;  %v12238_v32 = vld [vmem:[%s16716_s6 + $0x128] ss:$16 sps:$4 sm:$0xff]   ;;  %8850 = vmatpush1.bf16.msra.mxu1 %v12241_v28  ;;  %v12253_v21 = vld [vmem:[%s16716_s6 + $0x180] ss:$16 sps:$4 sm:$0xff]  }
 0x327   :  { %9176 = vmatpush1.bf16.msra.mxu0 %v12238_v32  ;;  %v12265_v28 = vld [vmem:[%s16716_s6 + $0x1c0] ss:$16 sps:$4 sm:$0xff]  }
 0x328   :  { %v15074_v43 = vadd.f32 %v11449_v5, %v4952_v7  ;;  %v11386_v36 = vpop.f32.mrb[216].mxu0  ;;  %v11450_v8 = vpop.f32.mrb[216].mxu1  ;;  %9177 = vmatprep.subr.bf16.mxu0 %v12246_v30  ;;  %v12255_v5 = vld [vmem:[%s16716_s6 + $0x184] ss:$16 sps:$4 sm:$0xff]  }
 0x329   :  { %v11387_v34 = vpop.f32.mrb[217].mxu0  ;;  %v11451_v0 = vpop.f32.mrb[217].mxu1 }
 0x32a   :  { %v11388_v11 = vadd.f32 %v11387_v34, %v11386_v36  ;;  %v11452_v15 = vadd.f32 %v11451_v0, %v11450_v8  ;;  %v11389_v24 = vpop.f32.mrb[218].mxu0  ;;  %v11453_v14 = vpop.f32.mrb[218].mxu1 }
 0x32b   :  { %v11390_v46 = vpop.f32.mrb[219].mxu0  ;;  %v11454_v31 = vpop.f32.mrb[219].mxu1  ;;  %9178 = vmatpush1.bf16.msra.mxu0 %v12244_v33  ;;  %v12273_v33 = vld [vmem:[%s16716_s6 + $0x1e4] ss:$16 sps:$4 sm:$0xff]  }
 0x32c   :  { %v4957_v47 = vadd.f32 %v11388_v11, %v14912_v56  ;;  %v11391_v35 = vadd.f32 %v11390_v46, %v11389_v24  ;;  %v11455_v60 = vadd.f32 %v11454_v31, %v11453_v14  ;;  %v12249_v56 = vld [vmem:[%s16716_s6 + $0x164] ss:$16 sps:$4 sm:$0xff]   ;;  %v12259_v11 = vld [vmem:[%s16716_s6 + $0x1a0] ss:$16 sps:$4 sm:$0xff]   ;;  %v12262_v24 = vld [vmem:[%s16716_s6 + $0x1a8] ss:$16 sps:$4 sm:$0xff]  }
 0x32d   :  { %8851 = vmatprep.subr.bf16.mxu1 %v12249_v56  ;;  %v12264_v14 = vld [vmem:[%s16716_s6 + $0x1ac] ss:$16 sps:$4 sm:$0xff]  }
 0x32e   :  { %v15092_v62 = vadd.f32 %v11452_v15, %v4957_v47  ;;  %v4960_v44 = vadd.f32 %v11391_v35, %v14915_v41  ;;  %v12252_v41 = vld [vmem:[%s16716_s6 + $0x16c] ss:$16 sps:$4 sm:$0xff]   ;;  %8852 = vmatpush1.bf16.msra.mxu1 %v12247_v2  ;;  %v12261_v15 = vld [vmem:[%s16716_s6 + $0x1a4] ss:$16 sps:$4 sm:$0xff]  }
 0x32f   :  { %9179 = vmatprep.subr.bf16.mxu0 %v12252_v41  ;;  %8853 = vmatprep.subr.bf16.mxu1 %v12255_v5  ;;  %v12270_v31 = vld [vmem:[%s16716_s6 + $0x1cc] ss:$16 sps:$4 sm:$0xff]  }
 0x330   :  { %v15101_v22 = vadd.f32 %v11455_v60, %v4960_v44  ;;  %v11392_v39 = vpop.f32.mrb[220].mxu0  ;;  %v11456_v23 = vpop.f32.mrb[220].mxu1  ;;  %9180 = vmatpush1.bf16.msra.mxu0 %v12250_v26  ;;  %v12276_v56 = vld [vmem:[%s16716_s6 + $0x1ec] ss:$16 sps:$4 sm:$0xff]  }
 0x331   :  { %v11393_v57 = vpop.f32.mrb[221].mxu0  ;;  %v11457_v63 = vpop.f32.mrb[221].mxu1 }
 0x332   :  { %v11394_v45 = vadd.f32 %v11393_v57, %v11392_v39  ;;  %v11458_v19 = vadd.f32 %v11457_v63, %v11456_v23  ;;  %v11395_v6 = vpop.f32.mrb[222].mxu0  ;;  %v11459_v4 = vpop.f32.mrb[222].mxu1  ;;  %8854 = vmatpush1.bf16.msra.mxu1 %v12253_v21 }
 0x333   :  { %v11396_v27 = vpop.f32.mrb[223].mxu0  ;;  %v11460_v42 = vpop.f32.mrb[223].mxu1  ;;  %8855 = vmatprep.subr.bf16.mxu1 %v12261_v15 }
 0x334   :  { %v4965_v13 = vadd.f32 %v11394_v45, %v14930_v1  ;;  %v11397_v49 = vadd.f32 %v11396_v27, %v11395_v6  ;;  %v11461_v38 = vadd.f32 %v11460_v42, %v11459_v4  ;;  %v12271_v45 = vld [vmem:[%s16716_s6 + $0x1e0] ss:$16 sps:$4 sm:$0xff]   ;;  %v12274_v27 = vld [vmem:[%s16716_s6 + $0x1e8] ss:$16 sps:$4 sm:$0xff]   ;;  %v12279_v42 = vld [vmem:[%s16716_s6 + $0x204] ss:$16 sps:$4 sm:$0xff]  }
 0x336   :  { %v15110_v9 = vadd.f32 %v11458_v19, %v4965_v13  ;;  %v4968_v18 = vadd.f32 %v11397_v49, %v14942_v58  ;;  %v12258_v58 = vld [vmem:[%s16716_s6 + $0x18c] ss:$16 sps:$4 sm:$0xff]   ;;  %8856 = vmatpush1.bf16.msra.mxu1 %v12259_v11 }
 0x337   :  { %9181 = vmatprep.subr.bf16.mxu0 %v12258_v58  ;;  %v12282_v13 = vld [vmem:[%s16716_s6 + $0x20c] ss:$16 sps:$4 sm:$0xff]  }
 0x338   :  { %v15122_v1 = vadd.f32 %v11461_v38, %v4968_v18  ;;  %v11398_v50 = vpop.f32.mrb[224].mxu0  ;;  %v11462_v54 = vpop.f32.mrb[224].mxu1  ;;  %9182 = vmatpush1.bf16.msra.mxu0 %v12256_v37 }
 0x339   :  { %v11399_v48 = vpop.f32.mrb[225].mxu0  ;;  %v11463_v7 = vpop.f32.mrb[225].mxu1  ;;  %9183 = vmatprep.subr.bf16.mxu0 %v12264_v14 }
 0x33a   :  { %v11400_v61 = vadd.f32 %v11399_v48, %v11398_v50  ;;  %v11464_v53 = vadd.f32 %v11463_v7, %v11462_v54  ;;  %v11401_v55 = vpop.f32.mrb[226].mxu0  ;;  %v11465_v36 = vpop.f32.mrb[226].mxu1 }
 0x33b   :  { %v11402_v8 = vpop.f32.mrb[227].mxu0  ;;  %v11466_v32 = vpop.f32.mrb[227].mxu1 }
 0x33c   :  { %v4973_v34 = vadd.f32 %v11400_v61, %v14960_v25  ;;  %v11403_v0 = vadd.f32 %v11402_v8, %v11401_v55  ;;  %v11467_v10 = vadd.f32 %v11466_v32, %v11465_v36  ;;  %v12267_v25 = vld [vmem:[%s16716_s6 + $0x1c4] ss:$16 sps:$4 sm:$0xff]   ;;  %9184 = vmatpush1.bf16.msra.mxu0 %v12262_v24 }
 0x33d   :  { %8857 = vmatprep.subr.bf16.mxu1 %v12267_v25  ;;  %9185 = vmatprep.subr.bf16.mxu0 %v12270_v31 }
 0x33e   :  { %v15143_v30 = vadd.f32 %v11464_v53, %v4973_v34  ;;  %v4976_v46 = vadd.f32 %v11403_v0, %v14972_v29  ;;  %v12268_v29 = vld [vmem:[%s16716_s6 + $0x1c8] ss:$16 sps:$4 sm:$0xff]   ;;  %8858 = vmatpush1.bf16.msra.mxu1 %v12265_v28 }
 0x33f   :  { %8859 = vmatprep.subr.bf16.mxu1 %v12273_v33 }
 0x340   :  { %v15152_v47 = vadd.f32 %v11467_v10, %v4976_v46  ;;  %v11404_v35 = vpop.f32.mrb[228].mxu0  ;;  %v11468_v60 = vpop.f32.mrb[228].mxu1  ;;  %9186 = vmatpush1.bf16.msra.mxu0 %v12268_v29 }
 0x341   :  { %v11405_v44 = vpop.f32.mrb[229].mxu0  ;;  %v11469_v2 = vpop.f32.mrb[229].mxu1  ;;  %9187 = vmatprep.subr.bf16.mxu0 %v12276_v56 }
 0x342   :  { %v11406_v39 = vadd.f32 %v11405_v44, %v11404_v35  ;;  %v11470_v23 = vadd.f32 %v11469_v2, %v11468_v60  ;;  %v11407_v26 = vpop.f32.mrb[230].mxu0  ;;  %v11471_v41 = vpop.f32.mrb[230].mxu1  ;;  %8860 = vmatpush1.bf16.msra.mxu1 %v12271_v45 }
 0x343   :  { %v11408_v57 = vpop.f32.mrb[231].mxu0  ;;  %v11472_v63 = vpop.f32.mrb[231].mxu1  ;;  %8870 = vmatprep.subr.bf16.mxu1 %v12279_v42 }
 0x344   :  { %v4981_v19 = vadd.f32 %v11406_v39, %v14990_v16  ;;  %v11409_v6 = vadd.f32 %v11408_v57, %v11407_v26  ;;  %v11473_v4 = vadd.f32 %v11472_v63, %v11471_v41  ;;  %9188 = vmatpush1.bf16.msra.mxu0 %v12274_v27 }
 0x345   :  { %9198 = vmatprep.subr.bf16.mxu0 %v12282_v13 }
 0x346   :  { %v15176_v49 = vadd.f32 %v11470_v23, %v4981_v19  ;;  %v4984_v16 = vadd.f32 %v11409_v6, %v15002_v40 }
 0x348   :  { %v15179_v38 = vadd.f32 %v11473_v4, %v4984_v16  ;;  %v11490_v18 = vpop.f32.mrb[232].mxu0  ;;  %v11554_v21 = vpop.f32.mrb[232].mxu1 }
 0x349   :  { %v11491_v5 = vpop.f32.mrb[233].mxu0  ;;  %v11555_v37 = vpop.f32.mrb[233].mxu1 }
 0x34a   :  { %v11492_v50 = vadd.f32 %v11491_v5, %v11490_v18  ;;  %v11556_v54 = vadd.f32 %v11555_v37, %v11554_v21  ;;  %v11493_v58 = vpop.f32.mrb[234].mxu0  ;;  %v11557_v48 = vpop.f32.mrb[234].mxu1 }
 0x34b   :  { %v11494_v7 = vpop.f32.mrb[235].mxu0  ;;  %v11558_v61 = vpop.f32.mrb[235].mxu1 }
 0x34c   :  { %v5119_v53 = vadd.f32 %v11492_v50, %v15008_v12  ;;  %v11495_v55 = vadd.f32 %v11494_v7, %v11493_v58  ;;  %v11559_v40 = vadd.f32 %v11558_v61, %v11557_v48 }
 0x34e   :  { %v5122_v36 = vadd.f32 %v11495_v55, %v15011_v59  ;;  %v15183_v8 = vadd.f32 %v11556_v54, %v5119_v53 }
 0x350   :  { %v11496_v32 = vpop.f32.mrb[236].mxu0  ;;  %v11560_v34 = vpop.f32.mrb[236].mxu1  ;;  %v15185_v0 = vadd.f32 %v11559_v40, %v5122_v36 }
 0x351   :  { %v11497_v10 = vpop.f32.mrb[237].mxu0  ;;  %v11561_v11 = vpop.f32.mrb[237].mxu1 }
 0x352   :  { %v11498_v15 = vadd.f32 %v11497_v10, %v11496_v32  ;;  %v11562_v24 = vadd.f32 %v11561_v11, %v11560_v34  ;;  %v11499_v14 = vpop.f32.mrb[238].mxu0  ;;  %v11563_v25 = vpop.f32.mrb[238].mxu1 }
 0x353   :  { %v11500_v46 = vpop.f32.mrb[239].mxu0  ;;  %v11564_v31 = vpop.f32.mrb[239].mxu1 }
 0x354   :  { %v5127_v12 = vadd.f32 %v11498_v15, %v15014_v51  ;;  %v11501_v28 = vadd.f32 %v11500_v46, %v11499_v14  ;;  %v11565_v35 = vadd.f32 %v11564_v31, %v11563_v25 }
 0x356   :  { %v5130_v59 = vadd.f32 %v11501_v28, %v15026_v52  ;;  %v15189_v60 = vadd.f32 %v11562_v24, %v5127_v12 }
 0x358   :  { %v11502_v29 = vpop.f32.mrb[240].mxu0  ;;  %v11566_v33 = vpop.f32.mrb[240].mxu1  ;;  %v15191_v44 = vadd.f32 %v11565_v35, %v5130_v59 }
 0x359   :  { %v11503_v2 = vpop.f32.mrb[241].mxu0  ;;  %v11567_v56 = vpop.f32.mrb[241].mxu1 }
 0x35a   :  { %v11504_v39 = vadd.f32 %v11503_v2, %v11502_v29  ;;  %v11568_v23 = vadd.f32 %v11567_v56, %v11566_v33  ;;  %v11505_v26 = vpop.f32.mrb[242].mxu0  ;;  %v11569_v41 = vpop.f32.mrb[242].mxu1 }
 0x35b   :  { %v11506_v57 = vpop.f32.mrb[243].mxu0  ;;  %v11570_v63 = vpop.f32.mrb[243].mxu1 }
 0x35c   :  { %v5135_v51 = vadd.f32 %v11504_v39, %v15044_v3  ;;  %v11507_v45 = vadd.f32 %v11506_v57, %v11505_v26  ;;  %v11571_v19 = vadd.f32 %v11570_v63, %v11569_v41 }
 0x35e   :  { %v5138_v52 = vadd.f32 %v11507_v45, %v15047_v20  ;;  %v15195_v6 = vadd.f32 %v11568_v23, %v5135_v51 }
 0x360   :  { %v11508_v4 = vpop.f32.mrb[244].mxu0  ;;  %v11572_v27 = vpop.f32.mrb[244].mxu1  ;;  %v15197_v42 = vadd.f32 %v11571_v19, %v5138_v52 }
 0x361   :  { %v11509_v13 = vpop.f32.mrb[245].mxu0  ;;  %v11573_v16 = vpop.f32.mrb[245].mxu1 }
 0x362   :  { %v11510_v18 = vadd.f32 %v11509_v13, %v11508_v4  ;;  %v11574_v21 = vadd.f32 %v11573_v16, %v11572_v27  ;;  %v11511_v5 = vpop.f32.mrb[246].mxu0  ;;  %v11575_v37 = vpop.f32.mrb[246].mxu1 }
 0x363   :  { %v11512_v50 = vpop.f32.mrb[247].mxu0  ;;  %v11576_v54 = vpop.f32.mrb[247].mxu1 }
 0x364   :  { %v5143_v3 = vadd.f32 %v11510_v18, %v15062_v17  ;;  %v11513_v58 = vadd.f32 %v11512_v50, %v11511_v5  ;;  %v11577_v48 = vadd.f32 %v11576_v54, %v11575_v37 }
 0x366   :  { %v5146_v20 = vadd.f32 %v11513_v58, %v15074_v43  ;;  %v15201_v7 = vadd.f32 %v11574_v21, %v5143_v3 }
 0x368   :  { %v11514_v61 = vpop.f32.mrb[248].mxu0  ;;  %v11578_v53 = vpop.f32.mrb[248].mxu1  ;;  %v15203_v55 = vadd.f32 %v11577_v48, %v5146_v20 }
 0x369   :  { %v11515_v40 = vpop.f32.mrb[249].mxu0  ;;  %v11579_v36 = vpop.f32.mrb[249].mxu1 }
 0x36a   :  { %v11516_v32 = vadd.f32 %v11515_v40, %v11514_v61  ;;  %v11580_v34 = vadd.f32 %v11579_v36, %v11578_v53  ;;  %v11517_v10 = vpop.f32.mrb[250].mxu0  ;;  %v11581_v11 = vpop.f32.mrb[250].mxu1 }
 0x36b   :  { %v11518_v15 = vpop.f32.mrb[251].mxu0  ;;  %v11582_v24 = vpop.f32.mrb[251].mxu1 }
 0x36c   :  { %v5151_v17 = vadd.f32 %v11516_v32, %v15092_v62  ;;  %v11519_v14 = vadd.f32 %v11518_v15, %v11517_v10  ;;  %v11583_v25 = vadd.f32 %v11582_v24, %v11581_v11 }
 0x36e   :  { %v5154_v43 = vadd.f32 %v11519_v14, %v15101_v22  ;;  %v15207_v46 = vadd.f32 %v11580_v34, %v5151_v17 }
 0x370   :  { %v11520_v31 = vpop.f32.mrb[252].mxu0  ;;  %v11584_v12 = vpop.f32.mrb[252].mxu1  ;;  %v15209_v28 = vadd.f32 %v11583_v25, %v5154_v43 }
 0x371   :  { %v11521_v35 = vpop.f32.mrb[253].mxu0  ;;  %v11585_v59 = vpop.f32.mrb[253].mxu1 }
 0x372   :  { %v11522_v29 = vadd.f32 %v11521_v35, %v11520_v31  ;;  %v11586_v33 = vadd.f32 %v11585_v59, %v11584_v12  ;;  %v11523_v2 = vpop.f32.mrb[254].mxu0  ;;  %v11587_v56 = vpop.f32.mrb[254].mxu1 }
 0x373   :  { %v11524_v39 = vpop.f32.mrb[255].mxu0  ;;  %v11588_v23 = vpop.f32.mrb[255].mxu1 }
 0x374   :  { %v5159_v62 = vadd.f32 %v11522_v29, %v15110_v9  ;;  %v11525_v26 = vadd.f32 %v11524_v39, %v11523_v2  ;;  %v11589_v41 = vadd.f32 %v11588_v23, %v11587_v56 }
 0x376   :  { %v5162_v22 = vadd.f32 %v11525_v26, %v15122_v1  ;;  %v15213_v57 = vadd.f32 %v11586_v33, %v5159_v62 }
 0x378   :  { %v11526_v63 = vpop.f32.mrb[0].mxu0  ;;  %v11590_v51 = vpop.f32.mrb[0].mxu1  ;;  %v15215_v45 = vadd.f32 %v11589_v41, %v5162_v22 }
 0x379   :  { %v11527_v19 = vpop.f32.mrb[1].mxu0  ;;  %v11591_v52 = vpop.f32.mrb[1].mxu1 }
 0x37a   :  { %v11528_v4 = vadd.f32 %v11527_v19, %v11526_v63  ;;  %v11592_v27 = vadd.f32 %v11591_v52, %v11590_v51  ;;  %v11529_v13 = vpop.f32.mrb[2].mxu0  ;;  %v11593_v16 = vpop.f32.mrb[2].mxu1 }
 0x37b   :  { %v11530_v18 = vpop.f32.mrb[3].mxu0  ;;  %v11594_v21 = vpop.f32.mrb[3].mxu1 }
 0x37c   :  { %v5167_v9 = vadd.f32 %v11528_v4, %v15143_v30  ;;  %v11531_v5 = vadd.f32 %v11530_v18, %v11529_v13  ;;  %v11595_v37 = vadd.f32 %v11594_v21, %v11593_v16 }
 0x37e   :  { %v5170_v1 = vadd.f32 %v11531_v5, %v15152_v47  ;;  %v15219_v50 = vadd.f32 %v11592_v27, %v5167_v9 }
 0x380   :  { %v11532_v54 = vpop.f32.mrb[4].mxu0  ;;  %v11596_v3 = vpop.f32.mrb[4].mxu1  ;;  %v15221_v58 = vadd.f32 %v11595_v37, %v5170_v1 }
 0x381   :  { %v11533_v48 = vpop.f32.mrb[5].mxu0  ;;  %v11597_v20 = vpop.f32.mrb[5].mxu1 }
 0x382   :  { %v11534_v61 = vadd.f32 %v11533_v48, %v11532_v54  ;;  %v11598_v53 = vadd.f32 %v11597_v20, %v11596_v3  ;;  %v11535_v40 = vpop.f32.mrb[6].mxu0  ;;  %v11599_v36 = vpop.f32.mrb[6].mxu1 }
 0x383   :  { %v11536_v32 = vpop.f32.mrb[7].mxu0  ;;  %v11600_v34 = vpop.f32.mrb[7].mxu1 }
 0x384   :  { %v5175_v30 = vadd.f32 %v11534_v61, %v15176_v49  ;;  %v11537_v10 = vadd.f32 %v11536_v32, %v11535_v40  ;;  %v11601_v11 = vadd.f32 %v11600_v34, %v11599_v36 }
 0x386   :  { %v5178_v47 = vadd.f32 %v11537_v10, %v15179_v38  ;;  %v5272_v15 = vadd.f32 %v11598_v53, %v5175_v30 }
 0x388   :  { %v11832_v24 = vpop.f32.mrb[8].mxu0  ;;  %v15225_v17 = vadd.f32 %v11601_v11, %v5178_v47 }
 0x389   :  { %v5321_v14 = vadd.f32 %v11832_v24, %v15189_v60  ;;  %v5312_v25 = vpop.f32.mrb[9].mxu0 }
 0x38a   :  { %v5313_v43 = vadd.f32 %v5312_v25, %v15183_v8  ;;  %v11833_v31 = vpop.f32.mrb[10].mxu0 }
 0x38b   :  { %v5377_v12 = vmax.f32 %v5321_v14, 0.0  ;;  %v5324_v35 = vadd.f32 %v11833_v31, %v15191_v44  ;;  %v5315_v59 = vpop.f32.mrb[11].mxu0 }
 0x38c   :  { %v5375_v29 = vmax.f32 %v5313_v43, 0.0  ;;  %v5316_v49 = vadd.f32 %v5315_v59, %v15185_v0 }
 0x38d   :  { %5393 = vst [vmem:[#allocation4 + $0x10] sm:$0xff] %v5377_v12  ;;  %v5378_v33 = vmax.f32 %v5324_v35, 0.0 }
 0x38e   :  { %5391 = vst [vmem:[#allocation4] sm:$0xff] %v5375_v29  ;;  %v5376_v38 = vmax.f32 %v5316_v49, 0.0 }
 0x38f   :  { %5394 = vst [vmem:[#allocation4 + $0x18] sm:$0xff] %v5378_v33 }
 0x390   :  { %5392 = vst [vmem:[#allocation4 + $0x8] sm:$0xff] %v5376_v38  ;;  %v11836_v2 = vpop.f32.mrb[12].mxu0 }
 0x391   :  { %v5337_v60 = vadd.f32 %v11836_v2, %v15201_v7  ;;  %v5328_v56 = vpop.f32.mrb[13].mxu0 }
 0x392   :  { %v5329_v8 = vadd.f32 %v5328_v56, %v15195_v6  ;;  %v11837_v39 = vpop.f32.mrb[14].mxu0 }
 0x393   :  { %v5381_v23 = vmax.f32 %v5337_v60, 0.0  ;;  %v5340_v44 = vadd.f32 %v11837_v39, %v15203_v55  ;;  %v5331_v62 = vpop.f32.mrb[15].mxu0 }
 0x394   :  { %v5332_v26 = vadd.f32 %v5331_v62, %v15197_v42  ;;  %v5379_v0 = vmax.f32 %v5329_v8, 0.0 }
 0x395   :  { %5397 = vst [vmem:[#allocation4 + $0x30] sm:$0xff] %v5381_v23  ;;  %v5382_v41 = vmax.f32 %v5340_v44, 0.0  ;;  %v5407_v1 = vld [vmem:[#allocation4] sm:$0x1]  ;;  %v5409_v54 = vld [vmem:[#allocation4 + $0x1] sm:$0x1] }
 0x396   :  { %v5380_v22 = vmax.f32 %v5332_v26, 0.0  ;;  %5395 = vst [vmem:[#allocation4 + $0x20] sm:$0xff] %v5379_v0  ;;  %v5422_v34 = vld [vmem:[#allocation4 + $0x2] sm:$0x1]  ;;  %v5424_v30 = vld [vmem:[#allocation4 + $0x3] sm:$0x1]  ;;  %v5416_v24 = vmax.f32 %v5407_v1, %v5409_v54 }
 0x397   :  { %5398 = vst [vmem:[#allocation4 + $0x38] sm:$0xff] %v5382_v41  ;;  %v5414_v5 = vld [vmem:[#allocation4 + $0x9] sm:$0x1]  ;;  %v5428_v10 = vld [vmem:[#allocation4 + $0xb] sm:$0x1]  ;;  %v5430_v23 = vmax.f32 %v5422_v34, %v5424_v30 }
 0x398   :  { %v11840_v63 = vpop.f32.mrb[16].mxu0  ;;  %5396 = vst [vmem:[#allocation4 + $0x28] sm:$0xff] %v5380_v22  ;;  %v5454_v35 = vld [vmem:[#allocation4 + $0xe] sm:$0x1]  ;;  %v5456_v8 = vld [vmem:[#allocation4 + $0xf] sm:$0x1] }
 0x399   :  { %v5353_v51 = vadd.f32 %v11840_v63, %v15213_v57  ;;  %v5344_v19 = vpop.f32.mrb[17].mxu0  ;;  %v5450_v0 = vld [vmem:[#allocation4 + $0x6] sm:$0x1]  ;;  %v5452_v41 = vld [vmem:[#allocation4 + $0x7] sm:$0x1] }
 0x39a   :  { %v5345_v6 = vadd.f32 %v5344_v19, %v15207_v46  ;;  %v11841_v7 = vpop.f32.mrb[18].mxu0  ;;  %v5412_v46 = vld [vmem:[#allocation4 + $0x8] sm:$0x1]  ;;  %v12297_v54 = vld [vmem:[%s16716_s6 + $0x264] ss:$16 sps:$4 sm:$0xff]  }
 0x39b   :  { %v5356_v52 = vadd.f32 %v11841_v7, %v15215_v45  ;;  %v5385_v55 = vmax.f32 %v5353_v51, 0.0  ;;  %v5347_v27 = vpop.f32.mrb[19].mxu0  ;;  %v5418_v3 = vmax.f32 %v5412_v46, %v5414_v5  ;;  %v5460_v51 = vmax.f32 %v5454_v35, %v5456_v8  ;;  %v12286_v46 = vld [vmem:[%s16716_s6 + $0x228] ss:$16 sps:$4 sm:$0xff]   ;;  %v12291_v5 = vld [vmem:[%s16716_s6 + $0x244] ss:$16 sps:$4 sm:$0xff]  }
 0x39c   :  { %v5383_v4 = vmax.f32 %v5345_v6, 0.0  ;;  %v5348_v13 = vadd.f32 %v5347_v27, %v15209_v28  ;;  %v5426_v28 = vld [vmem:[#allocation4 + $0xa] sm:$0x1]  ;;  %v12307_v34 = vld [vmem:[%s16716_s6 + $0x2a0] ss:$16 sps:$4 sm:$0xff]  }
 0x39d   :  { %v5386_v42 = vmax.f32 %v5356_v52, 0.0  ;;  %5401 = vst [vmem:[#allocation4 + $0x50] sm:$0xff] %v5385_v55  ;;  %v5432_v49 = vmax.f32 %v5426_v28, %v5428_v10  ;;  %v5420_v2 = vmax.f32 %v5416_v24, %v5418_v3  ;;  %v5458_v52 = vmax.f32 %v5450_v0, %v5452_v41  ;;  %v12280_v27 = vld [vmem:[%s16716_s6 + $0x208] ss:$16 sps:$4 sm:$0xff]   ;;  %v12300_v3 = vld [vmem:[%s16716_s6 + $0x26c] ss:$16 sps:$4 sm:$0xff]  }
 0x39e   :  { %5399 = vst [vmem:[#allocation4 + $0x40] sm:$0xff] %v5383_v4  ;;  %v5384_v16 = vmax.f32 %v5348_v13, 0.0  ;;  %v12277_v4 = vld [vmem:[%s16716_s6 + $0x200] ss:$16 sps:$4 sm:$0xff]   ;;  %v12292_v1 = vld [vmem:[%s16716_s6 + $0x248] ss:$16 sps:$4 sm:$0xff]  }
 0x39f   :  { %5402 = vst [vmem:[#allocation4 + $0x58] sm:$0xff] %v5386_v42  ;;  %v5434_v22 = vmax.f32 %v5430_v23, %v5432_v49  ;;  %v5462_v42 = vmax.f32 %v5458_v52, %v5460_v51  ;;  %v12303_v28 = vld [vmem:[%s16716_s6 + $0x284] ss:$16 sps:$4 sm:$0xff]   ;;  %v12310_v30 = vld [vmem:[%s16716_s6 + $0x2a8] ss:$16 sps:$4 sm:$0xff]  }
 0x3a0   :  { %v11844_v57 = vpop.f32.mrb[20].mxu0  ;;  %5400 = vst [vmem:[#allocation4 + $0x48] sm:$0xff] %v5384_v16  ;;  %v12285_v16 = vld [vmem:[%s16716_s6 + $0x224] ss:$16 sps:$4 sm:$0xff]   ;;  %v12324_v24 = vld [vmem:[%s16716_s6 + $0x2ec] ss:$16 sps:$4 sm:$0xff]  }
 0x3a1   :  { %v5369_v18 = vadd.f32 %v11844_v57, %v5272_v15  ;;  %v5360_v21 = vpop.f32.mrb[21].mxu0  ;;  %v12288_v57 = vld [vmem:[%s16716_s6 + $0x22c] ss:$16 sps:$4 sm:$0xff]   ;;  %v12315_v10 = vld [vmem:[%s16716_s6 + $0x2c4] ss:$16 sps:$4 sm:$0xff]  }
 0x3a2   :  { %v5361_v9 = vadd.f32 %v5360_v21, %v15219_v50  ;;  %v11845_v32 = vpop.f32.mrb[22].mxu0  ;;  %v12328_v35 = vld [vmem:[%s16716_s6 + $0x308] ss:$16 sps:$4 sm:$0xff]   ;;  %v12331_v49 = vld [vmem:[%s16716_s6 + $0x320] ss:$16 sps:$4 sm:$0xff]  }
 0x3a3   :  { %v5389_v40 = vmax.f32 %v5369_v18, 0.0  ;;  %v5372_v50 = vadd.f32 %v11845_v32, %v15225_v17  ;;  %v5363_v11 = vpop.f32.mrb[23].mxu0  ;;  %v12312_v32 = vld [vmem:[%s16716_s6 + $0x2ac] ss:$16 sps:$4 sm:$0xff]   ;;  %v12346_v23 = vld [vmem:[%s16716_s6 + $0x368] ss:$16 sps:$4 sm:$0xff]  }
 0x3a4   :  { %v5387_v36 = vmax.f32 %v5361_v9, 0.0  ;;  %v5364_v25 = vadd.f32 %v5363_v11, %v15221_v58  ;;  %v12283_v9 = vld [vmem:[%s16716_s6 + $0x220] ss:$16 sps:$4 sm:$0xff]   ;;  %v12348_v8 = vld [vmem:[%s16716_s6 + $0x36c] ss:$16 sps:$4 sm:$0xff]  }
 0x3a5   :  { %v5408_v37 = vld [vmem:[#allocation4 + $0x40] sm:$0x1]  ;;  %v5410_v45 = vld [vmem:[#allocation4 + $0x41] sm:$0x1]  ;;  %v5423_v47 = vld [vmem:[#allocation4 + $0x42] sm:$0x1] }
 0x3a6   :  { %v5417_v61 = vmax.f32 %v5408_v37, %v5410_v45  ;;  %v5425_v15 = vld [vmem:[#allocation4 + $0x43] sm:$0x1]  ;;  %5405 = vst [vmem:[#allocation4 + $0x70] sm:$0xff] %v5389_v40  ;;  %5403 = vst [vmem:[#allocation4 + $0x60] sm:$0xff] %v5387_v36  ;;  %v5451_v12 = vld [vmem:[#allocation4 + $0x46] sm:$0x1] }
 0x3a7   :  { %v5413_v48 = vld [vmem:[#allocation4 + $0x48] sm:$0x1]  ;;  %v5415_v20 = vld [vmem:[#allocation4 + $0x49] sm:$0x1]  ;;  %v5427_v43 = vld [vmem:[#allocation4 + $0x4a] sm:$0x1]  ;;  %v5431_v29 = vmax.f32 %v5423_v47, %v5425_v15 }
 0x3a8   :  { %v5419_v53 = vmax.f32 %v5413_v48, %v5415_v20  ;;  %v5429_v31 = vld [vmem:[#allocation4 + $0x4b] sm:$0x1]  ;;  %v5390_v59 = vmax.f32 %v5372_v50, 0.0  ;;  %v5453_v38 = vld [vmem:[#allocation4 + $0x47] sm:$0x1]  ;;  %v5388_v56 = vmax.f32 %v5364_v25, 0.0 }
 0x3a9   :  { %v5433_v33 = vmax.f32 %v5427_v43, %v5429_v31  ;;  %v5455_v17 = vld [vmem:[#allocation4 + $0x4e] sm:$0x1]  ;;  %v5457_v39 = vld [vmem:[#allocation4 + $0x4f] sm:$0x1]  ;;  %v5459_v62 = vmax.f32 %v5451_v12, %v5453_v38  ;;  %v12289_v45 = vld [vmem:[%s16716_s6 + $0x240] ss:$16 sps:$4 sm:$0xff]  }
 0x3aa   :  { %v5421_v14 = vmax.f32 %v5417_v61, %v5419_v53  ;;  %5406 = vst [vmem:[#allocation4 + $0x78] sm:$0xff] %v5390_v59  ;;  %v5461_v58 = vmax.f32 %v5455_v17, %v5457_v39  ;;  %5404 = vst [vmem:[#allocation4 + $0x68] sm:$0xff] %v5388_v56  ;;  %v12294_v37 = vld [vmem:[%s16716_s6 + $0x24c] ss:$16 sps:$4 sm:$0xff]   ;;  %v12295_v48 = vld [vmem:[%s16716_s6 + $0x260] ss:$16 sps:$4 sm:$0xff]  }
 0x3ab   :  { %v5435_v44 = vmax.f32 %v5431_v29, %v5433_v33  ;;  %v12298_v20 = vld [vmem:[%s16716_s6 + $0x268] ss:$16 sps:$4 sm:$0xff]   ;;  %v12306_v61 = vld [vmem:[%s16716_s6 + $0x28c] ss:$16 sps:$4 sm:$0xff]   ;;  %v12301_v53 = vld [vmem:[%s16716_s6 + $0x280] ss:$16 sps:$4 sm:$0xff]  }
 0x3ac   :  { %v5640_v60 = vrot.slane %v5421_v14, 7  ;;  %v5463_v19 = vmax.f32 %v5459_v62, %v5461_v58  ;;  %v12304_v40 = vld [vmem:[%s16716_s6 + $0x288] ss:$16 sps:$4 sm:$0xff]   ;;  %v12309_v36 = vld [vmem:[%s16716_s6 + $0x2a4] ss:$16 sps:$4 sm:$0xff]  }
 0x3ad   :  { %v5646_v63 = vrot.slane %v5435_v44, 7  ;;  %v12318_v50 = vld [vmem:[%s16716_s6 + $0x2cc] ss:$16 sps:$4 sm:$0xff]   ;;  %v12313_v11 = vld [vmem:[%s16716_s6 + $0x2c0] ss:$16 sps:$4 sm:$0xff]  }
 0x3ae   :  { %v5642_v26 = vsel %vm5641_vm1, %v5640_v60, %v5420_v2  ;;  %v5656_v13 = vrot.slane %v5463_v19, 7  ;;  %v12316_v47 = vld [vmem:[%s16716_s6 + $0x2c8] ss:$16 sps:$4 sm:$0xff]   ;;  %v12321_v15 = vld [vmem:[%s16716_s6 + $0x2e4] ss:$16 sps:$4 sm:$0xff]  }
 0x3af   :  { %v5647_v6 = vsel %vm5641_vm1, %v5646_v63, %v5434_v22  ;;  %v5719_v7 = vpack.c.bf16 %v5642_v26, %v5642_v26  ;;  %v12319_v14 = vld [vmem:[%s16716_s6 + $0x2e0] ss:$16 sps:$4 sm:$0xff]   ;;  %v12322_v25 = vld [vmem:[%s16716_s6 + $0x2e8] ss:$16 sps:$4 sm:$0xff]   ;;  %v12327_v43 = vld [vmem:[%s16716_s6 + $0x304] ss:$16 sps:$4 sm:$0xff]  }
 0x3b0   :  { %v5720_v55 = vpack.c.bf16 %v5647_v6, %v5647_v6  ;;  %v5657_v18 = vsel %vm5641_vm1, %v5656_v13, %v5462_v42  ;;  %v12330_v31 = vld [vmem:[%s16716_s6 + $0x30c] ss:$16 sps:$4 sm:$0xff]   ;;  %v12325_v12 = vld [vmem:[%s16716_s6 + $0x300] ss:$16 sps:$4 sm:$0xff]   ;;  %v12333_v59 = vld [vmem:[%s16716_s6 + $0x324] ss:$16 sps:$4 sm:$0xff]  }
 0x3b1   :  { %v5722_v21 = vpack.c.bf16 %v5657_v18, %v5657_v18  ;;  %v12336_v29 = vld [vmem:[%s16716_s6 + $0x32c] ss:$16 sps:$4 sm:$0xff]   ;;  %v12334_v33 = vld [vmem:[%s16716_s6 + $0x328] ss:$16 sps:$4 sm:$0xff]   ;;  %v12339_v38 = vld [vmem:[%s16716_s6 + $0x344] ss:$16 sps:$4 sm:$0xff]  }
 0x3b2   :  { %8861 = vmatprep.mubr.bf16.mxu1 %v5720_v55  ;;  %9189 = vmatprep.mubr.bf16.mxu0 %v5720_v55  ;;  %v12342_v17 = vld [vmem:[%s16716_s6 + $0x34c] ss:$16 sps:$4 sm:$0xff]   ;;  %v12337_v2 = vld [vmem:[%s16716_s6 + $0x340] ss:$16 sps:$4 sm:$0xff]   ;;  %v12340_v60 = vld [vmem:[%s16716_s6 + $0x348] ss:$16 sps:$4 sm:$0xff]  }
 0x3b3   :  { %8862 = vmatmul.mubr.bf16.vlgmr.msra.gmra.mrb[8].mxu1 %v5719_v7  ;;  %9190 = vmatmul.mubr.bf16.vlgmr.msra.gmra.mrb[24].mxu0 %v5719_v7  ;;  %v12345_v56 = vld [vmem:[%s16716_s6 + $0x364] ss:$16 sps:$4 sm:$0xff]   ;;  %v12343_v39 = vld [vmem:[%s16716_s6 + $0x360] ss:$16 sps:$4 sm:$0xff]   ;;  %v12354_v62 = vld [vmem:[%s16716_s6 + $0x38c] ss:$16 sps:$4 sm:$0xff]  }
 0x3b4   :  { %8871 = vmatpush1.bf16.msra.mxu1 %v12277_v4  ;;  %9199 = vmatpush1.bf16.msra.mxu0 %v12280_v27  ;;  %v12351_v44 = vld [vmem:[%s16716_s6 + $0x384] ss:$16 sps:$4 sm:$0xff]   ;;  %v12349_v58 = vld [vmem:[%s16716_s6 + $0x380] ss:$16 sps:$4 sm:$0xff]   ;;  %v5441_v26 = vld [vmem:[#allocation4 + $0x4c] sm:$0x1] }
 0x3b5   :  { %8872 = vmatprep.subr.bf16.mxu1 %v12285_v16  ;;  %9200 = vmatprep.subr.bf16.mxu0 %v12288_v57  ;;  %v5443_v0 = vld [vmem:[#allocation4 + $0x4d] sm:$0x1]  ;;  %v12352_v41 = vld [vmem:[%s16716_s6 + $0x388] ss:$16 sps:$4 sm:$0xff]   ;;  %v12357_v22 = vld [vmem:[%s16716_s6 + $0x3a4] ss:$16 sps:$4 sm:$0xff]  }
 0x3b6   :  { %8902 = vmatprep.mubr.bf16.mxu1 %v5722_v21  ;;  %9230 = vmatprep.mubr.bf16.mxu0 %v5722_v21  ;;  %v5485_v63 = vld [vmem:[#allocation4 + $0x5a] sm:$0x1]  ;;  %v5487_v51 = vld [vmem:[#allocation4 + $0x5b] sm:$0x1]  ;;  %v5437_v19 = vld [vmem:[#allocation4 + $0x44] sm:$0x1]  ;;  %v5447_v52 = vmax.f32 %v5441_v26, %v5443_v0 }
 0x3b7   :  { %v5439_v6 = vld [vmem:[#allocation4 + $0x45] sm:$0x1]  ;;  %v12360_v7 = vld [vmem:[%s16716_s6 + $0x3ac] ss:$16 sps:$4 sm:$0xff]   ;;  %v5481_v55 = vld [vmem:[#allocation4 + $0x52] sm:$0x1]  ;;  %v5491_v27 = vmax.f32 %v5485_v63, %v5487_v51 }
 0x3b8   :  { %8873 = vmatpush1.bf16.msra.mxu1 %v12283_v9  ;;  %9201 = vmatpush1.bf16.msra.mxu0 %v12286_v46  ;;  %v5483_v4 = vld [vmem:[#allocation4 + $0x53] sm:$0x1]  ;;  %v5445_v42 = vmax.f32 %v5437_v19, %v5439_v6  ;;  %v12358_v16 = vld [vmem:[%s16716_s6 + $0x3a8] ss:$16 sps:$4 sm:$0xff]   ;;  %v12363_v57 = vld [vmem:[%s16716_s6 + $0x3c4] ss:$16 sps:$4 sm:$0xff]  }
 0x3b9   :  { %8874 = vmatprep.subr.bf16.mxu1 %v12291_v5  ;;  %9202 = vmatprep.subr.bf16.mxu0 %v12294_v37  ;;  %v12355_v13 = vld [vmem:[%s16716_s6 + $0x3a0] ss:$16 sps:$4 sm:$0xff]   ;;  %v5440_v18 = vld [vmem:[#allocation4 + $0xc] sm:$0x1]  ;;  %v5442_v21 = vld [vmem:[#allocation4 + $0xd] sm:$0x1]  ;;  %v5489_v46 = vmax.f32 %v5481_v55, %v5483_v4 }
 0x3ba   :  { %v12366_v9 = vld [vmem:[%s16716_s6 + $0x3cc] ss:$16 sps:$4 sm:$0xff]   ;;  %v5449_v5 = vmax.f32 %v5445_v42, %v5447_v52  ;;  %v5484_v37 = vld [vmem:[#allocation4 + $0x1a] sm:$0x1]  ;;  %v12397_v0 = vld [vmem:[%s16716_s6 + $0x480] ss:$16 sps:$4 sm:$0xff]  }
 0x3bb   :  { %v12402_v26 = vld [vmem:[%s16716_s6 + $0x48c] ss:$16 sps:$4 sm:$0xff]   ;;  %v12403_v51 = vld [vmem:[%s16716_s6 + $0x4a0] ss:$16 sps:$4 sm:$0xff]   ;;  %v12406_v19 = vld [vmem:[%s16716_s6 + $0x4a8] ss:$16 sps:$4 sm:$0xff]  }
 0x3bc   :  { %8875 = vmatpush1.bf16.msra.mxu1 %v12289_v45  ;;  %9203 = vmatpush1.bf16.msra.mxu0 %v12292_v1  ;;  %v5486_v45 = vld [vmem:[#allocation4 + $0x1b] sm:$0x1]  ;;  %v5436_v1 = vld [vmem:[#allocation4 + $0x4] sm:$0x1]  ;;  %v12408_v63 = vld [vmem:[%s16716_s6 + $0x4ac] ss:$16 sps:$4 sm:$0xff]  }
 0x3bd   :  { %8876 = vmatprep.subr.bf16.mxu1 %v12297_v54  ;;  %9204 = vmatprep.subr.bf16.mxu0 %v12300_v3  ;;  %v5438_v54 = vld [vmem:[#allocation4 + $0x5] sm:$0x1]  ;;  %v12361_v3 = vld [vmem:[%s16716_s6 + $0x3c0] ss:$16 sps:$4 sm:$0xff]   ;;  %v12412_v55 = vld [vmem:[%s16716_s6 + $0x4c8] ss:$16 sps:$4 sm:$0xff]  }
 0x3be   :  { %v12411_v6 = vld [vmem:[%s16716_s6 + $0x4c4] ss:$16 sps:$4 sm:$0xff]   ;;  %v12409_v52 = vld [vmem:[%s16716_s6 + $0x4c0] ss:$16 sps:$4 sm:$0xff]  }
 0x3bf   :  { %v12417_v4 = vld [vmem:[%s16716_s6 + $0x4e4] ss:$16 sps:$4 sm:$0xff]   ;;  %v12415_v42 = vld [vmem:[%s16716_s6 + $0x4e0] ss:$16 sps:$4 sm:$0xff]  }
 0x3c0   :  { %8877 = vmatpush1.bf16.msra.mxu1 %v12295_v48  ;;  %9205 = vmatpush1.bf16.msra.mxu0 %v12298_v20  ;;  %v5493_v48 = vmax.f32 %v5489_v46, %v5491_v27  ;;  %v5446_v20 = vmax.f32 %v5440_v18, %v5442_v21  ;;  %v12420_v27 = vld [vmem:[%s16716_s6 + $0x4ec] ss:$16 sps:$4 sm:$0xff]   ;;  %v12421_v18 = vld [vmem:[%s16716_s6 + $0x500] ss:$16 sps:$4 sm:$0xff]   ;;  %v12424_v21 = vld [vmem:[%s16716_s6 + $0x508] ss:$16 sps:$4 sm:$0xff]  }
 0x3c1   :  { %8878 = vmatprep.subr.bf16.mxu1 %v12303_v28  ;;  %9206 = vmatprep.subr.bf16.mxu0 %v12306_v61  ;;  %v12364_v28 = vld [vmem:[%s16716_s6 + $0x3c8] ss:$16 sps:$4 sm:$0xff]   ;;  %v5480_v61 = vld [vmem:[#allocation4 + $0x12] sm:$0x1]  ;;  %v12432_v46 = vld [vmem:[%s16716_s6 + $0x52c] ss:$16 sps:$4 sm:$0xff]  }
 0x3c4   :  { %8879 = vmatpush1.bf16.msra.mxu1 %v12301_v53  ;;  %9207 = vmatpush1.bf16.msra.mxu0 %v12304_v40  ;;  %v5482_v53 = vld [vmem:[#allocation4 + $0x13] sm:$0x1]  ;;  %v12369_v40 = vld [vmem:[%s16716_s6 + $0x3e4] ss:$16 sps:$4 sm:$0xff]  }
 0x3c5   :  { %8880 = vmatprep.subr.bf16.mxu1 %v12309_v36  ;;  %9208 = vmatprep.subr.bf16.mxu0 %v12312_v32  ;;  %v12372_v36 = vld [vmem:[%s16716_s6 + $0x3ec] ss:$16 sps:$4 sm:$0xff]   ;;  %v5490_v32 = vmax.f32 %v5484_v37, %v5486_v45  ;;  %v12430_v37 = vld [vmem:[%s16716_s6 + $0x528] ss:$16 sps:$4 sm:$0xff]   ;;  %v12435_v45 = vld [vmem:[%s16716_s6 + $0x544] ss:$16 sps:$4 sm:$0xff]  }
 0x3c8   :  { %8881 = vmatpush1.bf16.msra.mxu1 %v12307_v34  ;;  %9209 = vmatpush1.bf16.msra.mxu0 %v12310_v30  ;;  %v5444_v34 = vmax.f32 %v5436_v1, %v5438_v54  ;;  %v5651_v30 = vrot.slane %v5449_v5, 7  ;;  %v12427_v5 = vld [vmem:[%s16716_s6 + $0x520] ss:$16 sps:$4 sm:$0xff]   ;;  %v12438_v1 = vld [vmem:[%s16716_s6 + $0x54c] ss:$16 sps:$4 sm:$0xff]  }
 0x3c9   :  { %8882 = vmatprep.subr.bf16.mxu1 %v12315_v10  ;;  %9210 = vmatprep.subr.bf16.mxu0 %v12318_v50  ;;  %v5488_v10 = vmax.f32 %v5480_v61, %v5482_v53  ;;  %v5666_v50 = vrot.slane %v5493_v48, 7  ;;  %v12433_v54 = vld [vmem:[%s16716_s6 + $0x540] ss:$16 sps:$4 sm:$0xff]   ;;  %v12441_v48 = vld [vmem:[%s16716_s6 + $0x564] ss:$16 sps:$4 sm:$0xff]  }
 0x3ca   :  { %v12442_v61 = vld [vmem:[%s16716_s6 + $0x568] ss:$16 sps:$4 sm:$0xff]   ;;  %v12447_v53 = vld [vmem:[%s16716_s6 + $0x584] ss:$16 sps:$4 sm:$0xff]  }
 0x3cc   :  { %8883 = vmatpush1.bf16.msra.mxu1 %v12313_v11  ;;  %9211 = vmatpush1.bf16.msra.mxu0 %v12316_v47  ;;  %v12367_v11 = vld [vmem:[%s16716_s6 + $0x3e0] ss:$16 sps:$4 sm:$0xff]   ;;  %v12370_v47 = vld [vmem:[%s16716_s6 + $0x3e8] ss:$16 sps:$4 sm:$0xff]  }
 0x3cd   :  { %8884 = vmatprep.subr.bf16.mxu1 %v12321_v15  ;;  %9212 = vmatprep.subr.bf16.mxu0 %v12324_v24  ;;  %v5448_v15 = vmax.f32 %v5444_v34, %v5446_v20  ;;  %v12375_v24 = vld [vmem:[%s16716_s6 + $0x404] ss:$16 sps:$4 sm:$0xff]   ;;  %v12444_v20 = vld [vmem:[%s16716_s6 + $0x56c] ss:$16 sps:$4 sm:$0xff]   ;;  %v5473_v34 = vld [vmem:[#allocation4 + $0x59] sm:$0x1] }
 0x3d0   :  { %8885 = vmatpush1.bf16.msra.mxu1 %v12319_v14  ;;  %9213 = vmatpush1.bf16.msra.mxu0 %v12322_v25  ;;  %v12378_v14 = vld [vmem:[%s16716_s6 + $0x40c] ss:$16 sps:$4 sm:$0xff]   ;;  %v5492_v25 = vmax.f32 %v5488_v10, %v5490_v32  ;;  %v5471_v32 = vld [vmem:[#allocation4 + $0x58] sm:$0x1]  ;;  %v12445_v10 = vld [vmem:[%s16716_s6 + $0x580] ss:$16 sps:$4 sm:$0xff]  }
 0x3d1   :  { %8886 = vmatprep.subr.bf16.mxu1 %v12327_v43  ;;  %9214 = vmatprep.subr.bf16.mxu0 %v12330_v31  ;;  %v5652_v43 = vsel %vm5641_vm1, %v5651_v30, %v5448_v15  ;;  %v5468_v30 = vld [vmem:[#allocation4 + $0x51] sm:$0x1]  ;;  %v5515_v15 = vld [vmem:[#allocation4 + $0x5f] sm:$0x1] }
 0x3d2   :  { %v5667_v31 = vsel %vm5641_vm1, %v5666_v50, %v5492_v25  ;;  %v12448_v50 = vld [vmem:[%s16716_s6 + $0x588] ss:$16 sps:$4 sm:$0xff]   ;;  %v5509_v25 = vld [vmem:[#allocation4 + $0x56] sm:$0x1] }
 0x3d4   :  { %8887 = vmatpush1.bf16.msra.mxu1 %v12325_v12  ;;  %9215 = vmatpush1.bf16.msra.mxu0 %v12328_v35  ;;  %v12373_v12 = vld [vmem:[%s16716_s6 + $0x400] ss:$16 sps:$4 sm:$0xff]   ;;  %v5721_v35 = vpack.c.bf16 %v5652_v43, %v5652_v43  ;;  %v5511_v43 = vld [vmem:[#allocation4 + $0x57] sm:$0x1] }
 0x3d5   :  { %8888 = vmatprep.subr.bf16.mxu1 %v12333_v59  ;;  %9216 = vmatprep.subr.bf16.mxu0 %v12336_v29  ;;  %v12376_v59 = vld [vmem:[%s16716_s6 + $0x408] ss:$16 sps:$4 sm:$0xff]   ;;  %v5724_v29 = vpack.c.bf16 %v5667_v31, %v5667_v31 }
 0x3d6   :  { %v5470_v31 = vld [vmem:[#allocation4 + $0x18] sm:$0x1] }
 0x3d8   :  { %8889 = vmatpush1.bf16.msra.mxu1 %v12331_v49  ;;  %9217 = vmatpush1.bf16.msra.mxu0 %v12334_v33  ;;  %v12381_v49 = vld [vmem:[%s16716_s6 + $0x424] ss:$16 sps:$4 sm:$0xff]   ;;  %v12384_v33 = vld [vmem:[%s16716_s6 + $0x42c] ss:$16 sps:$4 sm:$0xff]  }
 0x3d9   :  { %8890 = vmatprep.subr.bf16.mxu1 %v12339_v38  ;;  %9218 = vmatprep.subr.bf16.mxu0 %v12342_v17  ;;  %v12379_v38 = vld [vmem:[%s16716_s6 + $0x420] ss:$16 sps:$4 sm:$0xff]   ;;  %v12382_v17 = vld [vmem:[%s16716_s6 + $0x428] ss:$16 sps:$4 sm:$0xff]  }
 0x3dc   :  { %8891 = vmatpush1.bf16.msra.mxu1 %v12337_v2  ;;  %9219 = vmatpush1.bf16.msra.mxu0 %v12340_v60  ;;  %v12387_v2 = vld [vmem:[%s16716_s6 + $0x444] ss:$16 sps:$4 sm:$0xff]   ;;  %v12390_v60 = vld [vmem:[%s16716_s6 + $0x44c] ss:$16 sps:$4 sm:$0xff]  }
 0x3dd   :  { %8892 = vmatprep.subr.bf16.mxu1 %v12345_v56  ;;  %9220 = vmatprep.subr.bf16.mxu0 %v12348_v8  ;;  %v12385_v56 = vld [vmem:[%s16716_s6 + $0x440] ss:$16 sps:$4 sm:$0xff]   ;;  %v12388_v8 = vld [vmem:[%s16716_s6 + $0x448] ss:$16 sps:$4 sm:$0xff]  }
 0x3e0   :  { %8893 = vmatpush1.bf16.msra.mxu1 %v12343_v39  ;;  %9221 = vmatpush1.bf16.msra.mxu0 %v12346_v23  ;;  %v12393_v39 = vld [vmem:[%s16716_s6 + $0x464] ss:$16 sps:$4 sm:$0xff]   ;;  %v12396_v23 = vld [vmem:[%s16716_s6 + $0x46c] ss:$16 sps:$4 sm:$0xff]  }
 0x3e1   :  { %8894 = vmatprep.subr.bf16.mxu1 %v12351_v44  ;;  %9222 = vmatprep.subr.bf16.mxu0 %v12354_v62  ;;  %v12391_v44 = vld [vmem:[%s16716_s6 + $0x460] ss:$16 sps:$4 sm:$0xff]   ;;  %v12394_v62 = vld [vmem:[%s16716_s6 + $0x468] ss:$16 sps:$4 sm:$0xff]  }
 0x3e4   :  { %8895 = vmatpush1.bf16.msra.mxu1 %v12349_v58  ;;  %9223 = vmatpush1.bf16.msra.mxu0 %v12352_v41  ;;  %v12399_v58 = vld [vmem:[%s16716_s6 + $0x484] ss:$16 sps:$4 sm:$0xff]   ;;  %v12400_v41 = vld [vmem:[%s16716_s6 + $0x488] ss:$16 sps:$4 sm:$0xff]  }
 0x3e5   :  { %8896 = vmatprep.subr.bf16.mxu1 %v12357_v22  ;;  %9224 = vmatprep.subr.bf16.mxu0 %v12360_v7  ;;  %v12405_v22 = vld [vmem:[%s16716_s6 + $0x4a4] ss:$16 sps:$4 sm:$0xff]   ;;  %v12414_v7 = vld [vmem:[%s16716_s6 + $0x4cc] ss:$16 sps:$4 sm:$0xff]  }
 0x3e8   :  { %8897 = vmatpush1.bf16.msra.mxu1 %v12355_v13  ;;  %9225 = vmatpush1.bf16.msra.mxu0 %v12358_v16  ;;  %v12418_v13 = vld [vmem:[%s16716_s6 + $0x4e8] ss:$16 sps:$4 sm:$0xff]   ;;  %v12423_v16 = vld [vmem:[%s16716_s6 + $0x504] ss:$16 sps:$4 sm:$0xff]  }
 0x3e9   :  { %8898 = vmatprep.subr.bf16.mxu1 %v12363_v57  ;;  %9226 = vmatprep.subr.bf16.mxu0 %v12366_v9  ;;  %v12426_v57 = vld [vmem:[%s16716_s6 + $0x50c] ss:$16 sps:$4 sm:$0xff]   ;;  %v12429_v9 = vld [vmem:[%s16716_s6 + $0x524] ss:$16 sps:$4 sm:$0xff]  }
 0x3ec   :  { %8899 = vmatpush1.bf16.msra.mxu1 %v12361_v3  ;;  %9227 = vmatpush1.bf16.msra.mxu0 %v12364_v28  ;;  %v12436_v3 = vld [vmem:[%s16716_s6 + $0x548] ss:$16 sps:$4 sm:$0xff]   ;;  %v12439_v28 = vld [vmem:[%s16716_s6 + $0x560] ss:$16 sps:$4 sm:$0xff]  }
 0x3ed   :  { %8900 = vmatprep.subr.bf16.mxu1 %v12369_v40  ;;  %9228 = vmatprep.subr.bf16.mxu0 %v12372_v36  ;;  %v12450_v40 = vld [vmem:[%s16716_s6 + $0x58c] ss:$16 sps:$4 sm:$0xff]   ;;  %v5466_v36 = vld [vmem:[#allocation4 + $0x50] sm:$0x1] }
 0x3f0   :  { %8901 = vmatpush1.bf16.msra.mxu1 %v12367_v11  ;;  %9229 = vmatpush1.bf16.msra.mxu0 %v12370_v47  ;;  %v12453_v11 = vld [vmem:[%s16716_s6 + $0x5a4] ss:$16 sps:$4 sm:$0xff]   ;;  %v5513_v47 = vld [vmem:[#allocation4 + $0x5e] sm:$0x1] }
 0x3f1   :  { %8911 = vmatprep.subr.bf16.mxu1 %v12375_v24  ;;  %9239 = vmatprep.subr.bf16.mxu0 %v12378_v14  ;;  %v5477_v24 = vmax.f32 %v5471_v32, %v5473_v34  ;;  %v12456_v14 = vld [vmem:[%s16716_s6 + $0x5ac] ss:$16 sps:$4 sm:$0xff]   ;;  %v12493_v34 = vld [vmem:[%s16716_s6 + $0x680] ss:$16 sps:$4 sm:$0xff]  }
 0x3f2   :  { %v12498_v32 = vld [vmem:[%s16716_s6 + $0x68c] ss:$16 sps:$4 sm:$0xff]  }
 0x3f3   :  { %8903 = vmatmul.mubr.bf16.vlgmr.msra.gmra.mrb[8].mxu1 %v5721_v35  ;;  %9231 = vmatmul.mubr.bf16.vlgmr.msra.gmra.mrb[24].mxu0 %v5721_v35  ;;  %v12451_v35 = vld [vmem:[%s16716_s6 + $0x5a0] ss:$16 sps:$4 sm:$0xff]  }
 0x3f4   :  { %8912 = vmatpush1.bf16.msra.mxu1 %v12373_v12  ;;  %8943 = vmatprep.mubr.bf16.mxu1 %v5724_v29  ;;  %v5475_v12 = vmax.f32 %v5466_v36, %v5468_v30  ;;  %v12495_v36 = vld [vmem:[%s16716_s6 + $0x684] ss:$16 sps:$4 sm:$0xff]   ;;  %v12496_v30 = vld [vmem:[%s16716_s6 + $0x688] ss:$16 sps:$4 sm:$0xff]  }
 0x3f5   :  { %9240 = vmatpush1.bf16.msra.mxu0 %v12376_v59  ;;  %9271 = vmatprep.mubr.bf16.mxu0 %v5724_v29  ;;  %v5519_v59 = vmax.f32 %v5513_v47, %v5515_v15  ;;  %v5472_v29 = vld [vmem:[#allocation4 + $0x19] sm:$0x1]  ;;  %v12507_v15 = vld [vmem:[%s16716_s6 + $0x6c4] ss:$16 sps:$4 sm:$0xff]  }
 0x3f6   :  { %8913 = vmatprep.subr.bf16.mxu1 %v12381_v49  ;;  %9241 = vmatprep.subr.bf16.mxu0 %v12384_v33  ;;  %v12454_v49 = vld [vmem:[%s16716_s6 + $0x5a8] ss:$16 sps:$4 sm:$0xff]   ;;  %v12459_v33 = vld [vmem:[%s16716_s6 + $0x5c4] ss:$16 sps:$4 sm:$0xff]  }
 0x3f7   :  { %v12502_v47 = vld [vmem:[%s16716_s6 + $0x6a8] ss:$16 sps:$4 sm:$0xff]  }
 0x3f8   :  { %8914 = vmatpush1.bf16.msra.mxu1 %v12379_v38  ;;  %v5465_v38 = vld [vmem:[#allocation4 + $0x10] sm:$0x1] }
 0x3f9   :  { %9242 = vmatpush1.bf16.msra.mxu0 %v12382_v17  ;;  %8915 = vmatprep.subr.bf16.mxu1 %v12387_v2  ;;  %v5479_v17 = vmax.f32 %v5475_v12, %v5477_v24  ;;  %v12462_v2 = vld [vmem:[%s16716_s6 + $0x5cc] ss:$16 sps:$4 sm:$0xff]   ;;  %v12511_v12 = vld [vmem:[%s16716_s6 + $0x6e0] ss:$16 sps:$4 sm:$0xff]  }
 0x3fa   :  { %9243 = vmatprep.subr.bf16.mxu0 %v12390_v60  ;;  %v5517_v60 = vmax.f32 %v5509_v25, %v5511_v43  ;;  %v12510_v24 = vld [vmem:[%s16716_s6 + $0x6cc] ss:$16 sps:$4 sm:$0xff]   ;;  %v12508_v25 = vld [vmem:[%s16716_s6 + $0x6c8] ss:$16 sps:$4 sm:$0xff]   ;;  %v12513_v43 = vld [vmem:[%s16716_s6 + $0x6e4] ss:$16 sps:$4 sm:$0xff]  }
 0x3fc   :  { %8916 = vmatpush1.bf16.msra.mxu1 %v12385_v56  ;;  %v5467_v56 = vld [vmem:[#allocation4 + $0x11] sm:$0x1] }
 0x3fd   :  { %9244 = vmatpush1.bf16.msra.mxu0 %v12388_v8  ;;  %8917 = vmatprep.subr.bf16.mxu1 %v12393_v39  ;;  %v5512_v8 = vld [vmem:[#allocation4 + $0x1e] sm:$0x1]  ;;  %v5514_v39 = vld [vmem:[#allocation4 + $0x1f] sm:$0x1] }
 0x3fe   :  { %9245 = vmatprep.subr.bf16.mxu0 %v12396_v23  ;;  %v5476_v23 = vmax.f32 %v5470_v31, %v5472_v29  ;;  %v12516_v31 = vld [vmem:[%s16716_s6 + $0x6ec] ss:$16 sps:$4 sm:$0xff]  }
 0x3ff   :  { %v12522_v29 = vld [vmem:[%s16716_s6 + $0x70c] ss:$16 sps:$4 sm:$0xff]  }
 0x400   :  { %8918 = vmatpush1.bf16.msra.mxu1 %v12391_v44  ;;  %v12457_v44 = vld [vmem:[%s16716_s6 + $0x5c0] ss:$16 sps:$4 sm:$0xff]  }
 0x401   :  { %9246 = vmatpush1.bf16.msra.mxu0 %v12394_v62  ;;  %8919 = vmatprep.subr.bf16.mxu1 %v12399_v58  ;;  %v12460_v62 = vld [vmem:[%s16716_s6 + $0x5c8] ss:$16 sps:$4 sm:$0xff]   ;;  %v5521_v58 = vmax.f32 %v5517_v60, %v5519_v59  ;;  %v12519_v59 = vld [vmem:[%s16716_s6 + $0x704] ss:$16 sps:$4 sm:$0xff]  }
 0x402   :  { %9247 = vmatprep.subr.bf16.mxu0 %v12402_v26  ;;  %v12465_v26 = vld [vmem:[%s16716_s6 + $0x5e4] ss:$16 sps:$4 sm:$0xff]   ;;  %v12526_v60 = vld [vmem:[%s16716_s6 + $0x728] ss:$16 sps:$4 sm:$0xff]  }
 0x404   :  { %8920 = vmatpush1.bf16.msra.mxu1 %v12397_v0  ;;  %v5508_v0 = vld [vmem:[#allocation4 + $0x16] sm:$0x1] }
 0x405   :  { %9248 = vmatpush1.bf16.msra.mxu0 %v12400_v41  ;;  %8921 = vmatprep.subr.bf16.mxu1 %v12405_v22  ;;  %v5510_v41 = vld [vmem:[#allocation4 + $0x17] sm:$0x1]  ;;  %v5474_v22 = vmax.f32 %v5465_v38, %v5467_v56 }
 0x406   :  { %9249 = vmatprep.subr.bf16.mxu0 %v12408_v63  ;;  %v12468_v63 = vld [vmem:[%s16716_s6 + $0x5ec] ss:$16 sps:$4 sm:$0xff]   ;;  %v12525_v38 = vld [vmem:[%s16716_s6 + $0x724] ss:$16 sps:$4 sm:$0xff]  }
 0x407   :  { %v12531_v56 = vld [vmem:[%s16716_s6 + $0x744] ss:$16 sps:$4 sm:$0xff]  }
 0x408   :  { %8922 = vmatpush1.bf16.msra.mxu1 %v12403_v51  ;;  %v5661_v51 = vrot.slane %v5479_v17, 7  ;;  %v12528_v17 = vld [vmem:[%s16716_s6 + $0x72c] ss:$16 sps:$4 sm:$0xff]  }
 0x409   :  { %9250 = vmatpush1.bf16.msra.mxu0 %v12406_v19  ;;  %8923 = vmatprep.subr.bf16.mxu1 %v12411_v6  ;;  %v5518_v19 = vmax.f32 %v5512_v8, %v5514_v39  ;;  %v12463_v6 = vld [vmem:[%s16716_s6 + $0x5e0] ss:$16 sps:$4 sm:$0xff]   ;;  %v12534_v8 = vld [vmem:[%s16716_s6 + $0x74c] ss:$16 sps:$4 sm:$0xff]  }
 0x40a   :  { %9251 = vmatprep.subr.bf16.mxu0 %v12414_v7  ;;  %v5478_v7 = vmax.f32 %v5474_v22, %v5476_v23  ;;  %v12529_v39 = vld [vmem:[%s16716_s6 + $0x740] ss:$16 sps:$4 sm:$0xff]   ;;  %v12532_v23 = vld [vmem:[%s16716_s6 + $0x748] ss:$16 sps:$4 sm:$0xff]   ;;  %v5495_v22 = vld [vmem:[#allocation4 + $0x54] sm:$0x1] }
 0x40c   :  { %8924 = vmatpush1.bf16.msra.mxu1 %v12409_v52  ;;  %v5516_v52 = vmax.f32 %v5508_v0, %v5510_v41  ;;  %v12543_v0 = vld [vmem:[%s16716_s6 + $0x784] ss:$16 sps:$4 sm:$0xff]   ;;  %v12546_v41 = vld [vmem:[%s16716_s6 + $0x78c] ss:$16 sps:$4 sm:$0xff]  }
 0x40d   :  { %9252 = vmatpush1.bf16.msra.mxu0 %v12412_v55  ;;  %8925 = vmatprep.subr.bf16.mxu1 %v12417_v4  ;;  %v5676_v55 = vrot.slane %v5521_v58, 7  ;;  %v12466_v4 = vld [vmem:[%s16716_s6 + $0x5e8] ss:$16 sps:$4 sm:$0xff]   ;;  %v12535_v58 = vld [vmem:[%s16716_s6 + $0x760] ss:$16 sps:$4 sm:$0xff]  }
 0x40e   :  { %9253 = vmatprep.subr.bf16.mxu0 %v12420_v27  ;;  %v12471_v27 = vld [vmem:[%s16716_s6 + $0x604] ss:$16 sps:$4 sm:$0xff]  }
 0x410   :  { %8926 = vmatpush1.bf16.msra.mxu1 %v12415_v42  ;;  %v5662_v42 = vsel %vm5641_vm1, %v5661_v51, %v5478_v7  ;;  %v5501_v51 = vld [vmem:[#allocation4 + $0x5d] sm:$0x1]  ;;  %v5543_v7 = vld [vmem:[#allocation4 + $0x6a] sm:$0x1] }
 0x411   :  { %9254 = vmatpush1.bf16.msra.mxu0 %v12418_v13  ;;  %8927 = vmatprep.subr.bf16.mxu1 %v12423_v16  ;;  %v12474_v13 = vld [vmem:[%s16716_s6 + $0x60c] ss:$16 sps:$4 sm:$0xff]   ;;  %v5520_v16 = vmax.f32 %v5516_v52, %v5518_v19  ;;  %v5497_v19 = vld [vmem:[#allocation4 + $0x55] sm:$0x1]  ;;  %v12544_v52 = vld [vmem:[%s16716_s6 + $0x788] ss:$16 sps:$4 sm:$0xff]  }
 0x412   :  { %9255 = vmatprep.subr.bf16.mxu0 %v12426_v57  ;;  %v12469_v57 = vld [vmem:[%s16716_s6 + $0x600] ss:$16 sps:$4 sm:$0xff]  }
 0x414   :  { %8928 = vmatpush1.bf16.msra.mxu1 %v12421_v18  ;;  %v5677_v18 = vsel %vm5641_vm1, %v5676_v55, %v5520_v16  ;;  %v12549_v55 = vld [vmem:[%s16716_s6 + $0x7a4] ss:$16 sps:$4 sm:$0xff]   ;;  %v5541_v16 = vld [vmem:[#allocation4 + $0x63] sm:$0x1] }
 0x415   :  { %9256 = vmatpush1.bf16.msra.mxu0 %v12424_v21  ;;  %8929 = vmatprep.subr.bf16.mxu1 %v12429_v9  ;;  %v5723_v21 = vpack.c.bf16 %v5662_v42, %v5662_v42  ;;  %v12472_v9 = vld [vmem:[%s16716_s6 + $0x608] ss:$16 sps:$4 sm:$0xff]   ;;  %v12552_v42 = vld [vmem:[%s16716_s6 + $0x7ac] ss:$16 sps:$4 sm:$0xff]  }
 0x416   :  { %9257 = vmatprep.subr.bf16.mxu0 %v12432_v46  ;;  %v12477_v46 = vld [vmem:[%s16716_s6 + $0x624] ss:$16 sps:$4 sm:$0xff]  }
 0x418   :  { %8930 = vmatpush1.bf16.msra.mxu1 %v12427_v5  ;;  %v5726_v5 = vpack.c.bf16 %v5677_v18, %v5677_v18  ;;  %v5503_v18 = vmax.f32 %v5495_v22, %v5497_v19  ;;  %v12591_v22 = vld [vmem:[%s16716_s6 + $0x884] ss:$16 sps:$4 sm:$0xff]   ;;  %v12592_v19 = vld [vmem:[%s16716_s6 + $0x888] ss:$16 sps:$4 sm:$0xff]  }
 0x419   :  { %9258 = vmatpush1.bf16.msra.mxu0 %v12430_v37  ;;  %8931 = vmatprep.subr.bf16.mxu1 %v12435_v45  ;;  %v12480_v37 = vld [vmem:[%s16716_s6 + $0x62c] ss:$16 sps:$4 sm:$0xff]   ;;  %v12475_v45 = vld [vmem:[%s16716_s6 + $0x620] ss:$16 sps:$4 sm:$0xff]  }
 0x41a   :  { %9259 = vmatprep.subr.bf16.mxu0 %v12438_v1  ;;  %v12478_v1 = vld [vmem:[%s16716_s6 + $0x628] ss:$16 sps:$4 sm:$0xff]  }
 0x41c   :  { %8932 = vmatpush1.bf16.msra.mxu1 %v12433_v54  ;;  %v12483_v54 = vld [vmem:[%s16716_s6 + $0x644] ss:$16 sps:$4 sm:$0xff]  }
 0x41d   :  { %9260 = vmatpush1.bf16.msra.mxu0 %v12436_v3  ;;  %8933 = vmatprep.subr.bf16.mxu1 %v12441_v48  ;;  %v12486_v3 = vld [vmem:[%s16716_s6 + $0x64c] ss:$16 sps:$4 sm:$0xff]   ;;  %v12481_v48 = vld [vmem:[%s16716_s6 + $0x640] ss:$16 sps:$4 sm:$0xff]  }
 0x41e   :  { %9261 = vmatprep.subr.bf16.mxu0 %v12444_v20  ;;  %v12484_v20 = vld [vmem:[%s16716_s6 + $0x648] ss:$16 sps:$4 sm:$0xff]  }
 0x420   :  { %8934 = vmatpush1.bf16.msra.mxu1 %v12439_v28  ;;  %v12489_v28 = vld [vmem:[%s16716_s6 + $0x664] ss:$16 sps:$4 sm:$0xff]  }
 0x421   :  { %9262 = vmatpush1.bf16.msra.mxu0 %v12442_v61  ;;  %8935 = vmatprep.subr.bf16.mxu1 %v12447_v53  ;;  %v12492_v61 = vld [vmem:[%s16716_s6 + $0x66c] ss:$16 sps:$4 sm:$0xff]   ;;  %v12487_v53 = vld [vmem:[%s16716_s6 + $0x660] ss:$16 sps:$4 sm:$0xff]  }
 0x422   :  { %9263 = vmatprep.subr.bf16.mxu0 %v12450_v40  ;;  %v12490_v40 = vld [vmem:[%s16716_s6 + $0x668] ss:$16 sps:$4 sm:$0xff]  }
 0x424   :  { %8936 = vmatpush1.bf16.msra.mxu1 %v12445_v10  ;;  %v12501_v10 = vld [vmem:[%s16716_s6 + $0x6a4] ss:$16 sps:$4 sm:$0xff]  }
 0x425   :  { %9264 = vmatpush1.bf16.msra.mxu0 %v12448_v50  ;;  %8937 = vmatprep.subr.bf16.mxu1 %v12453_v11  ;;  %v12504_v50 = vld [vmem:[%s16716_s6 + $0x6ac] ss:$16 sps:$4 sm:$0xff]   ;;  %v12499_v11 = vld [vmem:[%s16716_s6 + $0x6a0] ss:$16 sps:$4 sm:$0xff]  }
 0x426   :  { %9265 = vmatprep.subr.bf16.mxu0 %v12456_v14  ;;  %v12505_v14 = vld [vmem:[%s16716_s6 + $0x6c0] ss:$16 sps:$4 sm:$0xff]  }
 0x428   :  { %8938 = vmatpush1.bf16.msra.mxu1 %v12451_v35  ;;  %v12514_v35 = vld [vmem:[%s16716_s6 + $0x6e8] ss:$16 sps:$4 sm:$0xff]  }
 0x429   :  { %9266 = vmatpush1.bf16.msra.mxu0 %v12454_v49  ;;  %8939 = vmatprep.subr.bf16.mxu1 %v12459_v33  ;;  %v12517_v49 = vld [vmem:[%s16716_s6 + $0x700] ss:$16 sps:$4 sm:$0xff]   ;;  %v12520_v33 = vld [vmem:[%s16716_s6 + $0x708] ss:$16 sps:$4 sm:$0xff]  }
 0x42a   :  { %9267 = vmatprep.subr.bf16.mxu0 %v12462_v2  ;;  %v12523_v2 = vld [vmem:[%s16716_s6 + $0x720] ss:$16 sps:$4 sm:$0xff]  }
 0x42c   :  { %8940 = vmatpush1.bf16.msra.mxu1 %v12457_v44  ;;  %v12537_v44 = vld [vmem:[%s16716_s6 + $0x764] ss:$16 sps:$4 sm:$0xff]  }
 0x42d   :  { %9268 = vmatpush1.bf16.msra.mxu0 %v12460_v62  ;;  %8941 = vmatprep.subr.bf16.mxu1 %v12465_v26  ;;  %v12540_v62 = vld [vmem:[%s16716_s6 + $0x76c] ss:$16 sps:$4 sm:$0xff]   ;;  %v12538_v26 = vld [vmem:[%s16716_s6 + $0x768] ss:$16 sps:$4 sm:$0xff]  }
 0x42e   :  { %9269 = vmatprep.subr.bf16.mxu0 %v12468_v63  ;;  %v5499_v63 = vld [vmem:[#allocation4 + $0x5c] sm:$0x1] }
 0x430   :  { %8942 = vmatpush1.bf16.msra.mxu1 %v12463_v6  ;;  %v12541_v6 = vld [vmem:[%s16716_s6 + $0x780] ss:$16 sps:$4 sm:$0xff]  }
 0x431   :  { %9270 = vmatpush1.bf16.msra.mxu0 %v12466_v4  ;;  %8952 = vmatprep.subr.bf16.mxu1 %v12471_v27  ;;  %v5545_v4 = vld [vmem:[#allocation4 + $0x6b] sm:$0x1]  ;;  %v5505_v27 = vmax.f32 %v5499_v63, %v5501_v51  ;;  %v12594_v63 = vld [vmem:[%s16716_s6 + $0x88c] ss:$16 sps:$4 sm:$0xff]   ;;  %v12589_v51 = vld [vmem:[%s16716_s6 + $0x880] ss:$16 sps:$4 sm:$0xff]  }
 0x432   :  { %9280 = vmatprep.subr.bf16.mxu0 %v12474_v13  ;;  %v5539_v13 = vld [vmem:[#allocation4 + $0x62] sm:$0x1] }
 0x433   :  { %8944 = vmatmul.mubr.bf16.vlgmr.msra.gmra.mrb[8].mxu1 %v5723_v21 }
 0x434   :  { %9272 = vmatmul.mubr.bf16.vlgmr.msra.gmra.mrb[24].mxu0 %v5723_v21  ;;  %8953 = vmatpush1.bf16.msra.mxu1 %v12469_v57  ;;  %v5498_v57 = vld [vmem:[#allocation4 + $0x1c] sm:$0x1]  ;;  %v12547_v21 = vld [vmem:[%s16716_s6 + $0x7a0] ss:$16 sps:$4 sm:$0xff]  }
 0x435   :  { %8984 = vmatprep.mubr.bf16.mxu1 %v5726_v5  ;;  %9281 = vmatpush1.bf16.msra.mxu0 %v12472_v9  ;;  %v5549_v9 = vmax.f32 %v5543_v7, %v5545_v4  ;;  %v12600_v7 = vld [vmem:[%s16716_s6 + $0x8ac] ss:$16 sps:$4 sm:$0xff]   ;;  %v12603_v4 = vld [vmem:[%s16716_s6 + $0x8c4] ss:$16 sps:$4 sm:$0xff]  }
 0x436   :  { %9312 = vmatprep.mubr.bf16.mxu0 %v5726_v5  ;;  %8954 = vmatprep.subr.bf16.mxu1 %v12477_v46  ;;  %v5500_v46 = vld [vmem:[#allocation4 + $0x1d] sm:$0x1]  ;;  %v12550_v5 = vld [vmem:[%s16716_s6 + $0x7a8] ss:$16 sps:$4 sm:$0xff]  }
 0x437   :  { %9282 = vmatprep.subr.bf16.mxu0 %v12480_v37  ;;  %v12555_v37 = vld [vmem:[%s16716_s6 + $0x7c4] ss:$16 sps:$4 sm:$0xff]  }
 0x438   :  { %8955 = vmatpush1.bf16.msra.mxu1 %v12475_v45  ;;  %v5494_v45 = vld [vmem:[#allocation4 + $0x14] sm:$0x1] }
 0x439   :  { %9283 = vmatpush1.bf16.msra.mxu0 %v12478_v1  ;;  %8956 = vmatprep.subr.bf16.mxu1 %v12483_v54  ;;  %v5507_v1 = vmax.f32 %v5503_v18, %v5505_v27  ;;  %v12558_v54 = vld [vmem:[%s16716_s6 + $0x7cc] ss:$16 sps:$4 sm:$0xff]   ;;  %v12607_v18 = vld [vmem:[%s16716_s6 + $0x8e0] ss:$16 sps:$4 sm:$0xff]  }
 0x43a   :  { %9284 = vmatprep.subr.bf16.mxu0 %v12486_v3  ;;  %v5547_v3 = vmax.f32 %v5539_v13, %v5541_v16  ;;  %v12606_v27 = vld [vmem:[%s16716_s6 + $0x8cc] ss:$16 sps:$4 sm:$0xff]   ;;  %v12604_v13 = vld [vmem:[%s16716_s6 + $0x8c8] ss:$16 sps:$4 sm:$0xff]   ;;  %v12609_v16 = vld [vmem:[%s16716_s6 + $0x8e4] ss:$16 sps:$4 sm:$0xff]  }
 0x43c   :  { %8957 = vmatpush1.bf16.msra.mxu1 %v12481_v48  ;;  %v5496_v48 = vld [vmem:[#allocation4 + $0x15] sm:$0x1] }
 0x43d   :  { %9285 = vmatpush1.bf16.msra.mxu0 %v12484_v20  ;;  %8958 = vmatprep.subr.bf16.mxu1 %v12489_v28  ;;  %v5542_v20 = vld [vmem:[#allocation4 + $0x2a] sm:$0x1]  ;;  %v5544_v28 = vld [vmem:[#allocation4 + $0x2b] sm:$0x1] }
 0x43e   :  { %9286 = vmatprep.subr.bf16.mxu0 %v12492_v61  ;;  %v5504_v61 = vmax.f32 %v5498_v57, %v5500_v46  ;;  %v12612_v57 = vld [vmem:[%s16716_s6 + $0x8ec] ss:$16 sps:$4 sm:$0xff]  }
 0x43f   :  { %v12618_v46 = vld [vmem:[%s16716_s6 + $0x90c] ss:$16 sps:$4 sm:$0xff]  }
 0x440   :  { %8959 = vmatpush1.bf16.msra.mxu1 %v12487_v53  ;;  %v12553_v53 = vld [vmem:[%s16716_s6 + $0x7c0] ss:$16 sps:$4 sm:$0xff]  }
 0x441   :  { %9287 = vmatpush1.bf16.msra.mxu0 %v12490_v40  ;;  %8960 = vmatprep.subr.bf16.mxu1 %v12495_v36  ;;  %v5538_v40 = vld [vmem:[#allocation4 + $0x22] sm:$0x1]  ;;  %v5551_v36 = vmax.f32 %v5547_v3, %v5549_v9  ;;  %v12615_v9 = vld [vmem:[%s16716_s6 + $0x904] ss:$16 sps:$4 sm:$0xff]   ;;  %v12622_v3 = vld [vmem:[%s16716_s6 + $0x928] ss:$16 sps:$4 sm:$0xff]  }
 0x442   :  { %9288 = vmatprep.subr.bf16.mxu0 %v12498_v32  ;;  %v12556_v32 = vld [vmem:[%s16716_s6 + $0x7c8] ss:$16 sps:$4 sm:$0xff]  }
 0x444   :  { %8961 = vmatpush1.bf16.msra.mxu1 %v12493_v34  ;;  %v12561_v34 = vld [vmem:[%s16716_s6 + $0x7e4] ss:$16 sps:$4 sm:$0xff]  }
 0x445   :  { %9289 = vmatpush1.bf16.msra.mxu0 %v12496_v30  ;;  %8962 = vmatprep.subr.bf16.mxu1 %v12501_v10  ;;  %v5540_v30 = vld [vmem:[#allocation4 + $0x23] sm:$0x1]  ;;  %v5502_v10 = vmax.f32 %v5494_v45, %v5496_v48  ;;  %v12621_v45 = vld [vmem:[%s16716_s6 + $0x924] ss:$16 sps:$4 sm:$0xff]  }
 0x446   :  { %9290 = vmatprep.subr.bf16.mxu0 %v12504_v50  ;;  %v12564_v50 = vld [vmem:[%s16716_s6 + $0x7ec] ss:$16 sps:$4 sm:$0xff]   ;;  %v12627_v48 = vld [vmem:[%s16716_s6 + $0x944] ss:$16 sps:$4 sm:$0xff]  }
 0x448   :  { %8963 = vmatpush1.bf16.msra.mxu1 %v12499_v11  ;;  %v5671_v11 = vrot.slane %v5507_v1, 7  ;;  %v12624_v1 = vld [vmem:[%s16716_s6 + $0x92c] ss:$16 sps:$4 sm:$0xff]  }
 0x449   :  { %9291 = vmatpush1.bf16.msra.mxu0 %v12502_v47  ;;  %8964 = vmatprep.subr.bf16.mxu1 %v12507_v15  ;;  %v5548_v47 = vmax.f32 %v5542_v20, %v5544_v28  ;;  %v12559_v15 = vld [vmem:[%s16716_s6 + $0x7e0] ss:$16 sps:$4 sm:$0xff]   ;;  %v12630_v20 = vld [vmem:[%s16716_s6 + $0x94c] ss:$16 sps:$4 sm:$0xff]  }
 0x44a   :  { %9292 = vmatprep.subr.bf16.mxu0 %v12510_v24  ;;  %v5506_v24 = vmax.f32 %v5502_v10, %v5504_v61  ;;  %v12625_v28 = vld [vmem:[%s16716_s6 + $0x940] ss:$16 sps:$4 sm:$0xff]   ;;  %v12628_v61 = vld [vmem:[%s16716_s6 + $0x948] ss:$16 sps:$4 sm:$0xff]  }
 0x44b   :  { %v5524_v10 = vld [vmem:[#allocation4 + $0x60] sm:$0x1] }
 0x44c   :  { %8965 = vmatpush1.bf16.msra.mxu1 %v12505_v14  ;;  %v5546_v14 = vmax.f32 %v5538_v40, %v5540_v30  ;;  %v12636_v40 = vld [vmem:[%s16716_s6 + $0x96c] ss:$16 sps:$4 sm:$0xff]  }
 0x44d   :  { %9293 = vmatpush1.bf16.msra.mxu0 %v12508_v25  ;;  %8966 = vmatprep.subr.bf16.mxu1 %v12513_v43  ;;  %v5686_v25 = vrot.slane %v5551_v36, 7  ;;  %v12562_v43 = vld [vmem:[%s16716_s6 + $0x7e8] ss:$16 sps:$4 sm:$0xff]   ;;  %v12631_v36 = vld [vmem:[%s16716_s6 + $0x960] ss:$16 sps:$4 sm:$0xff]  }
 0x44e   :  { %9294 = vmatprep.subr.bf16.mxu0 %v12516_v31  ;;  %v12567_v31 = vld [vmem:[%s16716_s6 + $0x804] ss:$16 sps:$4 sm:$0xff]   ;;  %v12642_v30 = vld [vmem:[%s16716_s6 + $0x98c] ss:$16 sps:$4 sm:$0xff]  }
 0x450   :  { %8967 = vmatpush1.bf16.msra.mxu1 %v12511_v12  ;;  %v5672_v12 = vsel %vm5641_vm1, %v5671_v11, %v5506_v24  ;;  %v5531_v11 = vld [vmem:[#allocation4 + $0x69] sm:$0x1]  ;;  %v5571_v24 = vld [vmem:[#allocation4 + $0x6e] sm:$0x1] }
 0x451   :  { %9295 = vmatpush1.bf16.msra.mxu0 %v12514_v35  ;;  %8968 = vmatprep.subr.bf16.mxu1 %v12519_v59  ;;  %v12570_v35 = vld [vmem:[%s16716_s6 + $0x80c] ss:$16 sps:$4 sm:$0xff]   ;;  %v5550_v59 = vmax.f32 %v5546_v14, %v5548_v47  ;;  %v5526_v47 = vld [vmem:[#allocation4 + $0x61] sm:$0x1]  ;;  %v12640_v14 = vld [vmem:[%s16716_s6 + $0x988] ss:$16 sps:$4 sm:$0xff]  }
 0x452   :  { %9296 = vmatprep.subr.bf16.mxu0 %v12522_v29  ;;  %v12565_v29 = vld [vmem:[%s16716_s6 + $0x800] ss:$16 sps:$4 sm:$0xff]  }
 0x454   :  { %8969 = vmatpush1.bf16.msra.mxu1 %v12517_v49  ;;  %v5687_v49 = vsel %vm5641_vm1, %v5686_v25, %v5550_v59  ;;  %v12645_v25 = vld [vmem:[%s16716_s6 + $0x9a4] ss:$16 sps:$4 sm:$0xff]  }
 0x455   :  { %9297 = vmatpush1.bf16.msra.mxu0 %v12520_v33  ;;  %8970 = vmatprep.subr.bf16.mxu1 %v12525_v38  ;;  %v5725_v33 = vpack.c.bf16 %v5672_v12, %v5672_v12  ;;  %v12568_v38 = vld [vmem:[%s16716_s6 + $0x808] ss:$16 sps:$4 sm:$0xff]   ;;  %v12648_v12 = vld [vmem:[%s16716_s6 + $0x9ac] ss:$16 sps:$4 sm:$0xff]   ;;  %v5569_v59 = vld [vmem:[#allocation4 + $0x67] sm:$0x1] }
 0x456   :  { %9298 = vmatprep.subr.bf16.mxu0 %v12528_v17  ;;  %v12573_v17 = vld [vmem:[%s16716_s6 + $0x824] ss:$16 sps:$4 sm:$0xff]  }
 0x458   :  { %8971 = vmatpush1.bf16.msra.mxu1 %v12523_v2  ;;  %v5728_v2 = vpack.c.bf16 %v5687_v49, %v5687_v49  ;;  %v5533_v49 = vmax.f32 %v5524_v10, %v5526_v47  ;;  %v12687_v10 = vld [vmem:[%s16716_s6 + $0xa84] ss:$16 sps:$4 sm:$0xff]   ;;  %v12688_v47 = vld [vmem:[%s16716_s6 + $0xa88] ss:$16 sps:$4 sm:$0xff]  }
 0x459   :  { %9299 = vmatpush1.bf16.msra.mxu0 %v12526_v60  ;;  %8972 = vmatprep.subr.bf16.mxu1 %v12531_v56  ;;  %v12576_v60 = vld [vmem:[%s16716_s6 + $0x82c] ss:$16 sps:$4 sm:$0xff]   ;;  %v12571_v56 = vld [vmem:[%s16716_s6 + $0x820] ss:$16 sps:$4 sm:$0xff]  }
 0x45a   :  { %9300 = vmatprep.subr.bf16.mxu0 %v12534_v8  ;;  %v12574_v8 = vld [vmem:[%s16716_s6 + $0x828] ss:$16 sps:$4 sm:$0xff]  }
 0x45c   :  { %8973 = vmatpush1.bf16.msra.mxu1 %v12529_v39  ;;  %v12579_v39 = vld [vmem:[%s16716_s6 + $0x844] ss:$16 sps:$4 sm:$0xff]  }
 0x45d   :  { %9301 = vmatpush1.bf16.msra.mxu0 %v12532_v23  ;;  %8974 = vmatprep.subr.bf16.mxu1 %v12537_v44  ;;  %v12582_v23 = vld [vmem:[%s16716_s6 + $0x84c] ss:$16 sps:$4 sm:$0xff]   ;;  %v12577_v44 = vld [vmem:[%s16716_s6 + $0x840] ss:$16 sps:$4 sm:$0xff]  }
 0x45e   :  { %9302 = vmatprep.subr.bf16.mxu0 %v12540_v62  ;;  %v12580_v62 = vld [vmem:[%s16716_s6 + $0x848] ss:$16 sps:$4 sm:$0xff]  }
 0x460   :  { %8975 = vmatpush1.bf16.msra.mxu1 %v12535_v58  ;;  %v12585_v58 = vld [vmem:[%s16716_s6 + $0x864] ss:$16 sps:$4 sm:$0xff]  }
 0x461   :  { %9303 = vmatpush1.bf16.msra.mxu0 %v12538_v26  ;;  %8976 = vmatprep.subr.bf16.mxu1 %v12543_v0  ;;  %v12588_v26 = vld [vmem:[%s16716_s6 + $0x86c] ss:$16 sps:$4 sm:$0xff]   ;;  %v12583_v0 = vld [vmem:[%s16716_s6 + $0x860] ss:$16 sps:$4 sm:$0xff]  }
 0x462   :  { %9304 = vmatprep.subr.bf16.mxu0 %v12546_v41  ;;  %v12586_v41 = vld [vmem:[%s16716_s6 + $0x868] ss:$16 sps:$4 sm:$0xff]  }
 0x464   :  { %8977 = vmatpush1.bf16.msra.mxu1 %v12541_v6  ;;  %v12597_v6 = vld [vmem:[%s16716_s6 + $0x8a4] ss:$16 sps:$4 sm:$0xff]  }
 0x465   :  { %9305 = vmatpush1.bf16.msra.mxu0 %v12544_v52  ;;  %8978 = vmatprep.subr.bf16.mxu1 %v12549_v55  ;;  %v12595_v52 = vld [vmem:[%s16716_s6 + $0x8a0] ss:$16 sps:$4 sm:$0xff]   ;;  %v12598_v55 = vld [vmem:[%s16716_s6 + $0x8a8] ss:$16 sps:$4 sm:$0xff]  }
 0x466   :  { %9306 = vmatprep.subr.bf16.mxu0 %v12552_v42  ;;  %v12601_v42 = vld [vmem:[%s16716_s6 + $0x8c0] ss:$16 sps:$4 sm:$0xff]  }
 0x468   :  { %8979 = vmatpush1.bf16.msra.mxu1 %v12547_v21  ;;  %v12610_v21 = vld [vmem:[%s16716_s6 + $0x8e8] ss:$16 sps:$4 sm:$0xff]  }
 0x469   :  { %9307 = vmatpush1.bf16.msra.mxu0 %v12550_v5  ;;  %8980 = vmatprep.subr.bf16.mxu1 %v12555_v37  ;;  %v12613_v5 = vld [vmem:[%s16716_s6 + $0x900] ss:$16 sps:$4 sm:$0xff]   ;;  %v12616_v37 = vld [vmem:[%s16716_s6 + $0x908] ss:$16 sps:$4 sm:$0xff]  }
 0x46a   :  { %9308 = vmatprep.subr.bf16.mxu0 %v12558_v54  ;;  %v12619_v54 = vld [vmem:[%s16716_s6 + $0x920] ss:$16 sps:$4 sm:$0xff]  }
 0x46c   :  { %8981 = vmatpush1.bf16.msra.mxu1 %v12553_v53  ;;  %v12633_v53 = vld [vmem:[%s16716_s6 + $0x964] ss:$16 sps:$4 sm:$0xff]  }
 0x46d   :  { %9309 = vmatpush1.bf16.msra.mxu0 %v12556_v32  ;;  %8982 = vmatprep.subr.bf16.mxu1 %v12561_v34  ;;  %v12634_v32 = vld [vmem:[%s16716_s6 + $0x968] ss:$16 sps:$4 sm:$0xff]   ;;  %v12639_v34 = vld [vmem:[%s16716_s6 + $0x984] ss:$16 sps:$4 sm:$0xff]  }
 0x46e   :  { %9310 = vmatprep.subr.bf16.mxu0 %v12564_v50  ;;  %v5529_v50 = vld [vmem:[#allocation4 + $0x68] sm:$0x1] }
 0x470   :  { %8983 = vmatpush1.bf16.msra.mxu1 %v12559_v15  ;;  %v12637_v15 = vld [vmem:[%s16716_s6 + $0x980] ss:$16 sps:$4 sm:$0xff]  }
 0x471   :  { %9311 = vmatpush1.bf16.msra.mxu0 %v12562_v43  ;;  %8993 = vmatprep.subr.bf16.mxu1 %v12567_v31  ;;  %v5573_v43 = vld [vmem:[#allocation4 + $0x6f] sm:$0x1]  ;;  %v5535_v31 = vmax.f32 %v5529_v50, %v5531_v11  ;;  %v12685_v11 = vld [vmem:[%s16716_s6 + $0xa80] ss:$16 sps:$4 sm:$0xff]  }
 0x472   :  { %9321 = vmatprep.subr.bf16.mxu0 %v12570_v35  ;;  %v5567_v35 = vld [vmem:[#allocation4 + $0x66] sm:$0x1]  ;;  %v12690_v50 = vld [vmem:[%s16716_s6 + $0xa8c] ss:$16 sps:$4 sm:$0xff]  }
 0x473   :  { %8985 = vmatmul.mubr.bf16.vlgmr.msra.gmra.mrb[8].mxu1 %v5725_v33 }
 0x474   :  { %9313 = vmatmul.mubr.bf16.vlgmr.msra.gmra.mrb[24].mxu0 %v5725_v33  ;;  %8994 = vmatpush1.bf16.msra.mxu1 %v12565_v29  ;;  %v5528_v29 = vld [vmem:[#allocation4 + $0x28] sm:$0x1]  ;;  %v12643_v33 = vld [vmem:[%s16716_s6 + $0x9a0] ss:$16 sps:$4 sm:$0xff]  }
 0x475   :  { %9025 = vmatprep.mubr.bf16.mxu1 %v5728_v2  ;;  %9322 = vmatpush1.bf16.msra.mxu0 %v12568_v38  ;;  %v5577_v38 = vmax.f32 %v5571_v24, %v5573_v43  ;;  %v12696_v24 = vld [vmem:[%s16716_s6 + $0xaac] ss:$16 sps:$4 sm:$0xff]   ;;  %v12699_v43 = vld [vmem:[%s16716_s6 + $0xac4] ss:$16 sps:$4 sm:$0xff]  }
 0x476   :  { %9353 = vmatprep.mubr.bf16.mxu0 %v5728_v2  ;;  %8995 = vmatprep.subr.bf16.mxu1 %v12573_v17  ;;  %v5530_v17 = vld [vmem:[#allocation4 + $0x29] sm:$0x1] }
 0x477   :  { %9323 = vmatprep.subr.bf16.mxu0 %v12576_v60  ;;  %v12646_v2 = vld [vmem:[%s16716_s6 + $0x9a8] ss:$16 sps:$4 sm:$0xff]   ;;  %v12651_v60 = vld [vmem:[%s16716_s6 + $0x9c4] ss:$16 sps:$4 sm:$0xff]  }
 0x478   :  { %8996 = vmatpush1.bf16.msra.mxu1 %v12571_v56  ;;  %v5523_v56 = vld [vmem:[#allocation4 + $0x20] sm:$0x1] }
 0x479   :  { %9324 = vmatpush1.bf16.msra.mxu0 %v12574_v8  ;;  %8997 = vmatprep.subr.bf16.mxu1 %v12579_v39  ;;  %v5537_v8 = vmax.f32 %v5533_v49, %v5535_v31  ;;  %v12654_v39 = vld [vmem:[%s16716_s6 + $0x9cc] ss:$16 sps:$4 sm:$0xff]   ;;  %v12703_v49 = vld [vmem:[%s16716_s6 + $0xae0] ss:$16 sps:$4 sm:$0xff]  }
 0x47a   :  { %9325 = vmatprep.subr.bf16.mxu0 %v12582_v23  ;;  %v5575_v23 = vmax.f32 %v5567_v35, %v5569_v59  ;;  %v12702_v31 = vld [vmem:[%s16716_s6 + $0xacc] ss:$16 sps:$4 sm:$0xff]   ;;  %v12700_v35 = vld [vmem:[%s16716_s6 + $0xac8] ss:$16 sps:$4 sm:$0xff]   ;;  %v12705_v59 = vld [vmem:[%s16716_s6 + $0xae4] ss:$16 sps:$4 sm:$0xff]  }
 0x47c   :  { %8998 = vmatpush1.bf16.msra.mxu1 %v12577_v44  ;;  %v5525_v44 = vld [vmem:[#allocation4 + $0x21] sm:$0x1] }
 0x47d   :  { %9326 = vmatpush1.bf16.msra.mxu0 %v12580_v62  ;;  %8999 = vmatprep.subr.bf16.mxu1 %v12585_v58  ;;  %v5570_v62 = vld [vmem:[#allocation4 + $0x2e] sm:$0x1]  ;;  %v5572_v58 = vld [vmem:[#allocation4 + $0x2f] sm:$0x1] }
 0x47e   :  { %9327 = vmatprep.subr.bf16.mxu0 %v12588_v26  ;;  %v5534_v26 = vmax.f32 %v5528_v29, %v5530_v17  ;;  %v12708_v29 = vld [vmem:[%s16716_s6 + $0xaec] ss:$16 sps:$4 sm:$0xff]  }
 0x47f   :  { %v12714_v17 = vld [vmem:[%s16716_s6 + $0xb0c] ss:$16 sps:$4 sm:$0xff]  }
 0x480   :  { %9000 = vmatpush1.bf16.msra.mxu1 %v12583_v0  ;;  %v12649_v0 = vld [vmem:[%s16716_s6 + $0x9c0] ss:$16 sps:$4 sm:$0xff]  }
 0x481   :  { %9328 = vmatpush1.bf16.msra.mxu0 %v12586_v41  ;;  %9001 = vmatprep.subr.bf16.mxu1 %v12591_v22  ;;  %v5566_v41 = vld [vmem:[#allocation4 + $0x26] sm:$0x1]  ;;  %v5579_v22 = vmax.f32 %v5575_v23, %v5577_v38  ;;  %v12718_v23 = vld [vmem:[%s16716_s6 + $0xb28] ss:$16 sps:$4 sm:$0xff]  }
 0x482   :  { %9329 = vmatprep.subr.bf16.mxu0 %v12594_v63  ;;  %v12652_v63 = vld [vmem:[%s16716_s6 + $0x9c8] ss:$16 sps:$4 sm:$0xff]   ;;  %v12711_v38 = vld [vmem:[%s16716_s6 + $0xb04] ss:$16 sps:$4 sm:$0xff]  }
 0x484   :  { %9002 = vmatpush1.bf16.msra.mxu1 %v12589_v51  ;;  %v12657_v51 = vld [vmem:[%s16716_s6 + $0x9e4] ss:$16 sps:$4 sm:$0xff]  }
 0x485   :  { %9330 = vmatpush1.bf16.msra.mxu0 %v12592_v19  ;;  %9003 = vmatprep.subr.bf16.mxu1 %v12597_v6  ;;  %v5568_v19 = vld [vmem:[#allocation4 + $0x27] sm:$0x1]  ;;  %v5532_v6 = vmax.f32 %v5523_v56, %v5525_v44 }
 0x486   :  { %9331 = vmatprep.subr.bf16.mxu0 %v12600_v7  ;;  %v12660_v7 = vld [vmem:[%s16716_s6 + $0x9ec] ss:$16 sps:$4 sm:$0xff]   ;;  %v12717_v56 = vld [vmem:[%s16716_s6 + $0xb24] ss:$16 sps:$4 sm:$0xff]  }
 0x487   :  { %v12723_v44 = vld [vmem:[%s16716_s6 + $0xb44] ss:$16 sps:$4 sm:$0xff]  }
 0x488   :  { %9004 = vmatpush1.bf16.msra.mxu1 %v12595_v52  ;;  %v5681_v52 = vrot.slane %v5537_v8, 7  ;;  %v12720_v8 = vld [vmem:[%s16716_s6 + $0xb2c] ss:$16 sps:$4 sm:$0xff]  }
 0x489   :  { %9332 = vmatpush1.bf16.msra.mxu0 %v12598_v55  ;;  %9005 = vmatprep.subr.bf16.mxu1 %v12603_v4  ;;  %v5576_v55 = vmax.f32 %v5570_v62, %v5572_v58  ;;  %v12655_v4 = vld [vmem:[%s16716_s6 + $0x9e0] ss:$16 sps:$4 sm:$0xff]   ;;  %v12726_v62 = vld [vmem:[%s16716_s6 + $0xb4c] ss:$16 sps:$4 sm:$0xff]  }
 0x48a   :  { %9333 = vmatprep.subr.bf16.mxu0 %v12606_v27  ;;  %v5536_v27 = vmax.f32 %v5532_v6, %v5534_v26  ;;  %v12721_v58 = vld [vmem:[%s16716_s6 + $0xb40] ss:$16 sps:$4 sm:$0xff]   ;;  %v12724_v26 = vld [vmem:[%s16716_s6 + $0xb48] ss:$16 sps:$4 sm:$0xff]   ;;  %v5553_v6 = vld [vmem:[#allocation4 + $0x64] sm:$0x1] }
 0x48c   :  { %9006 = vmatpush1.bf16.msra.mxu1 %v12601_v42  ;;  %v5574_v42 = vmax.f32 %v5566_v41, %v5568_v19  ;;  %v12732_v41 = vld [vmem:[%s16716_s6 + $0xb6c] ss:$16 sps:$4 sm:$0xff]  }
 0x48d   :  { %9334 = vmatpush1.bf16.msra.mxu0 %v12604_v13  ;;  %9007 = vmatprep.subr.bf16.mxu1 %v12609_v16  ;;  %v5696_v13 = vrot.slane %v5579_v22, 7  ;;  %v12658_v16 = vld [vmem:[%s16716_s6 + $0x9e8] ss:$16 sps:$4 sm:$0xff]   ;;  %v12727_v22 = vld [vmem:[%s16716_s6 + $0xb60] ss:$16 sps:$4 sm:$0xff]  }
 0x48e   :  { %9335 = vmatprep.subr.bf16.mxu0 %v12612_v57  ;;  %v12663_v57 = vld [vmem:[%s16716_s6 + $0xa04] ss:$16 sps:$4 sm:$0xff]   ;;  %v12738_v19 = vld [vmem:[%s16716_s6 + $0xb8c] ss:$16 sps:$4 sm:$0xff]  }
 0x490   :  { %9008 = vmatpush1.bf16.msra.mxu1 %v12607_v18  ;;  %v5682_v18 = vsel %vm5641_vm1, %v5681_v52, %v5536_v27  ;;  %v5559_v52 = vld [vmem:[#allocation4 + $0x6d] sm:$0x1]  ;;  %v5601_v27 = vld [vmem:[#allocation4 + $0x7a] sm:$0x1] }
 0x491   :  { %9336 = vmatpush1.bf16.msra.mxu0 %v12610_v21  ;;  %9009 = vmatprep.subr.bf16.mxu1 %v12615_v9  ;;  %v12666_v21 = vld [vmem:[%s16716_s6 + $0xa0c] ss:$16 sps:$4 sm:$0xff]   ;;  %v5578_v9 = vmax.f32 %v5574_v42, %v5576_v55  ;;  %v5555_v55 = vld [vmem:[#allocation4 + $0x65] sm:$0x1]  ;;  %v12736_v42 = vld [vmem:[%s16716_s6 + $0xb88] ss:$16 sps:$4 sm:$0xff]  }
 0x492   :  { %9337 = vmatprep.subr.bf16.mxu0 %v12618_v46  ;;  %v12661_v46 = vld [vmem:[%s16716_s6 + $0xa00] ss:$16 sps:$4 sm:$0xff]  }
 0x494   :  { %9010 = vmatpush1.bf16.msra.mxu1 %v12613_v5  ;;  %v5697_v5 = vsel %vm5641_vm1, %v5696_v13, %v5578_v9  ;;  %v12741_v13 = vld [vmem:[%s16716_s6 + $0xba4] ss:$16 sps:$4 sm:$0xff]   ;;  %v5599_v9 = vld [vmem:[#allocation4 + $0x73] sm:$0x1] }
 0x495   :  { %9338 = vmatpush1.bf16.msra.mxu0 %v12616_v37  ;;  %9011 = vmatprep.subr.bf16.mxu1 %v12621_v45  ;;  %v5727_v37 = vpack.c.bf16 %v5682_v18, %v5682_v18  ;;  %v12664_v45 = vld [vmem:[%s16716_s6 + $0xa08] ss:$16 sps:$4 sm:$0xff]   ;;  %v12744_v18 = vld [vmem:[%s16716_s6 + $0xbac] ss:$16 sps:$4 sm:$0xff]  }
 0x496   :  { %9339 = vmatprep.subr.bf16.mxu0 %v12624_v1  ;;  %v12669_v1 = vld [vmem:[%s16716_s6 + $0xa24] ss:$16 sps:$4 sm:$0xff]  }
 0x498   :  { %9012 = vmatpush1.bf16.msra.mxu1 %v12619_v54  ;;  %v5730_v54 = vpack.c.bf16 %v5697_v5, %v5697_v5  ;;  %v5561_v5 = vmax.f32 %v5553_v6, %v5555_v55  ;;  %v12783_v6 = vld [vmem:[%s16716_s6 + $0xc84] ss:$16 sps:$4 sm:$0xff]   ;;  %v12784_v55 = vld [vmem:[%s16716_s6 + $0xc88] ss:$16 sps:$4 sm:$0xff]  }
 0x499   :  { %9340 = vmatpush1.bf16.msra.mxu0 %v12622_v3  ;;  %9013 = vmatprep.subr.bf16.mxu1 %v12627_v48  ;;  %v12672_v3 = vld [vmem:[%s16716_s6 + $0xa2c] ss:$16 sps:$4 sm:$0xff]   ;;  %v12667_v48 = vld [vmem:[%s16716_s6 + $0xa20] ss:$16 sps:$4 sm:$0xff]  }
 0x49a   :  { %9341 = vmatprep.subr.bf16.mxu0 %v12630_v20  ;;  %v12670_v20 = vld [vmem:[%s16716_s6 + $0xa28] ss:$16 sps:$4 sm:$0xff]  }
 0x49c   :  { %9014 = vmatpush1.bf16.msra.mxu1 %v12625_v28  ;;  %v12675_v28 = vld [vmem:[%s16716_s6 + $0xa44] ss:$16 sps:$4 sm:$0xff]  }
 0x49d   :  { %9342 = vmatpush1.bf16.msra.mxu0 %v12628_v61  ;;  %9015 = vmatprep.subr.bf16.mxu1 %v12633_v53  ;;  %v12678_v61 = vld [vmem:[%s16716_s6 + $0xa4c] ss:$16 sps:$4 sm:$0xff]   ;;  %v12673_v53 = vld [vmem:[%s16716_s6 + $0xa40] ss:$16 sps:$4 sm:$0xff]  }
 0x49e   :  { %9343 = vmatprep.subr.bf16.mxu0 %v12636_v40  ;;  %v12676_v40 = vld [vmem:[%s16716_s6 + $0xa48] ss:$16 sps:$4 sm:$0xff]  }
 0x4a0   :  { %9016 = vmatpush1.bf16.msra.mxu1 %v12631_v36  ;;  %v12681_v36 = vld [vmem:[%s16716_s6 + $0xa64] ss:$16 sps:$4 sm:$0xff]  }
 0x4a1   :  { %9344 = vmatpush1.bf16.msra.mxu0 %v12634_v32  ;;  %9017 = vmatprep.subr.bf16.mxu1 %v12639_v34  ;;  %v12684_v32 = vld [vmem:[%s16716_s6 + $0xa6c] ss:$16 sps:$4 sm:$0xff]   ;;  %v12679_v34 = vld [vmem:[%s16716_s6 + $0xa60] ss:$16 sps:$4 sm:$0xff]  }
 0x4a2   :  { %9345 = vmatprep.subr.bf16.mxu0 %v12642_v30  ;;  %v12682_v30 = vld [vmem:[%s16716_s6 + $0xa68] ss:$16 sps:$4 sm:$0xff]  }
 0x4a4   :  { %9018 = vmatpush1.bf16.msra.mxu1 %v12637_v15  ;;  %v12693_v15 = vld [vmem:[%s16716_s6 + $0xaa4] ss:$16 sps:$4 sm:$0xff]  }
 0x4a5   :  { %9346 = vmatpush1.bf16.msra.mxu0 %v12640_v14  ;;  %9019 = vmatprep.subr.bf16.mxu1 %v12645_v25  ;;  %v12691_v14 = vld [vmem:[%s16716_s6 + $0xaa0] ss:$16 sps:$4 sm:$0xff]   ;;  %v12694_v25 = vld [vmem:[%s16716_s6 + $0xaa8] ss:$16 sps:$4 sm:$0xff]  }
 0x4a6   :  { %9347 = vmatprep.subr.bf16.mxu0 %v12648_v12  ;;  %v12697_v12 = vld [vmem:[%s16716_s6 + $0xac0] ss:$16 sps:$4 sm:$0xff]  }
 0x4a8   :  { %9020 = vmatpush1.bf16.msra.mxu1 %v12643_v33  ;;  %v12706_v33 = vld [vmem:[%s16716_s6 + $0xae8] ss:$16 sps:$4 sm:$0xff]  }
 0x4a9   :  { %9348 = vmatpush1.bf16.msra.mxu0 %v12646_v2  ;;  %9021 = vmatprep.subr.bf16.mxu1 %v12651_v60  ;;  %v12709_v2 = vld [vmem:[%s16716_s6 + $0xb00] ss:$16 sps:$4 sm:$0xff]   ;;  %v12712_v60 = vld [vmem:[%s16716_s6 + $0xb08] ss:$16 sps:$4 sm:$0xff]  }
 0x4aa   :  { %9349 = vmatprep.subr.bf16.mxu0 %v12654_v39  ;;  %v12715_v39 = vld [vmem:[%s16716_s6 + $0xb20] ss:$16 sps:$4 sm:$0xff]  }
 0x4ac   :  { %9022 = vmatpush1.bf16.msra.mxu1 %v12649_v0  ;;  %v12729_v0 = vld [vmem:[%s16716_s6 + $0xb64] ss:$16 sps:$4 sm:$0xff]  }
 0x4ad   :  { %9350 = vmatpush1.bf16.msra.mxu0 %v12652_v63  ;;  %9023 = vmatprep.subr.bf16.mxu1 %v12657_v51  ;;  %v12730_v63 = vld [vmem:[%s16716_s6 + $0xb68] ss:$16 sps:$4 sm:$0xff]   ;;  %v12735_v51 = vld [vmem:[%s16716_s6 + $0xb84] ss:$16 sps:$4 sm:$0xff]  }
 0x4ae   :  { %9351 = vmatprep.subr.bf16.mxu0 %v12660_v7  ;;  %v5557_v7 = vld [vmem:[#allocation4 + $0x6c] sm:$0x1] }
 0x4b0   :  { %9024 = vmatpush1.bf16.msra.mxu1 %v12655_v4  ;;  %v12733_v4 = vld [vmem:[%s16716_s6 + $0xb80] ss:$16 sps:$4 sm:$0xff]  }
 0x4b1   :  { %9352 = vmatpush1.bf16.msra.mxu0 %v12658_v16  ;;  %9034 = vmatprep.subr.bf16.mxu1 %v12663_v57  ;;  %v5603_v16 = vld [vmem:[#allocation4 + $0x7b] sm:$0x1]  ;;  %v5563_v57 = vmax.f32 %v5557_v7, %v5559_v52  ;;  %v12786_v7 = vld [vmem:[%s16716_s6 + $0xc8c] ss:$16 sps:$4 sm:$0xff]   ;;  %v12781_v52 = vld [vmem:[%s16716_s6 + $0xc80] ss:$16 sps:$4 sm:$0xff]  }
 0x4b2   :  { %9362 = vmatprep.subr.bf16.mxu0 %v12666_v21  ;;  %v5597_v21 = vld [vmem:[#allocation4 + $0x72] sm:$0x1] }
 0x4b3   :  { %9026 = vmatmul.mubr.bf16.vlgmr.msra.gmra.mrb[8].mxu1 %v5727_v37 }
 0x4b4   :  { %9354 = vmatmul.mubr.bf16.vlgmr.msra.gmra.mrb[24].mxu0 %v5727_v37  ;;  %9035 = vmatpush1.bf16.msra.mxu1 %v12661_v46  ;;  %v5556_v46 = vld [vmem:[#allocation4 + $0x2c] sm:$0x1]  ;;  %v12739_v37 = vld [vmem:[%s16716_s6 + $0xba0] ss:$16 sps:$4 sm:$0xff]  }
 0x4b5   :  { %9066 = vmatprep.mubr.bf16.mxu1 %v5730_v54  ;;  %9363 = vmatpush1.bf16.msra.mxu0 %v12664_v45  ;;  %v5607_v45 = vmax.f32 %v5601_v27, %v5603_v16  ;;  %v12792_v27 = vld [vmem:[%s16716_s6 + $0xcac] ss:$16 sps:$4 sm:$0xff]   ;;  %v12795_v16 = vld [vmem:[%s16716_s6 + $0xcc4] ss:$16 sps:$4 sm:$0xff]  }
 0x4b6   :  { %9394 = vmatprep.mubr.bf16.mxu0 %v5730_v54  ;;  %9036 = vmatprep.subr.bf16.mxu1 %v12669_v1  ;;  %v5558_v1 = vld [vmem:[#allocation4 + $0x2d] sm:$0x1]  ;;  %v12742_v54 = vld [vmem:[%s16716_s6 + $0xba8] ss:$16 sps:$4 sm:$0xff]  }
 0x4b7   :  { %9364 = vmatprep.subr.bf16.mxu0 %v12672_v3  ;;  %v12747_v3 = vld [vmem:[%s16716_s6 + $0xbc4] ss:$16 sps:$4 sm:$0xff]  }
 0x4b8   :  { %9037 = vmatpush1.bf16.msra.mxu1 %v12667_v48  ;;  %v5552_v48 = vld [vmem:[#allocation4 + $0x24] sm:$0x1] }
 0x4b9   :  { %9365 = vmatpush1.bf16.msra.mxu0 %v12670_v20  ;;  %9038 = vmatprep.subr.bf16.mxu1 %v12675_v28  ;;  %v5565_v20 = vmax.f32 %v5561_v5, %v5563_v57  ;;  %v12750_v28 = vld [vmem:[%s16716_s6 + $0xbcc] ss:$16 sps:$4 sm:$0xff]   ;;  %v12799_v5 = vld [vmem:[%s16716_s6 + $0xce0] ss:$16 sps:$4 sm:$0xff]  }
 0x4ba   :  { %9366 = vmatprep.subr.bf16.mxu0 %v12678_v61  ;;  %v5605_v61 = vmax.f32 %v5597_v21, %v5599_v9  ;;  %v12798_v57 = vld [vmem:[%s16716_s6 + $0xccc] ss:$16 sps:$4 sm:$0xff]   ;;  %v12796_v21 = vld [vmem:[%s16716_s6 + $0xcc8] ss:$16 sps:$4 sm:$0xff]   ;;  %v12801_v9 = vld [vmem:[%s16716_s6 + $0xce4] ss:$16 sps:$4 sm:$0xff]  }
 0x4bc   :  { %9039 = vmatpush1.bf16.msra.mxu1 %v12673_v53  ;;  %v5554_v53 = vld [vmem:[#allocation4 + $0x25] sm:$0x1] }
 0x4bd   :  { %9367 = vmatpush1.bf16.msra.mxu0 %v12676_v40  ;;  %9040 = vmatprep.subr.bf16.mxu1 %v12681_v36  ;;  %v5600_v40 = vld [vmem:[#allocation4 + $0x3a] sm:$0x1]  ;;  %v5602_v36 = vld [vmem:[#allocation4 + $0x3b] sm:$0x1] }
 0x4be   :  { %9368 = vmatprep.subr.bf16.mxu0 %v12684_v32  ;;  %v5562_v32 = vmax.f32 %v5556_v46, %v5558_v1  ;;  %v12804_v46 = vld [vmem:[%s16716_s6 + $0xcec] ss:$16 sps:$4 sm:$0xff]  }
 0x4bf   :  { %v12810_v1 = vld [vmem:[%s16716_s6 + $0xd0c] ss:$16 sps:$4 sm:$0xff]  }
 0x4c0   :  { %9041 = vmatpush1.bf16.msra.mxu1 %v12679_v34  ;;  %v12745_v34 = vld [vmem:[%s16716_s6 + $0xbc0] ss:$16 sps:$4 sm:$0xff]  }
 0x4c1   :  { %9369 = vmatpush1.bf16.msra.mxu0 %v12682_v30  ;;  %9042 = vmatprep.subr.bf16.mxu1 %v12687_v10  ;;  %v5596_v30 = vld [vmem:[#allocation4 + $0x32] sm:$0x1]  ;;  %v5609_v10 = vmax.f32 %v5605_v61, %v5607_v45  ;;  %v12807_v45 = vld [vmem:[%s16716_s6 + $0xd04] ss:$16 sps:$4 sm:$0xff]   ;;  %v12814_v61 = vld [vmem:[%s16716_s6 + $0xd28] ss:$16 sps:$4 sm:$0xff]  }
 0x4c2   :  { %9370 = vmatprep.subr.bf16.mxu0 %v12690_v50  ;;  %v12748_v50 = vld [vmem:[%s16716_s6 + $0xbc8] ss:$16 sps:$4 sm:$0xff]  }
 0x4c4   :  { %9043 = vmatpush1.bf16.msra.mxu1 %v12685_v11  ;;  %v12753_v11 = vld [vmem:[%s16716_s6 + $0xbe4] ss:$16 sps:$4 sm:$0xff]  }
 0x4c5   :  { %9371 = vmatpush1.bf16.msra.mxu0 %v12688_v47  ;;  %9044 = vmatprep.subr.bf16.mxu1 %v12693_v15  ;;  %v5598_v47 = vld [vmem:[#allocation4 + $0x33] sm:$0x1]  ;;  %v5560_v15 = vmax.f32 %v5552_v48, %v5554_v53  ;;  %v12813_v48 = vld [vmem:[%s16716_s6 + $0xd24] ss:$16 sps:$4 sm:$0xff]  }
 0x4c6   :  { %9372 = vmatprep.subr.bf16.mxu0 %v12696_v24  ;;  %v12756_v24 = vld [vmem:[%s16716_s6 + $0xbec] ss:$16 sps:$4 sm:$0xff]   ;;  %v12819_v53 = vld [vmem:[%s16716_s6 + $0xd44] ss:$16 sps:$4 sm:$0xff]  }
 0x4c8   :  { %9045 = vmatpush1.bf16.msra.mxu1 %v12691_v14  ;;  %v5691_v14 = vrot.slane %v5565_v20, 7  ;;  %v12816_v20 = vld [vmem:[%s16716_s6 + $0xd2c] ss:$16 sps:$4 sm:$0xff]  }
 0x4c9   :  { %9373 = vmatpush1.bf16.msra.mxu0 %v12694_v25  ;;  %9046 = vmatprep.subr.bf16.mxu1 %v12699_v43  ;;  %v5606_v25 = vmax.f32 %v5600_v40, %v5602_v36  ;;  %v12751_v43 = vld [vmem:[%s16716_s6 + $0xbe0] ss:$16 sps:$4 sm:$0xff]   ;;  %v12822_v40 = vld [vmem:[%s16716_s6 + $0xd4c] ss:$16 sps:$4 sm:$0xff]  }
 0x4ca   :  { %9374 = vmatprep.subr.bf16.mxu0 %v12702_v31  ;;  %v5564_v31 = vmax.f32 %v5560_v15, %v5562_v32  ;;  %v12817_v36 = vld [vmem:[%s16716_s6 + $0xd40] ss:$16 sps:$4 sm:$0xff]   ;;  %v12820_v32 = vld [vmem:[%s16716_s6 + $0xd48] ss:$16 sps:$4 sm:$0xff]  }
 0x4cb   :  { %v5582_v15 = vld [vmem:[#allocation4 + $0x70] sm:$0x1] }
 0x4cc   :  { %9047 = vmatpush1.bf16.msra.mxu1 %v12697_v12  ;;  %v5604_v12 = vmax.f32 %v5596_v30, %v5598_v47  ;;  %v12828_v30 = vld [vmem:[%s16716_s6 + $0xd6c] ss:$16 sps:$4 sm:$0xff]  }
 0x4cd   :  { %9375 = vmatpush1.bf16.msra.mxu0 %v12700_v35  ;;  %9048 = vmatprep.subr.bf16.mxu1 %v12705_v59  ;;  %v5706_v35 = vrot.slane %v5609_v10, 7  ;;  %v12754_v59 = vld [vmem:[%s16716_s6 + $0xbe8] ss:$16 sps:$4 sm:$0xff]   ;;  %v12823_v10 = vld [vmem:[%s16716_s6 + $0xd60] ss:$16 sps:$4 sm:$0xff]  }
 0x4ce   :  { %9376 = vmatprep.subr.bf16.mxu0 %v12708_v29  ;;  %v12759_v29 = vld [vmem:[%s16716_s6 + $0xc04] ss:$16 sps:$4 sm:$0xff]   ;;  %v12834_v47 = vld [vmem:[%s16716_s6 + $0xd8c] ss:$16 sps:$4 sm:$0xff]  }
 0x4d0   :  { %9049 = vmatpush1.bf16.msra.mxu1 %v12703_v49  ;;  %v5692_v49 = vsel %vm5641_vm1, %v5691_v14, %v5564_v31  ;;  %v5589_v14 = vld [vmem:[#allocation4 + $0x79] sm:$0x1]  ;;  %v5629_v31 = vld [vmem:[#allocation4 + $0x7e] sm:$0x1] }
 0x4d1   :  { %9377 = vmatpush1.bf16.msra.mxu0 %v12706_v33  ;;  %9050 = vmatprep.subr.bf16.mxu1 %v12711_v38  ;;  %v12762_v33 = vld [vmem:[%s16716_s6 + $0xc0c] ss:$16 sps:$4 sm:$0xff]   ;;  %v5608_v38 = vmax.f32 %v5604_v12, %v5606_v25  ;;  %v5584_v25 = vld [vmem:[#allocation4 + $0x71] sm:$0x1]  ;;  %v12832_v12 = vld [vmem:[%s16716_s6 + $0xd88] ss:$16 sps:$4 sm:$0xff]  }
 0x4d2   :  { %9378 = vmatprep.subr.bf16.mxu0 %v12714_v17  ;;  %v12757_v17 = vld [vmem:[%s16716_s6 + $0xc00] ss:$16 sps:$4 sm:$0xff]  }
 0x4d4   :  { %9051 = vmatpush1.bf16.msra.mxu1 %v12709_v2  ;;  %v5707_v2 = vsel %vm5641_vm1, %v5706_v35, %v5608_v38  ;;  %v12837_v35 = vld [vmem:[%s16716_s6 + $0xda4] ss:$16 sps:$4 sm:$0xff]  }
 0x4d5   :  { %9379 = vmatpush1.bf16.msra.mxu0 %v12712_v60  ;;  %9052 = vmatprep.subr.bf16.mxu1 %v12717_v56  ;;  %v5729_v60 = vpack.c.bf16 %v5692_v49, %v5692_v49  ;;  %v12760_v56 = vld [vmem:[%s16716_s6 + $0xc08] ss:$16 sps:$4 sm:$0xff]   ;;  %v12840_v49 = vld [vmem:[%s16716_s6 + $0xdac] ss:$16 sps:$4 sm:$0xff]   ;;  %v5627_v38 = vld [vmem:[#allocation4 + $0x77] sm:$0x1] }
 0x4d6   :  { %9380 = vmatprep.subr.bf16.mxu0 %v12720_v8  ;;  %v12765_v8 = vld [vmem:[%s16716_s6 + $0xc24] ss:$16 sps:$4 sm:$0xff]  }
 0x4d8   :  { %9053 = vmatpush1.bf16.msra.mxu1 %v12715_v39  ;;  %v5732_v39 = vpack.c.bf16 %v5707_v2, %v5707_v2  ;;  %v5591_v2 = vmax.f32 %v5582_v15, %v5584_v25  ;;  %v12879_v15 = vld [vmem:[%s16716_s6 + $0xe84] ss:$16 sps:$4 sm:$0xff]   ;;  %v12880_v25 = vld [vmem:[%s16716_s6 + $0xe88] ss:$16 sps:$4 sm:$0xff]  }
 0x4d9   :  { %9381 = vmatpush1.bf16.msra.mxu0 %v12718_v23  ;;  %9054 = vmatprep.subr.bf16.mxu1 %v12723_v44  ;;  %v12768_v23 = vld [vmem:[%s16716_s6 + $0xc2c] ss:$16 sps:$4 sm:$0xff]   ;;  %v12763_v44 = vld [vmem:[%s16716_s6 + $0xc20] ss:$16 sps:$4 sm:$0xff]  }
 0x4da   :  { %9382 = vmatprep.subr.bf16.mxu0 %v12726_v62  ;;  %v12766_v62 = vld [vmem:[%s16716_s6 + $0xc28] ss:$16 sps:$4 sm:$0xff]  }
 0x4dc   :  { %9055 = vmatpush1.bf16.msra.mxu1 %v12721_v58  ;;  %v12771_v58 = vld [vmem:[%s16716_s6 + $0xc44] ss:$16 sps:$4 sm:$0xff]  }
 0x4dd   :  { %9383 = vmatpush1.bf16.msra.mxu0 %v12724_v26  ;;  %9056 = vmatprep.subr.bf16.mxu1 %v12729_v0  ;;  %v12774_v26 = vld [vmem:[%s16716_s6 + $0xc4c] ss:$16 sps:$4 sm:$0xff]   ;;  %v12769_v0 = vld [vmem:[%s16716_s6 + $0xc40] ss:$16 sps:$4 sm:$0xff]  }
 0x4de   :  { %9384 = vmatprep.subr.bf16.mxu0 %v12732_v41  ;;  %v12772_v41 = vld [vmem:[%s16716_s6 + $0xc48] ss:$16 sps:$4 sm:$0xff]  }
 0x4e0   :  { %9057 = vmatpush1.bf16.msra.mxu1 %v12727_v22  ;;  %v12777_v22 = vld [vmem:[%s16716_s6 + $0xc64] ss:$16 sps:$4 sm:$0xff]  }
 0x4e1   :  { %9385 = vmatpush1.bf16.msra.mxu0 %v12730_v63  ;;  %9058 = vmatprep.subr.bf16.mxu1 %v12735_v51  ;;  %v12780_v63 = vld [vmem:[%s16716_s6 + $0xc6c] ss:$16 sps:$4 sm:$0xff]   ;;  %v12775_v51 = vld [vmem:[%s16716_s6 + $0xc60] ss:$16 sps:$4 sm:$0xff]  }
 0x4e2   :  { %9386 = vmatprep.subr.bf16.mxu0 %v12738_v19  ;;  %v12778_v19 = vld [vmem:[%s16716_s6 + $0xc68] ss:$16 sps:$4 sm:$0xff]  }
 0x4e4   :  { %9059 = vmatpush1.bf16.msra.mxu1 %v12733_v4  ;;  %v12789_v4 = vld [vmem:[%s16716_s6 + $0xca4] ss:$16 sps:$4 sm:$0xff]  }
 0x4e5   :  { %9387 = vmatpush1.bf16.msra.mxu0 %v12736_v42  ;;  %9060 = vmatprep.subr.bf16.mxu1 %v12741_v13  ;;  %v12787_v42 = vld [vmem:[%s16716_s6 + $0xca0] ss:$16 sps:$4 sm:$0xff]   ;;  %v12790_v13 = vld [vmem:[%s16716_s6 + $0xca8] ss:$16 sps:$4 sm:$0xff]  }
 0x4e6   :  { %9388 = vmatprep.subr.bf16.mxu0 %v12744_v18  ;;  %v12793_v18 = vld [vmem:[%s16716_s6 + $0xcc0] ss:$16 sps:$4 sm:$0xff]  }
 0x4e8   :  { %9061 = vmatpush1.bf16.msra.mxu1 %v12739_v37  ;;  %v12802_v37 = vld [vmem:[%s16716_s6 + $0xce8] ss:$16 sps:$4 sm:$0xff]  }
 0x4e9   :  { %9389 = vmatpush1.bf16.msra.mxu0 %v12742_v54  ;;  %9062 = vmatprep.subr.bf16.mxu1 %v12747_v3  ;;  %v12805_v54 = vld [vmem:[%s16716_s6 + $0xd00] ss:$16 sps:$4 sm:$0xff]   ;;  %v12808_v3 = vld [vmem:[%s16716_s6 + $0xd08] ss:$16 sps:$4 sm:$0xff]  }
 0x4ea   :  { %9390 = vmatprep.subr.bf16.mxu0 %v12750_v28  ;;  %v12811_v28 = vld [vmem:[%s16716_s6 + $0xd20] ss:$16 sps:$4 sm:$0xff]  }
 0x4ec   :  { %9063 = vmatpush1.bf16.msra.mxu1 %v12745_v34  ;;  %v12825_v34 = vld [vmem:[%s16716_s6 + $0xd64] ss:$16 sps:$4 sm:$0xff]  }
 0x4ed   :  { %9391 = vmatpush1.bf16.msra.mxu0 %v12748_v50  ;;  %9064 = vmatprep.subr.bf16.mxu1 %v12753_v11  ;;  %v12826_v50 = vld [vmem:[%s16716_s6 + $0xd68] ss:$16 sps:$4 sm:$0xff]   ;;  %v12831_v11 = vld [vmem:[%s16716_s6 + $0xd84] ss:$16 sps:$4 sm:$0xff]  }
 0x4ee   :  { %9392 = vmatprep.subr.bf16.mxu0 %v12756_v24  ;;  %v5587_v24 = vld [vmem:[#allocation4 + $0x78] sm:$0x1] }
 0x4f0   :  { %9065 = vmatpush1.bf16.msra.mxu1 %v12751_v43  ;;  %v12829_v43 = vld [vmem:[%s16716_s6 + $0xd80] ss:$16 sps:$4 sm:$0xff]  }
 0x4f1   :  { %9393 = vmatpush1.bf16.msra.mxu0 %v12754_v59  ;;  %9075 = vmatprep.subr.bf16.mxu1 %v12759_v29  ;;  %v5631_v59 = vld [vmem:[#allocation4 + $0x7f] sm:$0x1]  ;;  %v5593_v29 = vmax.f32 %v5587_v24, %v5589_v14  ;;  %v12877_v14 = vld [vmem:[%s16716_s6 + $0xe80] ss:$16 sps:$4 sm:$0xff]  }
 0x4f2   :  { %9403 = vmatprep.subr.bf16.mxu0 %v12762_v33  ;;  %v5625_v33 = vld [vmem:[#allocation4 + $0x76] sm:$0x1]  ;;  %v12882_v24 = vld [vmem:[%s16716_s6 + $0xe8c] ss:$16 sps:$4 sm:$0xff]  }
 0x4f3   :  { %9067 = vmatmul.mubr.bf16.vlgmr.msra.gmra.mrb[8].mxu1 %v5729_v60 }
 0x4f4   :  { %9395 = vmatmul.mubr.bf16.vlgmr.msra.gmra.mrb[24].mxu0 %v5729_v60  ;;  %9076 = vmatpush1.bf16.msra.mxu1 %v12757_v17  ;;  %v5586_v17 = vld [vmem:[#allocation4 + $0x38] sm:$0x1]  ;;  %v12835_v60 = vld [vmem:[%s16716_s6 + $0xda0] ss:$16 sps:$4 sm:$0xff]  }
 0x4f5   :  { %9107 = vmatprep.mubr.bf16.mxu1 %v5732_v39  ;;  %9404 = vmatpush1.bf16.msra.mxu0 %v12760_v56  ;;  %v5635_v56 = vmax.f32 %v5629_v31, %v5631_v59  ;;  %v12888_v31 = vld [vmem:[%s16716_s6 + $0xeac] ss:$16 sps:$4 sm:$0xff]   ;;  %v12891_v59 = vld [vmem:[%s16716_s6 + $0xec4] ss:$16 sps:$4 sm:$0xff]  }
 0x4f6   :  { %9435 = vmatprep.mubr.bf16.mxu0 %v5732_v39  ;;  %9077 = vmatprep.subr.bf16.mxu1 %v12765_v8  ;;  %v5588_v8 = vld [vmem:[#allocation4 + $0x39] sm:$0x1] }
 0x4f7   :  { %9405 = vmatprep.subr.bf16.mxu0 %v12768_v23  ;;  %v12838_v39 = vld [vmem:[%s16716_s6 + $0xda8] ss:$16 sps:$4 sm:$0xff]   ;;  %v12843_v23 = vld [vmem:[%s16716_s6 + $0xdc4] ss:$16 sps:$4 sm:$0xff]  }
 0x4f8   :  { %9078 = vmatpush1.bf16.msra.mxu1 %v12763_v44  ;;  %v5581_v44 = vld [vmem:[#allocation4 + $0x30] sm:$0x1] }
 0x4f9   :  { %9406 = vmatpush1.bf16.msra.mxu0 %v12766_v62  ;;  %9079 = vmatprep.subr.bf16.mxu1 %v12771_v58  ;;  %v5595_v62 = vmax.f32 %v5591_v2, %v5593_v29  ;;  %v12846_v58 = vld [vmem:[%s16716_s6 + $0xdcc] ss:$16 sps:$4 sm:$0xff]   ;;  %v12895_v2 = vld [vmem:[%s16716_s6 + $0xee0] ss:$16 sps:$4 sm:$0xff]  }
 0x4fa   :  { %9407 = vmatprep.subr.bf16.mxu0 %v12774_v26  ;;  %v5633_v26 = vmax.f32 %v5625_v33, %v5627_v38  ;;  %v12894_v29 = vld [vmem:[%s16716_s6 + $0xecc] ss:$16 sps:$4 sm:$0xff]   ;;  %v12892_v33 = vld [vmem:[%s16716_s6 + $0xec8] ss:$16 sps:$4 sm:$0xff]   ;;  %v12897_v38 = vld [vmem:[%s16716_s6 + $0xee4] ss:$16 sps:$4 sm:$0xff]  }
 0x4fc   :  { %9080 = vmatpush1.bf16.msra.mxu1 %v12769_v0  ;;  %v5583_v0 = vld [vmem:[#allocation4 + $0x31] sm:$0x1] }
 0x4fd   :  { %9408 = vmatpush1.bf16.msra.mxu0 %v12772_v41  ;;  %9081 = vmatprep.subr.bf16.mxu1 %v12777_v22  ;;  %v5628_v41 = vld [vmem:[#allocation4 + $0x3e] sm:$0x1]  ;;  %v5630_v22 = vld [vmem:[#allocation4 + $0x3f] sm:$0x1] }
 0x4fe   :  { %9409 = vmatprep.subr.bf16.mxu0 %v12780_v63  ;;  %v5592_v63 = vmax.f32 %v5586_v17, %v5588_v8  ;;  %v12900_v17 = vld [vmem:[%s16716_s6 + $0xeec] ss:$16 sps:$4 sm:$0xff]  }
 0x4ff   :  { %v12906_v8 = vld [vmem:[%s16716_s6 + $0xf0c] ss:$16 sps:$4 sm:$0xff]  }
 0x500   :  { %9082 = vmatpush1.bf16.msra.mxu1 %v12775_v51  ;;  %v12841_v51 = vld [vmem:[%s16716_s6 + $0xdc0] ss:$16 sps:$4 sm:$0xff]  }
 0x501   :  { %9410 = vmatpush1.bf16.msra.mxu0 %v12778_v19  ;;  %9083 = vmatprep.subr.bf16.mxu1 %v12783_v6  ;;  %v5624_v19 = vld [vmem:[#allocation4 + $0x36] sm:$0x1]  ;;  %v5637_v6 = vmax.f32 %v5633_v26, %v5635_v56  ;;  %v12910_v26 = vld [vmem:[%s16716_s6 + $0xf28] ss:$16 sps:$4 sm:$0xff]  }
 0x502   :  { %9411 = vmatprep.subr.bf16.mxu0 %v12786_v7  ;;  %v12844_v7 = vld [vmem:[%s16716_s6 + $0xdc8] ss:$16 sps:$4 sm:$0xff]   ;;  %v12903_v56 = vld [vmem:[%s16716_s6 + $0xf04] ss:$16 sps:$4 sm:$0xff]  }
 0x504   :  { %9084 = vmatpush1.bf16.msra.mxu1 %v12781_v52  ;;  %v12849_v52 = vld [vmem:[%s16716_s6 + $0xde4] ss:$16 sps:$4 sm:$0xff]  }
 0x505   :  { %9412 = vmatpush1.bf16.msra.mxu0 %v12784_v55  ;;  %9085 = vmatprep.subr.bf16.mxu1 %v12789_v4  ;;  %v5626_v55 = vld [vmem:[#allocation4 + $0x37] sm:$0x1]  ;;  %v5590_v4 = vmax.f32 %v5581_v44, %v5583_v0 }
 0x506   :  { %9413 = vmatprep.subr.bf16.mxu0 %v12792_v27  ;;  %v12852_v27 = vld [vmem:[%s16716_s6 + $0xdec] ss:$16 sps:$4 sm:$0xff]   ;;  %v12909_v44 = vld [vmem:[%s16716_s6 + $0xf24] ss:$16 sps:$4 sm:$0xff]  }
 0x507   :  { %v12915_v0 = vld [vmem:[%s16716_s6 + $0xf44] ss:$16 sps:$4 sm:$0xff]  }
 0x508   :  { %9086 = vmatpush1.bf16.msra.mxu1 %v12787_v42  ;;  %v5701_v42 = vrot.slane %v5595_v62, 7  ;;  %v12912_v62 = vld [vmem:[%s16716_s6 + $0xf2c] ss:$16 sps:$4 sm:$0xff]  }
 0x509   :  { %9414 = vmatpush1.bf16.msra.mxu0 %v12790_v13  ;;  %9087 = vmatprep.subr.bf16.mxu1 %v12795_v16  ;;  %v5634_v13 = vmax.f32 %v5628_v41, %v5630_v22  ;;  %v12847_v16 = vld [vmem:[%s16716_s6 + $0xde0] ss:$16 sps:$4 sm:$0xff]   ;;  %v12918_v41 = vld [vmem:[%s16716_s6 + $0xf4c] ss:$16 sps:$4 sm:$0xff]  }
 0x50a   :  { %9415 = vmatprep.subr.bf16.mxu0 %v12798_v57  ;;  %v5594_v57 = vmax.f32 %v5590_v4, %v5592_v63  ;;  %v12913_v22 = vld [vmem:[%s16716_s6 + $0xf40] ss:$16 sps:$4 sm:$0xff]   ;;  %v12916_v63 = vld [vmem:[%s16716_s6 + $0xf48] ss:$16 sps:$4 sm:$0xff]   ;;  %v5615_v4 = vld [vmem:[#allocation4 + $0x7c] sm:$0x1] }
 0x50c   :  { %9088 = vmatpush1.bf16.msra.mxu1 %v12793_v18  ;;  %v5632_v18 = vmax.f32 %v5624_v19, %v5626_v55  ;;  %v12924_v19 = vld [vmem:[%s16716_s6 + $0xf6c] ss:$16 sps:$4 sm:$0xff]  }
 0x50d   :  { %9416 = vmatpush1.bf16.msra.mxu0 %v12796_v21  ;;  %9089 = vmatprep.subr.bf16.mxu1 %v12801_v9  ;;  %v5716_v21 = vrot.slane %v5637_v6, 7  ;;  %v12850_v9 = vld [vmem:[%s16716_s6 + $0xde8] ss:$16 sps:$4 sm:$0xff]   ;;  %v12919_v6 = vld [vmem:[%s16716_s6 + $0xf60] ss:$16 sps:$4 sm:$0xff]  }
 0x50e   :  { %9417 = vmatprep.subr.bf16.mxu0 %v12804_v46  ;;  %v12855_v46 = vld [vmem:[%s16716_s6 + $0xe04] ss:$16 sps:$4 sm:$0xff]   ;;  %v12930_v55 = vld [vmem:[%s16716_s6 + $0xf8c] ss:$16 sps:$4 sm:$0xff]  }
 0x510   :  { %9090 = vmatpush1.bf16.msra.mxu1 %v12799_v5  ;;  %v5702_v5 = vsel %vm5641_vm1, %v5701_v42, %v5594_v57  ;;  %v5611_v42 = vld [vmem:[#allocation4 + $0x74] sm:$0x1]  ;;  %v12928_v57 = vld [vmem:[%s16716_s6 + $0xf88] ss:$16 sps:$4 sm:$0xff]  }
 0x511   :  { %9418 = vmatpush1.bf16.msra.mxu0 %v12802_v37  ;;  %9091 = vmatprep.subr.bf16.mxu1 %v12807_v45  ;;  %v12858_v37 = vld [vmem:[%s16716_s6 + $0xe0c] ss:$16 sps:$4 sm:$0xff]   ;;  %v5636_v45 = vmax.f32 %v5632_v18, %v5634_v13  ;;  %v12925_v13 = vld [vmem:[%s16716_s6 + $0xf80] ss:$16 sps:$4 sm:$0xff]   ;;  %v12933_v18 = vld [vmem:[%s16716_s6 + $0xfa4] ss:$16 sps:$4 sm:$0xff]  }
 0x512   :  { %9419 = vmatprep.subr.bf16.mxu0 %v12810_v1  ;;  %v12853_v1 = vld [vmem:[%s16716_s6 + $0xe00] ss:$16 sps:$4 sm:$0xff]  }
 0x514   :  { %9092 = vmatpush1.bf16.msra.mxu1 %v12805_v54  ;;  %v5717_v54 = vsel %vm5641_vm1, %v5716_v21, %v5636_v45  ;;  %v5616_v45 = vld [vmem:[#allocation4 + $0x3d] sm:$0x1] }
 0x515   :  { %9420 = vmatpush1.bf16.msra.mxu0 %v12808_v3  ;;  %9093 = vmatprep.subr.bf16.mxu1 %v12813_v48  ;;  %v5731_v3 = vpack.c.bf16 %v5702_v5, %v5702_v5  ;;  %v12856_v48 = vld [vmem:[%s16716_s6 + $0xe08] ss:$16 sps:$4 sm:$0xff]  }
 0x516   :  { %9421 = vmatprep.subr.bf16.mxu0 %v12816_v20  ;;  %v12861_v20 = vld [vmem:[%s16716_s6 + $0xe24] ss:$16 sps:$4 sm:$0xff]  }
 0x518   :  { %9094 = vmatpush1.bf16.msra.mxu1 %v12811_v28  ;;  %v5734_v28 = vpack.c.bf16 %v5717_v54, %v5717_v54  ;;  %v12939_v54 = vld [vmem:[%s16716_s6 + $0xfc4] ss:$16 sps:$4 sm:$0xff]  }
 0x519   :  { %9422 = vmatpush1.bf16.msra.mxu0 %v12814_v61  ;;  %9095 = vmatprep.subr.bf16.mxu1 %v12819_v53  ;;  %v12864_v61 = vld [vmem:[%s16716_s6 + $0xe2c] ss:$16 sps:$4 sm:$0xff]   ;;  %v12859_v53 = vld [vmem:[%s16716_s6 + $0xe20] ss:$16 sps:$4 sm:$0xff]  }
 0x51a   :  { %9423 = vmatprep.subr.bf16.mxu0 %v12822_v40  ;;  %v12862_v40 = vld [vmem:[%s16716_s6 + $0xe28] ss:$16 sps:$4 sm:$0xff]  }
 0x51c   :  { %9096 = vmatpush1.bf16.msra.mxu1 %v12817_v36  ;;  %v12867_v36 = vld [vmem:[%s16716_s6 + $0xe44] ss:$16 sps:$4 sm:$0xff]  }
 0x51d   :  { %9424 = vmatpush1.bf16.msra.mxu0 %v12820_v32  ;;  %9097 = vmatprep.subr.bf16.mxu1 %v12825_v34  ;;  %v12870_v32 = vld [vmem:[%s16716_s6 + $0xe4c] ss:$16 sps:$4 sm:$0xff]   ;;  %v12865_v34 = vld [vmem:[%s16716_s6 + $0xe40] ss:$16 sps:$4 sm:$0xff]  }
 0x51e   :  { %9425 = vmatprep.subr.bf16.mxu0 %v12828_v30  ;;  %v12868_v30 = vld [vmem:[%s16716_s6 + $0xe48] ss:$16 sps:$4 sm:$0xff]  }
 0x520   :  { %9098 = vmatpush1.bf16.msra.mxu1 %v12823_v10  ;;  %v12873_v10 = vld [vmem:[%s16716_s6 + $0xe64] ss:$16 sps:$4 sm:$0xff]  }
 0x521   :  { %9426 = vmatpush1.bf16.msra.mxu0 %v12826_v50  ;;  %9099 = vmatprep.subr.bf16.mxu1 %v12831_v11  ;;  %v12876_v50 = vld [vmem:[%s16716_s6 + $0xe6c] ss:$16 sps:$4 sm:$0xff]   ;;  %v12871_v11 = vld [vmem:[%s16716_s6 + $0xe60] ss:$16 sps:$4 sm:$0xff]  }
 0x522   :  { %9427 = vmatprep.subr.bf16.mxu0 %v12834_v47  ;;  %v12874_v47 = vld [vmem:[%s16716_s6 + $0xe68] ss:$16 sps:$4 sm:$0xff]  }
 0x524   :  { %9100 = vmatpush1.bf16.msra.mxu1 %v12829_v43  ;;  %v12885_v43 = vld [vmem:[%s16716_s6 + $0xea4] ss:$16 sps:$4 sm:$0xff]  }
 0x525   :  { %9428 = vmatpush1.bf16.msra.mxu0 %v12832_v12  ;;  %9101 = vmatprep.subr.bf16.mxu1 %v12837_v35  ;;  %v12883_v12 = vld [vmem:[%s16716_s6 + $0xea0] ss:$16 sps:$4 sm:$0xff]   ;;  %v12886_v35 = vld [vmem:[%s16716_s6 + $0xea8] ss:$16 sps:$4 sm:$0xff]  }
 0x526   :  { %9429 = vmatprep.subr.bf16.mxu0 %v12840_v49  ;;  %v12889_v49 = vld [vmem:[%s16716_s6 + $0xec0] ss:$16 sps:$4 sm:$0xff]  }
 0x528   :  { %9102 = vmatpush1.bf16.msra.mxu1 %v12835_v60  ;;  %v12898_v60 = vld [vmem:[%s16716_s6 + $0xee8] ss:$16 sps:$4 sm:$0xff]  }
 0x529   :  { %9430 = vmatpush1.bf16.msra.mxu0 %v12838_v39  ;;  %9103 = vmatprep.subr.bf16.mxu1 %v12843_v23  ;;  %v12901_v39 = vld [vmem:[%s16716_s6 + $0xf00] ss:$16 sps:$4 sm:$0xff]   ;;  %v12904_v23 = vld [vmem:[%s16716_s6 + $0xf08] ss:$16 sps:$4 sm:$0xff]  }
 0x52a   :  { %9431 = vmatprep.subr.bf16.mxu0 %v12846_v58  ;;  %v12907_v58 = vld [vmem:[%s16716_s6 + $0xf20] ss:$16 sps:$4 sm:$0xff]  }
 0x52c   :  { %9104 = vmatpush1.bf16.msra.mxu1 %v12841_v51  ;;  %v12921_v51 = vld [vmem:[%s16716_s6 + $0xf64] ss:$16 sps:$4 sm:$0xff]  }
 0x52d   :  { %9432 = vmatpush1.bf16.msra.mxu0 %v12844_v7  ;;  %9105 = vmatprep.subr.bf16.mxu1 %v12849_v52  ;;  %v12922_v7 = vld [vmem:[%s16716_s6 + $0xf68] ss:$16 sps:$4 sm:$0xff]   ;;  %v12927_v52 = vld [vmem:[%s16716_s6 + $0xf84] ss:$16 sps:$4 sm:$0xff]  }
 0x52e   :  { %9433 = vmatprep.subr.bf16.mxu0 %v12852_v27  ;;  %v5617_v27 = vld [vmem:[#allocation4 + $0x7d] sm:$0x1] }
 0x52f   :  { %v5621_v21 = vmax.f32 %v5615_v4, %v5617_v27 }
 0x530   :  { %9106 = vmatpush1.bf16.msra.mxu1 %v12847_v16  ;;  %v5613_v16 = vld [vmem:[#allocation4 + $0x75] sm:$0x1] }
 0x531   :  { %9434 = vmatpush1.bf16.msra.mxu0 %v12850_v9  ;;  %9116 = vmatprep.subr.bf16.mxu1 %v12855_v46  ;;  %v12936_v9 = vld [vmem:[%s16716_s6 + $0xfac] ss:$16 sps:$4 sm:$0xff]   ;;  %v5619_v5 = vmax.f32 %v5611_v42, %v5613_v16 }
 0x532   :  { %9444 = vmatprep.subr.bf16.mxu0 %v12858_v37  ;;  %v5614_v46 = vld [vmem:[#allocation4 + $0x3c] sm:$0x1]  ;;  %v12931_v37 = vld [vmem:[%s16716_s6 + $0xfa0] ss:$16 sps:$4 sm:$0xff]  }
 0x533   :  { %9108 = vmatmul.mubr.bf16.vlgmr.msra.gmra.mrb[8].mxu1 %v5731_v3 }
 0x534   :  { %9436 = vmatmul.mubr.bf16.vlgmr.msra.gmra.mrb[24].mxu0 %v5731_v3  ;;  %9117 = vmatpush1.bf16.msra.mxu1 %v12853_v1  ;;  %v12934_v1 = vld [vmem:[%s16716_s6 + $0xfa8] ss:$16 sps:$4 sm:$0xff]   ;;  %v5623_v3 = vmax.f32 %v5619_v5, %v5621_v21 }
 0x535   :  { %9148 = vmatprep.mubr.bf16.mxu1 %v5734_v28  ;;  %9445 = vmatpush1.bf16.msra.mxu0 %v12856_v48  ;;  %v12942_v48 = vld [vmem:[%s16716_s6 + $0xfcc] ss:$16 sps:$4 sm:$0xff]  }
 0x536   :  { %9476 = vmatprep.mubr.bf16.mxu0 %v5734_v28  ;;  %9118 = vmatprep.subr.bf16.mxu1 %v12861_v20  ;;  %v5610_v20 = vld [vmem:[#allocation4 + $0x34] sm:$0x1]  ;;  %v5612_v28 = vld [vmem:[#allocation4 + $0x35] sm:$0x1]  ;;  %v12967_v5 = vld [vmem:[%s16718_s8 + $0xc8] sm:$0xff]  }
 0x537   :  { %9446 = vmatprep.subr.bf16.mxu0 %v12864_v61  ;;  %v5620_v61 = vmax.f32 %v5614_v46, %v5616_v45  ;;  %v12968_v45 = vld [vmem:[%s16718_s8 + $0x88] sm:$0xff]  }
 0x538   :  { %9119 = vmatpush1.bf16.msra.mxu1 %v12859_v53  ;;  %v12937_v53 = vld [vmem:[%s16716_s6 + $0xfc0] ss:$16 sps:$4 sm:$0xff]  }
 0x539   :  { %9447 = vmatpush1.bf16.msra.mxu0 %v12862_v40  ;;  %9120 = vmatprep.subr.bf16.mxu1 %v12867_v36  ;;  %v12940_v40 = vld [vmem:[%s16716_s6 + $0xfc8] ss:$16 sps:$4 sm:$0xff]   ;;  %v12945_v36 = vld [vmem:[%s16716_s6 + $0xfe4] ss:$16 sps:$4 sm:$0xff]  }
 0x53a   :  { %9448 = vmatprep.subr.bf16.mxu0 %v12870_v32  ;;  %v5618_v32 = vmax.f32 %v5610_v20, %v5612_v28  ;;  %v12973_v20 = vld [vmem:[%s16718_s8 + $0xe0] sm:$0xff]  }
 0x53b   :  { %v12974_v28 = vld [vmem:[%s16718_s8 + $0xa0] sm:$0xff]  }
 0x53c   :  { %9121 = vmatpush1.bf16.msra.mxu1 %v12865_v34  ;;  %v12948_v34 = vld [vmem:[%s16716_s6 + $0xfec] ss:$16 sps:$4 sm:$0xff]  }
 0x53d   :  { %9449 = vmatpush1.bf16.msra.mxu0 %v12868_v30  ;;  %9122 = vmatprep.subr.bf16.mxu1 %v12873_v10  ;;  %v5711_v30 = vrot.slane %v5623_v3, 7  ;;  %v12943_v10 = vld [vmem:[%s16716_s6 + $0xfe0] ss:$16 sps:$4 sm:$0xff]   ;;  %v12971_v3 = vld [vmem:[%s16718_s8 + $0xd8] sm:$0xff]  }
 0x53e   :  { %9450 = vmatprep.subr.bf16.mxu0 %v12876_v50  ;;  %v5622_v50 = vmax.f32 %v5618_v32, %v5620_v61  ;;  %v12977_v32 = vld [vmem:[%s16718_s8 + $0xf0] sm:$0xff]  }
 0x540   :  { %9123 = vmatpush1.bf16.msra.mxu1 %v12871_v11  ;;  %v12946_v11 = vld [vmem:[%s16716_s6 + $0xfe8] ss:$16 sps:$4 sm:$0xff]  }
 0x541   :  { %9451 = vmatpush1.bf16.msra.mxu0 %v12874_v47  ;;  %9124 = vmatprep.subr.bf16.mxu1 %v12879_v15  ;;  %v12949_v47 = vld [vmem:[%s16718_s8 + $0x40] sm:$0xff]   ;;  %v5712_v15 = vsel %vm5641_vm1, %v5711_v30, %v5622_v50  ;;  %v12980_v50 = vld [vmem:[%s16718_s8 + $0xb8] sm:$0xff]  }
 0x542   :  { %9452 = vmatprep.subr.bf16.mxu0 %v12882_v24  ;;  %v12950_v24 = vld [vmem:[%s16718_s8] sm:$0xff]  }
 0x544   :  { %9125 = vmatpush1.bf16.msra.mxu1 %v12877_v14  ;;  %v5733_v14 = vpack.c.bf16 %v5712_v15, %v5712_v15 }
 0x545   :  { %9453 = vmatpush1.bf16.msra.mxu0 %v12880_v25  ;;  %9126 = vmatprep.subr.bf16.mxu1 %v12885_v43  ;;  %v12951_v25 = vld [vmem:[%s16718_s8 + $0x48] sm:$0xff]  }
 0x546   :  { %9454 = vmatprep.subr.bf16.mxu0 %v12888_v31  ;;  %v12952_v43 = vld [vmem:[%s16718_s8 + $0x8] sm:$0xff]   ;;  %v12953_v31 = vld [vmem:[%s16718_s8 + $0x50] sm:$0xff]  }
 0x548   :  { %9127 = vmatpush1.bf16.msra.mxu1 %v12883_v12  ;;  %v12954_v12 = vld [vmem:[%s16718_s8 + $0x10] sm:$0xff]  }
 0x549   :  { %9455 = vmatpush1.bf16.msra.mxu0 %v12886_v35  ;;  %9128 = vmatprep.subr.bf16.mxu1 %v12891_v59  ;;  %v12955_v35 = vld [vmem:[%s16718_s8 + $0x58] sm:$0xff]  }
 0x54a   :  { %9456 = vmatprep.subr.bf16.mxu0 %v12894_v29  ;;  %v12956_v59 = vld [vmem:[%s16718_s8 + $0x18] sm:$0xff]   ;;  %v12957_v29 = vld [vmem:[%s16718_s8 + $0x60] sm:$0xff]  }
 0x54c   :  { %9129 = vmatpush1.bf16.msra.mxu1 %v12889_v49  ;;  %v12958_v49 = vld [vmem:[%s16718_s8 + $0x20] sm:$0xff]  }
 0x54d   :  { %9457 = vmatpush1.bf16.msra.mxu0 %v12892_v33  ;;  %9130 = vmatprep.subr.bf16.mxu1 %v12897_v38  ;;  %v12959_v33 = vld [vmem:[%s16718_s8 + $0x68] sm:$0xff]  }
 0x54e   :  { %9458 = vmatprep.subr.bf16.mxu0 %v12900_v17  ;;  %v12960_v38 = vld [vmem:[%s16718_s8 + $0x28] sm:$0xff]   ;;  %v12961_v17 = vld [vmem:[%s16718_s8 + $0x70] sm:$0xff]  }
 0x550   :  { %9131 = vmatpush1.bf16.msra.mxu1 %v12895_v2  ;;  %v12962_v2 = vld [vmem:[%s16718_s8 + $0x30] sm:$0xff]  }
 0x551   :  { %9459 = vmatpush1.bf16.msra.mxu0 %v12898_v60  ;;  %9132 = vmatprep.subr.bf16.mxu1 %v12903_v56  ;;  %v12963_v60 = vld [vmem:[%s16718_s8 + $0x78] sm:$0xff]  }
 0x552   :  { %9460 = vmatprep.subr.bf16.mxu0 %v12906_v8  ;;  %v12964_v56 = vld [vmem:[%s16718_s8 + $0x38] sm:$0xff]   ;;  %v12965_v8 = vld [vmem:[%s16718_s8 + $0xc0] sm:$0xff]  }
 0x554   :  { %9133 = vmatpush1.bf16.msra.mxu1 %v12901_v39  ;;  %v6249_v39 = vlaneseq }
 0x555   :  { %9461 = vmatpush1.bf16.msra.mxu0 %v12904_v23  ;;  %9134 = vmatprep.subr.bf16.mxu1 %v12909_v44 }
 0x556   :  { %9462 = vmatprep.subr.bf16.mxu0 %v12912_v62  ;;  %v6250_v23 = vshrl.u32 %v6249_v39, 7  ;;  %v6247_v62 = vld [vmem:[%s16717_s7] sm:$0xf] }
 0x558   :  { %9135 = vmatpush1.bf16.msra.mxu1 %v12907_v58  ;;  %v6251_v44 = vsub.s32 0, %v6250_v23  ;;  %v6255_v58 = vsub.s32 1, %v6250_v23  ;;  %v6259_v61 = vsub.s32 2, %v6250_v23 }
 0x559   :  { %9463 = vmatpush1.bf16.msra.mxu0 %v12910_v26  ;;  %9136 = vmatprep.subr.bf16.mxu1 %v12915_v0  ;;  %v6263_v26 = vsub.s32 3, %v6250_v23 }
 0x55a   :  { %9464 = vmatprep.subr.bf16.mxu0 %v12918_v41  ;;  %v6252_v0 = vrot.slane %v6247_v62, %v6251_v44  ;;  %v6256_v41 = vrot.slane %v6247_v62, %v6255_v58 }
 0x55c   :  { %9137 = vmatpush1.bf16.msra.mxu1 %v12913_v22  ;;  %v6264_v22 = vrot.slane %v6247_v62, %v6263_v26 }
 0x55d   :  { %9465 = vmatpush1.bf16.msra.mxu0 %v12916_v63  ;;  %9138 = vmatprep.subr.bf16.mxu1 %v12921_v51 }
 0x55e   :  { %9466 = vmatprep.subr.bf16.mxu0 %v12924_v19 }
 0x560   :  { %9139 = vmatpush1.bf16.msra.mxu1 %v12919_v6 }
 0x561   :  { %9467 = vmatpush1.bf16.msra.mxu0 %v12922_v7  ;;  %9140 = vmatprep.subr.bf16.mxu1 %v12927_v52 }
 0x562   :  { %9468 = vmatprep.subr.bf16.mxu0 %v12930_v55 }
 0x564   :  { %9141 = vmatpush1.bf16.msra.mxu1 %v12925_v13 }
 0x565   :  { %9469 = vmatpush1.bf16.msra.mxu0 %v12928_v57  ;;  %9142 = vmatprep.subr.bf16.mxu1 %v12933_v18 }
 0x566   :  { %9470 = vmatprep.subr.bf16.mxu0 %v12936_v9  ;;  %v12966_v9 = vld [vmem:[%s16718_s8 + $0x80] sm:$0xff]  }
 0x568   :  { %9143 = vmatpush1.bf16.msra.mxu1 %v12931_v37 }
 0x569   :  { %9471 = vmatpush1.bf16.msra.mxu0 %v12934_v1  ;;  %9144 = vmatprep.subr.bf16.mxu1 %v12939_v54  ;;  %v12969_v1 = vld [vmem:[%s16718_s8 + $0xd0] sm:$0xff]  }
 0x56a   :  { %9472 = vmatprep.subr.bf16.mxu0 %v12942_v48  ;;  %v12970_v54 = vld [vmem:[%s16718_s8 + $0x90] sm:$0xff]   ;;  %v12972_v48 = vld [vmem:[%s16718_s8 + $0x98] sm:$0xff]  }
 0x56c   :  { %9145 = vmatpush1.bf16.msra.mxu1 %v12937_v53  ;;  %v12975_v53 = vld [vmem:[%s16718_s8 + $0xe8] sm:$0xff]  }
 0x56d   :  { %9473 = vmatpush1.bf16.msra.mxu0 %v12940_v40  ;;  %9146 = vmatprep.subr.bf16.mxu1 %v12945_v36  ;;  %v12976_v40 = vld [vmem:[%s16718_s8 + $0xa8] sm:$0xff]   ;;  %v6260_v36 = vrot.slane %v6247_v62, %v6259_v61 }
 0x56e   :  { %9474 = vmatprep.subr.bf16.mxu0 %v12948_v34  ;;  %v12978_v34 = vld [vmem:[%s16718_s8 + $0xb0] sm:$0xff]  }
 0x570   :  { %9147 = vmatpush1.bf16.msra.mxu1 %v12943_v10  ;;  %v12979_v10 = vld [vmem:[%s16718_s8 + $0xf8] sm:$0xff]   ;;  %s13012_s8 = smov [#allocation5]  }
 0x571   :  { %9475 = vmatpush1.bf16.msra.mxu0 %v12946_v11  ;;  %11618 = vmatprep.subr.bf16.mxu1 %v12949_v47 }
 0x573   :  { %9149 = vmatmul.mubr.bf16.vlgmr.msra.gmra.mrb[8].mxu1 %v5733_v14 }
 0x574   :  { %9477 = vmatmul.mubr.bf16.vlgmr.msra.gmra.mrb[24].mxu0 %v5733_v14  ;;  %11619 = vmatpush3.bf16.msra.mxu1 %v12950_v24 }
 0x575   :  { %11620 = vmatprep.subr.bf16.mxu1 %v12951_v25 }
 0x578   :  { %11621 = vmatpush3.bf16.msra.mxu1 %v12952_v43 }
 0x579   :  { %11622 = vmatprep.subr.bf16.mxu1 %v12953_v31  ;;  %v10725_v31 = vld [vmem:[%s16719_s9] ss:$0 sm:$0xff]  ;;  %s9857_s9 = sshll.u32 %s13012_s8, 4  ;;  %s9858_s9 = int_to_ptr.vmem [resolvable:$true] %s9857_s9 }
 0x57a   :  { %s12988_s3 = scalar_lea.vmem %s9858_s9, 32  ;;  %p12993_p1 = scmp.lt.s32.totalorder %s9858_s9, %s9858_s9 }
 0x57b   :  { %p12989_p0 = scmp.ne.s32.totalorder %s9858_s9, %s12988_s3  ;;  %p12994_p2 = scmp.lt.s32.totalorder %s12988_s3, %s12988_s3 }
 0x57c   :  { %11623 = vmatpush3.bf16.msra.mxu1 %v12954_v12 }
 0x57d   :  { %11624 = vmatprep.subr.bf16.mxu1 %v12955_v35  ;;  %p12995_p3 = por %p12994_p2, %p12993_p1 }
 0x57f   :  { %p12996_p4 = pnand %p12995_p3, %p12989_p0 }
 0x580   :  { %11625 = vmatpush3.bf16.msra.mxu1 %v12956_v59 }
 0x581   :  { %11626 = vmatprep.subr.bf16.mxu1 %v12957_v29 }
 0x584   :  { %11627 = vmatpush3.bf16.msra.mxu1 %v12958_v49 }
 0x585   :  { %11628 = vmatprep.subr.bf16.mxu1 %v12959_v33 }
 0x588   :  { %11629 = vmatpush3.bf16.msra.mxu1 %v12960_v38 }
 0x589   :  { %11630 = vmatprep.subr.bf16.mxu1 %v12961_v17 }
 0x58c   :  { %11631 = vmatpush3.bf16.msra.mxu1 %v12962_v2 }
 0x58d   :  { %11632 = vmatprep.subr.bf16.mxu1 %v12963_v60 }
 0x590   :  { %11633 = vmatpush3.bf16.msra.mxu1 %v12964_v56 }
 0x591   :  { %11640 = vmatprep.subr.bf16.mxu1 %v12965_v8 }
 0x646   :  { %v9150_v63 = vpop.f32.mrb[8].mxu1 }
 0x647   :  { %v11846_v51 = vadd.f32 %v9150_v63, %v6252_v0  ;;  %v9478_v19 = vpop.f32.mrb[24].mxu0  ;;  %v9152_v6 = vpop.f32.mrb[9].mxu1 }
 0x648   :  { %v11847_v7 = vadd.f32 %v9152_v6, %v6256_v41  ;;  %v9480_v52 = vpop.f32.mrb[25].mxu0  ;;  %v9154_v55 = vpop.f32.mrb[10].mxu1  ;;  %v11848_v30 = vadd.f32 %v9478_v19, %v6260_v36 }
 0x649   :  { %v9485_v4 = vmax.f32 %v11846_v51, 0.0  ;;  %v11849_v27 = vadd.f32 %v9480_v52, %v6264_v22  ;;  %v9482_v42 = vpop.f32.mrb[26].mxu0  ;;  %v9155_v13 = vpop.f32.mrb[11].mxu1 }
 0x64a   :  { %v9486_v16 = vmax.f32 %v11847_v7, 0.0  ;;  %v9483_v57 = vpop.f32.mrb[27].mxu0  ;;  %v9487_v11 = vmax.f32 %v11848_v30, 0.0 }
 0x64b   :  { %v9488_v18 = vmax.f32 %v11849_v27, 0.0  ;;  %v9489_v46 = vpack.c.bf16 %v9485_v4, %v9485_v4 }
 0x64c   :  { %v9490_v21 = vpack.c.bf16 %v9486_v16, %v9486_v16  ;;  %v9491_v47 = vpack.c.bf16 %v9487_v11, %v9487_v11 }
 0x64d   :  { %v9492_v37 = vpack.c.bf16 %v9488_v18, %v9488_v18 }
 0x64e   :  { %9788 = vmatprep.mubr.bf16.mxu1 %v9490_v21 }
 0x64f   :  { %9789 = vmatmul.mubr.bf16.vlgmr.msra.gmra.mrb[12].mxu1 %v9489_v46 }
 0x650   :  { %11641 = vmatpush3.bf16.msra.mxu1 %v12966_v9  ;;  %9828 = vmatprep.mubr.bf16.mxu1 %v9492_v37 }
 0x651   :  { %11642 = vmatprep.subr.bf16.mxu1 %v12967_v5 }
 0x654   :  { %11643 = vmatpush3.bf16.msra.mxu1 %v12968_v45 }
 0x655   :  { %11644 = vmatprep.subr.bf16.mxu1 %v12969_v1 }
 0x658   :  { %11645 = vmatpush3.bf16.msra.mxu1 %v12970_v54 }
 0x659   :  { %11646 = vmatprep.subr.bf16.mxu1 %v12971_v3 }
 0x65c   :  { %11647 = vmatpush3.bf16.msra.mxu1 %v12972_v48 }
 0x65d   :  { %11648 = vmatprep.subr.bf16.mxu1 %v12973_v20 }
 0x660   :  { %11649 = vmatpush3.bf16.msra.mxu1 %v12974_v28 }
 0x661   :  { %11650 = vmatprep.subr.bf16.mxu1 %v12975_v53 }
 0x664   :  { %11651 = vmatpush3.bf16.msra.mxu1 %v12976_v40 }
 0x665   :  { %11652 = vmatprep.subr.bf16.mxu1 %v12977_v32 }
 0x668   :  { %11653 = vmatpush3.bf16.msra.mxu1 %v12978_v34 }
 0x669   :  { %11654 = vmatprep.subr.bf16.mxu1 %v12979_v10 }
 0x66c   :  { %11655 = vmatpush3.bf16.msra.mxu1 %v12980_v50 }
 0x66f   :  { %9829 = vmatmul.mubr.bf16.vlgmr.msra.gmra.mrb[16].mxu1 %v9491_v47 }
 0x722   :  { %v11634_v15 = vpop.f32.mrb[12].mxu1 }
 0x723   :  { %v11635_v24 = vpop.f32.mrb[13].mxu1 }
 0x724   :  { %v11636_v14 = vadd.f32 %v11635_v24, %v11634_v15  ;;  %v11637_v25 = vpop.f32.mrb[14].mxu1 }
 0x725   :  { %v11638_v43 = vpop.f32.mrb[15].mxu1 }
 0x726   :  { %v9791_v59 = vadd.f32 %v11636_v14, %v10725_v31 }
 0x742   :  { %v11656_v12 = vpop.f32.mrb[16].mxu1 }
 0x743   :  { %v11657_v35 = vpop.f32.mrb[17].mxu1 }
 0x744   :  { %v11658_v29 = vadd.f32 %v11657_v35, %v11656_v12  ;;  %v11659_v49 = vpop.f32.mrb[18].mxu1 }
 0x745   :  { %v11660_v33 = vpop.f32.mrb[19].mxu1 }
 0x746   :  { %v9831_v38 = vadd.f32 %v11658_v29, %v9791_v59 }
 0x748   :  { %v9837_v17 = vsel %vm9836_vm2, %v9831_v38, -inf }
 0x749   :  { %9838 = vmax.xlane.f32.xlu0 %v9837_v17 }
 0x7d6   :  { %v9839_v2 = vpop.xlane.xlu0 %9838 }
 0x7d7   :  { %v9840_v60 = vsub.f32 %v9831_v38, %v9839_v2 }
 0x7d9   :  { %v9841_v56 = vmul.f32 1.442695, %v9840_v60 }
 0x7db   :  { %12981 = vpow2.f32 %v9841_v56 }
 0x7e5   :  { %v12982_v8 = vpop.eup %12981 }
 0x7e6   :  { %v9843_v39 = vsel %vm9836_vm2, %v12982_v8, 0.0 }
 0x7e7   :  { %9844 = vadd.xlane.f32.xlu0 %v9843_v39 }
 0x874   :  { %v9845_v23 = vpop.xlane.xlu0 %9844 }
 0x875   :  { %12983 = vlog2.f32 %v9845_v23 }
 0x87f   :  { %v12984_v44 = vpop.eup %12983 }
 0x880   :  { %v9847_v62 = vmul.f32 0.6931472, %v12984_v44 }
 0x882   :  { %v9848_v58 = vadd.f32 %v9847_v62, %v9839_v2 }
 0x884   :  { %v9849_v26 = vsub.f32 %v9831_v38, %v9848_v58 }
 0x886   :  { %9850 = vst [vmem:[#allocation5] sm:$0x3] %v9849_v26 }
 0x887   :  { %12999 = shalt.err (!%p12996_p4)
}
 0x888   :  { %s13000_s0 = scalar_lea.hbm %s16720_s10, 32 }
 0x889   :  { %p13001_p5 = scmp.ne.s32.totalorder %s16720_s10, %s13000_s0  ;;  %p13004_p6 = scmp.lt.u32.totalorder %s13000_s0, %s16720_s10 }
 0x88b   :  { %p13006_p7 = pnand %p13004_p6, %p13001_p5 }
 0x88d   :  { %13009 = shalt.err (!%p13006_p7)
}
 0x88e   :  { %9860 = dma.vmem_to_hbm [thread:$0]  %s9858_s9, 32, %s16720_s10, [#allocation6]  }
 0x88f   :  { %13010 = dma.done.wait [#allocation6], 32  }
 0x890   :  { %13011 = vsyncadd [#allocation6], 4294967264 }
 0x891   :  { %9864 = vsyncpa [#allocation6], 1 }

</bundles_post_ra>
